<compile_context>
chip_gen: v7x
topology: tpu7x:2x2x1
jax: 0.10.0
libtpu: 0.0.40
codegen_flags: <defaults>
</compile_context>

<pallas_src>
import jax
import jax.numpy as jnp
from jax import lax
from jax.experimental import pallas as pl
from jax.experimental.pallas import tpu as pltpu


_VMEM_LIMIT = 32 * 1024 * 1024   # ~12 MiB actually used; safe on v5e/v6e/v7x

# Fixed geometry implied by the PyTorch module (28x28 grayscale input):
#   conv1: 28 -> 26 -> pool 13   (32 ch)
#   conv2: 13 -> 11 -> pool  5   (64 ch)
#   conv3:  5 ->  3 -> pool  1   (128 ch)
_H0, _H1, _H2, _H3 = 28, 13, 5, 1
_C1, _C2, _C3 = 32, 64, 128
_FC1, _NCLS = 512, 26


# ----------------------------------------------------------------------------
# Wrapper-side weight / selection-matrix construction (tiny, data-independent)
# ----------------------------------------------------------------------------
def _pool_conv_weight(w, w_in, w_pool):
    """w: (3,3,Ci,Co) conv weight -> (2, 3, w_in*Ci, w_pool*Co) block-banded matrices.

    out[dx, kh, xin*Ci+ci, xp*Co+co] = w[kh, xin-(2*xp+dx), ci, co]  (0 if kw not in 0..2),
    so that (input row slab) @ out[dx, kh] evaluates the conv at pool x-offset dx.
    """
    ci, co = w.shape[2], w.shape[3]
    xin = jnp.arange(w_in)[:, None]
    xp = jnp.arange(w_pool)[None, :]
    per_dx = []
    for dx in (0, 1):
        kw_idx = xin - (2 * xp + dx)                          # (w_in, w_pool)
        valid = ((kw_idx >= 0) & (kw_idx <= 2)).astype(w.dtype)
        kw_clip = jnp.clip(kw_idx, 0, 2)
        per_kh = []
        for kh in range(3):
            g = w[kh][kw_clip] * valid[..., None, None]       # (w_in, w_pool, Ci, Co)
            per_kh.append(jnp.transpose(g, (0, 2, 1, 3)).reshape(w_in * ci, w_pool * co))
        per_dx.append(jnp.stack(per_kh))
    return jnp.stack(per_dx)                                  # (2, 3, w_in*Ci, w_pool*Co)


def _row_select(n_out, n_in):
    """(4, n_out, n_in) f32 with S[j, t, r] = 1 iff r == j + 2*t (stride-2 row picks)."""
    j = jnp.arange(4)[:, None, None]
    t = jnp.arange(n_out)[None, :, None]
    r = jnp.arange(n_in)[None, None, :]
    return (r == j + 2 * t).astype(jnp.float32)


# ----------------------------------------------------------------------------
# The single fused kernel (one image per grid step)
# ----------------------------------------------------------------------------
def _fused_net_kernel(x_ref, w1_ref, b1_ref, s2_ref, w2_ref, b2_ref,
                      s3_ref, w3_ref, b3_ref, wf1_ref, bf1_ref,
                      wf2_ref, bf2_ref, o_ref):
    f32 = jnp.float32

    def conv_pool(rows, w_ref, b_ref):
        # rows: list of 4 (Hp, W_in*Ci) slabs (stride-2 row phases 0..3)
        best = None
        for dy in range(2):
            for dx in range(2):
                z = None
                for kh in range(3):
                    t = jnp.dot(rows[dy + kh], w_ref[dx, kh, :, :],
                                preferred_element_type=f32)
                    z = t if z is None else z + t
                best = z if best is None else jnp.maximum(best, z)
        # shared per-channel bias + monotone ReLU commute with the pool max (exact)
        return jnp.maximum(best + b_ref[...], 0.0)

    # Stage 1: conv1 + ReLU + pool.  Input rows arrive pre-split by stride-2 phase.
    rows1 = [x_ref[0, j, :, :] for j in range(4)]                 # 4 x (13, 28)
    p1 = conv_pool(rows1, w1_ref, b1_ref)                         # (13, 13*32)

    # Stage 2: conv2 + ReLU + pool.  Row extraction via exact 0/1 selection matmuls.
    rows2 = [jnp.dot(s2_ref[j, :, :], p1, preferred_element_type=f32)
             for j in range(4)]                                   # 4 x (5, 13*32)
    p2 = conv_pool(rows2, w2_ref, b2_ref)                         # (5, 5*64)

    # Stage 3: conv3 + ReLU + pool (spatial collapses to 1x1 -> 128-dim feature).
    rows3 = [jnp.dot(s3_ref[j, :, :], p2, preferred_element_type=f32)
             for j in range(4)]                                   # 4 x (1, 5*64)
    feat = conv_pool(rows3, w3_ref, b3_ref)                       # (1, 128)

    # Head: fc1 + ReLU + fc2 + log_softmax.
    h = jnp.maximum(
        jnp.dot(feat, wf1_ref[...], preferred_element_type=f32) + bf1_ref[...], 0.0)
    logits = jnp.dot(h, wf2_ref[...], preferred_element_type=f32) + bf2_ref[...]
    m = jnp.max(logits, axis=-1, keepdims=True)
    lse = m + jnp.log(jnp.sum(jnp.exp(logits - m), axis=-1, keepdims=True))
    o_ref[0, :, :] = (logits - lse).astype(o_ref.dtype)


# ----------------------------------------------------------------------------
# Forward pass (single pallas_call) and pure-JAX reference
# ----------------------------------------------------------------------------
@jax.jit
def net_forward(x_nchw, params):
    n = x_nchw.shape[0]
    assert x_nchw.shape[1:] == (1, _H0, _H0)
    img = x_nchw[:, 0]                                            # (N, 28, 28)
    # Pre-split image rows by stride-2 phase j (= dy + kh in 0..3) so stage 1 needs
    # only plain in-kernel loads:  xs[n, j, t, :] = img[n, j + 2t, :].
    xs = jnp.stack([img[:, j:j + 2 * _H1 - 1:2, :] for j in range(4)], axis=1)

    (w1, b1), (w2, b2), (w3, b3) = params["conv1"], params["conv2"], params["conv3"]
    wf1, bf1 = params["fc1"]
    wf2, bf2 = params["fc2"]

    w1big = _pool_conv_weight(w1, _H0, _H1)        # (2, 3, 28, 416)
    w2big = _pool_conv_weight(w2, _H1, _H2)        # (2, 3, 416, 320)
    w3big = _pool_conv_weight(w3, _H2, _H3)        # (2, 3, 320, 128)
    b1row = jnp.tile(b1, _H1)[None, :]             # (1, 416)
    b2row = jnp.tile(b2, _H2)[None, :]             # (1, 320)
    b3row = jnp.tile(b3, _H3)[None, :]             # (1, 128)
    s2 = _row_select(_H2, _H1)                     # (4, 5, 13)
    s3 = _row_select(_H3, _H2)                     # (4, 1, 5)
    bf1row = bf1[None, :]                          # (1, 512)
    bf2row = bf2[None, :]                          # (1, 26)

    flops_per_img = 2 * (
        12 * _H1 * _H0 * (_H1 * _C1)               # stage-1 conv dots
        + 4 * _H2 * _H1 * (_H1 * _C1)              # stage-2 row selection
        + 12 * _H2 * (_H1 * _C1) * (_H2 * _C2)     # stage-2 conv dots
        + 4 * _H3 * _H2 * (_H2 * _C2)              # stage-3 row selection
        + 12 * _H3 * (_H2 * _C2) * (_H3 * _C3)     # stage-3 conv dots
        + _C3 * _FC1 + _FC1 * _NCLS)               # fc1, fc2
    weight_bytes = 4 * sum(a.size for a in
                           (w1big, b1row, s2, w2big, b2row, s3, w3big, b3row,
                            wf1, bf1row, wf2, bf2row))
    cost = pl.CostEstimate(flops=n * flops_per_img, transcendentals=n * (_NCLS + 1),
                           bytes_accessed=4 * (xs.size + n * _NCLS) + weight_bytes)

    out = pl.pallas_call(
        _fused_net_kernel,
        out_shape=jax.ShapeDtypeStruct((n, 1, _NCLS), jnp.float32),
        grid=(n,),
        in_specs=[
            pl.BlockSpec((1, 4, _H1, _H0), lambda i: (i, 0, 0, 0)),   # per-image rows
            pl.BlockSpec(w1big.shape, lambda i: (0, 0, 0, 0)),
            pl.BlockSpec(b1row.shape, lambda i: (0, 0)),
            pl.BlockSpec(s2.shape, lambda i: (0, 0, 0)),
            pl.BlockSpec(w2big.shape, lambda i: (0, 0, 0, 0)),
            pl.BlockSpec(b2row.shape, lambda i: (0, 0)),
            pl.BlockSpec(s3.shape, lambda i: (0, 0, 0)),
            pl.BlockSpec(w3big.shape, lambda i: (0, 0, 0, 0)),
            pl.BlockSpec(b3row.shape, lambda i: (0, 0)),
            pl.BlockSpec(wf1.shape, lambda i: (0, 0)),
            pl.BlockSpec(bf1row.shape, lambda i: (0, 0)),
            pl.BlockSpec(wf2.shape, lambda i: (0, 0)),
            pl.BlockSpec(bf2row.shape, lambda i: (0, 0)),
        ],
        out_specs=pl.BlockSpec((1, 1, _NCLS), lambda i: (i, 0, 0)),
        compiler_params=pltpu.CompilerParams(
            dimension_semantics=("parallel",),     # images shard across TCs (v7x)
            vmem_limit_bytes=_VMEM_LIMIT),
        cost_estimate=cost,
    )(xs, w1big, b1row, s2, w2big, b2row, s3, w3big, b3row, wf1, bf1row, wf2, bf2row)
    return out[:, 0, :]


@jax.jit
def reference_forward(x_nchw, params):
    a = x_nchw
    for name in ("conv1", "conv2", "conv3"):
        w, b = params[name]
        w_oihw = jnp.transpose(w, (3, 2, 0, 1))
        a = lax.conv_general_dilated(a, w_oihw, (1, 1), "VALID",
                                     dimension_numbers=("NCHW", "OIHW", "NCHW"))
        a = jnp.maximum(a + b[None, :, None, None], 0.0)
        a = lax.reduce_window(a, -jnp.inf, lax.max, (1, 1, 2, 2), (1, 1, 2, 2), "VALID")
    flat = a.reshape(a.shape[0], -1)
    w1, b1 = params["fc1"]
    w2, b2 = params["fc2"]
    h = jnp.maximum(flat @ w1 + b1, 0.0)
    logits = h @ w2 + b2
    return jax.nn.log_softmax(logits, axis=-1)


# ----------------------------------------------------------------------------
# Parameters (deterministic synthetic init; matches the nn.Module shapes)
# ----------------------------------------------------------------------------
def init_params(key):
    ks = jax.random.split(key, 10)

    def conv_init(kw, kb, cin, cout):
        scale = 1.0 / (3 * 3 * cin) ** 0.5
        w = jax.random.normal(kw, (3, 3, cin, cout), jnp.float32) * scale
        b = jax.random.normal(kb, (cout,), jnp.float32) * 0.01
        return w, b

    def fc_init(kw, kb, fin, fout):
        scale = 1.0 / fin ** 0.5
        w = jax.random.normal(kw, (fin, fout), jnp.float32) * scale
        b = jax.random.normal(kb, (fout,), jnp.float32) * 0.01
        return w, b

    return {
        "conv1": conv_init(ks[0], ks[1], 1, _C1),
        "conv2": conv_init(ks[2], ks[3], _C1, _C2),
        "conv3": conv_init(ks[4], ks[5], _C2, _C3),
        "fc1": fc_init(ks[6], ks[7], _C3, _FC1),    # linear_in = 128*1*1
        "fc2": fc_init(ks[8], ks[9], _FC1, _NCLS),
    }


if __name__ == "__main__":
    key = jax.random.PRNGKey(0)
    kx, kp = jax.random.split(key)
    x = jax.random.normal(kx, (2, 1, 28, 28), jnp.float32)   # batch=2, 28x28 grayscale
    params = init_params(kp)

    out = jax.block_until_ready(net_forward(x, params))
    assert out.shape == (2, _NCLS), out.shape

    ref = jax.block_until_ready(reference_forward(x, params))
    if not jnp.allclose(out, ref, atol=1e-4, rtol=1e-4):
        raise AssertionError("Pallas output does not match JAX reference")

    print("KERNEL_OK")
</pallas_src>

<mosaic_0001>
module attributes {stable_mosaic.version = 11 : i64} {
  func.func @_fused_net_kernel(%arg0: i32, %arg1: memref<1x4x13x28xf32, #tpu.memory_space<vmem>>, %arg2: memref<2x3x28x416xf32, #tpu.memory_space<vmem>>, %arg3: memref<1x416xf32, #tpu.memory_space<vmem>>, %arg4: memref<4x5x13xf32, #tpu.memory_space<vmem>>, %arg5: memref<2x3x416x320xf32, #tpu.memory_space<vmem>>, %arg6: memref<1x320xf32, #tpu.memory_space<vmem>>, %arg7: memref<4x1x5xf32, #tpu.memory_space<vmem>>, %arg8: memref<2x3x320x128xf32, #tpu.memory_space<vmem>>, %arg9: memref<1x128xf32, #tpu.memory_space<vmem>>, %arg10: memref<128x512xf32, #tpu.memory_space<vmem>>, %arg11: memref<1x512xf32, #tpu.memory_space<vmem>>, %arg12: memref<512x26xf32, #tpu.memory_space<vmem>>, %arg13: memref<1x26xf32, #tpu.memory_space<vmem>>, %arg14: memref<1x1x26xf32, #tpu.memory_space<vmem>>) attributes {dimension_semantics = [#tpu.dimension_semantics<parallel>], iteration_bounds = array<i64: 2>, scalar_prefetch = 0 : i64, scratch_operands = 0 : i64, tpu.core_type = #tpu.core_type<tc>, window_params = [{transform_indices = @transform_0, window_bounds = array<i64: 1, 4, 13, 28>}, {pipeline_mode = #tpu.pipeline_mode<synchronous>, transform_indices = @transform_1, window_bounds = array<i64: 2, 3, 28, 416>}, {pipeline_mode = #tpu.pipeline_mode<synchronous>, transform_indices = @transform_2, window_bounds = array<i64: 1, 416>}, {pipeline_mode = #tpu.pipeline_mode<synchronous>, transform_indices = @transform_3, window_bounds = array<i64: 4, 5, 13>}, {pipeline_mode = #tpu.pipeline_mode<synchronous>, transform_indices = @transform_4, window_bounds = array<i64: 2, 3, 416, 320>}, {pipeline_mode = #tpu.pipeline_mode<synchronous>, transform_indices = @transform_5, window_bounds = array<i64: 1, 320>}, {pipeline_mode = #tpu.pipeline_mode<synchronous>, transform_indices = @transform_6, window_bounds = array<i64: 4, 1, 5>}, {pipeline_mode = #tpu.pipeline_mode<synchronous>, transform_indices = @transform_7, window_bounds = array<i64: 2, 3, 320, 128>}, {pipeline_mode = #tpu.pipeline_mode<synchronous>, transform_indices = @transform_8, window_bounds = array<i64: 1, 128>}, {pipeline_mode = #tpu.pipeline_mode<synchronous>, transform_indices = @transform_9, window_bounds = array<i64: 128, 512>}, {pipeline_mode = #tpu.pipeline_mode<synchronous>, transform_indices = @transform_10, window_bounds = array<i64: 1, 512>}, {pipeline_mode = #tpu.pipeline_mode<synchronous>, transform_indices = @transform_11, window_bounds = array<i64: 512, 26>}, {pipeline_mode = #tpu.pipeline_mode<synchronous>, transform_indices = @transform_12, window_bounds = array<i64: 1, 26>}, {transform_indices = @transform_13, window_bounds = array<i64: 1, 1, 26>}]} {
    %c0 = arith.constant 0 : index
    %c0_0 = arith.constant 0 : index
    %c0_1 = arith.constant 0 : index
    %c0_2 = arith.constant 0 : index
    %0 = vector.load %arg1[%c0, %c0_0, %c0_1, %c0_2] : memref<1x4x13x28xf32, #tpu.memory_space<vmem>>, vector<1x1x13x28xf32>
    %1 = vector.shape_cast %0 : vector<1x1x13x28xf32> to vector<13x28xf32>
    %c0_3 = arith.constant 0 : index
    %c1 = arith.constant 1 : index
    %c0_4 = arith.constant 0 : index
    %c0_5 = arith.constant 0 : index
    %2 = vector.load %arg1[%c0_3, %c1, %c0_4, %c0_5] : memref<1x4x13x28xf32, #tpu.memory_space<vmem>>, vector<1x1x13x28xf32>
    %3 = vector.shape_cast %2 : vector<1x1x13x28xf32> to vector<13x28xf32>
    %c0_6 = arith.constant 0 : index
    %c2 = arith.constant 2 : index
    %c0_7 = arith.constant 0 : index
    %c0_8 = arith.constant 0 : index
    %4 = vector.load %arg1[%c0_6, %c2, %c0_7, %c0_8] : memref<1x4x13x28xf32, #tpu.memory_space<vmem>>, vector<1x1x13x28xf32>
    %5 = vector.shape_cast %4 : vector<1x1x13x28xf32> to vector<13x28xf32>
    %c0_9 = arith.constant 0 : index
    %c3 = arith.constant 3 : index
    %c0_10 = arith.constant 0 : index
    %c0_11 = arith.constant 0 : index
    %6 = vector.load %arg1[%c0_9, %c3, %c0_10, %c0_11] : memref<1x4x13x28xf32, #tpu.memory_space<vmem>>, vector<1x1x13x28xf32>
    %7 = vector.shape_cast %6 : vector<1x1x13x28xf32> to vector<13x28xf32>
    %c0_12 = arith.constant 0 : index
    %c0_13 = arith.constant 0 : index
    %c0_14 = arith.constant 0 : index
    %c0_15 = arith.constant 0 : index
    %8 = vector.load %arg2[%c0_12, %c0_13, %c0_14, %c0_15] : memref<2x3x28x416xf32, #tpu.memory_space<vmem>>, vector<1x1x28x416xf32>
    %9 = vector.shape_cast %8 : vector<1x1x28x416xf32> to vector<28x416xf32>
    %cst = arith.constant dense<0.000000e+00> : vector<13x416xf32>
    %10 = tpu.matmul %1, %9, %cst {dimension_numbers = #tpu.dot_dimension_numbers<[1], [0], [0], [1], [0, 0, 1, 1], [], []>} : vector<13x28xf32>, vector<28x416xf32>, vector<13x416xf32> -> vector<13x416xf32>
    %c0_16 = arith.constant 0 : index
    %c1_17 = arith.constant 1 : index
    %c0_18 = arith.constant 0 : index
    %c0_19 = arith.constant 0 : index
    %11 = vector.load %arg2[%c0_16, %c1_17, %c0_18, %c0_19] : memref<2x3x28x416xf32, #tpu.memory_space<vmem>>, vector<1x1x28x416xf32>
    %12 = vector.shape_cast %11 : vector<1x1x28x416xf32> to vector<28x416xf32>
    %cst_20 = arith.constant dense<0.000000e+00> : vector<13x416xf32>
    %13 = tpu.matmul %3, %12, %cst_20 {dimension_numbers = #tpu.dot_dimension_numbers<[1], [0], [0], [1], [0, 0, 1, 1], [], []>} : vector<13x28xf32>, vector<28x416xf32>, vector<13x416xf32> -> vector<13x416xf32>
    %14 = arith.addf %10, %13 : vector<13x416xf32>
    %c0_21 = arith.constant 0 : index
    %c2_22 = arith.constant 2 : index
    %c0_23 = arith.constant 0 : index
    %c0_24 = arith.constant 0 : index
    %15 = vector.load %arg2[%c0_21, %c2_22, %c0_23, %c0_24] : memref<2x3x28x416xf32, #tpu.memory_space<vmem>>, vector<1x1x28x416xf32>
    %16 = vector.shape_cast %15 : vector<1x1x28x416xf32> to vector<28x416xf32>
    %cst_25 = arith.constant dense<0.000000e+00> : vector<13x416xf32>
    %17 = tpu.matmul %5, %16, %cst_25 {dimension_numbers = #tpu.dot_dimension_numbers<[1], [0], [0], [1], [0, 0, 1, 1], [], []>} : vector<13x28xf32>, vector<28x416xf32>, vector<13x416xf32> -> vector<13x416xf32>
    %18 = arith.addf %14, %17 : vector<13x416xf32>
    %c1_26 = arith.constant 1 : index
    %c0_27 = arith.constant 0 : index
    %c0_28 = arith.constant 0 : index
    %c0_29 = arith.constant 0 : index
    %19 = vector.load %arg2[%c1_26, %c0_27, %c0_28, %c0_29] : memref<2x3x28x416xf32, #tpu.memory_space<vmem>>, vector<1x1x28x416xf32>
    %20 = vector.shape_cast %19 : vector<1x1x28x416xf32> to vector<28x416xf32>
    %cst_30 = arith.constant dense<0.000000e+00> : vector<13x416xf32>
    %21 = tpu.matmul %1, %20, %cst_30 {dimension_numbers = #tpu.dot_dimension_numbers<[1], [0], [0], [1], [0, 0, 1, 1], [], []>} : vector<13x28xf32>, vector<28x416xf32>, vector<13x416xf32> -> vector<13x416xf32>
    %c1_31 = arith.constant 1 : index
    %c1_32 = arith.constant 1 : index
    %c0_33 = arith.constant 0 : index
    %c0_34 = arith.constant 0 : index
    %22 = vector.load %arg2[%c1_31, %c1_32, %c0_33, %c0_34] : memref<2x3x28x416xf32, #tpu.memory_space<vmem>>, vector<1x1x28x416xf32>
    %23 = vector.shape_cast %22 : vector<1x1x28x416xf32> to vector<28x416xf32>
    %cst_35 = arith.constant dense<0.000000e+00> : vector<13x416xf32>
    %24 = tpu.matmul %3, %23, %cst_35 {dimension_numbers = #tpu.dot_dimension_numbers<[1], [0], [0], [1], [0, 0, 1, 1], [], []>} : vector<13x28xf32>, vector<28x416xf32>, vector<13x416xf32> -> vector<13x416xf32>
    %25 = arith.addf %21, %24 : vector<13x416xf32>
    %c1_36 = arith.constant 1 : index
    %c2_37 = arith.constant 2 : index
    %c0_38 = arith.constant 0 : index
    %c0_39 = arith.constant 0 : index
    %26 = vector.load %arg2[%c1_36, %c2_37, %c0_38, %c0_39] : memref<2x3x28x416xf32, #tpu.memory_space<vmem>>, vector<1x1x28x416xf32>
    %27 = vector.shape_cast %26 : vector<1x1x28x416xf32> to vector<28x416xf32>
    %cst_40 = arith.constant dense<0.000000e+00> : vector<13x416xf32>
    %28 = tpu.matmul %5, %27, %cst_40 {dimension_numbers = #tpu.dot_dimension_numbers<[1], [0], [0], [1], [0, 0, 1, 1], [], []>} : vector<13x28xf32>, vector<28x416xf32>, vector<13x416xf32> -> vector<13x416xf32>
    %29 = arith.addf %25, %28 : vector<13x416xf32>
    %30 = arith.maximumf %18, %29 : vector<13x416xf32>
    %c0_41 = arith.constant 0 : index
    %c0_42 = arith.constant 0 : index
    %c0_43 = arith.constant 0 : index
    %c0_44 = arith.constant 0 : index
    %31 = vector.load %arg2[%c0_41, %c0_42, %c0_43, %c0_44] : memref<2x3x28x416xf32, #tpu.memory_space<vmem>>, vector<1x1x28x416xf32>
    %32 = vector.shape_cast %31 : vector<1x1x28x416xf32> to vector<28x416xf32>
    %cst_45 = arith.constant dense<0.000000e+00> : vector<13x416xf32>
    %33 = tpu.matmul %3, %32, %cst_45 {dimension_numbers = #tpu.dot_dimension_numbers<[1], [0], [0], [1], [0, 0, 1, 1], [], []>} : vector<13x28xf32>, vector<28x416xf32>, vector<13x416xf32> -> vector<13x416xf32>
    %c0_46 = arith.constant 0 : index
    %c1_47 = arith.constant 1 : index
    %c0_48 = arith.constant 0 : index
    %c0_49 = arith.constant 0 : index
    %34 = vector.load %arg2[%c0_46, %c1_47, %c0_48, %c0_49] : memref<2x3x28x416xf32, #tpu.memory_space<vmem>>, vector<1x1x28x416xf32>
    %35 = vector.shape_cast %34 : vector<1x1x28x416xf32> to vector<28x416xf32>
    %cst_50 = arith.constant dense<0.000000e+00> : vector<13x416xf32>
    %36 = tpu.matmul %5, %35, %cst_50 {dimension_numbers = #tpu.dot_dimension_numbers<[1], [0], [0], [1], [0, 0, 1, 1], [], []>} : vector<13x28xf32>, vector<28x416xf32>, vector<13x416xf32> -> vector<13x416xf32>
    %37 = arith.addf %33, %36 : vector<13x416xf32>
    %c0_51 = arith.constant 0 : index
    %c2_52 = arith.constant 2 : index
    %c0_53 = arith.constant 0 : index
    %c0_54 = arith.constant 0 : index
    %38 = vector.load %arg2[%c0_51, %c2_52, %c0_53, %c0_54] : memref<2x3x28x416xf32, #tpu.memory_space<vmem>>, vector<1x1x28x416xf32>
    %39 = vector.shape_cast %38 : vector<1x1x28x416xf32> to vector<28x416xf32>
    %cst_55 = arith.constant dense<0.000000e+00> : vector<13x416xf32>
    %40 = tpu.matmul %7, %39, %cst_55 {dimension_numbers = #tpu.dot_dimension_numbers<[1], [0], [0], [1], [0, 0, 1, 1], [], []>} : vector<13x28xf32>, vector<28x416xf32>, vector<13x416xf32> -> vector<13x416xf32>
    %41 = arith.addf %37, %40 : vector<13x416xf32>
    %42 = arith.maximumf %30, %41 : vector<13x416xf32>
    %c1_56 = arith.constant 1 : index
    %c0_57 = arith.constant 0 : index
    %c0_58 = arith.constant 0 : index
    %c0_59 = arith.constant 0 : index
    %43 = vector.load %arg2[%c1_56, %c0_57, %c0_58, %c0_59] : memref<2x3x28x416xf32, #tpu.memory_space<vmem>>, vector<1x1x28x416xf32>
    %44 = vector.shape_cast %43 : vector<1x1x28x416xf32> to vector<28x416xf32>
    %cst_60 = arith.constant dense<0.000000e+00> : vector<13x416xf32>
    %45 = tpu.matmul %3, %44, %cst_60 {dimension_numbers = #tpu.dot_dimension_numbers<[1], [0], [0], [1], [0, 0, 1, 1], [], []>} : vector<13x28xf32>, vector<28x416xf32>, vector<13x416xf32> -> vector<13x416xf32>
    %c1_61 = arith.constant 1 : index
    %c1_62 = arith.constant 1 : index
    %c0_63 = arith.constant 0 : index
    %c0_64 = arith.constant 0 : index
    %46 = vector.load %arg2[%c1_61, %c1_62, %c0_63, %c0_64] : memref<2x3x28x416xf32, #tpu.memory_space<vmem>>, vector<1x1x28x416xf32>
    %47 = vector.shape_cast %46 : vector<1x1x28x416xf32> to vector<28x416xf32>
    %cst_65 = arith.constant dense<0.000000e+00> : vector<13x416xf32>
    %48 = tpu.matmul %5, %47, %cst_65 {dimension_numbers = #tpu.dot_dimension_numbers<[1], [0], [0], [1], [0, 0, 1, 1], [], []>} : vector<13x28xf32>, vector<28x416xf32>, vector<13x416xf32> -> vector<13x416xf32>
    %49 = arith.addf %45, %48 : vector<13x416xf32>
    %c1_66 = arith.constant 1 : index
    %c2_67 = arith.constant 2 : index
    %c0_68 = arith.constant 0 : index
    %c0_69 = arith.constant 0 : index
    %50 = vector.load %arg2[%c1_66, %c2_67, %c0_68, %c0_69] : memref<2x3x28x416xf32, #tpu.memory_space<vmem>>, vector<1x1x28x416xf32>
    %51 = vector.shape_cast %50 : vector<1x1x28x416xf32> to vector<28x416xf32>
    %cst_70 = arith.constant dense<0.000000e+00> : vector<13x416xf32>
    %52 = tpu.matmul %7, %51, %cst_70 {dimension_numbers = #tpu.dot_dimension_numbers<[1], [0], [0], [1], [0, 0, 1, 1], [], []>} : vector<13x28xf32>, vector<28x416xf32>, vector<13x416xf32> -> vector<13x416xf32>
    %53 = arith.addf %49, %52 : vector<13x416xf32>
    %54 = arith.maximumf %42, %53 : vector<13x416xf32>
    %c0_71 = arith.constant 0 : index
    %c0_72 = arith.constant 0 : index
    %55 = vector.load %arg3[%c0_71, %c0_72] : memref<1x416xf32, #tpu.memory_space<vmem>>, vector<1x416xf32>
    %56 = vector.broadcast %55 : vector<1x416xf32> to vector<13x416xf32>
    %57 = arith.addf %54, %56 : vector<13x416xf32>
    %cst_73 = arith.constant 0.000000e+00 : f32
    %58 = vector.broadcast %cst_73 : f32 to vector<13x416xf32>
    %59 = arith.maximumf %57, %58 : vector<13x416xf32>
    %c0_74 = arith.constant 0 : index
    %c0_75 = arith.constant 0 : index
    %c0_76 = arith.constant 0 : index
    %60 = vector.load %arg4[%c0_74, %c0_75, %c0_76] : memref<4x5x13xf32, #tpu.memory_space<vmem>>, vector<1x5x13xf32>
    %61 = vector.shape_cast %60 : vector<1x5x13xf32> to vector<5x13xf32>
    %cst_77 = arith.constant dense<0.000000e+00> : vector<5x416xf32>
    %62 = tpu.matmul %61, %59, %cst_77 {dimension_numbers = #tpu.dot_dimension_numbers<[1], [0], [0], [1], [0, 0, 1, 1], [], []>} : vector<5x13xf32>, vector<13x416xf32>, vector<5x416xf32> -> vector<5x416xf32>
    %c1_78 = arith.constant 1 : index
    %c0_79 = arith.constant 0 : index
    %c0_80 = arith.constant 0 : index
    %63 = vector.load %arg4[%c1_78, %c0_79, %c0_80] : memref<4x5x13xf32, #tpu.memory_space<vmem>>, vector<1x5x13xf32>
    %64 = vector.shape_cast %63 : vector<1x5x13xf32> to vector<5x13xf32>
    %cst_81 = arith.constant dense<0.000000e+00> : vector<5x416xf32>
    %65 = tpu.matmul %64, %59, %cst_81 {dimension_numbers = #tpu.dot_dimension_numbers<[1], [0], [0], [1], [0, 0, 1, 1], [], []>} : vector<5x13xf32>, vector<13x416xf32>, vector<5x416xf32> -> vector<5x416xf32>
    %c2_82 = arith.constant 2 : index
    %c0_83 = arith.constant 0 : index
    %c0_84 = arith.constant 0 : index
    %66 = vector.load %arg4[%c2_82, %c0_83, %c0_84] : memref<4x5x13xf32, #tpu.memory_space<vmem>>, vector<1x5x13xf32>
    %67 = vector.shape_cast %66 : vector<1x5x13xf32> to vector<5x13xf32>
    %cst_85 = arith.constant dense<0.000000e+00> : vector<5x416xf32>
    %68 = tpu.matmul %67, %59, %cst_85 {dimension_numbers = #tpu.dot_dimension_numbers<[1], [0], [0], [1], [0, 0, 1, 1], [], []>} : vector<5x13xf32>, vector<13x416xf32>, vector<5x416xf32> -> vector<5x416xf32>
    %c3_86 = arith.constant 3 : index
    %c0_87 = arith.constant 0 : index
    %c0_88 = arith.constant 0 : index
    %69 = vector.load %arg4[%c3_86, %c0_87, %c0_88] : memref<4x5x13xf32, #tpu.memory_space<vmem>>, vector<1x5x13xf32>
    %70 = vector.shape_cast %69 : vector<1x5x13xf32> to vector<5x13xf32>
    %cst_89 = arith.constant dense<0.000000e+00> : vector<5x416xf32>
    %71 = tpu.matmul %70, %59, %cst_89 {dimension_numbers = #tpu.dot_dimension_numbers<[1], [0], [0], [1], [0, 0, 1, 1], [], []>} : vector<5x13xf32>, vector<13x416xf32>, vector<5x416xf32> -> vector<5x416xf32>
    %c0_90 = arith.constant 0 : index
    %c0_91 = arith.constant 0 : index
    %c0_92 = arith.constant 0 : index
    %c0_93 = arith.constant 0 : index
    %72 = vector.load %arg5[%c0_90, %c0_91, %c0_92, %c0_93] : memref<2x3x416x320xf32, #tpu.memory_space<vmem>>, vector<1x1x416x320xf32>
    %73 = vector.shape_cast %72 : vector<1x1x416x320xf32> to vector<416x320xf32>
    %cst_94 = arith.constant dense<0.000000e+00> : vector<5x320xf32>
    %74 = tpu.matmul %62, %73, %cst_94 {dimension_numbers = #tpu.dot_dimension_numbers<[1], [0], [0], [1], [0, 0, 1, 1], [], []>} : vector<5x416xf32>, vector<416x320xf32>, vector<5x320xf32> -> vector<5x320xf32>
    %c0_95 = arith.constant 0 : index
    %c1_96 = arith.constant 1 : index
    %c0_97 = arith.constant 0 : index
    %c0_98 = arith.constant 0 : index
    %75 = vector.load %arg5[%c0_95, %c1_96, %c0_97, %c0_98] : memref<2x3x416x320xf32, #tpu.memory_space<vmem>>, vector<1x1x416x320xf32>
    %76 = vector.shape_cast %75 : vector<1x1x416x320xf32> to vector<416x320xf32>
    %cst_99 = arith.constant dense<0.000000e+00> : vector<5x320xf32>
    %77 = tpu.matmul %65, %76, %cst_99 {dimension_numbers = #tpu.dot_dimension_numbers<[1], [0], [0], [1], [0, 0, 1, 1], [], []>} : vector<5x416xf32>, vector<416x320xf32>, vector<5x320xf32> -> vector<5x320xf32>
    %78 = arith.addf %74, %77 : vector<5x320xf32>
    %c0_100 = arith.constant 0 : index
    %c2_101 = arith.constant 2 : index
    %c0_102 = arith.constant 0 : index
    %c0_103 = arith.constant 0 : index
    %79 = vector.load %arg5[%c0_100, %c2_101, %c0_102, %c0_103] : memref<2x3x416x320xf32, #tpu.memory_space<vmem>>, vector<1x1x416x320xf32>
    %80 = vector.shape_cast %79 : vector<1x1x416x320xf32> to vector<416x320xf32>
    %cst_104 = arith.constant dense<0.000000e+00> : vector<5x320xf32>
    %81 = tpu.matmul %68, %80, %cst_104 {dimension_numbers = #tpu.dot_dimension_numbers<[1], [0], [0], [1], [0, 0, 1, 1], [], []>} : vector<5x416xf32>, vector<416x320xf32>, vector<5x320xf32> -> vector<5x320xf32>
    %82 = arith.addf %78, %81 : vector<5x320xf32>
    %c1_105 = arith.constant 1 : index
    %c0_106 = arith.constant 0 : index
    %c0_107 = arith.constant 0 : index
    %c0_108 = arith.constant 0 : index
    %83 = vector.load %arg5[%c1_105, %c0_106, %c0_107, %c0_108] : memref<2x3x416x320xf32, #tpu.memory_space<vmem>>, vector<1x1x416x320xf32>
    %84 = vector.shape_cast %83 : vector<1x1x416x320xf32> to vector<416x320xf32>
    %cst_109 = arith.constant dense<0.000000e+00> : vector<5x320xf32>
    %85 = tpu.matmul %62, %84, %cst_109 {dimension_numbers = #tpu.dot_dimension_numbers<[1], [0], [0], [1], [0, 0, 1, 1], [], []>} : vector<5x416xf32>, vector<416x320xf32>, vector<5x320xf32> -> vector<5x320xf32>
    %c1_110 = arith.constant 1 : index
    %c1_111 = arith.constant 1 : index
    %c0_112 = arith.constant 0 : index
    %c0_113 = arith.constant 0 : index
    %86 = vector.load %arg5[%c1_110, %c1_111, %c0_112, %c0_113] : memref<2x3x416x320xf32, #tpu.memory_space<vmem>>, vector<1x1x416x320xf32>
    %87 = vector.shape_cast %86 : vector<1x1x416x320xf32> to vector<416x320xf32>
    %cst_114 = arith.constant dense<0.000000e+00> : vector<5x320xf32>
    %88 = tpu.matmul %65, %87, %cst_114 {dimension_numbers = #tpu.dot_dimension_numbers<[1], [0], [0], [1], [0, 0, 1, 1], [], []>} : vector<5x416xf32>, vector<416x320xf32>, vector<5x320xf32> -> vector<5x320xf32>
    %89 = arith.addf %85, %88 : vector<5x320xf32>
    %c1_115 = arith.constant 1 : index
    %c2_116 = arith.constant 2 : index
    %c0_117 = arith.constant 0 : index
    %c0_118 = arith.constant 0 : index
    %90 = vector.load %arg5[%c1_115, %c2_116, %c0_117, %c0_118] : memref<2x3x416x320xf32, #tpu.memory_space<vmem>>, vector<1x1x416x320xf32>
    %91 = vector.shape_cast %90 : vector<1x1x416x320xf32> to vector<416x320xf32>
    %cst_119 = arith.constant dense<0.000000e+00> : vector<5x320xf32>
    %92 = tpu.matmul %68, %91, %cst_119 {dimension_numbers = #tpu.dot_dimension_numbers<[1], [0], [0], [1], [0, 0, 1, 1], [], []>} : vector<5x416xf32>, vector<416x320xf32>, vector<5x320xf32> -> vector<5x320xf32>
    %93 = arith.addf %89, %92 : vector<5x320xf32>
    %94 = arith.maximumf %82, %93 : vector<5x320xf32>
    %c0_120 = arith.constant 0 : index
    %c0_121 = arith.constant 0 : index
    %c0_122 = arith.constant 0 : index
    %c0_123 = arith.constant 0 : index
    %95 = vector.load %arg5[%c0_120, %c0_121, %c0_122, %c0_123] : memref<2x3x416x320xf32, #tpu.memory_space<vmem>>, vector<1x1x416x320xf32>
    %96 = vector.shape_cast %95 : vector<1x1x416x320xf32> to vector<416x320xf32>
    %cst_124 = arith.constant dense<0.000000e+00> : vector<5x320xf32>
    %97 = tpu.matmul %65, %96, %cst_124 {dimension_numbers = #tpu.dot_dimension_numbers<[1], [0], [0], [1], [0, 0, 1, 1], [], []>} : vector<5x416xf32>, vector<416x320xf32>, vector<5x320xf32> -> vector<5x320xf32>
    %c0_125 = arith.constant 0 : index
    %c1_126 = arith.constant 1 : index
    %c0_127 = arith.constant 0 : index
    %c0_128 = arith.constant 0 : index
    %98 = vector.load %arg5[%c0_125, %c1_126, %c0_127, %c0_128] : memref<2x3x416x320xf32, #tpu.memory_space<vmem>>, vector<1x1x416x320xf32>
    %99 = vector.shape_cast %98 : vector<1x1x416x320xf32> to vector<416x320xf32>
    %cst_129 = arith.constant dense<0.000000e+00> : vector<5x320xf32>
    %100 = tpu.matmul %68, %99, %cst_129 {dimension_numbers = #tpu.dot_dimension_numbers<[1], [0], [0], [1], [0, 0, 1, 1], [], []>} : vector<5x416xf32>, vector<416x320xf32>, vector<5x320xf32> -> vector<5x320xf32>
    %101 = arith.addf %97, %100 : vector<5x320xf32>
    %c0_130 = arith.constant 0 : index
    %c2_131 = arith.constant 2 : index
    %c0_132 = arith.constant 0 : index
    %c0_133 = arith.constant 0 : index
    %102 = vector.load %arg5[%c0_130, %c2_131, %c0_132, %c0_133] : memref<2x3x416x320xf32, #tpu.memory_space<vmem>>, vector<1x1x416x320xf32>
    %103 = vector.shape_cast %102 : vector<1x1x416x320xf32> to vector<416x320xf32>
    %cst_134 = arith.constant dense<0.000000e+00> : vector<5x320xf32>
    %104 = tpu.matmul %71, %103, %cst_134 {dimension_numbers = #tpu.dot_dimension_numbers<[1], [0], [0], [1], [0, 0, 1, 1], [], []>} : vector<5x416xf32>, vector<416x320xf32>, vector<5x320xf32> -> vector<5x320xf32>
    %105 = arith.addf %101, %104 : vector<5x320xf32>
    %106 = arith.maximumf %94, %105 : vector<5x320xf32>
    %c1_135 = arith.constant 1 : index
    %c0_136 = arith.constant 0 : index
    %c0_137 = arith.constant 0 : index
    %c0_138 = arith.constant 0 : index
    %107 = vector.load %arg5[%c1_135, %c0_136, %c0_137, %c0_138] : memref<2x3x416x320xf32, #tpu.memory_space<vmem>>, vector<1x1x416x320xf32>
    %108 = vector.shape_cast %107 : vector<1x1x416x320xf32> to vector<416x320xf32>
    %cst_139 = arith.constant dense<0.000000e+00> : vector<5x320xf32>
    %109 = tpu.matmul %65, %108, %cst_139 {dimension_numbers = #tpu.dot_dimension_numbers<[1], [0], [0], [1], [0, 0, 1, 1], [], []>} : vector<5x416xf32>, vector<416x320xf32>, vector<5x320xf32> -> vector<5x320xf32>
    %c1_140 = arith.constant 1 : index
    %c1_141 = arith.constant 1 : index
    %c0_142 = arith.constant 0 : index
    %c0_143 = arith.constant 0 : index
    %110 = vector.load %arg5[%c1_140, %c1_141, %c0_142, %c0_143] : memref<2x3x416x320xf32, #tpu.memory_space<vmem>>, vector<1x1x416x320xf32>
    %111 = vector.shape_cast %110 : vector<1x1x416x320xf32> to vector<416x320xf32>
    %cst_144 = arith.constant dense<0.000000e+00> : vector<5x320xf32>
    %112 = tpu.matmul %68, %111, %cst_144 {dimension_numbers = #tpu.dot_dimension_numbers<[1], [0], [0], [1], [0, 0, 1, 1], [], []>} : vector<5x416xf32>, vector<416x320xf32>, vector<5x320xf32> -> vector<5x320xf32>
    %113 = arith.addf %109, %112 : vector<5x320xf32>
    %c1_145 = arith.constant 1 : index
    %c2_146 = arith.constant 2 : index
    %c0_147 = arith.constant 0 : index
    %c0_148 = arith.constant 0 : index
    %114 = vector.load %arg5[%c1_145, %c2_146, %c0_147, %c0_148] : memref<2x3x416x320xf32, #tpu.memory_space<vmem>>, vector<1x1x416x320xf32>
    %115 = vector.shape_cast %114 : vector<1x1x416x320xf32> to vector<416x320xf32>
    %cst_149 = arith.constant dense<0.000000e+00> : vector<5x320xf32>
    %116 = tpu.matmul %71, %115, %cst_149 {dimension_numbers = #tpu.dot_dimension_numbers<[1], [0], [0], [1], [0, 0, 1, 1], [], []>} : vector<5x416xf32>, vector<416x320xf32>, vector<5x320xf32> -> vector<5x320xf32>
    %117 = arith.addf %113, %116 : vector<5x320xf32>
    %118 = arith.maximumf %106, %117 : vector<5x320xf32>
    %c0_150 = arith.constant 0 : index
    %c0_151 = arith.constant 0 : index
    %119 = vector.load %arg6[%c0_150, %c0_151] : memref<1x320xf32, #tpu.memory_space<vmem>>, vector<1x320xf32>
    %120 = vector.broadcast %119 : vector<1x320xf32> to vector<5x320xf32>
    %121 = arith.addf %118, %120 : vector<5x320xf32>
    %cst_152 = arith.constant 0.000000e+00 : f32
    %122 = vector.broadcast %cst_152 : f32 to vector<5x320xf32>
    %123 = arith.maximumf %121, %122 : vector<5x320xf32>
    %c0_153 = arith.constant 0 : index
    %c0_154 = arith.constant 0 : index
    %c0_155 = arith.constant 0 : index
    %124 = vector.load %arg7[%c0_153, %c0_154, %c0_155] : memref<4x1x5xf32, #tpu.memory_space<vmem>>, vector<1x1x5xf32>
    %125 = vector.shape_cast %124 : vector<1x1x5xf32> to vector<1x5xf32>
    %cst_156 = arith.constant dense<0.000000e+00> : vector<1x320xf32>
    %126 = tpu.matmul %125, %123, %cst_156 {dimension_numbers = #tpu.dot_dimension_numbers<[1], [0], [0], [1], [0, 0, 1, 1], [], []>} : vector<1x5xf32>, vector<5x320xf32>, vector<1x320xf32> -> vector<1x320xf32>
    %c1_157 = arith.constant 1 : index
    %c0_158 = arith.constant 0 : index
    %c0_159 = arith.constant 0 : index
    %127 = vector.load %arg7[%c1_157, %c0_158, %c0_159] : memref<4x1x5xf32, #tpu.memory_space<vmem>>, vector<1x1x5xf32>
    %128 = vector.shape_cast %127 : vector<1x1x5xf32> to vector<1x5xf32>
    %cst_160 = arith.constant dense<0.000000e+00> : vector<1x320xf32>
    %129 = tpu.matmul %128, %123, %cst_160 {dimension_numbers = #tpu.dot_dimension_numbers<[1], [0], [0], [1], [0, 0, 1, 1], [], []>} : vector<1x5xf32>, vector<5x320xf32>, vector<1x320xf32> -> vector<1x320xf32>
    %c2_161 = arith.constant 2 : index
    %c0_162 = arith.constant 0 : index
    %c0_163 = arith.constant 0 : index
    %130 = vector.load %arg7[%c2_161, %c0_162, %c0_163] : memref<4x1x5xf32, #tpu.memory_space<vmem>>, vector<1x1x5xf32>
    %131 = vector.shape_cast %130 : vector<1x1x5xf32> to vector<1x5xf32>
    %cst_164 = arith.constant dense<0.000000e+00> : vector<1x320xf32>
    %132 = tpu.matmul %131, %123, %cst_164 {dimension_numbers = #tpu.dot_dimension_numbers<[1], [0], [0], [1], [0, 0, 1, 1], [], []>} : vector<1x5xf32>, vector<5x320xf32>, vector<1x320xf32> -> vector<1x320xf32>
    %c3_165 = arith.constant 3 : index
    %c0_166 = arith.constant 0 : index
    %c0_167 = arith.constant 0 : index
    %133 = vector.load %arg7[%c3_165, %c0_166, %c0_167] : memref<4x1x5xf32, #tpu.memory_space<vmem>>, vector<1x1x5xf32>
    %134 = vector.shape_cast %133 : vector<1x1x5xf32> to vector<1x5xf32>
    %cst_168 = arith.constant dense<0.000000e+00> : vector<1x320xf32>
    %135 = tpu.matmul %134, %123, %cst_168 {dimension_numbers = #tpu.dot_dimension_numbers<[1], [0], [0], [1], [0, 0, 1, 1], [], []>} : vector<1x5xf32>, vector<5x320xf32>, vector<1x320xf32> -> vector<1x320xf32>
    %c0_169 = arith.constant 0 : index
    %c0_170 = arith.constant 0 : index
    %c0_171 = arith.constant 0 : index
    %c0_172 = arith.constant 0 : index
    %136 = vector.load %arg8[%c0_169, %c0_170, %c0_171, %c0_172] : memref<2x3x320x128xf32, #tpu.memory_space<vmem>>, vector<1x1x320x128xf32>
    %137 = vector.shape_cast %136 : vector<1x1x320x128xf32> to vector<320x128xf32>
    %cst_173 = arith.constant dense<0.000000e+00> : vector<1x128xf32>
    %138 = tpu.matmul %126, %137, %cst_173 {dimension_numbers = #tpu.dot_dimension_numbers<[1], [0], [0], [1], [0, 0, 1, 1], [], []>} : vector<1x320xf32>, vector<320x128xf32>, vector<1x128xf32> -> vector<1x128xf32>
    %c0_174 = arith.constant 0 : index
    %c1_175 = arith.constant 1 : index
    %c0_176 = arith.constant 0 : index
    %c0_177 = arith.constant 0 : index
    %139 = vector.load %arg8[%c0_174, %c1_175, %c0_176, %c0_177] : memref<2x3x320x128xf32, #tpu.memory_space<vmem>>, vector<1x1x320x128xf32>
    %140 = vector.shape_cast %139 : vector<1x1x320x128xf32> to vector<320x128xf32>
    %cst_178 = arith.constant dense<0.000000e+00> : vector<1x128xf32>
    %141 = tpu.matmul %129, %140, %cst_178 {dimension_numbers = #tpu.dot_dimension_numbers<[1], [0], [0], [1], [0, 0, 1, 1], [], []>} : vector<1x320xf32>, vector<320x128xf32>, vector<1x128xf32> -> vector<1x128xf32>
    %142 = arith.addf %138, %141 : vector<1x128xf32>
    %c0_179 = arith.constant 0 : index
    %c2_180 = arith.constant 2 : index
    %c0_181 = arith.constant 0 : index
    %c0_182 = arith.constant 0 : index
    %143 = vector.load %arg8[%c0_179, %c2_180, %c0_181, %c0_182] : memref<2x3x320x128xf32, #tpu.memory_space<vmem>>, vector<1x1x320x128xf32>
    %144 = vector.shape_cast %143 : vector<1x1x320x128xf32> to vector<320x128xf32>
    %cst_183 = arith.constant dense<0.000000e+00> : vector<1x128xf32>
    %145 = tpu.matmul %132, %144, %cst_183 {dimension_numbers = #tpu.dot_dimension_numbers<[1], [0], [0], [1], [0, 0, 1, 1], [], []>} : vector<1x320xf32>, vector<320x128xf32>, vector<1x128xf32> -> vector<1x128xf32>
    %146 = arith.addf %142, %145 : vector<1x128xf32>
    %c1_184 = arith.constant 1 : index
    %c0_185 = arith.constant 0 : index
    %c0_186 = arith.constant 0 : index
    %c0_187 = arith.constant 0 : index
    %147 = vector.load %arg8[%c1_184, %c0_185, %c0_186, %c0_187] : memref<2x3x320x128xf32, #tpu.memory_space<vmem>>, vector<1x1x320x128xf32>
    %148 = vector.shape_cast %147 : vector<1x1x320x128xf32> to vector<320x128xf32>
    %cst_188 = arith.constant dense<0.000000e+00> : vector<1x128xf32>
    %149 = tpu.matmul %126, %148, %cst_188 {dimension_numbers = #tpu.dot_dimension_numbers<[1], [0], [0], [1], [0, 0, 1, 1], [], []>} : vector<1x320xf32>, vector<320x128xf32>, vector<1x128xf32> -> vector<1x128xf32>
    %c1_189 = arith.constant 1 : index
    %c1_190 = arith.constant 1 : index
    %c0_191 = arith.constant 0 : index
    %c0_192 = arith.constant 0 : index
    %150 = vector.load %arg8[%c1_189, %c1_190, %c0_191, %c0_192] : memref<2x3x320x128xf32, #tpu.memory_space<vmem>>, vector<1x1x320x128xf32>
    %151 = vector.shape_cast %150 : vector<1x1x320x128xf32> to vector<320x128xf32>
    %cst_193 = arith.constant dense<0.000000e+00> : vector<1x128xf32>
    %152 = tpu.matmul %129, %151, %cst_193 {dimension_numbers = #tpu.dot_dimension_numbers<[1], [0], [0], [1], [0, 0, 1, 1], [], []>} : vector<1x320xf32>, vector<320x128xf32>, vector<1x128xf32> -> vector<1x128xf32>
    %153 = arith.addf %149, %152 : vector<1x128xf32>
    %c1_194 = arith.constant 1 : index
    %c2_195 = arith.constant 2 : index
    %c0_196 = arith.constant 0 : index
    %c0_197 = arith.constant 0 : index
    %154 = vector.load %arg8[%c1_194, %c2_195, %c0_196, %c0_197] : memref<2x3x320x128xf32, #tpu.memory_space<vmem>>, vector<1x1x320x128xf32>
    %155 = vector.shape_cast %154 : vector<1x1x320x128xf32> to vector<320x128xf32>
    %cst_198 = arith.constant dense<0.000000e+00> : vector<1x128xf32>
    %156 = tpu.matmul %132, %155, %cst_198 {dimension_numbers = #tpu.dot_dimension_numbers<[1], [0], [0], [1], [0, 0, 1, 1], [], []>} : vector<1x320xf32>, vector<320x128xf32>, vector<1x128xf32> -> vector<1x128xf32>
    %157 = arith.addf %153, %156 : vector<1x128xf32>
    %158 = arith.maximumf %146, %157 : vector<1x128xf32>
    %c0_199 = arith.constant 0 : index
    %c0_200 = arith.constant 0 : index
    %c0_201 = arith.constant 0 : index
    %c0_202 = arith.constant 0 : index
    %159 = vector.load %arg8[%c0_199, %c0_200, %c0_201, %c0_202] : memref<2x3x320x128xf32, #tpu.memory_space<vmem>>, vector<1x1x320x128xf32>
    %160 = vector.shape_cast %159 : vector<1x1x320x128xf32> to vector<320x128xf32>
    %cst_203 = arith.constant dense<0.000000e+00> : vector<1x128xf32>
    %161 = tpu.matmul %129, %160, %cst_203 {dimension_numbers = #tpu.dot_dimension_numbers<[1], [0], [0], [1], [0, 0, 1, 1], [], []>} : vector<1x320xf32>, vector<320x128xf32>, vector<1x128xf32> -> vector<1x128xf32>
    %c0_204 = arith.constant 0 : index
    %c1_205 = arith.constant 1 : index
    %c0_206 = arith.constant 0 : index
    %c0_207 = arith.constant 0 : index
    %162 = vector.load %arg8[%c0_204, %c1_205, %c0_206, %c0_207] : memref<2x3x320x128xf32, #tpu.memory_space<vmem>>, vector<1x1x320x128xf32>
    %163 = vector.shape_cast %162 : vector<1x1x320x128xf32> to vector<320x128xf32>
    %cst_208 = arith.constant dense<0.000000e+00> : vector<1x128xf32>
    %164 = tpu.matmul %132, %163, %cst_208 {dimension_numbers = #tpu.dot_dimension_numbers<[1], [0], [0], [1], [0, 0, 1, 1], [], []>} : vector<1x320xf32>, vector<320x128xf32>, vector<1x128xf32> -> vector<1x128xf32>
    %165 = arith.addf %161, %164 : vector<1x128xf32>
    %c0_209 = arith.constant 0 : index
    %c2_210 = arith.constant 2 : index
    %c0_211 = arith.constant 0 : index
    %c0_212 = arith.constant 0 : index
    %166 = vector.load %arg8[%c0_209, %c2_210, %c0_211, %c0_212] : memref<2x3x320x128xf32, #tpu.memory_space<vmem>>, vector<1x1x320x128xf32>
    %167 = vector.shape_cast %166 : vector<1x1x320x128xf32> to vector<320x128xf32>
    %cst_213 = arith.constant dense<0.000000e+00> : vector<1x128xf32>
    %168 = tpu.matmul %135, %167, %cst_213 {dimension_numbers = #tpu.dot_dimension_numbers<[1], [0], [0], [1], [0, 0, 1, 1], [], []>} : vector<1x320xf32>, vector<320x128xf32>, vector<1x128xf32> -> vector<1x128xf32>
    %169 = arith.addf %165, %168 : vector<1x128xf32>
    %170 = arith.maximumf %158, %169 : vector<1x128xf32>
    %c1_214 = arith.constant 1 : index
    %c0_215 = arith.constant 0 : index
    %c0_216 = arith.constant 0 : index
    %c0_217 = arith.constant 0 : index
    %171 = vector.load %arg8[%c1_214, %c0_215, %c0_216, %c0_217] : memref<2x3x320x128xf32, #tpu.memory_space<vmem>>, vector<1x1x320x128xf32>
    %172 = vector.shape_cast %171 : vector<1x1x320x128xf32> to vector<320x128xf32>
    %cst_218 = arith.constant dense<0.000000e+00> : vector<1x128xf32>
    %173 = tpu.matmul %129, %172, %cst_218 {dimension_numbers = #tpu.dot_dimension_numbers<[1], [0], [0], [1], [0, 0, 1, 1], [], []>} : vector<1x320xf32>, vector<320x128xf32>, vector<1x128xf32> -> vector<1x128xf32>
    %c1_219 = arith.constant 1 : index
    %c1_220 = arith.constant 1 : index
    %c0_221 = arith.constant 0 : index
    %c0_222 = arith.constant 0 : index
    %174 = vector.load %arg8[%c1_219, %c1_220, %c0_221, %c0_222] : memref<2x3x320x128xf32, #tpu.memory_space<vmem>>, vector<1x1x320x128xf32>
    %175 = vector.shape_cast %174 : vector<1x1x320x128xf32> to vector<320x128xf32>
    %cst_223 = arith.constant dense<0.000000e+00> : vector<1x128xf32>
    %176 = tpu.matmul %132, %175, %cst_223 {dimension_numbers = #tpu.dot_dimension_numbers<[1], [0], [0], [1], [0, 0, 1, 1], [], []>} : vector<1x320xf32>, vector<320x128xf32>, vector<1x128xf32> -> vector<1x128xf32>
    %177 = arith.addf %173, %176 : vector<1x128xf32>
    %c1_224 = arith.constant 1 : index
    %c2_225 = arith.constant 2 : index
    %c0_226 = arith.constant 0 : index
    %c0_227 = arith.constant 0 : index
    %178 = vector.load %arg8[%c1_224, %c2_225, %c0_226, %c0_227] : memref<2x3x320x128xf32, #tpu.memory_space<vmem>>, vector<1x1x320x128xf32>
    %179 = vector.shape_cast %178 : vector<1x1x320x128xf32> to vector<320x128xf32>
    %cst_228 = arith.constant dense<0.000000e+00> : vector<1x128xf32>
    %180 = tpu.matmul %135, %179, %cst_228 {dimension_numbers = #tpu.dot_dimension_numbers<[1], [0], [0], [1], [0, 0, 1, 1], [], []>} : vector<1x320xf32>, vector<320x128xf32>, vector<1x128xf32> -> vector<1x128xf32>
    %181 = arith.addf %177, %180 : vector<1x128xf32>
    %182 = arith.maximumf %170, %181 : vector<1x128xf32>
    %c0_229 = arith.constant 0 : index
    %c0_230 = arith.constant 0 : index
    %183 = vector.load %arg9[%c0_229, %c0_230] : memref<1x128xf32, #tpu.memory_space<vmem>>, vector<1x128xf32>
    %184 = arith.addf %182, %183 : vector<1x128xf32>
    %cst_231 = arith.constant 0.000000e+00 : f32
    %185 = vector.broadcast %cst_231 : f32 to vector<1x128xf32>
    %186 = arith.maximumf %184, %185 : vector<1x128xf32>
    %c0_232 = arith.constant 0 : index
    %c0_233 = arith.constant 0 : index
    %187 = vector.load %arg10[%c0_232, %c0_233] : memref<128x512xf32, #tpu.memory_space<vmem>>, vector<128x512xf32>
    %cst_234 = arith.constant dense<0.000000e+00> : vector<1x512xf32>
    %188 = tpu.matmul %186, %187, %cst_234 {dimension_numbers = #tpu.dot_dimension_numbers<[1], [0], [0], [1], [0, 0, 1, 1], [], []>} : vector<1x128xf32>, vector<128x512xf32>, vector<1x512xf32> -> vector<1x512xf32>
    %c0_235 = arith.constant 0 : index
    %c0_236 = arith.constant 0 : index
    %189 = vector.load %arg11[%c0_235, %c0_236] : memref<1x512xf32, #tpu.memory_space<vmem>>, vector<1x512xf32>
    %190 = arith.addf %188, %189 : vector<1x512xf32>
    %cst_237 = arith.constant 0.000000e+00 : f32
    %191 = vector.broadcast %cst_237 : f32 to vector<1x512xf32>
    %192 = arith.maximumf %190, %191 : vector<1x512xf32>
    %c0_238 = arith.constant 0 : index
    %c0_239 = arith.constant 0 : index
    %193 = vector.load %arg12[%c0_238, %c0_239] : memref<512x26xf32, #tpu.memory_space<vmem>>, vector<512x26xf32>
    %cst_240 = arith.constant dense<0.000000e+00> : vector<1x26xf32>
    %194 = tpu.matmul %192, %193, %cst_240 {dimension_numbers = #tpu.dot_dimension_numbers<[1], [0], [0], [1], [0, 0, 1, 1], [], []>} : vector<1x512xf32>, vector<512x26xf32>, vector<1x26xf32> -> vector<1x26xf32>
    %c0_241 = arith.constant 0 : index
    %c0_242 = arith.constant 0 : index
    %195 = vector.load %arg13[%c0_241, %c0_242] : memref<1x26xf32, #tpu.memory_space<vmem>>, vector<1x26xf32>
    %196 = arith.addf %194, %195 : vector<1x26xf32>
    %cst_243 = arith.constant dense<0xFF800000> : vector<1xf32>
    %197 = vector.multi_reduction <maximumf>, %196, %cst_243 [1] : vector<1x26xf32> to vector<1xf32>
    %198 = vector.shape_cast %197 : vector<1xf32> to vector<1x1xf32>
    %199 = vector.broadcast %198 : vector<1x1xf32> to vector<1x26xf32>
    %200 = arith.subf %196, %199 : vector<1x26xf32>
    %201 = math.exp %200 : vector<1x26xf32>
    %cst_244 = arith.constant dense<0.000000e+00> : vector<1xf32>
    %202 = vector.multi_reduction <add>, %201, %cst_244 [1] : vector<1x26xf32> to vector<1xf32>
    %203 = vector.shape_cast %202 : vector<1xf32> to vector<1x1xf32>
    %204 = math.log %203 : vector<1x1xf32>
    %205 = arith.addf %198, %204 : vector<1x1xf32>
    %206 = vector.broadcast %205 : vector<1x1xf32> to vector<1x26xf32>
    %207 = arith.subf %196, %206 : vector<1x26xf32>
    %c0_245 = arith.constant 0 : index
    %c0_246 = arith.constant 0 : index
    %c0_247 = arith.constant 0 : index
    %208 = vector.load %arg14[%c0_245, %c0_246, %c0_247] : memref<1x1x26xf32, #tpu.memory_space<vmem>>, vector<1x1x26xf32>
    %209 = vector.shape_cast %208 : vector<1x1x26xf32> to vector<1x26xf32>
    %210 = vector.shape_cast %207 : vector<1x26xf32> to vector<1x1x26xf32>
    tpu.vector_store %arg14[%c0_245, %c0_246, %c0_247], %210 {strides = array<i32>} : memref<1x1x26xf32, #tpu.memory_space<vmem>>, vector<1x1x26xf32>,
    return
  }
  func.func @transform_0(%arg0: i32) -> (i32, i32, i32, i32) {
    %c0_i32 = arith.constant 0 : i32
    %c0_i32_0 = arith.constant 0 : i32
    %c0_i32_1 = arith.constant 0 : i32
    %c0_i32_2 = arith.constant 0 : i32
    return %arg0, %c0_i32, %c0_i32_0, %c0_i32_1 : i32, i32, i32, i32
  }
  func.func @transform_1(%arg0: i32) -> (i32, i32, i32, i32) {
    %c0_i32 = arith.constant 0 : i32
    %c0_i32_0 = arith.constant 0 : i32
    %c0_i32_1 = arith.constant 0 : i32
    %c0_i32_2 = arith.constant 0 : i32
    %c0_i32_3 = arith.constant 0 : i32
    return %c0_i32, %c0_i32_0, %c0_i32_1, %c0_i32_2 : i32, i32, i32, i32
  }
  func.func @transform_2(%arg0: i32) -> (i32, i32) {
    %c0_i32 = arith.constant 0 : i32
    %c0_i32_0 = arith.constant 0 : i32
    %c0_i32_1 = arith.constant 0 : i32
    return %c0_i32, %c0_i32_0 : i32, i32
  }
  func.func @transform_3(%arg0: i32) -> (i32, i32, i32) {
    %c0_i32 = arith.constant 0 : i32
    %c0_i32_0 = arith.constant 0 : i32
    %c0_i32_1 = arith.constant 0 : i32
    %c0_i32_2 = arith.constant 0 : i32
    return %c0_i32, %c0_i32_0, %c0_i32_1 : i32, i32, i32
  }
  func.func @transform_4(%arg0: i32) -> (i32, i32, i32, i32) {
    %c0_i32 = arith.constant 0 : i32
    %c0_i32_0 = arith.constant 0 : i32
    %c0_i32_1 = arith.constant 0 : i32
    %c0_i32_2 = arith.constant 0 : i32
    %c0_i32_3 = arith.constant 0 : i32
    return %c0_i32, %c0_i32_0, %c0_i32_1, %c0_i32_2 : i32, i32, i32, i32
  }
  func.func @transform_5(%arg0: i32) -> (i32, i32) {
    %c0_i32 = arith.constant 0 : i32
    %c0_i32_0 = arith.constant 0 : i32
    %c0_i32_1 = arith.constant 0 : i32
    return %c0_i32, %c0_i32_0 : i32, i32
  }
  func.func @transform_6(%arg0: i32) -> (i32, i32, i32) {
    %c0_i32 = arith.constant 0 : i32
    %c0_i32_0 = arith.constant 0 : i32
    %c0_i32_1 = arith.constant 0 : i32
    %c0_i32_2 = arith.constant 0 : i32
    return %c0_i32, %c0_i32_0, %c0_i32_1 : i32, i32, i32
  }
  func.func @transform_7(%arg0: i32) -> (i32, i32, i32, i32) {
    %c0_i32 = arith.constant 0 : i32
    %c0_i32_0 = arith.constant 0 : i32
    %c0_i32_1 = arith.constant 0 : i32
    %c0_i32_2 = arith.constant 0 : i32
    %c0_i32_3 = arith.constant 0 : i32
    return %c0_i32, %c0_i32_0, %c0_i32_1, %c0_i32_2 : i32, i32, i32, i32
  }
  func.func @transform_8(%arg0: i32) -> (i32, i32) {
    %c0_i32 = arith.constant 0 : i32
    %c0_i32_0 = arith.constant 0 : i32
    %c0_i32_1 = arith.constant 0 : i32
    return %c0_i32, %c0_i32_0 : i32, i32
  }
  func.func @transform_9(%arg0: i32) -> (i32, i32) {
    %c0_i32 = arith.constant 0 : i32
    %c0_i32_0 = arith.constant 0 : i32
    %c0_i32_1 = arith.constant 0 : i32
    return %c0_i32, %c0_i32_0 : i32, i32
  }
  func.func @transform_10(%arg0: i32) -> (i32, i32) {
    %c0_i32 = arith.constant 0 : i32
    %c0_i32_0 = arith.constant 0 : i32
    %c0_i32_1 = arith.constant 0 : i32
    return %c0_i32, %c0_i32_0 : i32, i32
  }
  func.func @transform_11(%arg0: i32) -> (i32, i32) {
    %c0_i32 = arith.constant 0 : i32
    %c0_i32_0 = arith.constant 0 : i32
    %c0_i32_1 = arith.constant 0 : i32
    return %c0_i32, %c0_i32_0 : i32, i32
  }
  func.func @transform_12(%arg0: i32) -> (i32, i32) {
    %c0_i32 = arith.constant 0 : i32
    %c0_i32_0 = arith.constant 0 : i32
    %c0_i32_1 = arith.constant 0 : i32
    return %c0_i32, %c0_i32_0 : i32, i32
  }
  func.func @transform_13(%arg0: i32) -> (i32, i32, i32) {
    %c0_i32 = arith.constant 0 : i32
    %c0_i32_0 = arith.constant 0 : i32
    %c0_i32_1 = arith.constant 0 : i32
    return %arg0, %c0_i32, %c0_i32_0 : i32, i32, i32
  }
}

</mosaic_0001>

<bundles_post_ra>
// kernel: tile.14
= control target key start
LH: loop header
LB: loop body
LE: loop exit
PB: predicated region body
PF: predicated region fallthrough
CT: control target
= control target key end

     0   :  { %s28_s0 = inlined_call_operand.vmem [shape: f32[32], index: 0, kind: input, shape index: {}]   ;;  %s29_s1 = inlined_call_operand.vmem [shape: f32[13,32], index: 1, kind: output, shape index: {}]  }
   0x1   :  { %v4_v0 = vld [vmem:[%s28_s0] ss:$0 sm:$0xff] }
   0x2   :  { %5 = vst [vmem:[%s29_s1] sm:$0xff] %v4_v0  ;;  %8 = vst [vmem:[%s29_s1 + $0x8] sm:$0xff] %v4_v0 }

// kernel: tile.15
= control target key start
LH: loop header
LB: loop body
LE: loop exit
PB: predicated region body
PF: predicated region fallthrough
CT: control target
= control target key end

     0   :  { %s57_s8 = smov 96   ;;  %vm3_vm0 = vcmask 261120   ;;  %s59_s15 = smov 64   ;;  %vm9_vm1 = vcmask 1048320   ;;  %vm15_vm2 = vcmask 785920   ;;  %vm21_vm3 = vcmask 523520   ;;  %s94_s0 = inlined_call_operand.vmem [shape: f32[13,32], index: 0, kind: input, shape index: {}]   ;;  %s95_s1 = inlined_call_operand.vmem [shape: f32[1,416], index: 1, kind: output, shape index: {}]  }
   0x1   :  { %v48_v0 = vld [vmem:[%s94_s0 + $0x3] ss:$4 sm:$0x7]   ;;  %v49_v1 = vld [vmem:[%s94_s0 + $0x2] ss:$4 sm:$0x7]  }
   0x2   :  { %7 = vrot.lane.b32.xlu0 %v48_v0, %s57_s8  ;;  %v50_v2 = vld [vmem:[%s94_s0 + $0x1] ss:$4 sm:$0x7]   ;;  %v2_v3 = vld [vmem:[%s94_s0] ss:$4 sm:$0xf]  }
   0x3   :  { %s58_s0 = smov 32   ;;  %4 = vst.msk [vmem:[#allocation0] ss:$8 sm:$0xf] %vm3_vm0, %v2_v3  }
   0x4   :  { %19 = vrot.lane.b32.xlu1 %v50_v2, %s58_s0 }
   0x6   :  { %13 = vrot.lane.b32.xlu0 %v49_v1, %s59_s15 }
   0xa   :  { %v41_v4 = vld [vmem:[#allocation0 + $0x18] sm:$0x1] }
   0xb   :  { %53 = vst [vmem:[%s95_s1 + $0x3] sm:$0x1] %v41_v4 }
  0x74   :  { %v8_v5 = vpop.permute.xlu0 %7  }
  0x75   :  { %10 = vst.msk [vmem:[#allocation0] ss:$8 sm:$0x7] %vm9_vm1, %v8_v5  }
  0x76   :  { %v20_v6 = vpop.permute.xlu1 %19  }
  0x78   :  { %v14_v7 = vpop.permute.xlu0 %13  }
  0x79   :  { %16 = vst.msk [vmem:[#allocation0] ss:$8 sm:$0x7] %vm15_vm2, %v14_v7  }
  0x7a   :  { %22 = vst.msk [vmem:[#allocation0] ss:$8 sm:$0x7] %vm21_vm3, %v20_v6  }
  0x81   :  { %v26_v8 = vld [vmem:[#allocation0] sm:$0x1]  ;;  %v30_v9 = vld [vmem:[#allocation0 + $0x8] sm:$0x1]  ;;  %v35_v10 = vld [vmem:[#allocation0 + $0x10] sm:$0x1] }
  0x82   :  { %28 = vst [vmem:[%s95_s1] sm:$0x1] %v26_v8  ;;  %51 = vst [vmem:[%s95_s1 + $0x1] sm:$0x1] %v30_v9 }
  0x83   :  { %52 = vst [vmem:[%s95_s1 + $0x2] sm:$0x1] %v35_v10 }

// kernel: tile.19
= control target key start
LH: loop header
LB: loop body
LE: loop exit
PB: predicated region body
PF: predicated region fallthrough
CT: control target
= control target key end

     0   :  { %s22_s0 = inlined_call_operand.vmem [shape: f32[64], index: 0, kind: input, shape index: {}]   ;;  %s23_s1 = inlined_call_operand.vmem [shape: f32[5,64], index: 1, kind: output, shape index: {}]  }
   0x1   :  { %v4_v0 = vld [vmem:[%s22_s0] ss:$0 sm:$0xff] }
   0x2   :  { %5 = vst [vmem:[%s23_s1] sm:$0xff] %v4_v0 }

// kernel: tile.20
= control target key start
LH: loop header
LB: loop body
LE: loop exit
PB: predicated region body
PF: predicated region fallthrough
CT: control target
= control target key end

     0   :  { %s6_s6 = smov 3  ;;  %vm3_vm0 = vcmask 523264   ;;  %vm10_vm1 = vcmask 1048064   ;;  %s60_s0 = inlined_call_operand.vmem [shape: f32[5,64], index: 0, kind: input, shape index: {}]   ;;  %s61_s1 = inlined_call_operand.vmem [shape: f32[1,320], index: 1, kind: output, shape index: {}]  }
   0x1   :  { %v2_v0 = vld [vmem:[%s60_s0] ss:$2 sm:$0x7]   ;;  %v30_v1 = vld [vmem:[%s60_s0 + $0x1] ss:$2 sm:%s6_s6]   ;;  %s34_s0 = smov 64  }
   0x2   :  { %4 = vst.msk [vmem:[#allocation0] ss:$8 sm:$0x7] %vm3_vm0, %v2_v0   ;;  %8 = vrot.lane.b32.xlu0 %v30_v1, %s34_s0 }
   0x9   :  { %v24_v2 = vld [vmem:[#allocation0 + $0x10] sm:$0x1] }
   0xa   :  { %32 = vst [vmem:[%s61_s1 + $0x2] sm:$0x1] %v24_v2 }
  0x74   :  { %v9_v3 = vpop.permute.xlu0 %8  }
  0x75   :  { %11 = vst.msk [vmem:[#allocation0] ss:$8 sm:$0x3] %vm10_vm1, %v9_v3  }
  0x7c   :  { %v15_v4 = vld [vmem:[#allocation0] sm:$0x1]  ;;  %v19_v5 = vld [vmem:[#allocation0 + $0x8] sm:$0x1] }
  0x7d   :  { %17 = vst [vmem:[%s61_s1] sm:$0x1] %v15_v4  ;;  %31 = vst [vmem:[%s61_s1 + $0x1] sm:$0x1] %v19_v5 }

// kernel: net_forward.1
= control target key start
LH: loop header
LB: loop body
LE: loop exit
PB: predicated region body
PF: predicated region fallthrough
CT: control target
= control target key end

     0   :  { %s24207_s0 = inlined_call_operand.vmem [shape: f32[2,4,13,28], index: 0, kind: input, shape index: {}]   ;;  %s24208_s1 = inlined_call_operand.vmem [shape: f32[2,3,28,416], index: 1, kind: input, shape index: {}]   ;;  %s24209_s2 = inlined_call_operand.vmem [shape: f32[1,416], index: 2, kind: input, shape index: {}]   ;;  %s24210_s3 = inlined_call_operand.vmem [shape: f32[4,5,13], index: 3, kind: input, shape index: {}]   ;;  %s24211_s4 = inlined_call_operand.vmem [shape: f32[2,3,416,320], index: 4, kind: input, shape index: {}]   ;;  %s24212_s5 = inlined_call_operand.vmem [shape: f32[1,320], index: 5, kind: input, shape index: {}]   ;;  %s24213_s6 = inlined_call_operand.vmem [shape: f32[4,1,5], index: 6, kind: input, shape index: {}]   ;;  %s24214_s7 = inlined_call_operand.vmem [shape: f32[2,3,320,128], index: 7, kind: input, shape index: {}]   ;;  %s24215_s8 = inlined_call_operand.vmem [shape: f32[1,128], index: 8, kind: input, shape index: {}]   ;;  %s24216_s9 = inlined_call_operand.vmem [shape: f32[128,512], index: 9, kind: input, shape index: {}]   ;;  %s24217_s10 = inlined_call_operand.vmem [shape: f32[1,512], index: 10, kind: input, shape index: {}]   ;;  %s24218_s11 = inlined_call_operand.vmem [shape: f32[512,26], index: 11, kind: input, shape index: {}]   ;;  %s24219_s12 = inlined_call_operand.vmem [shape: f32[1,26], index: 12, kind: input, shape index: {}]   ;;  %s24220_s13 = inlined_call_operand.hbm [shape: f32[2,1,26], index: 13, kind: output, shape index: {}]  }
   0x1   :  { %24663 = sst [smem:[#allocation335_spill]] %s24207_s0 }
   0x2   :  { %18 = vsyncpa [#allocation3], 0 }
   0x3   :  { %20 = vsyncpa [#allocation3 + $0x1], 0  ;;  %s16448_s25 = smov 0   ;;  %s16450_s26 = smov 0  }
   0x4   :  { %s16452_s27 = smov 0   ;;  %s16454_s28 = smov 0  }
   0x5 LB: > { %24664 = sst [smem:[#allocation5_spill]] %s16367_s27  ;;  %s16469_s29 = sadd.s32 4294967295, %s16371_s28   ;;  %s16371_s28 = sphi %s16454_s28, %s25540_s28   ;;  %s16367_s27 = sphi %s16452_s27, %s25542_s27   ;;  %s16363_s26 = sphi %s16450_s26, %s25544_s26   ;;  %s16359_s25 = sphi %s16448_s25, %s25543_s25  }
   0x6   : > { %s10634_s30 = sadd.s32 4294967294, %s16371_s28   ;;  %s16473_s14 = sadd.s32 1, %s16371_s28  }
   0x7   : > { %24665 = sst [smem:[#allocation6_spill]] %s16473_s14  ;;  %s311_s15 = sadd.s32 1, %s16367_s27 }
   0x8   : > { %s308_s16 = ssub.s32 %s16371_s28, %s16473_s14  ;;  %p321_p0 = scmp.ne.s32.totalorder %s16367_s27, %s16363_s26 }
   0x9   : > { %p309_p1 = scmp.eq.s32.totalorder %s308_s16, 0  ;;  %p322_p2 = scmp.eq.s32.totalorder %s16469_s29, 1 }
   0xa   : > { %p327_p3 = scmp.ne.s32.totalorder %s16363_s26, %s16359_s25  ;;  %p328_p4 = scmp.eq.s32.totalorder %s10634_s30, 1 }
   0xb   : > { %s16484_s17 = scalar_select %p309_p1, %s16367_s27, %s311_s15  }
   0xc   : > { %p16486_p5 = por %p322_p2, %p321_p0  ;;  %p16490_p6 = por %p328_p4, %p327_p3 }
   0xd   : > { %24666 = sst [smem:[#allocation7_spill]] %s16484_s17  ;;  %p10637_p7 = scmp.ge.s32.totalorder %s16371_s28, 1 }
   0xe   : > { %p390_p8 = scmp.lt.s32.totalorder %s16371_s28, 3 }
  0x10   : > { %p391_p9 = pnand %p10637_p7, %p390_p8 }
  0x12   : > { %394 = sbr.rel (%p391_p9) target bundleno = 3567 (0xdef), region = 72 }
  0x19   : > { %v10647_v0 = vld [vmem:[%s24208_s1 + $0x88] sm:$0xff]  ;;  %v452_v2 = vld [vmem:[%s24208_s1 + $0x18] sm:$0xff]  ;;  %vm489_vm0 = vcmask 1043456   ;;  %v10646_v5 = vld [vmem:[%s24208_s1 + $0x80] sm:$0xff]  ;;  %v24225_v7 = vmov 0.0   ;;  %p433_p10 = scmp.lt.s32.totalorder %s16469_s29, 1 }
  0x1a   : > { %v10651_v1 = vld [vmem:[%s24208_s1 + $0xa8] sm:$0xff]  ;;  %v456_v4 = vld [vmem:[%s24208_s1 + $0x38] sm:$0xff]  ;;  %v10650_v6 = vld [vmem:[%s24208_s1 + $0xa0] sm:$0xff]  ;;  %566 = vmatprep.mubr.f32.mxu0 %v24225_v7  ;;  %815 = vmatprep.mubr.f32.mxu1 %v24225_v7  ;;  %vm16374_vm1 = vmmov 1   ;;  %s24671_s0 = sld [smem:[#allocation335_spill]]  ;;  %vm482_vm3 = vcmask 228352  }
  0x1b   : > { %v16505_v3 = vpack.c.bf16 %v10651_v1, %v10647_v0  ;;  %v16519_v8 = vpack.c.bf16 %v456_v4, %v452_v2  ;;  %v16521_v9 = vpack.c.bf16 %v10650_v6, %v10646_v5  ;;  %v451_v10 = vld [vmem:[%s24208_s1 + $0x10] sm:$0xff]  ;;  %v10655_v12 = vld [vmem:[%s24208_s1 + $0xc8] sm:$0xff]  ;;  %vm16540_vm2 = vmpackc.low %vm489_vm0, %vm16374_vm1  ;;  %s434_s22 = scalar_select %p433_p10, %s16469_s29, 1  ;;  %vm2595_vm4 = vcmask 1044480  }
  0x1c   : > { %v455_v11 = vld [vmem:[%s24208_s1 + $0x30] sm:$0xff]  ;;  %v10659_v14 = vld [vmem:[%s24208_s1 + $0xe8] sm:$0xf]  ;;  %v460_v16 = vld [vmem:[%s24208_s1 + $0x58] sm:$0xff]  ;;  %vm2591_vm6 = vcmask 105472   ;;  %vm3504_vm7 = vcmask 261120  }
  0x1d   : > { %13167 = vmatprep.subr.bf16.mxu0 %v16505_v3  ;;  %v16533_v13 = vpack.c.bf16 %v455_v11, %v451_v10  ;;  %13197 = vmatprep.subr.bf16.mxu1 %v16519_v8  ;;  %v16550_v17 = vpack.c.bf16 %v10659_v14, %v10655_v12  ;;  %v464_v18 = vld [vmem:[%s24208_s1 + $0x78] sm:$0xf]  ;;  %v10654_v19 = vld [vmem:[%s24208_s1 + $0xc0] sm:$0xff]  ;;  %v459_v23 = vld [vmem:[%s24208_s1 + $0x50] sm:$0xff]  ;;  %s11891_s27 = sshll.u32 %s434_s22, 6  ;;  %vm7574_vm8 = vcmask 39936  }
  0x1e   : > { %13169 = vmatpush1.bf16.msra.mxu0 %v16521_v9  ;;  %v10658_v20 = vld [vmem:[%s24208_s1 + $0xe0] sm:$0xf]  ;;  %v16562_v21 = vpack.c.bf16 %v464_v18, %v460_v16  ;;  %v463_v24 = vld [vmem:[%s24208_s1 + $0x70] sm:$0xf]  ;;  %v10649_v25 = vld [vmem:[%s24208_s1 + $0x98] sm:$0xff]  ;;  %vm16376_vm9 = vmmov 0  }
  0x1f   : > { %13199 = vmatpush1.bf16.msra.mxu1 %v16533_v13  ;;  %v16564_v22 = vpack.c.bf16 %v10658_v20, %v10654_v19  ;;  %13172 = vmatprep.subr.msk.bf16.mxu0 %vm16540_vm2, %v16550_v17  ;;  %v16578_v26 = vpack.c.bf16 %v463_v24, %v459_v23  ;;  %v10653_v27 = vld [vmem:[%s24208_s1 + $0xb8] sm:$0xff]  ;;  %v10648_v33 = vld [vmem:[%s24208_s1 + $0x90] sm:$0xff]  ;;  %v450_v52 = vld [vmem:[%s24208_s1 + $0x8] sm:$0xff]  ;;  %vm8247_vm10 = vcmask 523264   ;;  %vm10551_vm11 = vcmask 204800  }
  0x20   : > { %s16583_s16 = scalar_lea.vmem %s24671_s0, %s11891_s27  ;;  %v10681_v28 = vld [vmem:[%s24208_s1 + $0x118] sm:$0xff]  ;;  %13202 = vmatprep.subr.msk.bf16.mxu1 %vm16540_vm2, %v16562_v21  ;;  %v16600_v31 = vpack.c.bf16 %v10653_v27, %v10649_v25  ;;  %v10652_v34 = vld [vmem:[%s24208_s1 + $0xb0] sm:$0xff]  ;;  %v454_v53 = vld [vmem:[%s24208_s1 + $0x28] sm:$0xff]  ;;  %s431_s27 = sand.u32 1, %s16363_s26  }
  0x21   : > { %v10685_v29 = vld [vmem:[%s24208_s1 + $0x138] sm:$0xff]  ;;  %v16598_v30 = vld [vmem:[%s16583_s16 + $0x10] sm:$0xff]  ;;  %v16624_v37 = vld [vmem:[%s16583_s16] sm:$0xff]  ;;  %v16626_v38 = vpack.c.bf16 %v10652_v34, %v10648_v33  ;;  %v16692_v58 = vpack.c.bf16 %v454_v53, %v450_v52  ;;  %s432_s0 = scalar_lea.vmem [#allocation2], %s431_s27  ;;  %s10567_s22 = scalar_lea.sflag [#allocation3], %s431_s27 }
  0x22   : > { %v16602_v32 = vpack.c.bf16 %v10685_v29, %v10681_v28  ;;  %13175 = vmatpush1.bf16.msk.msra.mxu0 %vm16540_vm2, %v16564_v22  ;;  %v10680_v35 = vld [vmem:[%s24208_s1 + $0x110] sm:$0xff]  ;;  %v10657_v40 = vld [vmem:[%s24208_s1 + $0xd8] sm:$0xff]  ;;  %v16678_v54 = vld [vmem:[%s16583_s16 + $0x8] sm:$0x1f]  ;;  %s10579_s24 = sshll.u32 %s432_s0, 4  ;;  %s24166_s24 = int_to_ptr.vmem [resolvable:$true] %s10579_s24 }
  0x23   : > { %v10684_v36 = vld [vmem:[%s24208_s1 + $0x130] sm:$0xff]  ;;  %13205 = vmatpush1.bf16.msk.msra.mxu1 %vm16540_vm2, %v16578_v26  ;;  %13177 = vmatprep.subr.bf16.mxu0 %v16600_v31  ;;  %v10661_v41 = vld [vmem:[%s24208_s1 + $0xf8] sm:$0xf]  ;;  %v449_v59 = vld [vmem:[%s24208_s1] sm:$0xff]  ;;  %s16309_s21 = scalar_lea.vmem %s24166_s24, 16 }
  0x24   : > { %v16628_v39 = vpack.c.bf16 %v10684_v36, %v10680_v35  ;;  %13217 = vmatprep.subr.bf16.mxu1 %v16602_v32  ;;  %v16638_v42 = vld [vmem:[%s16583_s16 + $0x18] sm:$0x1f]  ;;  %v16640_v43 = vpack.c.bf16 %v10661_v41, %v10657_v40  ;;  %v10656_v47 = vld [vmem:[%s24208_s1 + $0xd0] sm:$0xff]  ;;  %v453_v60 = vld [vmem:[%s24208_s1 + $0x20] sm:$0xff]  ;;  %p16310_p11 = scmp.ne.s32.totalorder %s24166_s24, %s16309_s21 }
  0x25   : > { %v10689_v44 = vld [vmem:[%s24208_s1 + $0x158] sm:$0xff]  ;;  %10664 = vmatmul.mubr.msk.f32.vlgmr.msra.gmra.mrb[0].mxu0 %vm482_vm3, %v16598_v30  ;;  %v10660_v48 = vld [vmem:[%s24208_s1 + $0xf0] sm:$0xf]  ;;  %v458_v0 = vld [vmem:[%s24208_s1 + $0x48] sm:$0xff]  ;;  %v16724_v2 = vpack.c.bf16 %v453_v60, %v449_v59 }
  0x26   : > { %v10693_v45 = vld [vmem:[%s24208_s1 + $0x178] sm:$0xf]  ;;  %v10688_v49 = vld [vmem:[%s24208_s1 + $0x150] sm:$0xff]  ;;  %10676 = vmatmul.mubr.msk.f32.vlgmr.msra.gmra.mrb[0].mxu1 %vm482_vm3, %v16624_v37  ;;  %13179 = vmatpush1.bf16.msra.mxu0 %v16626_v38  ;;  %v16664_v50 = vpack.c.bf16 %v10660_v48, %v10656_v47  ;;  %v462_v1 = vld [vmem:[%s24208_s1 + $0x68] sm:$0xf]  ;;  %p16311_p12 = pnand %p16310_p11, %p16486_p5 }
  0x27   : > { %v16650_v46 = vpack.c.bf16 %v10693_v45, %v10689_v44  ;;  %v10692_v51 = vld [vmem:[%s24208_s1 + $0x170] sm:$0xf]  ;;  %13219 = vmatpush1.bf16.msra.mxu1 %v16628_v39  ;;  %572 = vmatprep.mubr.f32.mxu0 %v24225_v7  ;;  %v10721_v56 = vld [vmem:[%s24208_s1 + $0x218] sm:$0xff]  ;;  %v16737_v6 = vld [vmem:[%s16583_s16 + $0x20] sm:$0xff]  ;;  %v16749_v14 = vpack.c.bf16 %v462_v1, %v458_v0 }
  0x28   : > { %v16680_v55 = vpack.c.bf16 %v10692_v51, %v10688_v49  ;;  %v10725_v57 = vld [vmem:[%s24208_s1 + $0x238] sm:$0xff]  ;;  %821 = vmatprep.mubr.f32.mxu1 %v24225_v7  ;;  %13182 = vmatprep.subr.msk.bf16.mxu0 %vm16540_vm2, %v16640_v43  ;;  %v10720_v61 = vld [vmem:[%s24208_s1 + $0x210] sm:$0xff]  ;;  %v457_v11 = vld [vmem:[%s24208_s1 + $0x40] sm:$0xff]  ;;  %p16312_p13 = pneg %p16311_p12 }
  0x29   : > { %10665 = vmatmul.mubr.msk.f32.gmra.mrb[2].mxu0 %vm482_vm3, %v16638_v42  ;;  %13222 = vmatprep.subr.msk.bf16.mxu1 %vm16540_vm2, %v16650_v46  ;;  %v16708_v62 = vpack.c.bf16 %v10725_v57, %v10721_v56  ;;  %v10724_v63 = vld [vmem:[%s24208_s1 + $0x230] sm:$0xff]  ;;  %v10729_v4 = vld [vmem:[%s24208_s1 + $0x258] sm:$0xff]  ;;  %v461_v12 = vld [vmem:[%s24208_s1 + $0x60] sm:$0xf] }
  0x2a   : > { %10677 = vmatmul.mubr.msk.f32.gmra.mrb[2].mxu1 %vm482_vm3, %v16678_v54  ;;  %13185 = vmatpush1.bf16.msk.msra.mxu0 %vm16540_vm2, %v16664_v50  ;;  %v10733_v5 = vld [vmem:[%s24208_s1 + $0x278] sm:$0xf]  ;;  %v16739_v10 = vpack.c.bf16 %v10724_v63, %v10720_v61  ;;  %v10728_v16 = vld [vmem:[%s24208_s1 + $0x250] sm:$0xff]  ;;  %v10679_v20 = vld [vmem:[%s24208_s1 + $0x108] sm:$0xff]  ;;  %v16771_v24 = vpack.c.bf16 %v461_v12, %v457_v11 }
  0x2b   : > { %13225 = vmatpush1.bf16.msk.msra.mxu1 %vm16540_vm2, %v16680_v55  ;;  %643 = vmatprep.mubr.f32.mxu0 %v24225_v7  ;;  %v10732_v18 = vld [vmem:[%s24208_s1 + $0x270] sm:$0xf]  ;;  %v16760_v19 = vpack.c.bf16 %v10733_v5, %v10729_v4  ;;  %v10683_v23 = vld [vmem:[%s24208_s1 + $0x128] sm:$0xff]  ;;  %v10705_v25 = vld [vmem:[%s24208_s1 + $0x198] sm:$0xff] }
  0x2c   : > { %1004 = vmatprep.mubr.f32.mxu1 %v24225_v7  ;;  %13187 = vmatprep.subr.bf16.mxu0 %v16692_v58  ;;  %v10709_v27 = vld [vmem:[%s24208_s1 + $0x1b8] sm:$0xff]  ;;  %v16782_v28 = vld [vmem:[%s16583_s16 + $0x28] sm:$0x1f]  ;;  %v16784_v29 = vpack.c.bf16 %v10732_v18, %v10728_v16  ;;  %v10678_v33 = vld [vmem:[%s24208_s1 + $0x100] sm:$0xff]  ;;  %v16796_v35 = vpack.c.bf16 %v10683_v23, %v10679_v20 }
  0x2d   : > { %10668 = vmatmul.mubr.msk.f32.vlgmr.msra.gmra.mrb[4].mxu0 %vm482_vm3, %v16598_v30  ;;  %13237 = vmatprep.subr.bf16.mxu1 %v16708_v62  ;;  %v10682_v34 = vld [vmem:[%s24208_s1 + $0x120] sm:$0xff]  ;;  %v10704_v36 = vld [vmem:[%s24208_s1 + $0x190] sm:$0xff]  ;;  %v16809_v41 = vpack.c.bf16 %v10709_v27, %v10705_v25  ;;  %v10687_v44 = vld [vmem:[%s24208_s1 + $0x148] sm:$0xff] }
  0x2e   : > { %10700 = vmatmul.mubr.msk.f32.vlgmr.msra.gmra.mrb[0].mxu1 %vm482_vm3, %v16737_v6  ;;  %13189 = vmatpush1.bf16.msra.mxu0 %v16724_v2  ;;  %v10708_v40 = vld [vmem:[%s24208_s1 + $0x1b0] sm:$0xff]  ;;  %v10691_v45 = vld [vmem:[%s24208_s1 + $0x168] sm:$0xf]  ;;  %v16822_v47 = vpack.c.bf16 %v10682_v34, %v10678_v33  ;;  %v10713_v48 = vld [vmem:[%s24208_s1 + $0x1d8] sm:$0xff] }
  0x2f   : > { %13239 = vmatpush1.bf16.msra.mxu1 %v16739_v10  ;;  %649 = vmatprep.mubr.f32.mxu0 %v24225_v7  ;;  %v10717_v49 = vld [vmem:[%s24208_s1 + $0x1f8] sm:$0xf]  ;;  %v16834_v51 = vpack.c.bf16 %v10708_v40, %v10704_v36  ;;  %v10686_v52 = vld [vmem:[%s24208_s1 + $0x140] sm:$0xff]  ;;  %v16844_v56 = vpack.c.bf16 %v10691_v45, %v10687_v44  ;;  %v10712_v57 = vld [vmem:[%s24208_s1 + $0x1d0] sm:$0xff] }
  0x30   : > { %1010 = vmatprep.mubr.f32.mxu1 %v24225_v7  ;;  %13192 = vmatprep.subr.msk.bf16.mxu0 %vm16540_vm2, %v16749_v14  ;;  %v10690_v53 = vld [vmem:[%s24208_s1 + $0x160] sm:$0xf]  ;;  %v10716_v59 = vld [vmem:[%s24208_s1 + $0x1f0] sm:$0xf]  ;;  %v16855_v60 = vpack.c.bf16 %v10717_v49, %v10713_v48  ;;  %v10719_v61 = vld [vmem:[%s24208_s1 + $0x208] sm:$0xff] }
  0x31   : > { %10669 = vmatmul.mubr.msk.f32.gmra.mrb[6].mxu0 %vm482_vm3, %v16638_v42  ;;  %13242 = vmatprep.subr.msk.bf16.mxu1 %vm16540_vm2, %v16760_v19  ;;  %v10723_v63 = vld [vmem:[%s24208_s1 + $0x228] sm:$0xff]  ;;  %v16866_v0 = vpack.c.bf16 %v10690_v53, %v10686_v52  ;;  %v10753_v1 = vld [vmem:[%s24208_s1 + $0x298] sm:$0xff]  ;;  %v16876_v5 = vpack.c.bf16 %v10716_v59, %v10712_v57  ;;  %v10718_v11 = vld [vmem:[%s24208_s1 + $0x200] sm:$0xff] }
  0x32   : > { %10701 = vmatmul.mubr.msk.f32.gmra.mrb[2].mxu1 %vm482_vm3, %v16782_v28  ;;  %13195 = vmatpush1.bf16.msk.msra.mxu0 %vm16540_vm2, %v16771_v24  ;;  %v10757_v4 = vld [vmem:[%s24208_s1 + $0x2b8] sm:$0xff]  ;;  %v10722_v12 = vld [vmem:[%s24208_s1 + $0x220] sm:$0xff]  ;;  %v16888_v16 = vpack.c.bf16 %v10723_v63, %v10719_v61  ;;  %v10752_v18 = vld [vmem:[%s24208_s1 + $0x290] sm:$0xff] }
  0x33   : > { %13245 = vmatpush1.bf16.msk.msra.mxu1 %vm16540_vm2, %v16784_v29  ;;  %738 = vmatprep.mubr.f32.mxu0 %v24225_v7  ;;  %v10756_v20 = vld [vmem:[%s24208_s1 + $0x2b0] sm:$0xff]  ;;  %v16901_v23 = vpack.c.bf16 %v10757_v4, %v10753_v1  ;;  %v10727_v25 = vld [vmem:[%s24208_s1 + $0x248] sm:$0xff]  ;;  %v16914_v33 = vpack.c.bf16 %v10722_v12, %v10718_v11  ;;  %v10761_v34 = vld [vmem:[%s24208_s1 + $0x2d8] sm:$0xff] }
  0x34   : > { %1212 = vmatprep.mubr.f32.mxu1 %v24225_v7  ;;  %13207 = vmatprep.subr.bf16.mxu0 %v16796_v35  ;;  %v10731_v27 = vld [vmem:[%s24208_s1 + $0x268] sm:$0xf]  ;;  %v10765_v36 = vld [vmem:[%s24208_s1 + $0x2f8] sm:$0xf]  ;;  %v16926_v40 = vpack.c.bf16 %v10756_v20, %v10752_v18  ;;  %v10726_v44 = vld [vmem:[%s24208_s1 + $0x240] sm:$0xff] }
  0x35   : > { %10672 = vmatmul.mubr.msk.f32.vlgmr.msra.gmra.mrb[0].mxu0 %vm482_vm3, %v16624_v37  ;;  %13257 = vmatprep.subr.bf16.mxu1 %v16809_v41  ;;  %v10730_v45 = vld [vmem:[%s24208_s1 + $0x260] sm:$0xf]  ;;  %v16936_v48 = vpack.c.bf16 %v10731_v27, %v10727_v25  ;;  %v10760_v49 = vld [vmem:[%s24208_s1 + $0x2d0] sm:$0xff]  ;;  %v16947_v53 = vpack.c.bf16 %v10765_v36, %v10761_v34  ;;  %v10703_v57 = vld [vmem:[%s24208_s1 + $0x188] sm:$0xff] }
  0x36   : > { %10740 = vmatmul.mubr.msk.f32.vlgmr.msra.gmra.mrb[4].mxu1 %vm482_vm3, %v16598_v30  ;;  %13209 = vmatpush1.bf16.msra.mxu0 %v16822_v47  ;;  %v10764_v52 = vld [vmem:[%s24208_s1 + $0x2f0] sm:$0xf]  ;;  %v10707_v59 = vld [vmem:[%s24208_s1 + $0x1a8] sm:$0xff]  ;;  %v16958_v61 = vpack.c.bf16 %v10730_v45, %v10726_v44  ;;  %v10702_v1 = vld [vmem:[%s24208_s1 + $0x180] sm:$0xff] }
  0x37   : > { %13259 = vmatpush1.bf16.msra.mxu1 %v16834_v51  ;;  %744 = vmatprep.mubr.f32.mxu0 %v24225_v7  ;;  %v16962_v63 = vpack.c.bf16 %v10764_v52, %v10760_v49  ;;  %v10706_v4 = vld [vmem:[%s24208_s1 + $0x1a0] sm:$0xff]  ;;  %v16974_v11 = vpack.c.bf16 %v10707_v59, %v10703_v57  ;;  %v10711_v12 = vld [vmem:[%s24208_s1 + $0x1c8] sm:$0xff]  ;;  %vm17269_vm5 = vmpackc.low %vm2595_vm4, %vm16374_vm1 }
  0x38   : > { %1218 = vmatprep.mubr.f32.mxu1 %v24225_v7  ;;  %13212 = vmatprep.subr.msk.bf16.mxu0 %vm16540_vm2, %v16844_v56  ;;  %v10715_v18 = vld [vmem:[%s24208_s1 + $0x1e8] sm:$0xf]  ;;  %v16992_v20 = vpack.c.bf16 %v10706_v4, %v10702_v1  ;;  %v10710_v25 = vld [vmem:[%s24208_s1 + $0x1c0] sm:$0xff] }
  0x39   : > { %10673 = vmatmul.mubr.msk.f32.gmra.mrb[2].mxu0 %vm482_vm3, %v16678_v54  ;;  %13262 = vmatprep.subr.msk.bf16.mxu1 %vm16540_vm2, %v16855_v60  ;;  %v10714_v27 = vld [vmem:[%s24208_s1 + $0x1e0] sm:$0xf]  ;;  %v17006_v34 = vpack.c.bf16 %v10715_v18, %v10711_v12  ;;  %v10751_v36 = vld [vmem:[%s24208_s1 + $0x288] sm:$0xff] }
  0x3a   : > { %10741 = vmatmul.mubr.msk.f32.gmra.mrb[6].mxu1 %vm482_vm3, %v16638_v42  ;;  %13215 = vmatpush1.bf16.msk.msra.mxu0 %vm16540_vm2, %v16866_v0  ;;  %v10755_v44 = vld [vmem:[%s24208_s1 + $0x2a8] sm:$0xff]  ;;  %v17020_v45 = vpack.c.bf16 %v10714_v27, %v10710_v25  ;;  %v10754_v49 = vld [vmem:[%s24208_s1 + $0x2a0] sm:$0xff] }
  0x3b   : > { %13265 = vmatpush1.bf16.msk.msra.mxu1 %vm16540_vm2, %v16876_v5  ;;  %927 = vmatprep.mubr.f32.mxu0 %v24225_v7  ;;  %v17034_v52 = vpack.c.bf16 %v10755_v44, %v10751_v36  ;;  %v10763_v57 = vld [vmem:[%s24208_s1 + $0x2e8] sm:$0xf]  ;;  %v10762_v1 = vld [vmem:[%s24208_s1 + $0x2e0] sm:$0xf] }
  0x3c   : > { %1378 = vmatprep.mubr.f32.mxu1 %v24225_v7  ;;  %13227 = vmatprep.subr.bf16.mxu0 %v16888_v16 }
  0x3d   : > { %10696 = vmatmul.mubr.msk.f32.vlgmr.msra.gmra.mrb[0].mxu0 %vm482_vm3, %v16737_v6  ;;  %13277 = vmatprep.subr.bf16.mxu1 %v16901_v23 }
  0x3e   : > { %10748 = vmatmul.mubr.msk.f32.vlgmr.msra.gmra.mrb[4].mxu1 %vm482_vm3, %v16624_v37  ;;  %13229 = vmatpush1.bf16.msra.mxu0 %v16914_v33 }
  0x3f   : > { %13279 = vmatpush1.bf16.msra.mxu1 %v16926_v40  ;;  %933 = vmatprep.mubr.f32.mxu0 %v24225_v7 }
  0x40   : > { %1384 = vmatprep.mubr.f32.mxu1 %v24225_v7  ;;  %13232 = vmatprep.subr.msk.bf16.mxu0 %vm16540_vm2, %v16936_v48 }
  0x41   : > { %10697 = vmatmul.mubr.msk.f32.gmra.mrb[2].mxu0 %vm482_vm3, %v16782_v28  ;;  %13282 = vmatprep.subr.msk.bf16.mxu1 %vm16540_vm2, %v16947_v53 }
  0x42   : > { %10749 = vmatmul.mubr.msk.f32.gmra.mrb[6].mxu1 %vm482_vm3, %v16678_v54  ;;  %13235 = vmatpush1.bf16.msk.msra.mxu0 %vm16540_vm2, %v16958_v61 }
  0x43   : > { %13285 = vmatpush1.bf16.msk.msra.mxu1 %vm16540_vm2, %v16962_v63  ;;  %1135 = vmatprep.mubr.f32.mxu0 %v24225_v7 }
  0x44   : > { %1561 = vmatprep.mubr.f32.mxu1 %v24225_v7  ;;  %13247 = vmatprep.subr.bf16.mxu0 %v16974_v11 }
  0x45   : > { %10736 = vmatmul.mubr.msk.f32.vlgmr.msra.gmra.mrb[8].mxu0 %vm482_vm3, %v16598_v30  ;;  %13297 = vmatprep.subr.bf16.mxu1 %v16600_v31  ;;  %v10750_v31 = vld [vmem:[%s24208_s1 + $0x280] sm:$0xff] }
  0x46   : > { %10772 = vmatmul.mubr.msk.f32.vlgmr.msra.gmra.mrb[4].mxu1 %vm482_vm3, %v16737_v6  ;;  %13249 = vmatpush1.bf16.msra.mxu0 %v16992_v20  ;;  %v17052_v59 = vpack.c.bf16 %v10754_v49, %v10750_v31  ;;  %v2552_v31 = vld [vmem:[%s24209_s2] sm:$0xf] }
  0x47   : > { %13299 = vmatpush1.bf16.msra.mxu1 %v16626_v38  ;;  %1141 = vmatprep.mubr.f32.mxu0 %v24225_v7  ;;  %v10759_v38 = vld [vmem:[%s24208_s1 + $0x2c8] sm:$0xff] }
  0x48   : > { %1567 = vmatprep.mubr.f32.mxu1 %v24225_v7  ;;  %13252 = vmatprep.subr.msk.bf16.mxu0 %vm16540_vm2, %v17006_v34  ;;  %v17066_v4 = vpack.c.bf16 %v10763_v57, %v10759_v38 }
  0x49   : > { %10737 = vmatmul.mubr.msk.f32.gmra.mrb[10].mxu0 %vm482_vm3, %v16638_v42  ;;  %13302 = vmatprep.subr.msk.bf16.mxu1 %vm16540_vm2, %v16640_v43  ;;  %v10758_v43 = vld [vmem:[%s24208_s1 + $0x2c0] sm:$0xff] }
  0x4a   : > { %10773 = vmatmul.mubr.msk.f32.gmra.mrb[6].mxu1 %vm482_vm3, %v16782_v28  ;;  %13255 = vmatpush1.bf16.msk.msra.mxu0 %vm16540_vm2, %v17020_v45 }
  0x4b   : > { %13305 = vmatpush1.bf16.msk.msra.mxu1 %vm16540_vm2, %v16664_v50  ;;  %1301 = vmatprep.mubr.f32.mxu0 %v24225_v7  ;;  %v17074_v50 = vpack.c.bf16 %v10762_v1, %v10758_v43 }
  0x4c   : > { %1731 = vmatprep.mubr.f32.mxu1 %v24225_v7  ;;  %13267 = vmatprep.subr.bf16.mxu0 %v17034_v52 }
  0x4d   : > { %10744 = vmatmul.mubr.msk.f32.vlgmr.msra.gmra.mrb[8].mxu0 %vm482_vm3, %v16624_v37  ;;  %13317 = vmatprep.subr.bf16.mxu1 %v16519_v8  ;;  %v17138_v8 = vld [vmem:[%s16583_s16 + $0x38] sm:$0x1f] }
  0x4e   : > { %10780 = vmatmul.mubr.msk.f32.vlgmr.msra.gmra.mrb[8].mxu1 %vm482_vm3, %v16737_v6  ;;  %13269 = vmatpush1.bf16.msra.mxu0 %v17052_v59 }
  0x4f   : > { %13319 = vmatpush1.bf16.msra.mxu1 %v16533_v13  ;;  %1307 = vmatprep.mubr.f32.mxu0 %v24225_v7 }
  0x50   : > { %1737 = vmatprep.mubr.f32.mxu1 %v24225_v7  ;;  %13272 = vmatprep.subr.msk.bf16.mxu0 %vm16540_vm2, %v17066_v4 }
  0x51   : > { %10745 = vmatmul.mubr.msk.f32.gmra.mrb[10].mxu0 %vm482_vm3, %v16678_v54  ;;  %13322 = vmatprep.subr.msk.bf16.mxu1 %vm16540_vm2, %v16562_v21 }
  0x52   : > { %10781 = vmatmul.mubr.msk.f32.gmra.mrb[10].mxu1 %vm482_vm3, %v16782_v28  ;;  %13275 = vmatpush1.bf16.msk.msra.mxu0 %vm16540_vm2, %v17074_v50 }
  0x53   : > { %13325 = vmatpush1.bf16.msk.msra.mxu1 %vm16540_vm2, %v16578_v26  ;;  %1484 = vmatprep.mubr.f32.mxu0 %v24225_v7 }
  0x54   : > { %1885 = vmatprep.mubr.f32.mxu1 %v24225_v7  ;;  %13287 = vmatprep.subr.bf16.mxu0 %v16505_v3  ;;  %v17125_v3 = vld [vmem:[%s16583_s16 + $0x30] sm:$0xff]  ;;  %s11888_s16 = sshll.u32 %s16469_s29, 4  ;;  %s16377_s29 = smov [#allocation2]  }
  0x55   : > { %10768 = vmatmul.mubr.msk.f32.vlgmr.msra.gmra.mrb[8].mxu0 %vm482_vm3, %v16737_v6  ;;  %13337 = vmatprep.subr.bf16.mxu1 %v16602_v32  ;;  %s24164_s20 = scalar_lea.hbm %s24220_s13, %s11888_s16  ;;  %s16313_s23 = sshll.u32 %s16377_s29, 4  ;;  %s16314_s23 = int_to_ptr.vmem [resolvable:$false] %s16313_s23 }
  0x56   : > { %10788 = vmatmul.mubr.msk.f32.vlgmr.msra.gmra.mrb[8].mxu1 %vm482_vm3, %v16598_v30  ;;  %13289 = vmatpush1.bf16.msra.mxu0 %v16521_v9  ;;  %s16315_s17 = scalar_lea.vmem %s16314_s23, 32  ;;  %p16316_p0 = scmp.lt.s32.totalorder %s24166_s24, %s16314_s23 }
  0x57   : > { %13339 = vmatpush1.bf16.msra.mxu1 %v16628_v39  ;;  %1490 = vmatprep.mubr.f32.mxu0 %v24225_v7  ;;  %p16317_p1 = scmp.lt.s32.totalorder %s16315_s17, %s16309_s21 }
  0x58   : > { %1891 = vmatprep.mubr.f32.mxu1 %v24225_v7  ;;  %13292 = vmatprep.subr.msk.bf16.mxu0 %vm16540_vm2, %v16550_v17 }
  0x59   : > { %10769 = vmatmul.mubr.msk.f32.gmra.mrb[10].mxu0 %vm482_vm3, %v16782_v28  ;;  %13342 = vmatprep.subr.msk.bf16.mxu1 %vm16540_vm2, %v16650_v46  ;;  %p16318_p2 = por %p16317_p1, %p16316_p0 }
  0x5a   : > { %10789 = vmatmul.mubr.msk.f32.gmra.mrb[10].mxu1 %vm482_vm3, %v16638_v42  ;;  %13295 = vmatpush1.bf16.msk.msra.mxu0 %vm16540_vm2, %v16564_v22 }
  0x5b   : > { %13345 = vmatpush1.bf16.msk.msra.mxu1 %vm16540_vm2, %v16680_v55  ;;  %1654 = vmatprep.mubr.f32.mxu0 %v24225_v7  ;;  %p16319_p3 = pnand %p16318_p2, %p16312_p13 }
  0x5c   : > { %2045 = vmatprep.mubr.f32.mxu1 %v24225_v7  ;;  %13307 = vmatprep.subr.bf16.mxu0 %v16692_v58 }
  0x5d   : > { %10776 = vmatmul.mubr.msk.f32.vlgmr.msra.gmra.mrb[12].mxu0 %vm482_vm3, %v16737_v6  ;;  %13357 = vmatprep.subr.bf16.mxu1 %v16708_v62 }
  0x5e   : > { %10796 = vmatmul.mubr.msk.f32.vlgmr.msra.gmra.mrb[8].mxu1 %vm482_vm3, %v17125_v3  ;;  %13309 = vmatpush1.bf16.msra.mxu0 %v16724_v2 }
  0x5f   : > { %13359 = vmatpush1.bf16.msra.mxu1 %v16739_v10  ;;  %1660 = vmatprep.mubr.f32.mxu0 %v24225_v7 }
  0x60   : > { %2051 = vmatprep.mubr.f32.mxu1 %v24225_v7  ;;  %13312 = vmatprep.subr.msk.bf16.mxu0 %vm16540_vm2, %v16749_v14 }
  0x61   : > { %10777 = vmatmul.mubr.msk.f32.gmra.mrb[14].mxu0 %vm482_vm3, %v16782_v28  ;;  %13362 = vmatprep.subr.msk.bf16.mxu1 %vm16540_vm2, %v16760_v19 }
  0x62   : > { %10797 = vmatmul.mubr.msk.f32.gmra.mrb[10].mxu1 %vm482_vm3, %v17138_v8  ;;  %13315 = vmatpush1.bf16.msk.msra.mxu0 %vm16540_vm2, %v16771_v24 }
  0x63   : > { %13365 = vmatpush1.bf16.msk.msra.mxu1 %vm16540_vm2, %v16784_v29  ;;  %1808 = vmatprep.mubr.f32.mxu0 %v24225_v7 }
  0x64   : > { %2215 = vmatprep.mubr.f32.mxu1 %v24225_v7  ;;  %13327 = vmatprep.subr.bf16.mxu0 %v16796_v35 }
  0x65   : > { %10784 = vmatmul.mubr.msk.f32.vlgmr.msra.gmra.mrb[12].mxu0 %vm482_vm3, %v16598_v30  ;;  %13377 = vmatprep.subr.bf16.mxu1 %v16809_v41 }
  0x66   : > { %10804 = vmatmul.mubr.msk.f32.vlgmr.msra.gmra.mrb[12].mxu1 %vm482_vm3, %v16737_v6  ;;  %13329 = vmatpush1.bf16.msra.mxu0 %v16822_v47 }
  0x67   : > { %13379 = vmatpush1.bf16.msra.mxu1 %v16834_v51  ;;  %1814 = vmatprep.mubr.f32.mxu0 %v24225_v7 }
  0x68   : > { %2221 = vmatprep.mubr.f32.mxu1 %v24225_v7  ;;  %13332 = vmatprep.subr.msk.bf16.mxu0 %vm16540_vm2, %v16844_v56 }
  0x69   : > { %10785 = vmatmul.mubr.msk.f32.gmra.mrb[14].mxu0 %vm482_vm3, %v16638_v42  ;;  %13382 = vmatprep.subr.msk.bf16.mxu1 %vm16540_vm2, %v16855_v60 }
  0x6a   : > { %10805 = vmatmul.mubr.msk.f32.gmra.mrb[14].mxu1 %vm482_vm3, %v16782_v28  ;;  %13335 = vmatpush1.bf16.msk.msra.mxu0 %vm16540_vm2, %v16866_v0 }
  0x6b   : > { %13385 = vmatpush1.bf16.msk.msra.mxu1 %vm16540_vm2, %v16876_v5  ;;  %1968 = vmatprep.mubr.f32.mxu0 %v24225_v7 }
  0x6c   : > { %2369 = vmatprep.mubr.f32.mxu1 %v24225_v7  ;;  %13347 = vmatprep.subr.bf16.mxu0 %v16888_v16 }
  0x6d   : > { %10792 = vmatmul.mubr.msk.f32.vlgmr.msra.gmra.mrb[12].mxu0 %vm482_vm3, %v17125_v3  ;;  %13397 = vmatprep.subr.bf16.mxu1 %v16901_v23 }
  0x6e   : > { %10812 = vmatmul.mubr.msk.f32.vlgmr.msra.gmra.mrb[12].mxu1 %vm482_vm3, %v16598_v30  ;;  %13349 = vmatpush1.bf16.msra.mxu0 %v16914_v33 }
  0x6f   : > { %13399 = vmatpush1.bf16.msra.mxu1 %v16926_v40  ;;  %1974 = vmatprep.mubr.f32.mxu0 %v24225_v7 }
  0x70   : > { %2375 = vmatprep.mubr.f32.mxu1 %v24225_v7  ;;  %13352 = vmatprep.subr.msk.bf16.mxu0 %vm16540_vm2, %v16936_v48 }
  0x71   : > { %10793 = vmatmul.mubr.msk.f32.gmra.mrb[14].mxu0 %vm482_vm3, %v17138_v8  ;;  %13402 = vmatprep.subr.msk.bf16.mxu1 %vm16540_vm2, %v16947_v53 }
  0x72   : > { %10813 = vmatmul.mubr.msk.f32.gmra.mrb[14].mxu1 %vm482_vm3, %v16638_v42  ;;  %13355 = vmatpush1.bf16.msk.msra.mxu0 %vm16540_vm2, %v16958_v61 }
  0x73   : > { %13405 = vmatpush1.bf16.msk.msra.mxu1 %vm16540_vm2, %v16962_v63  ;;  %2138 = vmatprep.mubr.f32.mxu0 %v24225_v7  ;;  %v2554_v63 = vlaneseq }
  0x74   : > { %2523 = vmatprep.mubr.f32.mxu1 %v24225_v7  ;;  %13367 = vmatprep.subr.bf16.mxu0 %v16974_v11 }
  0x75   : > { %10800 = vmatmul.mubr.msk.f32.vlgmr.msra.gmra.mrb[16].mxu0 %vm482_vm3, %v16737_v6  ;;  %v17255_v25 = vshrl.u32 %v2554_v63, 7  ;;  %v10908_v63 = vld [vmem:[%s24211_s4 + $0x6b8] sm:$0xff] }
  0x76   : > { %10820 = vmatmul.mubr.msk.f32.vlgmr.msra.gmra.mrb[12].mxu1 %vm482_vm3, %v17125_v3  ;;  %13369 = vmatpush1.bf16.msra.mxu0 %v16992_v20 }
  0x77   : > { %2144 = vmatprep.mubr.f32.mxu0 %v24225_v7  ;;  %2529 = vmatprep.mubr.f32.mxu1 %v24225_v7  ;;  %24672 = vst [vmem:[#allocation8_spill] sm:$0xff] %v17255_v25  ;;  %v24224_v49 = vsub.s32 3, %v17255_v25 }
  0x78   : > { %13372 = vmatprep.subr.msk.bf16.mxu0 %vm16540_vm2, %v17006_v34 }
  0x79   : > { %10801 = vmatmul.mubr.msk.f32.gmra.mrb[18].mxu0 %vm482_vm3, %v16782_v28  ;;  %v2569_v1 = vrot.slane %v2552_v31, %v24224_v49  ;;  %v10947_v49 = vld [vmem:[%s24211_s4 + $0x7f0] sm:$0xff] }
  0x7a   : > { %10821 = vmatmul.mubr.msk.f32.gmra.mrb[14].mxu1 %vm482_vm3, %v17138_v8  ;;  %13375 = vmatpush1.bf16.msk.msra.mxu0 %vm16540_vm2, %v17020_v45  ;;  %v17258_v45 = vsub.s32 2, %v17255_v25 }
  0x7b   : > { %2292 = vmatprep.mubr.f32.mxu0 %v24225_v7  ;;  %13387 = vmatprep.subr.bf16.mxu0 %v17034_v52 }
  0x7c   : > { %2743 = vmatprep.mubr.f32.mxu1 %v24225_v7  ;;  %24673 = vst [vmem:[#allocation9_spill] sm:$0xff] %v17258_v45  ;;  %v2565_v57 = vrot.slane %v2552_v31, %v17258_v45 }
  0x7d   : > { %10808 = vmatmul.mubr.msk.f32.vlgmr.msra.gmra.mrb[16].mxu0 %vm482_vm3, %v16598_v30 }
  0x7e   : > { %13389 = vmatpush1.bf16.msra.mxu0 %v17052_v59  ;;  %2298 = vmatprep.mubr.f32.mxu0 %v24225_v7 }
  0x7f   : > { %13392 = vmatprep.subr.msk.bf16.mxu0 %vm16540_vm2, %v17066_v4 }
  0x81   : > { %10809 = vmatmul.mubr.msk.f32.gmra.mrb[18].mxu0 %vm482_vm3, %v16638_v42 }
  0x82   : > { %13395 = vmatpush1.bf16.msk.msra.mxu0 %vm16540_vm2, %v17074_v50  ;;  %2446 = vmatprep.mubr.f32.mxu0 %v24225_v7 }
  0x85   : > { %10816 = vmatmul.mubr.msk.f32.vlgmr.msra.gmra.mrb[16].mxu0 %vm482_vm3, %v17125_v3 }
  0x86   : > { %2452 = vmatprep.mubr.f32.mxu0 %v24225_v7 }
  0x89   : > { %10817 = vmatmul.mubr.msk.f32.gmra.mrb[18].mxu0 %vm482_vm3, %v17138_v8 }
  0x8a   : > { %2672 = vmatprep.mubr.f32.mxu0 %v24225_v7 }
 0x100   : > { %v645_v9 = vpop.f32.mrb[4].mxu0 }
 0x101   : > { %v1006_v13 = vpop.f32.mrb[0].mxu1  ;;  %v647_v17 = vpop.f32.mrb[5].mxu0 }
 0x102   : > { %v16102_v21 = vadd.f32 %v1006_v13, %v645_v9  ;;  %v1008_v22 = vpop.f32.mrb[1].mxu1 }
 0x103   : > { %v16103_v26 = vadd.f32 %v1008_v22, %v647_v17 }
 0x104   : > { %v651_v15 = vpop.f32.mrb[6].mxu0 }
 0x105   : > { %v1012_v30 = vpop.f32.mrb[2].mxu1  ;;  %v653_v32 = vpop.f32.mrb[7].mxu0 }
 0x106   : > { %v16104_v37 = vadd.f32 %v1012_v30, %v651_v15  ;;  %v1014_v39 = vpop.f32.mrb[3].mxu1 }
 0x107   : > { %v16105_v42 = vadd.f32 %v1014_v39, %v653_v32 }
 0x110   : > { %v929_v46 = vpop.f32.mrb[0].mxu0 }
 0x111   : > { %v931_v54 = vpop.f32.mrb[1].mxu0 }
 0x114   : > { %v935_v55 = vpop.f32.mrb[2].mxu0 }
 0x115   : > { %v937_v58 = vpop.f32.mrb[3].mxu0 }
 0x119   : > { %v1563_v62 = vpop.f32.mrb[4].mxu1 }
 0x11a   : > { %v1584_v2 = vmax.f32 %v16102_v21, %v1563_v62  ;;  %v1565_v6 = vpop.f32.mrb[5].mxu1 }
 0x11b   : > { %v1585_v10 = vmax.f32 %v16103_v26, %v1565_v6 }
 0x11d   : > { %v1569_v14 = vpop.f32.mrb[6].mxu1 }
 0x11e   : > { %v1588_v19 = vmax.f32 %v16104_v37, %v1569_v14  ;;  %v1571_v24 = vpop.f32.mrb[7].mxu1  ;;  %v10862_v37 = vld [vmem:[%s24211_s4 + $0x548] sm:$0xff] }
 0x11f   : > { %v1589_v28 = vmax.f32 %v16105_v42, %v1571_v24  ;;  %v17274_v42 = vsub.s32 0, %v17255_v25 }
 0x121   : > { %24676 = vst [vmem:[#allocation10_spill] sm:$0xff] %v17274_v42  ;;  %v2557_v62 = vrot.slane %v2552_v31, %v17274_v42 }
 0x128   : > { %v1486_v29 = vpop.f32.mrb[8].mxu0 }
 0x129   : > { %v1582_v35 = vmax.f32 %v929_v46, %v1486_v29  ;;  %v1488_v41 = vpop.f32.mrb[9].mxu0  ;;  %v17277_v46 = vsub.s32 1, %v17255_v25  ;;  %v10955_v25 = vld [vmem:[%s24211_s4 + $0x830] sm:$0xff] }
 0x12a   : > { %v1583_v47 = vmax.f32 %v931_v54, %v1488_v41 }
 0x12b   : > { %24677 = vst [vmem:[#allocation11_spill] sm:$0xff] %v17277_v46 }
 0x12c   : > { %v1492_v51 = vpop.f32.mrb[10].mxu0 }
 0x12d   : > { %v1586_v56 = vmax.f32 %v935_v55, %v1492_v51  ;;  %v1494_v60 = vpop.f32.mrb[11].mxu0  ;;  %v2590_v55 = vld [vmem:[%s24210_s3] sm:$0x1f]  ;;  %v10902_v51 = vld [vmem:[%s24211_s4 + $0x688] sm:$0xff] }
 0x12e   : > { %v1587_v0 = vmax.f32 %v937_v58, %v1494_v60 }
 0x131   : > { %v2047_v5 = vpop.f32.mrb[8].mxu1 }
 0x132   : > { %v2068_v16 = vmax.f32 %v1584_v2, %v2047_v5  ;;  %v2049_v23 = vpop.f32.mrb[9].mxu1 }
 0x133   : > { %v2069_v33 = vmax.f32 %v1585_v10, %v2049_v23  ;;  %v2561_v10 = vrot.slane %v2552_v31, %v17277_v46  ;;  %v10914_v31 = vld [vmem:[%s24211_s4 + $0x6e8] sm:$0xff] }
 0x135   : > { %v2053_v40 = vpop.f32.mrb[10].mxu1 }
 0x136   : > { %v2072_v48 = vmax.f32 %v1588_v19, %v2053_v40  ;;  %v2055_v53 = vpop.f32.mrb[11].mxu1  ;;  %v10828_v19 = vld [vmem:[%s24210_s3 + $0x8] sm:$0x1f] }
 0x137   : > { %v2073_v61 = vmax.f32 %v1589_v28, %v2055_v53  ;;  %v10854_v40 = vld [vmem:[%s24211_s4 + $0x508] sm:$0xff] }
 0x140   : > { %v1970_v11 = vpop.f32.mrb[12].mxu0 }
 0x141   : > { %v2066_v12 = vmax.f32 %v1582_v35, %v1970_v11  ;;  %v1972_v18 = vpop.f32.mrb[13].mxu0 }
 0x142   : > { %v2067_v20 = vmax.f32 %v1583_v47, %v1972_v18  ;;  %v10899_v47 = vld [vmem:[%s24211_s4 + $0x670] sm:$0xff] }
 0x143   : > { %v17316_v23 = vpack.c.bf16 %v10902_v51, %v10899_v47  ;;  %v10935_v47 = vld [vmem:[%s24211_s4 + $0x790] sm:$0xff]  ;;  %v10938_v51 = vld [vmem:[%s24211_s4 + $0x7a8] sm:$0xff] }
 0x144   : > { %v1976_v27 = vpop.f32.mrb[14].mxu0 }
 0x145   : > { %v2070_v34 = vmax.f32 %v1586_v56, %v1976_v27  ;;  %v1978_v36 = vpop.f32.mrb[15].mxu0  ;;  %24678 = vst [vmem:[#allocation12_spill] sm:$0xff] %v17316_v23  ;;  %v10857_v27 = vld [vmem:[%s24211_s4 + $0x520] sm:$0xff] }
 0x146   : > { %v2071_v44 = vmax.f32 %v1587_v0, %v1978_v36  ;;  %v17312_v0 = vld [vmem:[%s24210_s3 + $0x10] sm:$0x1f]  ;;  %v10842_v36 = vld [vmem:[%s24210_s3 + $0x18] sm:$0x1f] }
 0x149   : > { %v2525_v52 = vpop.f32.mrb[12].mxu1 }
 0x14a   : > { %v2546_v38 = vmax.f32 %v2068_v16, %v2525_v52  ;;  %v2527_v59 = vpop.f32.mrb[13].mxu1 }
 0x14b   : > { %v2547_v43 = vmax.f32 %v2069_v33, %v2527_v59  ;;  %v10851_v33 = vld [vmem:[%s24211_s4 + $0x4f0] sm:$0xff]  ;;  %v10866_v59 = vld [vmem:[%s24211_s4 + $0x568] sm:$0xff] }
 0x14c   : > { %v2576_v50 = vadd.f32 %v2565_v57, %v2546_v38  ;;  %v17335_v18 = vpack.c.bf16 %v10854_v40, %v10851_v33  ;;  %v10871_v40 = vld [vmem:[%s24211_s4 + $0x590] sm:$0xff] }
 0x14d   : > { %v2531_v4 = vpop.f32.mrb[14].mxu1  ;;  %v2577_v9 = vadd.f32 %v2569_v1, %v2547_v43  ;;  %v10917_v43 = vld [vmem:[%s24211_s4 + $0x700] sm:$0xff] }
 0x14e   : > { %v2550_v3 = vmax.f32 %v2072_v48, %v2531_v4  ;;  %v2533_v8 = vpop.f32.mrb[15].mxu1  ;;  %v2584_v22 = vmax.f32 %v2576_v50, 0.0  ;;  %24679 = vst [vmem:[#allocation13_spill] sm:$0xff] %v17335_v18  ;;  %v10850_v4 = vld [vmem:[%s24211_s4 + $0x4e8] sm:$0xff] }
 0x14f   : > { %v2551_v13 = vmax.f32 %v2073_v61, %v2533_v8  ;;  %v2585_v15 = vmax.f32 %v2577_v9, 0.0  ;;  %v10905_v61 = vld [vmem:[%s24211_s4 + $0x6a0] sm:$0xff] }
 0x150   : > { %v2580_v17 = vadd.f32 %v2565_v57, %v2550_v3  ;;  %v10863_v57 = vld [vmem:[%s24211_s4 + $0x550] sm:$0xff]  ;;  %v10853_v3 = vld [vmem:[%s24211_s4 + $0x500] sm:$0xff] }
 0x151   : > { %v2581_v21 = vadd.f32 %v2569_v1, %v2551_v13  ;;  %v10920_v1 = vld [vmem:[%s24211_s4 + $0x718] sm:$0xff]  ;;  %v17390_v50 = vpack.c.bf16 %v10866_v59, %v10863_v57  ;;  %v10869_v9 = vld [vmem:[%s24211_s4 + $0x580] sm:$0xff] }
 0x152   : > { %v2588_v26 = vmax.f32 %v2580_v17, 0.0  ;;  %v17396_v8 = vpack.c.bf16 %v10920_v1, %v10917_v43  ;;  %v10872_v13 = vld [vmem:[%s24211_s4 + $0x598] sm:$0xff]  ;;  %v10923_v17 = vld [vmem:[%s24211_s4 + $0x730] sm:$0xff]  ;;  %v10873_v59 = vld [vmem:[%s24211_s4 + $0x5a0] sm:$0xff] }
 0x153   : > { %v2589_v30 = vmax.f32 %v2581_v21, 0.0  ;;  %24683 = vst [vmem:[#allocation17_spill] sm:$0xff] %v17390_v50  ;;  %v10926_v21 = vld [vmem:[%s24211_s4 + $0x748] sm:$0xff]  ;;  %v10876_v43 = vld [vmem:[%s24211_s4 + $0x5b8] sm:$0xff] }
 0x154   : > { %v13415_v32 = vpack.c.bf16 %v2588_v26, %v2584_v22  ;;  %24684 = vst [vmem:[#allocation18_spill] sm:$0xff] %v17396_v8  ;;  %v17416_v22 = vpack.c.bf16 %v10853_v3, %v10850_v4  ;;  %v10849_v26 = vld [vmem:[%s24211_s4 + $0x4e0] sm:$0xff]  ;;  %v10880_v1 = vld [vmem:[%s24211_s4 + $0x5d8] sm:$0xff]  ;;  %v10883_v4 = vld [vmem:[%s24211_s4 + $0x5f0] sm:$0xff]  ;;  %v17561_v3 = vpack.c.bf16 %v10876_v43, %v10873_v59 }
 0x155   : > { %v13412_v39 = vpack.c.bf16 %v2589_v30, %v2585_v15  ;;  %v10852_v15 = vld [vmem:[%s24211_s4 + $0x4f8] sm:$0xff]  ;;  %v10909_v43 = vld [vmem:[%s24211_s4 + $0x6c0] sm:$0xff] }
 0x156   : > { %v10856_v30 = vld [vmem:[%s24211_s4 + $0x518] sm:$0xff] }
 0x157   : > { %13414 = vmatprep.subr.msk.bf16.mxu1 %vm17269_vm5, %v13412_v39 }
 0x158   : > { %13417 = vmatpush1.bf16.msk.msra.mxu1 %vm17269_vm5, %v13415_v32  ;;  %v2448_v54 = vpop.f32.mrb[16].mxu0 }
 0x159   : > { %v2544_v58 = vmax.f32 %v2066_v12, %v2448_v54  ;;  %13426 = vmatprep.subr.msk.bf16.mxu1 %vm17269_vm5, %v13412_v39  ;;  %v2450_v2 = vpop.f32.mrb[17].mxu0  ;;  %v17434_v54 = vpack.c.bf16 %v10926_v21, %v10923_v17  ;;  %v10882_v17 = vld [vmem:[%s24211_s4 + $0x5e8] sm:$0xff] }
 0x15a   : > { %v2545_v6 = vmax.f32 %v2067_v20, %v2450_v2  ;;  %v17338_v20 = vpack.c.bf16 %v10908_v63, %v10905_v61  ;;  %v10932_v2 = vld [vmem:[%s24211_s4 + $0x778] sm:$0xff]  ;;  %v10890_v61 = vld [vmem:[%s24211_s4 + $0x628] sm:$0xff] }
 0x15b   : > { %10827 = vmatmul.mubr.msk.f32.vlgmr.msra.gmra.mrb[16].mxu1 %vm2591_vm6, %v2590_v55  ;;  %v2574_v24 = vadd.f32 %v2557_v62, %v2544_v58  ;;  %24686 = vst [vmem:[#allocation20_spill] sm:$0xff] %v17434_v54  ;;  %v10878_v58 = vld [vmem:[%s24211_s4 + $0x5c8] sm:$0xff] }
 0x15c   : > { %13429 = vmatpush1.bf16.msk.msra.mxu1 %vm17269_vm5, %v13415_v32  ;;  %v2454_v14 = vpop.f32.mrb[18].mxu0  ;;  %2890 = vmatprep.mubr.f32.mxu1 %v24225_v7  ;;  %v2575_v35 = vadd.f32 %v2561_v10, %v2545_v6  ;;  %24680 = vst [vmem:[#allocation14_spill] sm:$0xff] %v17338_v20  ;;  %v17453_v6 = vpack.c.bf16 %v10852_v15, %v10849_v26  ;;  %v10886_v21 = vld [vmem:[%s24211_s4 + $0x608] sm:$0xff]  ;;  %v10889_v26 = vld [vmem:[%s24211_s4 + $0x620] sm:$0xff] }
 0x15d   : > { %v2548_v28 = vmax.f32 %v2070_v34, %v2454_v14  ;;  %13438 = vmatprep.subr.msk.bf16.mxu1 %vm17269_vm5, %v13412_v39  ;;  %v2456_v29 = vpop.f32.mrb[19].mxu0  ;;  %v2582_v5 = vmax.f32 %v2574_v24, 0.0  ;;  %v10860_v34 = vld [vmem:[%s24211_s4 + $0x538] sm:$0xff]  ;;  %v10855_v14 = vld [vmem:[%s24211_s4 + $0x510] sm:$0xff] }
 0x15e   : > { %v2549_v41 = vmax.f32 %v2071_v44, %v2456_v29  ;;  %v2583_v48 = vmax.f32 %v2575_v35, 0.0  ;;  %v10911_v44 = vld [vmem:[%s24211_s4 + $0x6d0] sm:$0xff]  ;;  %v17363_v52 = vpack.c.bf16 %v10860_v34, %v10857_v27  ;;  %v10881_v35 = vld [vmem:[%s24211_s4 + $0x5e0] sm:$0xff]  ;;  %v10870_v27 = vld [vmem:[%s24211_s4 + $0x588] sm:$0xff] }
 0x15f   : > { %v2578_v56 = vadd.f32 %v2557_v62, %v2548_v28  ;;  %10834 = vmatmul.mubr.msk.f32.vlgmr.msra.gmra.mrb[18].mxu1 %vm2591_vm6, %v10828_v19  ;;  %v17366_v38 = vpack.c.bf16 %v10914_v31, %v10911_v44  ;;  %v10929_v62 = vld [vmem:[%s24211_s4 + $0x760] sm:$0xff] }
 0x160   : > { %v2579_v60 = vadd.f32 %v2561_v10, %v2549_v41  ;;  %13441 = vmatpush1.bf16.msk.msra.mxu1 %vm17269_vm5, %v13415_v32  ;;  %3037 = vmatprep.mubr.f32.mxu1 %v24225_v7  ;;  %24681 = vst [vmem:[#allocation15_spill] sm:$0xff] %v17363_v52  ;;  %v10865_v28 = vld [vmem:[%s24211_s4 + $0x560] sm:$0xff]  ;;  %v17474_v29 = vpack.c.bf16 %v10932_v2, %v10929_v62  ;;  %v10884_v41 = vld [vmem:[%s24211_s4 + $0x5f8] sm:$0xff]  ;;  %v10895_v62 = vld [vmem:[%s24211_s4 + $0x650] sm:$0xff] }
 0x161   : > { %v2586_v16 = vmax.f32 %v2578_v56, 0.0  ;;  %13450 = vmatprep.subr.msk.bf16.mxu1 %vm17269_vm5, %v13412_v39  ;;  %24682 = vst [vmem:[#allocation16_spill] sm:$0xff] %v17366_v38  ;;  %v10859_v39 = vld [vmem:[%s24211_s4 + $0x530] sm:$0xff]  ;;  %v17505_v33 = vpack.c.bf16 %v10884_v41, %v10881_v35  ;;  %v10877_v44 = vld [vmem:[%s24211_s4 + $0x5c0] sm:$0xff] }
 0x162   : > { %v2587_v53 = vmax.f32 %v2579_v60, 0.0  ;;  %v17456_v10 = vpack.c.bf16 %v10859_v39, %v10856_v30  ;;  %24688 = vst [vmem:[#allocation22_spill] sm:$0xff] %v17474_v29  ;;  %v17493_v60 = vpack.c.bf16 %v10865_v28, %v10862_v37  ;;  %v17582_v30 = vpack.c.bf16 %v10889_v26, %v10886_v21  ;;  %v10885_v39 = vld [vmem:[%s24211_s4 + $0x600] sm:$0xff]  ;;  %v10894_v37 = vld [vmem:[%s24211_s4 + $0x648] sm:$0xff]  ;;  %v10915_v26 = vld [vmem:[%s24211_s4 + $0x6f0] sm:$0xff] }
 0x163   : > { %v13409_v11 = vpack.c.bf16 %v2586_v16, %v2582_v5  ;;  %10841 = vmatmul.mubr.msk.f32.vlgmr.msra.gmra.mrb[20].mxu1 %vm2591_vm6, %v17312_v0  ;;  %v10864_v5 = vld [vmem:[%s24211_s4 + $0x558] sm:$0xff]  ;;  %24689 = vst [vmem:[#allocation23_spill] sm:$0xff] %v17505_v33  ;;  %v10898_v28 = vld [vmem:[%s24211_s4 + $0x668] sm:$0xff]  ;;  %v10901_v35 = vld [vmem:[%s24211_s4 + $0x680] sm:$0xff] }
 0x164   : > { %v13406_v12 = vpack.c.bf16 %v2587_v53, %v2583_v48  ;;  %13453 = vmatpush1.bf16.msk.msra.mxu1 %vm17269_vm5, %v13415_v32  ;;  %3184 = vmatprep.mubr.f32.mxu1 %v24225_v7  ;;  %v17428_v32 = vpack.c.bf16 %v10872_v13, %v10869_v9  ;;  %v10868_v16 = vld [vmem:[%s24211_s4 + $0x578] sm:$0xff]  ;;  %v17511_v48 = vpack.c.bf16 %v10938_v51, %v10935_v47  ;;  %v10887_v53 = vld [vmem:[%s24211_s4 + $0x610] sm:$0xff]  ;;  %v10897_v51 = vld [vmem:[%s24211_s4 + $0x660] sm:$0xff] }
 0x165   : > { %13559 = vmatprep.subr.bf16.mxu1 %v17316_v23  ;;  %v17532_v34 = vpack.c.bf16 %v10890_v61, %v10887_v53  ;;  %v17564_v9 = vpack.c.bf16 %v10883_v4, %v10880_v1  ;;  %v10879_v13 = vld [vmem:[%s24211_s4 + $0x5d0] sm:$0xff]  ;;  %v17618_v47 = vpack.c.bf16 %v10901_v35, %v10898_v28  ;;  %v10912_v1 = vld [vmem:[%s24211_s4 + $0x6d8] sm:$0xff]  ;;  %v10981_v23 = vld [vmem:[%s24211_s4 + $0x900] sm:$0xff] }
 0x166   : > { %13408 = vmatprep.subr.msk.bf16.mxu0 %vm17269_vm5, %v13406_v12  ;;  %24685 = vst [vmem:[#allocation19_spill] sm:$0xff] %v17428_v32  ;;  %24690 = vst [vmem:[#allocation24_spill] sm:$0xff] %v17511_v48  ;;  %v17579_v15 = vpack.c.bf16 %v10882_v17, %v10879_v13  ;;  %v10903_v61 = vld [vmem:[%s24211_s4 + $0x690] sm:$0xff]  ;;  %v10916_v4 = vld [vmem:[%s24211_s4 + $0x6f8] sm:$0xff]  ;;  %v17669_v17 = vpack.c.bf16 %v10912_v1, %v10909_v43 }
 0x167   : > { %13411 = vmatpush1.bf16.msk.msra.mxu0 %vm17269_vm5, %v13409_v11  ;;  %10848 = vmatmul.mubr.msk.f32.vlgmr.msra.gmra.mrb[22].mxu1 %vm2591_vm6, %v10842_v36  ;;  %24691 = vst [vmem:[#allocation25_spill] sm:$0xff] %v17532_v34  ;;  %v10919_v13 = vld [vmem:[%s24211_s4 + $0x710] sm:$0xff]  ;;  %v10924_v28 = vld [vmem:[%s24211_s4 + $0x738] sm:$0xff]  ;;  %v10933_v1 = vld [vmem:[%s24211_s4 + $0x780] sm:$0xff] }
 0x168   : > { %13420 = vmatprep.subr.msk.bf16.mxu0 %vm17269_vm5, %v13406_v12  ;;  %13561 = vmatpush3.bf16.msra.mxu1 %v17335_v18  ;;  %v17672_v21 = vpack.c.bf16 %v10919_v13, %v10916_v4  ;;  %v10928_v35 = vld [vmem:[%s24211_s4 + $0x758] sm:$0xff]  ;;  %v10978_v18 = vld [vmem:[%s24211_s4 + $0x8e8] sm:$0xff] }
 0x169   : > { %13563 = vmatprep.subr.bf16.mxu1 %v17338_v20  ;;  %v10936_v4 = vld [vmem:[%s24211_s4 + $0x798] sm:$0xff] }
 0x16a   : > { %10824 = vmatmul.mubr.msk.f32.vlgmr.msra.gmra.mrb[20].mxu0 %vm2591_vm6, %v2590_v55  ;;  %v10875_v55 = vld [vmem:[%s24211_s4 + $0x5b0] sm:$0xff]  ;;  %v17735_v13 = vpack.c.bf16 %v10936_v4, %v10933_v1  ;;  %v10946_v1 = vld [vmem:[%s24211_s4 + $0x7e8] sm:$0xff]  ;;  %v10949_v4 = vld [vmem:[%s24211_s4 + $0x800] sm:$0xff] }
 0x16b   : > { %13423 = vmatpush1.bf16.msk.msra.mxu0 %vm17269_vm5, %v13409_v11  ;;  %2819 = vmatprep.mubr.f32.mxu0 %v24225_v7  ;;  %v17468_v24 = vpack.c.bf16 %v10878_v58, %v10875_v55  ;;  %v10888_v55 = vld [vmem:[%s24211_s4 + $0x618] sm:$0xff] }
 0x16c   : > { %13432 = vmatprep.subr.msk.bf16.mxu0 %vm17269_vm5, %v13406_v12  ;;  %13565 = vmatpush3.bf16.msra.mxu1 %v17363_v52  ;;  %v10892_v58 = vld [vmem:[%s24211_s4 + $0x638] sm:$0xff]  ;;  %v17597_v2 = vpack.c.bf16 %v10888_v55, %v10885_v39  ;;  %v10918_v39 = vld [vmem:[%s24211_s4 + $0x708] sm:$0xff]  ;;  %v10975_v52 = vld [vmem:[%s24211_s4 + $0x8d0] sm:$0xff] }
 0x16d   : > { %13567 = vmatprep.subr.bf16.mxu1 %v17366_v38  ;;  %24687 = vst [vmem:[#allocation21_spill] sm:$0xff] %v17468_v24  ;;  %v10922_v55 = vld [vmem:[%s24211_s4 + $0x728] sm:$0xff]  ;;  %v10972_v38 = vld [vmem:[%s24211_s4 + $0x8b8] sm:$0xff] }
 0x16e   : > { %10831 = vmatmul.mubr.msk.f32.vlgmr.msra.gmra.mrb[22].mxu0 %vm2591_vm6, %v10828_v19  ;;  %v10858_v19 = vld [vmem:[%s24211_s4 + $0x528] sm:$0xff] }
 0x16f   : > { %13435 = vmatpush1.bf16.msk.msra.mxu0 %vm17269_vm5, %v13409_v11  ;;  %2966 = vmatprep.mubr.f32.mxu0 %v24225_v7  ;;  %v17490_v56 = vpack.c.bf16 %v10858_v19, %v10855_v14  ;;  %v17600_v14 = vpack.c.bf16 %v10895_v62, %v10892_v58  ;;  %v10891_v19 = vld [vmem:[%s24211_s4 + $0x630] sm:$0xff]  ;;  %v10925_v58 = vld [vmem:[%s24211_s4 + $0x740] sm:$0xff]  ;;  %v17687_v62 = vpack.c.bf16 %v10918_v39, %v10915_v26  ;;  %v10940_v26 = vld [vmem:[%s24211_s4 + $0x7b8] sm:$0xff] }
 0x170   : > { %13444 = vmatprep.subr.msk.bf16.mxu0 %vm17269_vm5, %v13406_v12  ;;  %13569 = vmatpush3.bf16.msra.mxu1 %v17390_v50  ;;  %v10867_v12 = vld [vmem:[%s24211_s4 + $0x570] sm:$0xff]  ;;  %v17615_v41 = vpack.c.bf16 %v10894_v37, %v10891_v19  ;;  %v17690_v19 = vpack.c.bf16 %v10925_v58, %v10922_v55  ;;  %v10921_v37 = vld [vmem:[%s24211_s4 + $0x720] sm:$0xff] }
 0x171   : > { %13571 = vmatprep.subr.bf16.mxu1 %v17396_v8  ;;  %v17542_v31 = vpack.c.bf16 %v10870_v27, %v10867_v12  ;;  %v10906_v12 = vld [vmem:[%s24211_s4 + $0x6a8] sm:$0xff]  ;;  %v10943_v39 = vld [vmem:[%s24211_s4 + $0x7d0] sm:$0xff]  ;;  %v10941_v55 = vld [vmem:[%s24211_s4 + $0x7c0] sm:$0xff] }
 0x172   : > { %10838 = vmatmul.mubr.msk.f32.vlgmr.msra.gmra.mrb[24].mxu0 %vm2591_vm6, %v17312_v0  ;;  %v10861_v0 = vld [vmem:[%s24211_s4 + $0x540] sm:$0xff]  ;;  %v10910_v27 = vld [vmem:[%s24211_s4 + $0x6c8] sm:$0xff]  ;;  %v17748_v58 = vpack.c.bf16 %v10943_v39, %v10940_v26  ;;  %v17781_v26 = vpack.c.bf16 %v10949_v4, %v10946_v1  ;;  %v24227_v39 = vmov 0.0|0.0   ;;  %v10948_v4 = vld [vmem:[%s24211_s4 + $0x7f8] sm:$0xff] }
 0x173   : > { %13447 = vmatpush1.bf16.msk.msra.mxu0 %vm17269_vm5, %v13409_v11  ;;  %3113 = vmatprep.mubr.f32.mxu0 %v24225_v7  ;;  %v17520_v63 = vpack.c.bf16 %v10864_v5, %v10861_v0  ;;  %v17523_v11 = vpack.c.bf16 %v10871_v40, %v10868_v16  ;;  %v10900_v0 = vld [vmem:[%s24211_s4 + $0x678] sm:$0xff]  ;;  %v10907_v16 = vld [vmem:[%s24211_s4 + $0x6b0] sm:$0xff]  ;;  %v10950_v7 = vld [vmem:[%s24211_s4 + $0x808] sm:$0xff] }
 0x174   : > { %13455 = vmatprep.subr.bf16.mxu0 %v17416_v22  ;;  %13573 = vmatpush3.bf16.msra.mxu1 %v17428_v32  ;;  %v10904_v5 = vld [vmem:[%s24211_s4 + $0x698] sm:$0xff]  ;;  %v17633_v40 = vpack.c.bf16 %v10900_v0, %v10897_v51  ;;  %v10931_v51 = vld [vmem:[%s24211_s4 + $0x770] sm:$0xff]  ;;  %v17705_v0 = vpack.c.bf16 %v10924_v28, %v10921_v37  ;;  %v17819_v42 = vpack.c.bf16 %v10950_v7, %v10947_v49  ;;  %v10961_v49 = vld [vmem:[%s24211_s4 + $0x860] sm:$0xff] }
 0x175   : > { %13575 = vmatprep.subr.bf16.mxu1 %v17434_v54  ;;  %v17636_v53 = vpack.c.bf16 %v10907_v16, %v10904_v5  ;;  %v17708_v5 = vpack.c.bf16 %v10931_v51, %v10928_v35  ;;  %v10927_v16 = vld [vmem:[%s24211_s4 + $0x750] sm:$0xff]  ;;  %v10944_v37 = vld [vmem:[%s24211_s4 + $0x7d8] sm:$0xff]  ;;  %v10942_v35 = vld [vmem:[%s24211_s4 + $0x7c8] sm:$0xff] }
 0x176   : > { %10845 = vmatmul.mubr.msk.f32.vlgmr.msra.gmra.mrb[26].mxu0 %vm2591_vm6, %v10842_v36  ;;  %v10874_v36 = vld [vmem:[%s24211_s4 + $0x5a8] sm:$0xff]  ;;  %v10939_v28 = vld [vmem:[%s24211_s4 + $0x7b0] sm:$0xff]  ;;  %v17759_v51 = vpack.c.bf16 %v10944_v37, %v10941_v55  ;;  %24695 = vst [vmem:[#allocation29_spill] sm:$0xff] %v17819_v42  ;;  %v10956_v7 = vld [vmem:[%s24211_s4 + $0x838] sm:$0xff] }
 0x177   : > { %13457 = vmatpush1.bf16.msra.mxu0 %v17453_v6  ;;  %v17545_v57 = vpack.c.bf16 %v10877_v44, %v10874_v36  ;;  %v10913_v36 = vld [vmem:[%s24211_s4 + $0x6e0] sm:$0xff]  ;;  %v17651_v44 = vpack.c.bf16 %v10906_v12, %v10903_v61  ;;  %v10930_v61 = vld [vmem:[%s24211_s4 + $0x768] sm:$0xff]  ;;  %v10960_v54 = vld [vmem:[%s24211_s4 + $0x858] sm:$0xff] }
 0x178   : > { %13459 = vmatprep.subr.bf16.mxu0 %v17456_v10  ;;  %13577 = vmatpush3.bf16.msra.mxu1 %v17468_v24  ;;  %v17654_v59 = vpack.c.bf16 %v10913_v36, %v10910_v27  ;;  %v10934_v12 = vld [vmem:[%s24211_s4 + $0x788] sm:$0xff]  ;;  %v10937_v27 = vld [vmem:[%s24211_s4 + $0x7a0] sm:$0xff]  ;;  %v17723_v36 = vpack.c.bf16 %v10930_v61, %v10927_v16  ;;  %24692 = vst [vmem:[#allocation26_spill] sm:$0xff] %v17759_v51 }
 0x179   : > { %13579 = vmatprep.subr.bf16.mxu1 %v17474_v29  ;;  %v17726_v43 = vpack.c.bf16 %v10937_v27, %v10934_v12  ;;  %v17761_v16 = vpack.c.bf16 %v10942_v35, %v10939_v28  ;;  %v10893_v61 = vld [vmem:[%s24211_s4 + $0x640] sm:$0xff]  ;;  %v10896_v12 = vld [vmem:[%s24211_s4 + $0x658] sm:$0xff]  ;;  %v24699_v29 = vmov 0.0|0.0   ;;  %v10966_v8 = vld [vmem:[%s24211_s4 + $0x888] sm:$0xff] }
 0x17a   : > { %v17770_v27 = vpack.c.bf16 %v10896_v12, %v10893_v61  ;;  %v10945_v12 = vld [vmem:[%s24211_s4 + $0x7e0] sm:$0xff] }
 0x17b   : > { %13461 = vmatpush1.bf16.msra.mxu0 %v17490_v56  ;;  %v17817_v46 = vpack.c.bf16 %v10948_v4, %v10945_v12  ;;  %v10957_v4 = vld [vmem:[%s24211_s4 + $0x840] sm:$0xff] }
 0x17c   : > { %13463 = vmatprep.subr.bf16.mxu0 %v17493_v60  ;;  %13581 = vmatpush3.bf16.msra.mxu1 %v17505_v33  ;;  %24693 = vst [vmem:[#allocation27_spill] sm:$0xff] %v17770_v27  ;;  %v10953_v33 = vld [vmem:[%s24211_s4 + $0x820] sm:$0xff] }
 0x17d   : > { %13583 = vmatprep.subr.bf16.mxu1 %v17511_v48  ;;  %v10954_v48 = vld [vmem:[%s24211_s4 + $0x828] sm:$0xff]  ;;  %v17851_v12 = vpack.c.bf16 %v10956_v7, %v10953_v33  ;;  %v10967_v7 = vld [vmem:[%s24211_s4 + $0x890] sm:$0xff] }
 0x17e   : > { %v10962_v33 = vld [vmem:[%s24211_s4 + $0x868] sm:$0xff] }
 0x17f   : > { %13465 = vmatpush1.bf16.msra.mxu0 %v17520_v63  ;;  %24698 = vst [vmem:[#allocation32_spill] sm:$0xff] %v17851_v12 }
 0x180   : > { %13467 = vmatprep.subr.bf16.mxu0 %v17523_v11  ;;  %13585 = vmatpush3.bf16.msra.mxu1 %v17532_v34 }
 0x181   : > { %13587 = vmatprep.subr.bf16.mxu1 %v17759_v51 }
 0x183   : > { %13469 = vmatpush1.bf16.msra.mxu0 %v17542_v31 }
 0x184   : > { %13471 = vmatprep.subr.bf16.mxu0 %v17545_v57  ;;  %13589 = vmatpush3.bf16.msra.mxu1 %v17770_v27  ;;  %v10951_v27 = vld [vmem:[%s24211_s4 + $0x810] sm:$0xff] }
 0x185   : > { %13590 = vmatprep.subr.bf16.mxu1 %v24227_v39  ;;  %v10952_v39 = vld [vmem:[%s24211_s4 + $0x818] sm:$0xff] }
 0x186   : > { %v17826_v34 = vpack.c.bf16 %v10955_v25, %v10952_v39  ;;  %v10958_v25 = vld [vmem:[%s24211_s4 + $0x848] sm:$0xff]  ;;  %v17849_v39 = vpack.c.bf16 %v10954_v48, %v10951_v27  ;;  %v10959_v48 = vld [vmem:[%s24211_s4 + $0x850] sm:$0xff]  ;;  %v10964_v27 = vld [vmem:[%s24211_s4 + $0x878] sm:$0xff] }
 0x187   : > { %13473 = vmatpush1.bf16.msra.mxu0 %v17561_v3  ;;  %v17858_v24 = vpack.c.bf16 %v10961_v49, %v10958_v25  ;;  %v17881_v25 = vpack.c.bf16 %v10960_v54, %v10957_v4  ;;  %v17883_v49 = vpack.c.bf16 %v10962_v33, %v10959_v48  ;;  %v17890_v32 = vpack.c.bf16 %v10967_v7, %v10964_v27  ;;  %v10965_v54 = vld [vmem:[%s24211_s4 + $0x880] sm:$0xff]  ;;  %v10968_v4 = vld [vmem:[%s24211_s4 + $0x898] sm:$0xff]  ;;  %v10970_v48 = vld [vmem:[%s24211_s4 + $0x8a8] sm:$0xff] }
 0x188   : > { %13475 = vmatprep.subr.bf16.mxu0 %v17564_v9  ;;  %24696 = vst [vmem:[#allocation30_spill] sm:$0xff] %v17826_v34  ;;  %24697 = vst [vmem:[#allocation31_spill] sm:$0xff] %v17849_v39  ;;  %v10973_v33 = vld [vmem:[%s24211_s4 + $0x8c0] sm:$0xff]  ;;  %v17911_v7 = vpack.c.bf16 %v10968_v4, %v10965_v54  ;;  %v10976_v54 = vld [vmem:[%s24211_s4 + $0x8d8] sm:$0xff] }
 0x189   : > { %24700 = vst [vmem:[#allocation33_spill] sm:$0xff] %v17858_v24  ;;  %24701 = vst [vmem:[#allocation34_spill] sm:$0xff] %v17881_v25  ;;  %v17918_v50 = vpack.c.bf16 %v10973_v33, %v10970_v48  ;;  %v10979_v4 = vld [vmem:[%s24211_s4 + $0x8f0] sm:$0xff] }
 0x18a   : > { %24702 = vst [vmem:[#allocation35_spill] sm:$0xff] %v17883_v49  ;;  %24703 = vst [vmem:[#allocation36_spill] sm:$0xff] %v17890_v32  ;;  %v17948_v20 = vpack.c.bf16 %v10979_v4, %v10976_v54  ;;  %v10985_v54 = vld [vmem:[%s24211_s4 + $0x920] sm:$0xff]  ;;  %v17969_v4 = vpack.c.bf16 %v10978_v18, %v10975_v52  ;;  %v10983_v18 = vld [vmem:[%s24211_s4 + $0x910] sm:$0xff] }
 0x18b   : > { %13477 = vmatpush1.bf16.msra.mxu0 %v17579_v15  ;;  %24705 = vst [vmem:[#allocation38_spill] sm:$0xff] %v17911_v7  ;;  %24706 = vst [vmem:[#allocation39_spill] sm:$0xff] %v17918_v50  ;;  %v10986_v52 = vld [vmem:[%s24211_s4 + $0x928] sm:$0xff] }
 0x18c   : > { %13479 = vmatprep.subr.bf16.mxu0 %v17582_v30  ;;  %24709 = vst [vmem:[#allocation42_spill] sm:$0xff] %v17948_v20  ;;  %24710 = vst [vmem:[#allocation43_spill] sm:$0xff] %v17969_v4 }
 0x18f   : > { %13481 = vmatpush1.bf16.msra.mxu0 %v17597_v2 }
 0x190   : > { %13483 = vmatprep.subr.bf16.mxu0 %v17600_v14 }
 0x193   : > { %13485 = vmatpush1.bf16.msra.mxu0 %v17615_v41 }
 0x194   : > { %13487 = vmatprep.subr.bf16.mxu0 %v17618_v47 }
 0x197   : > { %13489 = vmatpush1.bf16.msra.mxu0 %v17633_v40 }
 0x198   : > { %13491 = vmatprep.subr.bf16.mxu0 %v17636_v53 }
 0x19b   : > { %13493 = vmatpush1.bf16.msra.mxu0 %v17651_v44 }
 0x19c   : > { %13495 = vmatprep.subr.bf16.mxu0 %v17654_v59 }
 0x19f   : > { %13497 = vmatpush1.bf16.msra.mxu0 %v17669_v17 }
 0x1a0   : > { %13499 = vmatprep.subr.bf16.mxu0 %v17672_v21 }
 0x1a3   : > { %13501 = vmatpush1.bf16.msra.mxu0 %v17687_v62 }
 0x1a4   : > { %13503 = vmatprep.subr.bf16.mxu0 %v17690_v19 }
 0x1a7   : > { %13505 = vmatpush1.bf16.msra.mxu0 %v17705_v0 }
 0x1a8   : > { %13507 = vmatprep.subr.bf16.mxu0 %v17708_v5 }
 0x1ab   : > { %13509 = vmatpush1.bf16.msra.mxu0 %v17723_v36 }
 0x1ac   : > { %13511 = vmatprep.subr.bf16.mxu0 %v17726_v43 }
 0x1af   : > { %13513 = vmatpush1.bf16.msra.mxu0 %v17735_v13 }
 0x1b0   : > { %13515 = vmatprep.subr.bf16.mxu0 %v17748_v58 }
 0x1b3   : > { %13517 = vmatpush1.bf16.msra.mxu0 %v17761_v16 }
 0x1b4   : > { %13519 = vmatprep.subr.bf16.mxu0 %v17781_v26 }
 0x22e   : > { %v17785_v55 = vpop.f32.mrb[16].mxu1 }
 0x22f   : > { %24694 = vst [vmem:[#allocation28_spill] sm:$0xff] %v17785_v55  ;;  %v17787_v37 = vpop.f32.mrb[17].mxu1 }
 0x232   : > { %v17789_v28 = vpop.f32.mrb[18].mxu1 }
 0x233   : > { %v17791_v35 = vpop.f32.mrb[19].mxu1 }
 0x23d   : > { %v17793_v61 = vpop.f32.mrb[20].mxu0 }
 0x23e   : > { %v17798_v1 = vpop.f32.mrb[21].mxu0 }
 0x241   : > { %v17815_v45 = vpop.f32.mrb[22].mxu0 }
 0x242   : > { %v17824_v51 = vpop.f32.mrb[23].mxu0 }
 0x243   : > { %3572 = vmatprep.mubr.f32.mxu0 %v17824_v51  ;;  %3714 = vmatprep.mubr.f32.mxu1 %v17824_v51 }
 0x244   : > { %3573 = vmatmul.mubr.f32.vlgmr.msra.gmra.mrb[28].mxu0 %v17815_v45  ;;  %3715 = vmatmul.mubr.f32.vlgmr.msra.gmra.mrb[24].mxu1 %v17815_v45 }
 0x245   : > { %13521 = vmatpush1.bf16.msra.mxu0 %v17817_v46  ;;  %13592 = vmatpush1.bf16.msra.mxu1 %v17819_v42  ;;  %v10963_v42 = vld [vmem:[%s24211_s4 + $0x870] sm:$0xff]  ;;  %v17935_v48 = vpop.f32.mrb[24].mxu0 }
 0x246   : > { %13523 = vmatprep.subr.bf16.mxu0 %v17826_v34  ;;  %13593 = vmatprep.subr.bf16.mxu1 %v24699_v29  ;;  %v17909_v27 = vpack.c.bf16 %v10966_v8, %v10963_v42  ;;  %v10971_v42 = vld [vmem:[%s24211_s4 + $0x8b0] sm:$0xff]  ;;  %v10974_v8 = vld [vmem:[%s24211_s4 + $0x8c8] sm:$0xff] }
 0x247   : > { %11005 = vmatprep.mubr.msk.f32.mxu0 %vm3504_vm7, %v17791_v35  ;;  %11006 = vmatprep.mubr.msk.f32.mxu1 %vm3504_vm7, %v17791_v35  ;;  %v3221_v34 = vld [vmem:[%s24211_s4 + $0xf0] sm:$0xff] }
 0x248   : > { %24704 = vst [vmem:[#allocation37_spill] sm:$0xff] %v17909_v27 }
 0x249   : > { %13525 = vmatpush1.bf16.msra.mxu0 %v17849_v39  ;;  %13595 = vmatpush1.bf16.msra.mxu1 %v17851_v12  ;;  %v10969_v12 = vld [vmem:[%s24211_s4 + $0x8a0] sm:$0xff] }
 0x24a   : > { %13527 = vmatprep.subr.bf16.mxu0 %v17858_v24  ;;  %13596 = vmatprep.subr.bf16.mxu1 %v24699_v29  ;;  %v17939_v33 = vpack.c.bf16 %v10972_v38, %v10969_v12  ;;  %v10977_v38 = vld [vmem:[%s24211_s4 + $0x8e0] sm:$0xff]  ;;  %v10980_v12 = vld [vmem:[%s24211_s4 + $0x8f8] sm:$0xff]  ;;  %v3212_v24 = vld [vmem:[%s24211_s4 + $0xa8] sm:$0xff] }
 0x24b   : > { %v3215_v39 = vld [vmem:[%s24211_s4 + $0xc0] sm:$0xff] }
 0x24c   : > { %24707 = vst [vmem:[#allocation40_spill] sm:$0xff] %v17939_v33 }
 0x24d   : > { %13529 = vmatpush1.bf16.msra.mxu0 %v17881_v25  ;;  %13598 = vmatpush1.bf16.msra.mxu1 %v17883_v49  ;;  %v17941_v49 = vpack.c.bf16 %v10974_v8, %v10971_v42  ;;  %v17959_v42 = vpop.f32.mrb[25].mxu0  ;;  %v10982_v8 = vld [vmem:[%s24211_s4 + $0x908] sm:$0xff]  ;;  %v3191_v25 = vld [vmem:[%s24211_s4] sm:$0xff] }
 0x24e   : > { %13531 = vmatprep.subr.bf16.mxu0 %v17890_v32  ;;  %13599 = vmatprep.subr.bf16.mxu1 %v24699_v29 }
 0x24f   : > { %24708 = vst [vmem:[#allocation41_spill] sm:$0xff] %v17941_v49 }
 0x251   : > { %13533 = vmatpush1.bf16.msra.mxu0 %v17909_v27  ;;  %13601 = vmatpush1.bf16.msra.mxu1 %v17911_v7  ;;  %v17971_v7 = vpack.c.bf16 %v10980_v12, %v10977_v38  ;;  %v10988_v38 = vld [vmem:[%s24211_s4 + $0x938] sm:$0xff]  ;;  %v10991_v12 = vld [vmem:[%s24211_s4 + $0x950] sm:$0xff] }
 0x252   : > { %13535 = vmatprep.subr.bf16.mxu0 %v17918_v50  ;;  %13602 = vmatprep.subr.bf16.mxu1 %v24699_v29  ;;  %v17978_v50 = vpack.c.bf16 %v10985_v54, %v10982_v8  ;;  %v17999_v54 = vpack.c.bf16 %v10986_v52, %v10983_v18  ;;  %v10994_v18 = vld [vmem:[%s24211_s4 + $0x968] sm:$0xff]  ;;  %v10997_v52 = vld [vmem:[%s24211_s4 + $0x980] sm:$0xff] }
 0x253   : > { %24711 = vst [vmem:[#allocation44_spill] sm:$0xff] %v17971_v7 }
 0x254   : > { %24712 = vst [vmem:[#allocation45_spill] sm:$0xff] %v17978_v50  ;;  %24714 = vst [vmem:[#allocation47_spill] sm:$0xff] %v17999_v54 }
 0x255   : > { %13537 = vmatpush1.bf16.msra.mxu0 %v17939_v33  ;;  %13604 = vmatpush1.bf16.msra.mxu1 %v17941_v49  ;;  %v10984_v33 = vld [vmem:[%s24211_s4 + $0x918] sm:$0xff]  ;;  %v10987_v49 = vld [vmem:[%s24211_s4 + $0x930] sm:$0xff] }
 0x256   : > { %13539 = vmatprep.subr.bf16.mxu0 %v17948_v20  ;;  %13605 = vmatprep.subr.bf16.mxu1 %v24699_v29  ;;  %v17997_v8 = vpack.c.bf16 %v10984_v33, %v10981_v23  ;;  %v18006_v20 = vpack.c.bf16 %v10991_v12, %v10988_v38  ;;  %v10989_v23 = vld [vmem:[%s24211_s4 + $0x940] sm:$0xff]  ;;  %v10992_v33 = vld [vmem:[%s24211_s4 + $0x958] sm:$0xff] }
 0x257   : > { %v18027_v12 = vpack.c.bf16 %v10992_v33, %v10989_v23  ;;  %v11000_v23 = vld [vmem:[%s24211_s4 + $0x998] sm:$0xff]  ;;  %v11003_v33 = vld [vmem:[%s24211_s4 + $0x9b0] sm:$0xff] }
 0x258   : > { %24713 = vst [vmem:[#allocation46_spill] sm:$0xff] %v17997_v8  ;;  %24715 = vst [vmem:[#allocation48_spill] sm:$0xff] %v18006_v20  ;;  %v18065_v27 = vpack.c.bf16 %v11003_v33, %v11000_v23  ;;  %v3241_v23 = vld [vmem:[%s24211_s4 + $0x190] sm:$0xff]  ;;  %v3244_v33 = vld [vmem:[%s24211_s4 + $0x1a8] sm:$0xff] }
 0x259   : > { %13541 = vmatpush1.bf16.msra.mxu0 %v17969_v4  ;;  %13607 = vmatpush1.bf16.msra.mxu1 %v17971_v7  ;;  %v10990_v4 = vld [vmem:[%s24211_s4 + $0x948] sm:$0xff]  ;;  %24717 = vst [vmem:[#allocation50_spill] sm:$0xff] %v18027_v12  ;;  %v10993_v7 = vld [vmem:[%s24211_s4 + $0x960] sm:$0xff]  ;;  %v18095_v32 = vpack.c.bf16 %v3244_v33, %v3241_v23 }
 0x25a   : > { %13543 = vmatprep.subr.bf16.mxu0 %v17978_v50  ;;  %13608 = vmatprep.subr.bf16.mxu1 %v24699_v29  ;;  %v18025_v38 = vpack.c.bf16 %v10990_v4, %v10987_v49  ;;  %v18034_v50 = vpack.c.bf16 %v10997_v52, %v10994_v18  ;;  %v10995_v49 = vld [vmem:[%s24211_s4 + $0x970] sm:$0xff]  ;;  %v10998_v4 = vld [vmem:[%s24211_s4 + $0x988] sm:$0xff]  ;;  %24721 = vst [vmem:[#allocation54_spill] sm:$0xff] %v18065_v27 }
 0x25b   : > { %v18055_v52 = vpack.c.bf16 %v10998_v4, %v10995_v49  ;;  %v3192_v49 = vld [vmem:[%s24211_s4 + $0x8] sm:$0xff]  ;;  %v3195_v4 = vld [vmem:[%s24211_s4 + $0x20] sm:$0xff]  ;;  %24725 = vst [vmem:[#allocation58_spill] sm:$0xff] %v18095_v32 }
 0x25c   : > { %24716 = vst [vmem:[#allocation49_spill] sm:$0xff] %v18025_v38  ;;  %24718 = vst [vmem:[#allocation51_spill] sm:$0xff] %v18034_v50 }
 0x25d   : > { %13545 = vmatpush1.bf16.msra.mxu0 %v17997_v8  ;;  %13610 = vmatpush1.bf16.msra.mxu1 %v17999_v54  ;;  %v10996_v8 = vld [vmem:[%s24211_s4 + $0x978] sm:$0xff]  ;;  %24720 = vst [vmem:[#allocation53_spill] sm:$0xff] %v18055_v52  ;;  %v10999_v54 = vld [vmem:[%s24211_s4 + $0x990] sm:$0xff] }
 0x25e   : > { %13547 = vmatprep.subr.bf16.mxu0 %v18006_v20  ;;  %13611 = vmatprep.subr.bf16.mxu1 %v24699_v29  ;;  %v18053_v18 = vpack.c.bf16 %v10996_v8, %v10993_v7  ;;  %v11002_v20 = vld [vmem:[%s24211_s4 + $0x9a8] sm:$0xff]  ;;  %v11001_v7 = vld [vmem:[%s24211_s4 + $0x9a0] sm:$0xff]  ;;  %v11004_v8 = vld [vmem:[%s24211_s4 + $0x9b8] sm:$0xff] }
 0x260   : > { %24719 = vst [vmem:[#allocation52_spill] sm:$0xff] %v18053_v18 }
 0x261   : > { %13549 = vmatpush1.bf16.msra.mxu0 %v18025_v38  ;;  %13613 = vmatpush1.bf16.msra.mxu1 %v18027_v12  ;;  %v18087_v12 = vpack.c.bf16 %v11002_v20, %v10999_v54  ;;  %v18093_v38 = vpack.c.bf16 %v3195_v4, %v3192_v49  ;;  %v3193_v20 = vld [vmem:[%s24211_s4 + $0x10] sm:$0xff]  ;;  %v3196_v54 = vld [vmem:[%s24211_s4 + $0x28] sm:$0xff]  ;;  %v3247_v49 = vld [vmem:[%s24211_s4 + $0x1c0] sm:$0xff] }
 0x262   : > { %13551 = vmatprep.subr.bf16.mxu0 %v18034_v50  ;;  %13614 = vmatprep.subr.bf16.mxu1 %v24699_v29  ;;  %v18089_v50 = vpack.c.bf16 %v11004_v8, %v11001_v7  ;;  %v3198_v7 = vld [vmem:[%s24211_s4 + $0x38] sm:$0xff]  ;;  %v3201_v8 = vld [vmem:[%s24211_s4 + $0x50] sm:$0xff]  ;;  %v18127_v33 = vpack.c.bf16 %v3196_v54, %v3193_v20  ;;  %v3204_v54 = vld [vmem:[%s24211_s4 + $0x68] sm:$0xff] }
 0x263   : > { %24722 = vst [vmem:[#allocation55_spill] sm:$0xff] %v18087_v12  ;;  %24724 = vst [vmem:[#allocation57_spill] sm:$0xff] %v18093_v38  ;;  %v3250_v4 = vld [vmem:[%s24211_s4 + $0x1d8] sm:$0xff] }
 0x264   : > { %24723 = vst [vmem:[#allocation56_spill] sm:$0xff] %v18089_v50  ;;  %24727 = vst [vmem:[#allocation60_spill] sm:$0xff] %v18127_v33  ;;  %v3202_v20 = vld [vmem:[%s24211_s4 + $0x58] sm:$0xff] }
 0x265   : > { %13553 = vmatpush1.bf16.msra.mxu0 %v18053_v18  ;;  %13616 = vmatpush1.bf16.msra.mxu1 %v18055_v52  ;;  %v3194_v52 = vld [vmem:[%s24211_s4 + $0x18] sm:$0xff]  ;;  %v3200_v18 = vld [vmem:[%s24211_s4 + $0x48] sm:$0xff] }
 0x266   : > { %13555 = vmatprep.subr.bf16.mxu0 %v18065_v27  ;;  %13617 = vmatprep.subr.bf16.mxu1 %v24699_v29  ;;  %v18123_v23 = vpack.c.bf16 %v3194_v52, %v3191_v25  ;;  %v3197_v27 = vld [vmem:[%s24211_s4 + $0x30] sm:$0xff]  ;;  %v18138_v25 = vpack.c.bf16 %v3201_v8, %v3198_v7  ;;  %v18140_v52 = vpack.c.bf16 %v3250_v4, %v3247_v49  ;;  %v3256_v8 = vld [vmem:[%s24211_s4 + $0x208] sm:$0xff] }
 0x267   : > { %v3253_v7 = vld [vmem:[%s24211_s4 + $0x1f0] sm:$0xff]  ;;  %v18161_v49 = vpack.c.bf16 %v3200_v18, %v3197_v27  ;;  %v3210_v18 = vld [vmem:[%s24211_s4 + $0x98] sm:$0xff] }
 0x268   : > { %24726 = vst [vmem:[#allocation59_spill] sm:$0xff] %v18123_v23  ;;  %24728 = vst [vmem:[#allocation61_spill] sm:$0xff] %v18138_v25  ;;  %v3205_v27 = vld [vmem:[%s24211_s4 + $0x70] sm:$0xff] }
 0x269   : > { %13557 = vmatpush1.bf16.msra.mxu0 %v18087_v12  ;;  %13619 = vmatpush1.bf16.msra.mxu1 %v18089_v50  ;;  %v3199_v50 = vld [vmem:[%s24211_s4 + $0x40] sm:$0xff]  ;;  %24729 = vst [vmem:[#allocation62_spill] sm:$0xff] %v18140_v52  ;;  %24730 = vst [vmem:[#allocation63_spill] sm:$0xff] %v18161_v49 }
 0x26a   : > { %13621 = vmatprep.subr.bf16.mxu0 %v18093_v38  ;;  %13725 = vmatprep.subr.bf16.mxu1 %v18095_v32  ;;  %v3207_v32 = vld [vmem:[%s24211_s4 + $0x80] sm:$0xff]  ;;  %v18165_v4 = vpack.c.bf16 %v3202_v20, %v3199_v50  ;;  %v18180_v50 = vpack.c.bf16 %v3256_v8, %v3253_v7  ;;  %v3213_v20 = vld [vmem:[%s24211_s4 + $0xb0] sm:$0xff]  ;;  %v3262_v7 = vld [vmem:[%s24211_s4 + $0x238] sm:$0xff] }
 0x26b   : > { %v18167_v38 = vpack.c.bf16 %v3207_v32, %v3204_v54  ;;  %v3203_v12 = vld [vmem:[%s24211_s4 + $0x60] sm:$0xff]  ;;  %v3208_v32 = vld [vmem:[%s24211_s4 + $0x88] sm:$0xff] }
 0x26c   : > { %3644 = vmatmul.mubr.f32.vlgmr.msra.gmra.mrb[28].mxu0 %v17789_v28  ;;  %3785 = vmatmul.mubr.f32.vlgmr.msra.gmra.mrb[26].mxu1 %v17789_v28  ;;  %24731 = vst [vmem:[#allocation64_spill] sm:$0xff] %v18165_v4  ;;  %24733 = vst [vmem:[#allocation66_spill] sm:$0xff] %v18180_v50  ;;  %v3259_v54 = vld [vmem:[%s24211_s4 + $0x220] sm:$0xff] }
 0x26d   : > { %13623 = vmatpush1.bf16.msra.mxu0 %v18123_v23  ;;  %3857 = vmatprep.mubr.f32.mxu0 %v17798_v1  ;;  %24732 = vst [vmem:[#allocation65_spill] sm:$0xff] %v18167_v38  ;;  %v3206_v23 = vld [vmem:[%s24211_s4 + $0x78] sm:$0xff] }
 0x26e   : > { %13727 = vmatpush3.bf16.msra.mxu1 %v18127_v33  ;;  %3999 = vmatprep.mubr.f32.mxu1 %v17798_v1  ;;  %v18198_v8 = vpack.c.bf16 %v3206_v23, %v3203_v12  ;;  %v18204_v33 = vpack.c.bf16 %v3213_v20, %v3210_v18  ;;  %v3211_v12 = vld [vmem:[%s24211_s4 + $0xa0] sm:$0xff]  ;;  %v18216_v23 = vpack.c.bf16 %v3262_v7, %v3259_v54  ;;  %v18227_v20 = vpop.f32.mrb[20].mxu1  ;;  %v3268_v54 = vld [vmem:[%s24211_s4 + $0x268] sm:$0xff] }
 0x26f   : > { %13625 = vmatprep.subr.bf16.mxu0 %v18138_v25  ;;  %13729 = vmatprep.subr.bf16.mxu1 %v18140_v52  ;;  %v18202_v52 = vpack.c.bf16 %v3208_v32, %v3205_v27  ;;  %v3209_v25 = vld [vmem:[%s24211_s4 + $0x90] sm:$0xff]  ;;  %v3214_v27 = vld [vmem:[%s24211_s4 + $0xb8] sm:$0xff]  ;;  %v3216_v32 = vld [vmem:[%s24211_s4 + $0xc8] sm:$0xff] }
 0x270   : > { %24734 = vst [vmem:[#allocation67_spill] sm:$0xff] %v18198_v8  ;;  %24736 = vst [vmem:[#allocation69_spill] sm:$0xff] %v18204_v33  ;;  %v3219_v18 = vld [vmem:[%s24211_s4 + $0xe0] sm:$0xff]  ;;  %v18236_v7 = vpack.c.bf16 %v3212_v24, %v3209_v25  ;;  %v3217_v24 = vld [vmem:[%s24211_s4 + $0xd0] sm:$0xff] }
 0x271   : > { %13627 = vmatpush1.bf16.msra.mxu0 %v18161_v49  ;;  %24735 = vst [vmem:[#allocation68_spill] sm:$0xff] %v18202_v52  ;;  %24737 = vst [vmem:[#allocation70_spill] sm:$0xff] %v18216_v23  ;;  %v18244_v49 = vpack.c.bf16 %v3219_v18, %v3216_v32  ;;  %v3225_v32 = vld [vmem:[%s24211_s4 + $0x110] sm:$0xff] }
 0x272   : > { %13731 = vmatpush3.bf16.msra.mxu1 %v18165_v4  ;;  %13629 = vmatprep.subr.bf16.mxu0 %v18167_v38  ;;  %24738 = vst [vmem:[#allocation71_spill] sm:$0xff] %v18236_v7  ;;  %v18238_v4 = vpop.f32.mrb[21].mxu1  ;;  %v18242_v38 = vpack.c.bf16 %v3214_v27, %v3211_v12  ;;  %v3220_v12 = vld [vmem:[%s24211_s4 + $0xe8] sm:$0xff]  ;;  %v3222_v27 = vld [vmem:[%s24211_s4 + $0xf8] sm:$0xff] }
 0x273   : > { %13733 = vmatprep.subr.bf16.mxu1 %v18180_v50  ;;  %v3265_v50 = vld [vmem:[%s24211_s4 + $0x250] sm:$0xff]  ;;  %24739 = vst [vmem:[#allocation72_spill] sm:$0xff] %v18238_v4  ;;  %24741 = vst [vmem:[#allocation74_spill] sm:$0xff] %v18244_v49  ;;  %v18267_v18 = vpop.f32.mrb[22].mxu1 }
 0x274   : > { %24740 = vst [vmem:[#allocation73_spill] sm:$0xff] %v18242_v38  ;;  %v18256_v25 = vpack.c.bf16 %v3268_v54, %v3265_v50  ;;  %24743 = vst [vmem:[#allocation76_spill] sm:$0xff] %v18267_v18  ;;  %v3274_v50 = vld [vmem:[%s24211_s4 + $0x298] sm:$0xff]  ;;  %v18284_v18 = vpack.c.bf16 %v3225_v32, %v3222_v27  ;;  %v3231_v27 = vld [vmem:[%s24211_s4 + $0x140] sm:$0xff] }
 0x275   : > { %13631 = vmatpush1.bf16.msra.mxu0 %v18198_v8  ;;  %v3218_v8 = vld [vmem:[%s24211_s4 + $0xd8] sm:$0xff]  ;;  %v3277_v32 = vld [vmem:[%s24211_s4 + $0x2b0] sm:$0xff] }
 0x276   : > { %13735 = vmatpush3.bf16.msra.mxu1 %v18202_v52  ;;  %13633 = vmatprep.subr.bf16.mxu0 %v18204_v33  ;;  %24742 = vst [vmem:[#allocation75_spill] sm:$0xff] %v18256_v25  ;;  %v18276_v54 = vpack.c.bf16 %v3218_v8, %v3215_v39  ;;  %v18278_v52 = vpop.f32.mrb[23].mxu1  ;;  %v18282_v33 = vpack.c.bf16 %v3220_v12, %v3217_v24  ;;  %24747 = vst [vmem:[#allocation80_spill] sm:$0xff] %v18284_v18  ;;  %v3223_v39 = vld [vmem:[%s24211_s4 + $0x100] sm:$0xff]  ;;  %v3226_v24 = vld [vmem:[%s24211_s4 + $0x118] sm:$0xff] }
 0x277   : > { %13737 = vmatprep.subr.bf16.mxu1 %v18216_v23  ;;  %v3271_v23 = vld [vmem:[%s24211_s4 + $0x280] sm:$0xff]  ;;  %24745 = vst [vmem:[#allocation78_spill] sm:$0xff] %v18278_v52  ;;  %v3228_v12 = vld [vmem:[%s24211_s4 + $0x128] sm:$0xff]  ;;  %v18318_v52 = vpack.c.bf16 %v3226_v24, %v3223_v39  ;;  %v3234_v24 = vld [vmem:[%s24211_s4 + $0x158] sm:$0xff] }
 0x278   : > { %24744 = vst [vmem:[#allocation77_spill] sm:$0xff] %v18276_v54  ;;  %24746 = vst [vmem:[#allocation79_spill] sm:$0xff] %v18282_v33  ;;  %v18296_v8 = vpack.c.bf16 %v3274_v50, %v3271_v23  ;;  %v3280_v23 = vld [vmem:[%s24211_s4 + $0x2c8] sm:$0xff] }
 0x279   : > { %13635 = vmatpush1.bf16.msra.mxu0 %v18236_v7  ;;  %v3224_v7 = vld [vmem:[%s24211_s4 + $0x108] sm:$0xff]  ;;  %24750 = vst [vmem:[#allocation83_spill] sm:$0xff] %v18318_v52 }
 0x27a   : > { %13739 = vmatpush3.bf16.msra.mxu1 %v18242_v38  ;;  %13637 = vmatprep.subr.bf16.mxu0 %v18244_v49  ;;  %24748 = vst [vmem:[#allocation81_spill] sm:$0xff] %v18296_v8  ;;  %v18314_v50 = vpack.c.bf16 %v3224_v7, %v3221_v34  ;;  %v3227_v38 = vld [vmem:[%s24211_s4 + $0x120] sm:$0xff]  ;;  %v3230_v49 = vld [vmem:[%s24211_s4 + $0x138] sm:$0xff]  ;;  %v3229_v34 = vld [vmem:[%s24211_s4 + $0x130] sm:$0xff]  ;;  %v18332_v7 = vpack.c.bf16 %v3280_v23, %v3277_v32 }
 0x27b   : > { %13741 = vmatprep.subr.bf16.mxu1 %v18256_v25  ;;  %v18320_v25 = vpack.c.bf16 %v3231_v27, %v3228_v12  ;;  %v3232_v39 = vld [vmem:[%s24211_s4 + $0x148] sm:$0xff]  ;;  %v3237_v12 = vld [vmem:[%s24211_s4 + $0x170] sm:$0xff]  ;;  %v3283_v27 = vld [vmem:[%s24211_s4 + $0x2e0] sm:$0xff]  ;;  %v18350_v23 = vpack.c.bf16 %v3230_v49, %v3227_v38 }
 0x27c   : > { %24749 = vst [vmem:[#allocation82_spill] sm:$0xff] %v18314_v50  ;;  %24752 = vst [vmem:[#allocation85_spill] sm:$0xff] %v18332_v7  ;;  %v3286_v32 = vld [vmem:[%s24211_s4 + $0x2f8] sm:$0xff]  ;;  %v3235_v38 = vld [vmem:[%s24211_s4 + $0x160] sm:$0xff] }
 0x27d   : > { %13639 = vmatpush1.bf16.msra.mxu0 %v18276_v54  ;;  %24751 = vst [vmem:[#allocation84_spill] sm:$0xff] %v18320_v25  ;;  %24753 = vst [vmem:[#allocation86_spill] sm:$0xff] %v18350_v23  ;;  %v3236_v54 = vld [vmem:[%s24211_s4 + $0x168] sm:$0xff]  ;;  %v18368_v49 = vpack.c.bf16 %v3286_v32, %v3283_v27 }
 0x27e   : > { %13743 = vmatpush3.bf16.msra.mxu1 %v18282_v33  ;;  %13641 = vmatprep.subr.bf16.mxu0 %v18284_v18  ;;  %v18356_v33 = vpack.c.bf16 %v3237_v12, %v3234_v24  ;;  %v3233_v18 = vld [vmem:[%s24211_s4 + $0x150] sm:$0xff]  ;;  %v3243_v24 = vld [vmem:[%s24211_s4 + $0x1a0] sm:$0xff] }
 0x27f   : > { %13745 = vmatprep.subr.bf16.mxu1 %v18296_v8  ;;  %v18354_v8 = vpack.c.bf16 %v3232_v39, %v3229_v34  ;;  %24756 = vst [vmem:[#allocation89_spill] sm:$0xff] %v18368_v49  ;;  %v3238_v34 = vld [vmem:[%s24211_s4 + $0x178] sm:$0xff]  ;;  %v3240_v39 = vld [vmem:[%s24211_s4 + $0x188] sm:$0xff]  ;;  %v18380_v12 = vpack.c.bf16 %v3236_v54, %v3233_v18  ;;  %v3289_v18 = vld [vmem:[%s24211_s4 + $0x310] sm:$0xff] }
 0x280   : > { %24755 = vst [vmem:[#allocation88_spill] sm:$0xff] %v18356_v33  ;;  %v18384_v27 = vpack.c.bf16 %v3238_v34, %v3235_v38  ;;  %v18386_v32 = vpack.c.bf16 %v3243_v24, %v3240_v39  ;;  %v3292_v54 = vld [vmem:[%s24211_s4 + $0x328] sm:$0xff]  ;;  %v3246_v38 = vld [vmem:[%s24211_s4 + $0x1b8] sm:$0xff]  ;;  %v3249_v34 = vld [vmem:[%s24211_s4 + $0x1d0] sm:$0xff] }
 0x281   : > { %13643 = vmatpush1.bf16.msra.mxu0 %v18314_v50  ;;  %24754 = vst [vmem:[#allocation87_spill] sm:$0xff] %v18354_v8  ;;  %24757 = vst [vmem:[#allocation90_spill] sm:$0xff] %v18380_v12  ;;  %v18412_v24 = vpack.c.bf16 %v3292_v54, %v3289_v18  ;;  %v3252_v18 = vld [vmem:[%s24211_s4 + $0x1e8] sm:$0xff]  ;;  %v3255_v54 = vld [vmem:[%s24211_s4 + $0x200] sm:$0xff] }
 0x282   : > { %13747 = vmatpush3.bf16.msra.mxu1 %v18318_v52  ;;  %13645 = vmatprep.subr.bf16.mxu0 %v18320_v25  ;;  %24758 = vst [vmem:[#allocation91_spill] sm:$0xff] %v18384_v27  ;;  %24759 = vst [vmem:[#allocation92_spill] sm:$0xff] %v18386_v32  ;;  %v3242_v52 = vld [vmem:[%s24211_s4 + $0x198] sm:$0xff]  ;;  %v3305_v25 = vld [vmem:[%s24211_s4 + $0x390] sm:$0xff] }
 0x283   : > { %13749 = vmatprep.subr.bf16.mxu1 %v18332_v7  ;;  %v3239_v7 = vld [vmem:[%s24211_s4 + $0x180] sm:$0xff]  ;;  %24761 = vst [vmem:[#allocation94_spill] sm:$0xff] %v18412_v24  ;;  %v3308_v50 = vld [vmem:[%s24211_s4 + $0x3a8] sm:$0xff] }
 0x284   : > { %v18408_v39 = vpack.c.bf16 %v3242_v52, %v3239_v7  ;;  %v18424_v52 = vpack.c.bf16 %v3249_v34, %v3246_v38  ;;  %v3298_v7 = vld [vmem:[%s24211_s4 + $0x358] sm:$0xff]  ;;  %v18444_v34 = vpack.c.bf16 %v3255_v54, %v3252_v18 }
 0x285   : > { %13647 = vmatpush1.bf16.msra.mxu0 %v18350_v23  ;;  %v3299_v23 = vld [vmem:[%s24211_s4 + $0x360] sm:$0xff] }
 0x286   : > { %13751 = vmatpush3.bf16.msra.mxu1 %v18354_v8  ;;  %13649 = vmatprep.subr.bf16.mxu0 %v18356_v33  ;;  %24760 = vst [vmem:[#allocation93_spill] sm:$0xff] %v18408_v39  ;;  %v3248_v8 = vld [vmem:[%s24211_s4 + $0x1c8] sm:$0xff]  ;;  %24762 = vst [vmem:[#allocation95_spill] sm:$0xff] %v18424_v52  ;;  %v3254_v33 = vld [vmem:[%s24211_s4 + $0x1f8] sm:$0xff] }
 0x287   : > { %13753 = vmatprep.subr.bf16.mxu1 %v18368_v49  ;;  %v3245_v49 = vld [vmem:[%s24211_s4 + $0x1b0] sm:$0xff]  ;;  %24765 = vst [vmem:[#allocation98_spill] sm:$0xff] %v18444_v34 }
 0x289   : > { %13651 = vmatpush1.bf16.msra.mxu0 %v18380_v12  ;;  %v3295_v12 = vld [vmem:[%s24211_s4 + $0x340] sm:$0xff] }
 0x28a   : > { %13755 = vmatpush3.bf16.msra.mxu1 %v18384_v27  ;;  %13653 = vmatprep.subr.bf16.mxu0 %v18386_v32  ;;  %v18437_v27 = vpack.c.bf16 %v3248_v8, %v3245_v49  ;;  %v18442_v38 = vpack.c.bf16 %v3298_v7, %v3295_v12  ;;  %v3251_v32 = vld [vmem:[%s24211_s4 + $0x1e0] sm:$0xff]  ;;  %v3301_v8 = vld [vmem:[%s24211_s4 + $0x370] sm:$0xff]  ;;  %v3304_v49 = vld [vmem:[%s24211_s4 + $0x388] sm:$0xff] }
 0x28b   : > { %13756 = vmatprep.subr.bf16.mxu1 %v24699_v29  ;;  %v3258_v12 = vld [vmem:[%s24211_s4 + $0x218] sm:$0xff]  ;;  %v3261_v7 = vld [vmem:[%s24211_s4 + $0x230] sm:$0xff]  ;;  %v18467_v18 = vpack.c.bf16 %v3254_v33, %v3251_v32  ;;  %v18471_v54 = vpack.c.bf16 %v3304_v49, %v3301_v8  ;;  %v3307_v33 = vld [vmem:[%s24211_s4 + $0x3a0] sm:$0xff] }
 0x28c   : > { %24763 = vst [vmem:[#allocation96_spill] sm:$0xff] %v18437_v27  ;;  %24764 = vst [vmem:[#allocation97_spill] sm:$0xff] %v18442_v38  ;;  %v3310_v32 = vld [vmem:[%s24211_s4 + $0x3b8] sm:$0xff]  ;;  %v3264_v8 = vld [vmem:[%s24211_s4 + $0x248] sm:$0xff] }
 0x28d   : > { %4000 = vmatmul.mubr.f32.vlgmr.msra.gmra.mrb[28].mxu1 %v17793_v61  ;;  %13655 = vmatpush1.bf16.msra.mxu0 %v18408_v39  ;;  %24766 = vst [vmem:[#allocation99_spill] sm:$0xff] %v18467_v18  ;;  %24767 = vst [vmem:[#allocation100_spill] sm:$0xff] %v18471_v54  ;;  %v3260_v39 = vld [vmem:[%s24211_s4 + $0x228] sm:$0xff]  ;;  %v3267_v49 = vld [vmem:[%s24211_s4 + $0x260] sm:$0xff] }
 0x28e   : > { %13758 = vmatpush1.bf16.msra.mxu1 %v18412_v24  ;;  %11008 = vmatprep.mubr.msk.f32.mxu1 %vm3504_vm7, %v17787_v37  ;;  %v18473_v24 = vpack.c.bf16 %v3261_v7, %v3258_v12  ;;  %v18499_v7 = vpack.c.bf16 %v3310_v32, %v3307_v33  ;;  %v3270_v33 = vld [vmem:[%s24211_s4 + $0x278] sm:$0xff]  ;;  %v3273_v32 = vld [vmem:[%s24211_s4 + $0x290] sm:$0xff] }
 0x28f   : > { %13657 = vmatprep.subr.bf16.mxu0 %v18424_v52  ;;  %13759 = vmatprep.subr.bf16.mxu1 %v24699_v29  ;;  %v3257_v52 = vld [vmem:[%s24211_s4 + $0x210] sm:$0xff] }
 0x290   : > { %24768 = vst [vmem:[#allocation101_spill] sm:$0xff] %v18473_v24  ;;  %v18495_v12 = vpack.c.bf16 %v3260_v39, %v3257_v52  ;;  %24770 = vst [vmem:[#allocation103_spill] sm:$0xff] %v18499_v7  ;;  %v3313_v39 = vld [vmem:[%s24211_s4 + $0x3d0] sm:$0xff]  ;;  %v3316_v52 = vld [vmem:[%s24211_s4 + $0x3e8] sm:$0xff] }
 0x291   : > { %13659 = vmatpush1.bf16.msra.mxu0 %v18437_v27  ;;  %v3266_v27 = vld [vmem:[%s24211_s4 + $0x258] sm:$0xff] }
 0x292   : > { %13761 = vmatpush1.bf16.msra.mxu1 %v18442_v38  ;;  %13661 = vmatprep.subr.bf16.mxu0 %v18444_v34  ;;  %24769 = vst [vmem:[#allocation102_spill] sm:$0xff] %v18495_v12  ;;  %v18501_v38 = vpack.c.bf16 %v3267_v49, %v3264_v8  ;;  %v3263_v34 = vld [vmem:[%s24211_s4 + $0x240] sm:$0xff]  ;;  %v18527_v49 = vpack.c.bf16 %v3316_v52, %v3313_v39  ;;  %v3276_v39 = vld [vmem:[%s24211_s4 + $0x2a8] sm:$0xff] }
 0x293   : > { %13762 = vmatprep.subr.bf16.mxu1 %v24699_v29  ;;  %v18523_v8 = vpack.c.bf16 %v3266_v27, %v3263_v34  ;;  %v3319_v27 = vld [vmem:[%s24211_s4 + $0x400] sm:$0xff]  ;;  %v3322_v34 = vld [vmem:[%s24211_s4 + $0x418] sm:$0xff] }
 0x294   : > { %24771 = vst [vmem:[#allocation104_spill] sm:$0xff] %v18501_v38  ;;  %24773 = vst [vmem:[#allocation106_spill] sm:$0xff] %v18527_v49  ;;  %v3279_v52 = vld [vmem:[%s24211_s4 + $0x2c0] sm:$0xff] }
 0x295   : > { %13663 = vmatpush1.bf16.msra.mxu0 %v18467_v18  ;;  %24772 = vst [vmem:[#allocation105_spill] sm:$0xff] %v18523_v8  ;;  %v3272_v18 = vld [vmem:[%s24211_s4 + $0x288] sm:$0xff] }
 0x296   : > { %13764 = vmatpush1.bf16.msra.mxu1 %v18471_v54  ;;  %13665 = vmatprep.subr.bf16.mxu0 %v18473_v24  ;;  %v18529_v54 = vpack.c.bf16 %v3273_v32, %v3270_v33  ;;  %v3269_v24 = vld [vmem:[%s24211_s4 + $0x270] sm:$0xff]  ;;  %v18555_v32 = vpack.c.bf16 %v3322_v34, %v3319_v27  ;;  %v3282_v27 = vld [vmem:[%s24211_s4 + $0x2d8] sm:$0xff] }
 0x297   : > { %13765 = vmatprep.subr.bf16.mxu1 %v24699_v29  ;;  %v18551_v33 = vpack.c.bf16 %v3272_v18, %v3269_v24  ;;  %v3325_v24 = vld [vmem:[%s24211_s4 + $0x430] sm:$0xff]  ;;  %v3328_v18 = vld [vmem:[%s24211_s4 + $0x448] sm:$0xff] }
 0x298   : > { %24774 = vst [vmem:[#allocation107_spill] sm:$0xff] %v18529_v54  ;;  %24776 = vst [vmem:[#allocation109_spill] sm:$0xff] %v18555_v32  ;;  %v3285_v34 = vld [vmem:[%s24211_s4 + $0x2f0] sm:$0xff] }
 0x299   : > { %13667 = vmatpush1.bf16.msra.mxu0 %v18495_v12  ;;  %24775 = vst [vmem:[#allocation108_spill] sm:$0xff] %v18551_v33  ;;  %v3278_v12 = vld [vmem:[%s24211_s4 + $0x2b8] sm:$0xff] }
 0x29a   : > { %13767 = vmatpush1.bf16.msra.mxu1 %v18499_v7  ;;  %13669 = vmatprep.subr.bf16.mxu0 %v18501_v38  ;;  %v18557_v7 = vpack.c.bf16 %v3279_v52, %v3276_v39  ;;  %v3275_v38 = vld [vmem:[%s24211_s4 + $0x2a0] sm:$0xff]  ;;  %v18583_v52 = vpack.c.bf16 %v3328_v18, %v3325_v24  ;;  %v3288_v24 = vld [vmem:[%s24211_s4 + $0x308] sm:$0xff] }
 0x29b   : > { %13768 = vmatprep.subr.bf16.mxu1 %v24699_v29  ;;  %v18579_v39 = vpack.c.bf16 %v3278_v12, %v3275_v38  ;;  %v3331_v38 = vld [vmem:[%s24211_s4 + $0x460] sm:$0xff]  ;;  %v3334_v12 = vld [vmem:[%s24211_s4 + $0x478] sm:$0xff] }
 0x29c   : > { %24777 = vst [vmem:[#allocation110_spill] sm:$0xff] %v18557_v7  ;;  %24779 = vst [vmem:[#allocation112_spill] sm:$0xff] %v18583_v52  ;;  %v3291_v18 = vld [vmem:[%s24211_s4 + $0x320] sm:$0xff] }
 0x29d   : > { %13671 = vmatpush1.bf16.msra.mxu0 %v18523_v8  ;;  %24778 = vst [vmem:[#allocation111_spill] sm:$0xff] %v18579_v39  ;;  %v3284_v8 = vld [vmem:[%s24211_s4 + $0x2e8] sm:$0xff] }
 0x29e   : > { %13770 = vmatpush1.bf16.msra.mxu1 %v18527_v49  ;;  %13673 = vmatprep.subr.bf16.mxu0 %v18529_v54  ;;  %v18585_v49 = vpack.c.bf16 %v3285_v34, %v3282_v27  ;;  %v3281_v54 = vld [vmem:[%s24211_s4 + $0x2d0] sm:$0xff]  ;;  %v18611_v34 = vpack.c.bf16 %v3334_v12, %v3331_v38  ;;  %v3294_v38 = vld [vmem:[%s24211_s4 + $0x338] sm:$0xff] }
 0x29f   : > { %13771 = vmatprep.subr.bf16.mxu1 %v24699_v29  ;;  %v18607_v27 = vpack.c.bf16 %v3284_v8, %v3281_v54  ;;  %v3337_v54 = vld [vmem:[%s24211_s4 + $0x490] sm:$0xff]  ;;  %v3340_v8 = vld [vmem:[%s24211_s4 + $0x4a8] sm:$0xff] }
 0x2a0   : > { %24780 = vst [vmem:[#allocation113_spill] sm:$0xff] %v18585_v49  ;;  %24782 = vst [vmem:[#allocation115_spill] sm:$0xff] %v18611_v34  ;;  %v3297_v12 = vld [vmem:[%s24211_s4 + $0x350] sm:$0xff] }
 0x2a1   : > { %13675 = vmatpush1.bf16.msra.mxu0 %v18551_v33  ;;  %24781 = vst [vmem:[#allocation114_spill] sm:$0xff] %v18607_v27  ;;  %v3290_v33 = vld [vmem:[%s24211_s4 + $0x318] sm:$0xff] }
 0x2a2   : > { %13773 = vmatpush1.bf16.msra.mxu1 %v18555_v32  ;;  %13677 = vmatprep.subr.bf16.mxu0 %v18557_v7  ;;  %v18613_v32 = vpack.c.bf16 %v3291_v18, %v3288_v24  ;;  %v3287_v7 = vld [vmem:[%s24211_s4 + $0x300] sm:$0xff]  ;;  %v18639_v18 = vpack.c.bf16 %v3340_v8, %v3337_v54  ;;  %v3300_v54 = vld [vmem:[%s24211_s4 + $0x368] sm:$0xff] }
 0x2a3   : > { %13774 = vmatprep.subr.bf16.mxu1 %v24699_v29  ;;  %v18635_v24 = vpack.c.bf16 %v3290_v33, %v3287_v7  ;;  %v3343_v7 = vld [vmem:[%s24211_s4 + $0x4c0] sm:$0xff]  ;;  %v3346_v33 = vld [vmem:[%s24211_s4 + $0x4d8] sm:$0xff] }
 0x2a4   : > { %24783 = vst [vmem:[#allocation116_spill] sm:$0xff] %v18613_v32  ;;  %24785 = vst [vmem:[#allocation118_spill] sm:$0xff] %v18639_v18  ;;  %v3303_v8 = vld [vmem:[%s24211_s4 + $0x380] sm:$0xff] }
 0x2a5   : > { %13679 = vmatpush1.bf16.msra.mxu0 %v18579_v39  ;;  %24784 = vst [vmem:[#allocation117_spill] sm:$0xff] %v18635_v24  ;;  %v3296_v39 = vld [vmem:[%s24211_s4 + $0x348] sm:$0xff] }
 0x2a6   : > { %13776 = vmatpush1.bf16.msra.mxu1 %v18583_v52  ;;  %13681 = vmatprep.subr.bf16.mxu0 %v18585_v49  ;;  %v18641_v52 = vpack.c.bf16 %v3297_v12, %v3294_v38  ;;  %v3293_v49 = vld [vmem:[%s24211_s4 + $0x330] sm:$0xff]  ;;  %v11062_v12 = vld [vmem:[%s24211_s4 + $0xb68] sm:$0xff] }
 0x2a7   : > { %13777 = vmatprep.subr.bf16.mxu1 %v24699_v29  ;;  %v11059_v38 = vld [vmem:[%s24211_s4 + $0xb50] sm:$0xff] }
 0x2a8   : > { %24786 = vst [vmem:[#allocation119_spill] sm:$0xff] %v18641_v52 }
 0x2a9   : > { %13683 = vmatpush1.bf16.msra.mxu0 %v18607_v27  ;;  %v18678_v27 = vpack.c.bf16 %v3303_v8, %v3300_v54  ;;  %v3309_v54 = vld [vmem:[%s24211_s4 + $0x3b0] sm:$0xff]  ;;  %v11065_v8 = vld [vmem:[%s24211_s4 + $0xb80] sm:$0xff] }
 0x2aa   : > { %13779 = vmatpush1.bf16.msra.mxu1 %v18611_v34  ;;  %13685 = vmatprep.subr.bf16.mxu0 %v18613_v32  ;;  %v18672_v34 = vpack.c.bf16 %v3296_v39, %v3293_v49  ;;  %v18676_v32 = vpack.c.bf16 %v3346_v33, %v3343_v7  ;;  %v11011_v49 = vld [vmem:[%s24211_s4 + $0x9d0] sm:$0xff]  ;;  %v18690_v39 = vpack.c.bf16 %v11062_v12, %v11059_v38  ;;  %v11014_v7 = vld [vmem:[%s24211_s4 + $0x9e8] sm:$0xff]  ;;  %v3306_v33 = vld [vmem:[%s24211_s4 + $0x398] sm:$0xff] }
 0x2ab   : > { %13780 = vmatprep.subr.bf16.mxu1 %v24699_v29  ;;  %24789 = vst [vmem:[#allocation122_spill] sm:$0xff] %v18678_v27  ;;  %v11068_v38 = vld [vmem:[%s24211_s4 + $0xb98] sm:$0xff] }
 0x2ac   : > { %3858 = vmatmul.mubr.f32.vlgmr.msra.gmra.mrb[28].mxu0 %v17793_v61  ;;  %24787 = vst [vmem:[#allocation120_spill] sm:$0xff] %v18672_v34  ;;  %24788 = vst [vmem:[#allocation121_spill] sm:$0xff] %v18676_v32 }
 0x2ad   : > { %13687 = vmatpush1.bf16.msra.mxu0 %v18635_v24  ;;  %11007 = vmatprep.mubr.msk.f32.mxu0 %vm3504_vm7, %v17787_v37  ;;  %v3302_v24 = vld [vmem:[%s24211_s4 + $0x378] sm:$0xff]  ;;  %24790 = vst [vmem:[#allocation123_spill] sm:$0xff] %v18690_v39 }
 0x2ae   : > { %13782 = vmatpush1.bf16.msra.mxu1 %v18639_v18  ;;  %13689 = vmatprep.subr.bf16.mxu0 %v18641_v52  ;;  %v18708_v12 = vpack.c.bf16 %v3302_v24, %v3299_v23  ;;  %v18712_v18 = vpack.c.bf16 %v11014_v7, %v11011_v49  ;;  %v18714_v52 = vpack.c.bf16 %v3309_v54, %v3306_v33  ;;  %v11017_v23 = vld [vmem:[%s24211_s4 + $0xa00] sm:$0xff]  ;;  %v11020_v49 = vld [vmem:[%s24211_s4 + $0xa18] sm:$0xff]  ;;  %v3312_v7 = vld [vmem:[%s24211_s4 + $0x3c8] sm:$0xff] }
 0x2af   : > { %13783 = vmatprep.subr.bf16.mxu1 %v24699_v29  ;;  %v18726_v24 = vpack.c.bf16 %v11068_v38, %v11065_v8  ;;  %v3315_v33 = vld [vmem:[%s24211_s4 + $0x3e0] sm:$0xff]  ;;  %v11071_v54 = vld [vmem:[%s24211_s4 + $0xbb0] sm:$0xff]  ;;  %v11074_v8 = vld [vmem:[%s24211_s4 + $0xbc8] sm:$0xff]  ;;  %v18745_v38 = vpack.c.bf16 %v3308_v50, %v3305_v25 }
 0x2b0   : > { %24791 = vst [vmem:[#allocation124_spill] sm:$0xff] %v18708_v12  ;;  %24792 = vst [vmem:[#allocation125_spill] sm:$0xff] %v18712_v18  ;;  %v11023_v25 = vld [vmem:[%s24211_s4 + $0xa30] sm:$0xff]  ;;  %v18763_v50 = vpack.c.bf16 %v11074_v8, %v11071_v54  ;;  %v11080_v54 = vld [vmem:[%s24211_s4 + $0xbf8] sm:$0xff] }
 0x2b1   : > { %13691 = vmatpush1.bf16.msra.mxu0 %v18672_v34  ;;  %24793 = vst [vmem:[#allocation126_spill] sm:$0xff] %v18714_v52  ;;  %24794 = vst [vmem:[#allocation127_spill] sm:$0xff] %v18726_v24  ;;  %v3314_v34 = vld [vmem:[%s24211_s4 + $0x3d8] sm:$0xff] }
 0x2b2   : > { %13785 = vmatpush1.bf16.msra.mxu1 %v18676_v32  ;;  %13693 = vmatprep.subr.bf16.mxu0 %v18678_v27  ;;  %24795 = vst [vmem:[#allocation128_spill] sm:$0xff] %v18745_v38  ;;  %v18749_v32 = vpack.c.bf16 %v11020_v49, %v11017_v23  ;;  %v3311_v27 = vld [vmem:[%s24211_s4 + $0x3c0] sm:$0xff]  ;;  %24798 = vst [vmem:[#allocation131_spill] sm:$0xff] %v18763_v50  ;;  %v11026_v23 = vld [vmem:[%s24211_s4 + $0xa48] sm:$0xff] }
 0x2b3   : > { %13891 = vmatprep.subr.bf16.mxu1 %v18690_v39  ;;  %v18751_v39 = vpack.c.bf16 %v3315_v33, %v3312_v7  ;;  %v3318_v49 = vld [vmem:[%s24211_s4 + $0x3f8] sm:$0xff]  ;;  %v3321_v7 = vld [vmem:[%s24211_s4 + $0x410] sm:$0xff]  ;;  %v11077_v33 = vld [vmem:[%s24211_s4 + $0xbe0] sm:$0xff]  ;;  %v18782_v8 = vpack.c.bf16 %v3314_v34, %v3311_v27 }
 0x2b4   : > { %24796 = vst [vmem:[#allocation129_spill] sm:$0xff] %v18749_v32  ;;  %v11029_v27 = vld [vmem:[%s24211_s4 + $0xa60] sm:$0xff]  ;;  %v18800_v34 = vpack.c.bf16 %v11080_v54, %v11077_v33  ;;  %v11086_v33 = vld [vmem:[%s24211_s4 + $0xc28] sm:$0xff] }
 0x2b5   : > { %4070 = vmatmul.mubr.f32.vlgmr.msra.gmra.mrb[26].mxu1 %v17785_v55  ;;  %13695 = vmatpush1.bf16.msra.mxu0 %v18708_v12  ;;  %24797 = vst [vmem:[#allocation130_spill] sm:$0xff] %v18751_v39  ;;  %24799 = vst [vmem:[#allocation132_spill] sm:$0xff] %v18782_v8  ;;  %v3320_v12 = vld [vmem:[%s24211_s4 + $0x408] sm:$0xff] }
 0x2b6   : > { %13893 = vmatpush3.bf16.msra.mxu1 %v18712_v18  ;;  %13697 = vmatprep.subr.bf16.mxu0 %v18714_v52  ;;  %v18788_v18 = vpack.c.bf16 %v3321_v7, %v3318_v49  ;;  %v3317_v52 = vld [vmem:[%s24211_s4 + $0x3f0] sm:$0xff]  ;;  %24802 = vst [vmem:[#allocation135_spill] sm:$0xff] %v18800_v34  ;;  %v3327_v49 = vld [vmem:[%s24211_s4 + $0x440] sm:$0xff] }
 0x2b7   : > { %13895 = vmatprep.subr.bf16.mxu1 %v18726_v24  ;;  %4441 = vmatprep.mubr.f32.mxu1 %v17959_v42  ;;  %v18786_v24 = vpack.c.bf16 %v11026_v23, %v11023_v25  ;;  %v11032_v25 = vld [vmem:[%s24211_s4 + $0xa78] sm:$0xff]  ;;  %v3324_v23 = vld [vmem:[%s24211_s4 + $0x428] sm:$0xff]  ;;  %v11083_v7 = vld [vmem:[%s24211_s4 + $0xc10] sm:$0xff]  ;;  %v18818_v54 = vpack.c.bf16 %v3320_v12, %v3317_v52 }
 0x2b8   : > { %24801 = vst [vmem:[#allocation134_spill] sm:$0xff] %v18788_v18  ;;  %v11035_v52 = vld [vmem:[%s24211_s4 + $0xa90] sm:$0xff]  ;;  %v18836_v12 = vpack.c.bf16 %v11086_v33, %v11083_v7  ;;  %v11092_v7 = vld [vmem:[%s24211_s4 + $0xc58] sm:$0xff] }
 0x2b9   : > { %13699 = vmatpush1.bf16.msra.mxu0 %v18745_v38  ;;  %24800 = vst [vmem:[#allocation133_spill] sm:$0xff] %v18786_v24  ;;  %24803 = vst [vmem:[#allocation136_spill] sm:$0xff] %v18818_v54  ;;  %v3326_v38 = vld [vmem:[%s24211_s4 + $0x438] sm:$0xff] }
 0x2ba   : > { %13897 = vmatpush3.bf16.msra.mxu1 %v18749_v32  ;;  %13701 = vmatprep.subr.bf16.mxu0 %v18751_v39  ;;  %v18824_v32 = vpack.c.bf16 %v3327_v49, %v3324_v23  ;;  %v3323_v39 = vld [vmem:[%s24211_s4 + $0x420] sm:$0xff]  ;;  %24806 = vst [vmem:[#allocation139_spill] sm:$0xff] %v18836_v12  ;;  %v3333_v23 = vld [vmem:[%s24211_s4 + $0x470] sm:$0xff] }
 0x2bb   : > { %13899 = vmatprep.subr.bf16.mxu1 %v18763_v50  ;;  %v18822_v50 = vpack.c.bf16 %v11032_v25, %v11029_v27  ;;  %v11038_v27 = vld [vmem:[%s24211_s4 + $0xaa8] sm:$0xff]  ;;  %v3330_v25 = vld [vmem:[%s24211_s4 + $0x458] sm:$0xff]  ;;  %v11089_v49 = vld [vmem:[%s24211_s4 + $0xc40] sm:$0xff]  ;;  %v18854_v33 = vpack.c.bf16 %v3326_v38, %v3323_v39 }
 0x2bc   : > { %24805 = vst [vmem:[#allocation138_spill] sm:$0xff] %v18824_v32  ;;  %v11041_v39 = vld [vmem:[%s24211_s4 + $0xac0] sm:$0xff]  ;;  %v18872_v38 = vpack.c.bf16 %v11092_v7, %v11089_v49  ;;  %v11098_v49 = vld [vmem:[%s24211_s4 + $0xc88] sm:$0xff] }
 0x2bd   : > { %13703 = vmatpush1.bf16.msra.mxu0 %v18782_v8  ;;  %24804 = vst [vmem:[#allocation137_spill] sm:$0xff] %v18822_v50  ;;  %24807 = vst [vmem:[#allocation140_spill] sm:$0xff] %v18854_v33  ;;  %v3332_v8 = vld [vmem:[%s24211_s4 + $0x468] sm:$0xff] }
 0x2be   : > { %13901 = vmatpush3.bf16.msra.mxu1 %v18786_v24  ;;  %13705 = vmatprep.subr.bf16.mxu0 %v18788_v18  ;;  %v18860_v24 = vpack.c.bf16 %v3333_v23, %v3330_v25  ;;  %v3329_v18 = vld [vmem:[%s24211_s4 + $0x450] sm:$0xff]  ;;  %24810 = vst [vmem:[#allocation143_spill] sm:$0xff] %v18872_v38  ;;  %v3339_v25 = vld [vmem:[%s24211_s4 + $0x4a0] sm:$0xff] }
 0x2bf   : > { %13903 = vmatprep.subr.bf16.mxu1 %v18800_v34  ;;  %v18858_v34 = vpack.c.bf16 %v11038_v27, %v11035_v52  ;;  %v11044_v52 = vld [vmem:[%s24211_s4 + $0xad8] sm:$0xff]  ;;  %v3336_v27 = vld [vmem:[%s24211_s4 + $0x488] sm:$0xff]  ;;  %v11095_v23 = vld [vmem:[%s24211_s4 + $0xc70] sm:$0xff]  ;;  %v18890_v7 = vpack.c.bf16 %v3332_v8, %v3329_v18 }
 0x2c0   : > { %24809 = vst [vmem:[#allocation142_spill] sm:$0xff] %v18860_v24  ;;  %v11047_v18 = vld [vmem:[%s24211_s4 + $0xaf0] sm:$0xff]  ;;  %v18908_v8 = vpack.c.bf16 %v11098_v49, %v11095_v23  ;;  %v11104_v23 = vld [vmem:[%s24211_s4 + $0xcb8] sm:$0xff] }
 0x2c1   : > { %13707 = vmatpush1.bf16.msra.mxu0 %v18818_v54  ;;  %24808 = vst [vmem:[#allocation141_spill] sm:$0xff] %v18858_v34  ;;  %24811 = vst [vmem:[#allocation144_spill] sm:$0xff] %v18890_v7  ;;  %v3338_v54 = vld [vmem:[%s24211_s4 + $0x498] sm:$0xff] }
 0x2c2   : > { %13905 = vmatpush3.bf16.msra.mxu1 %v18822_v50  ;;  %13709 = vmatprep.subr.bf16.mxu0 %v18824_v32  ;;  %v18896_v50 = vpack.c.bf16 %v3339_v25, %v3336_v27  ;;  %v3335_v32 = vld [vmem:[%s24211_s4 + $0x480] sm:$0xff]  ;;  %24814 = vst [vmem:[#allocation147_spill] sm:$0xff] %v18908_v8  ;;  %v3345_v27 = vld [vmem:[%s24211_s4 + $0x4d0] sm:$0xff] }
 0x2c3   : > { %13907 = vmatprep.subr.bf16.mxu1 %v18836_v12  ;;  %v18894_v12 = vpack.c.bf16 %v11044_v52, %v11041_v39  ;;  %v11050_v39 = vld [vmem:[%s24211_s4 + $0xb08] sm:$0xff]  ;;  %v3342_v52 = vld [vmem:[%s24211_s4 + $0x4b8] sm:$0xff]  ;;  %v11101_v25 = vld [vmem:[%s24211_s4 + $0xca0] sm:$0xff]  ;;  %v18926_v49 = vpack.c.bf16 %v3338_v54, %v3335_v32 }
 0x2c4   : > { %24813 = vst [vmem:[#allocation146_spill] sm:$0xff] %v18896_v50  ;;  %v11053_v32 = vld [vmem:[%s24211_s4 + $0xb20] sm:$0xff]  ;;  %v18944_v54 = vpack.c.bf16 %v11104_v23, %v11101_v25 }
 0x2c5   : > { %13711 = vmatpush1.bf16.msra.mxu0 %v18854_v33  ;;  %24812 = vst [vmem:[#allocation145_spill] sm:$0xff] %v18894_v12  ;;  %24815 = vst [vmem:[#allocation148_spill] sm:$0xff] %v18926_v49  ;;  %v3344_v33 = vld [vmem:[%s24211_s4 + $0x4c8] sm:$0xff] }
 0x2c6   : > { %13909 = vmatpush3.bf16.msra.mxu1 %v18858_v34  ;;  %13713 = vmatprep.subr.bf16.mxu0 %v18860_v24  ;;  %v18932_v34 = vpack.c.bf16 %v3345_v27, %v3342_v52  ;;  %v3341_v24 = vld [vmem:[%s24211_s4 + $0x4b0] sm:$0xff]  ;;  %24818 = vst [vmem:[#allocation151_spill] sm:$0xff] %v18944_v54  ;;  %v11013_v52 = vld [vmem:[%s24211_s4 + $0x9e0] sm:$0xff] }
 0x2c7   : > { %13911 = vmatprep.subr.bf16.mxu1 %v18872_v38  ;;  %v18930_v38 = vpack.c.bf16 %v11050_v39, %v11047_v18  ;;  %v11056_v18 = vld [vmem:[%s24211_s4 + $0xb38] sm:$0xff]  ;;  %v11010_v39 = vld [vmem:[%s24211_s4 + $0x9c8] sm:$0xff]  ;;  %v18956_v27 = vpack.c.bf16 %v3344_v33, %v3341_v24  ;;  %v11107_v24 = vld [vmem:[%s24211_s4 + $0xcd0] sm:$0xff] }
 0x2c8   : > { %24817 = vst [vmem:[#allocation150_spill] sm:$0xff] %v18932_v34  ;;  %v18960_v25 = vpack.c.bf16 %v11056_v18, %v11053_v32  ;;  %v18962_v23 = vpack.c.bf16 %v11013_v52, %v11010_v39  ;;  %v11110_v33 = vld [vmem:[%s24211_s4 + $0xce8] sm:$0xff]  ;;  %v11016_v32 = vld [vmem:[%s24211_s4 + $0x9f8] sm:$0xff]  ;;  %v11019_v18 = vld [vmem:[%s24211_s4 + $0xa10] sm:$0xff] }
 0x2c9   : > { %13715 = vmatpush1.bf16.msra.mxu0 %v18890_v7  ;;  %24816 = vst [vmem:[#allocation149_spill] sm:$0xff] %v18930_v38  ;;  %24819 = vst [vmem:[#allocation152_spill] sm:$0xff] %v18956_v27  ;;  %v18988_v52 = vpack.c.bf16 %v11110_v33, %v11107_v24  ;;  %v11022_v24 = vld [vmem:[%s24211_s4 + $0xa28] sm:$0xff]  ;;  %v11025_v33 = vld [vmem:[%s24211_s4 + $0xa40] sm:$0xff] }
 0x2ca   : > { %13913 = vmatpush3.bf16.msra.mxu1 %v18894_v12  ;;  %13717 = vmatprep.subr.bf16.mxu0 %v18896_v50  ;;  %24820 = vst [vmem:[#allocation153_spill] sm:$0xff] %v18960_v25  ;;  %24821 = vst [vmem:[#allocation154_spill] sm:$0xff] %v18962_v23  ;;  %v11012_v12 = vld [vmem:[%s24211_s4 + $0x9d8] sm:$0xff] }
 0x2cb   : > { %13915 = vmatprep.subr.bf16.mxu1 %v18908_v8  ;;  %v11009_v8 = vld [vmem:[%s24211_s4 + $0x9c0] sm:$0xff]  ;;  %24823 = vst [vmem:[#allocation156_spill] sm:$0xff] %v18988_v52  ;;  %v11072_v50 = vld [vmem:[%s24211_s4 + $0xbb8] sm:$0xff] }
 0x2cc   : > { %v18984_v39 = vpack.c.bf16 %v11012_v12, %v11009_v8  ;;  %v19000_v12 = vpack.c.bf16 %v11019_v18, %v11016_v32  ;;  %v11116_v8 = vld [vmem:[%s24211_s4 + $0xd18] sm:$0xff] }
 0x2cd   : > { %13719 = vmatpush1.bf16.msra.mxu0 %v18926_v49  ;;  %v11069_v49 = vld [vmem:[%s24211_s4 + $0xba0] sm:$0xff]  ;;  %v11084_v7 = vld [vmem:[%s24211_s4 + $0xc18] sm:$0xff] }
 0x2ce   : > { %13917 = vmatpush3.bf16.msra.mxu1 %v18930_v38  ;;  %13721 = vmatprep.subr.bf16.mxu0 %v18932_v34  ;;  %24822 = vst [vmem:[#allocation155_spill] sm:$0xff] %v18984_v39  ;;  %v11018_v38 = vld [vmem:[%s24211_s4 + $0xa08] sm:$0xff]  ;;  %24824 = vst [vmem:[#allocation157_spill] sm:$0xff] %v19000_v12  ;;  %v11024_v34 = vld [vmem:[%s24211_s4 + $0xa38] sm:$0xff] }
 0x2cf   : > { %13919 = vmatprep.subr.bf16.mxu1 %v18944_v54  ;;  %v11015_v54 = vld [vmem:[%s24211_s4 + $0x9f0] sm:$0xff] }
 0x2d0   : > { %v19014_v32 = vpack.c.bf16 %v11018_v38, %v11015_v54  ;;  %v11119_v38 = vld [vmem:[%s24211_s4 + $0xd30] sm:$0xff]  ;;  %v11122_v54 = vld [vmem:[%s24211_s4 + $0xd48] sm:$0xff] }
 0x2d1   : > { %13723 = vmatpush1.bf16.msra.mxu0 %v18956_v27  ;;  %v11113_v27 = vld [vmem:[%s24211_s4 + $0xd00] sm:$0xff] }
 0x2d2   : > { %13921 = vmatpush3.bf16.msra.mxu1 %v18960_v25  ;;  %13787 = vmatprep.subr.bf16.mxu0 %v18962_v23  ;;  %24825 = vst [vmem:[#allocation158_spill] sm:$0xff] %v19014_v32  ;;  %v19018_v18 = vpack.c.bf16 %v11116_v8, %v11113_v27  ;;  %v19020_v25 = vpack.c.bf16 %v11025_v33, %v11022_v24  ;;  %v11021_v23 = vld [vmem:[%s24211_s4 + $0xa20] sm:$0xff]  ;;  %v11028_v27 = vld [vmem:[%s24211_s4 + $0xa58] sm:$0xff]  ;;  %v11031_v8 = vld [vmem:[%s24211_s4 + $0xa70] sm:$0xff] }
 0x2d3   : > { %13922 = vmatprep.subr.bf16.mxu1 %v24699_v29  ;;  %v19045_v24 = vpack.c.bf16 %v11024_v34, %v11021_v23  ;;  %v19049_v33 = vpack.c.bf16 %v11122_v54, %v11119_v38  ;;  %v11125_v34 = vld [vmem:[%s24211_s4 + $0xd60] sm:$0xff]  ;;  %v11128_v23 = vld [vmem:[%s24211_s4 + $0xd78] sm:$0xff]  ;;  %v11034_v38 = vld [vmem:[%s24211_s4 + $0xa88] sm:$0xff] }
 0x2d4   : > { %3929 = vmatmul.mubr.f32.vlgmr.msra.gmra.mrb[28].mxu0 %v17785_v55  ;;  %24826 = vst [vmem:[#allocation159_spill] sm:$0xff] %v19018_v18  ;;  %24827 = vst [vmem:[#allocation160_spill] sm:$0xff] %v19020_v25  ;;  %v11037_v54 = vld [vmem:[%s24211_s4 + $0xaa0] sm:$0xff] }
 0x2d5   : > { %4442 = vmatmul.mubr.f32.vlgmr.msra.gmra.mrb[30].mxu1 %v17935_v48  ;;  %13789 = vmatpush1.bf16.msra.mxu0 %v18984_v39  ;;  %24828 = vst [vmem:[#allocation161_spill] sm:$0xff] %v19045_v24  ;;  %24829 = vst [vmem:[#allocation162_spill] sm:$0xff] %v19049_v33  ;;  %v11030_v39 = vld [vmem:[%s24211_s4 + $0xa68] sm:$0xff] }
 0x2d6   : > { %4299 = vmatprep.mubr.f32.mxu0 %v17959_v42  ;;  %13924 = vmatpush1.bf16.msra.mxu1 %v18988_v52  ;;  %v19051_v52 = vpack.c.bf16 %v11031_v8, %v11028_v27  ;;  %v19077_v8 = vpack.c.bf16 %v11128_v23, %v11125_v34  ;;  %v11040_v34 = vld [vmem:[%s24211_s4 + $0xab8] sm:$0xff]  ;;  %v11043_v23 = vld [vmem:[%s24211_s4 + $0xad0] sm:$0xff] }
 0x2d7   : > { %13791 = vmatprep.subr.bf16.mxu0 %v19000_v12  ;;  %13925 = vmatprep.subr.bf16.mxu1 %v24699_v29  ;;  %v11027_v12 = vld [vmem:[%s24211_s4 + $0xa50] sm:$0xff] }
 0x2d8   : > { %11166 = vmatprep.mubr.msk.f32.mxu1 %vm3504_vm7, %v18238_v4  ;;  %24830 = vst [vmem:[#allocation163_spill] sm:$0xff] %v19051_v52  ;;  %v19073_v27 = vpack.c.bf16 %v11030_v39, %v11027_v12  ;;  %24832 = vst [vmem:[#allocation165_spill] sm:$0xff] %v19077_v8  ;;  %v11131_v39 = vld [vmem:[%s24211_s4 + $0xd90] sm:$0xff]  ;;  %v11134_v12 = vld [vmem:[%s24211_s4 + $0xda8] sm:$0xff] }
 0x2d9   : > { %13793 = vmatpush1.bf16.msra.mxu0 %v19014_v32  ;;  %v11036_v32 = vld [vmem:[%s24211_s4 + $0xa98] sm:$0xff] }
 0x2da   : > { %13927 = vmatpush1.bf16.msra.mxu1 %v19018_v18  ;;  %13795 = vmatprep.subr.bf16.mxu0 %v19020_v25  ;;  %24831 = vst [vmem:[#allocation164_spill] sm:$0xff] %v19073_v27  ;;  %v19079_v18 = vpack.c.bf16 %v11037_v54, %v11034_v38  ;;  %v11033_v25 = vld [vmem:[%s24211_s4 + $0xa80] sm:$0xff]  ;;  %v19105_v54 = vpack.c.bf16 %v11134_v12, %v11131_v39  ;;  %v11046_v39 = vld [vmem:[%s24211_s4 + $0xae8] sm:$0xff] }
 0x2db   : > { %13928 = vmatprep.subr.bf16.mxu1 %v24699_v29  ;;  %v19101_v38 = vpack.c.bf16 %v11036_v32, %v11033_v25  ;;  %v11137_v25 = vld [vmem:[%s24211_s4 + $0xdc0] sm:$0xff]  ;;  %v11140_v32 = vld [vmem:[%s24211_s4 + $0xdd8] sm:$0xff] }
 0x2dc   : > { %24833 = vst [vmem:[#allocation166_spill] sm:$0xff] %v19079_v18  ;;  %24835 = vst [vmem:[#allocation168_spill] sm:$0xff] %v19105_v54  ;;  %v11049_v12 = vld [vmem:[%s24211_s4 + $0xb00] sm:$0xff] }
 0x2dd   : > { %13797 = vmatpush1.bf16.msra.mxu0 %v19045_v24  ;;  %24834 = vst [vmem:[#allocation167_spill] sm:$0xff] %v19101_v38  ;;  %v11042_v24 = vld [vmem:[%s24211_s4 + $0xac8] sm:$0xff] }
 0x2de   : > { %13930 = vmatpush1.bf16.msra.mxu1 %v19049_v33  ;;  %13799 = vmatprep.subr.bf16.mxu0 %v19051_v52  ;;  %v19107_v33 = vpack.c.bf16 %v11043_v23, %v11040_v34  ;;  %v11039_v52 = vld [vmem:[%s24211_s4 + $0xab0] sm:$0xff]  ;;  %v19133_v23 = vpack.c.bf16 %v11140_v32, %v11137_v25  ;;  %v11052_v25 = vld [vmem:[%s24211_s4 + $0xb18] sm:$0xff] }
 0x2df   : > { %13931 = vmatprep.subr.bf16.mxu1 %v24699_v29  ;;  %v19129_v34 = vpack.c.bf16 %v11042_v24, %v11039_v52  ;;  %v11143_v52 = vld [vmem:[%s24211_s4 + $0xdf0] sm:$0xff]  ;;  %v11146_v24 = vld [vmem:[%s24211_s4 + $0xe08] sm:$0xff] }
 0x2e0   : > { %24836 = vst [vmem:[#allocation169_spill] sm:$0xff] %v19107_v33  ;;  %24838 = vst [vmem:[#allocation171_spill] sm:$0xff] %v19133_v23  ;;  %v11055_v32 = vld [vmem:[%s24211_s4 + $0xb30] sm:$0xff] }
 0x2e1   : > { %13801 = vmatpush1.bf16.msra.mxu0 %v19073_v27  ;;  %24837 = vst [vmem:[#allocation170_spill] sm:$0xff] %v19129_v34  ;;  %v11048_v27 = vld [vmem:[%s24211_s4 + $0xaf8] sm:$0xff] }
 0x2e2   : > { %13933 = vmatpush1.bf16.msra.mxu1 %v19077_v8  ;;  %13803 = vmatprep.subr.bf16.mxu0 %v19079_v18  ;;  %v19135_v8 = vpack.c.bf16 %v11049_v12, %v11046_v39  ;;  %v11045_v18 = vld [vmem:[%s24211_s4 + $0xae0] sm:$0xff]  ;;  %v19161_v12 = vpack.c.bf16 %v11146_v24, %v11143_v52  ;;  %v11058_v52 = vld [vmem:[%s24211_s4 + $0xb48] sm:$0xff] }
 0x2e3   : > { %13934 = vmatprep.subr.bf16.mxu1 %v24699_v29  ;;  %v19157_v39 = vpack.c.bf16 %v11048_v27, %v11045_v18  ;;  %v11149_v18 = vld [vmem:[%s24211_s4 + $0xe20] sm:$0xff]  ;;  %v11152_v27 = vld [vmem:[%s24211_s4 + $0xe38] sm:$0xff] }
 0x2e4   : > { %24839 = vst [vmem:[#allocation172_spill] sm:$0xff] %v19135_v8  ;;  %24841 = vst [vmem:[#allocation174_spill] sm:$0xff] %v19161_v12  ;;  %v11061_v24 = vld [vmem:[%s24211_s4 + $0xb60] sm:$0xff] }
 0x2e5   : > { %13805 = vmatpush1.bf16.msra.mxu0 %v19101_v38  ;;  %24840 = vst [vmem:[#allocation173_spill] sm:$0xff] %v19157_v39  ;;  %v11054_v38 = vld [vmem:[%s24211_s4 + $0xb28] sm:$0xff] }
 0x2e6   : > { %13936 = vmatpush1.bf16.msra.mxu1 %v19105_v54  ;;  %13807 = vmatprep.subr.bf16.mxu0 %v19107_v33  ;;  %v19163_v54 = vpack.c.bf16 %v11055_v32, %v11052_v25  ;;  %v11051_v33 = vld [vmem:[%s24211_s4 + $0xb10] sm:$0xff]  ;;  %v19189_v32 = vpack.c.bf16 %v11152_v27, %v11149_v18  ;;  %v11064_v18 = vld [vmem:[%s24211_s4 + $0xb78] sm:$0xff] }
 0x2e7   : > { %13937 = vmatprep.subr.bf16.mxu1 %v24699_v29  ;;  %v19185_v25 = vpack.c.bf16 %v11054_v38, %v11051_v33  ;;  %v11155_v33 = vld [vmem:[%s24211_s4 + $0xe50] sm:$0xff]  ;;  %v11158_v38 = vld [vmem:[%s24211_s4 + $0xe68] sm:$0xff] }
 0x2e8   : > { %24842 = vst [vmem:[#allocation175_spill] sm:$0xff] %v19163_v54  ;;  %24844 = vst [vmem:[#allocation177_spill] sm:$0xff] %v19189_v32  ;;  %v11067_v27 = vld [vmem:[%s24211_s4 + $0xb90] sm:$0xff] }
 0x2e9   : > { %13809 = vmatpush1.bf16.msra.mxu0 %v19129_v34  ;;  %24843 = vst [vmem:[#allocation176_spill] sm:$0xff] %v19185_v25  ;;  %v11060_v34 = vld [vmem:[%s24211_s4 + $0xb58] sm:$0xff] }
 0x2ea   : > { %13939 = vmatpush1.bf16.msra.mxu1 %v19133_v23  ;;  %13811 = vmatprep.subr.bf16.mxu0 %v19135_v8  ;;  %v19191_v23 = vpack.c.bf16 %v11061_v24, %v11058_v52  ;;  %v11057_v8 = vld [vmem:[%s24211_s4 + $0xb40] sm:$0xff]  ;;  %v19217_v24 = vpack.c.bf16 %v11158_v38, %v11155_v33  ;;  %v11070_v33 = vld [vmem:[%s24211_s4 + $0xba8] sm:$0xff] }
 0x2eb   : > { %13940 = vmatprep.subr.bf16.mxu1 %v24699_v29  ;;  %v19213_v52 = vpack.c.bf16 %v11060_v34, %v11057_v8  ;;  %v11161_v8 = vld [vmem:[%s24211_s4 + $0xe80] sm:$0xff]  ;;  %v11164_v34 = vld [vmem:[%s24211_s4 + $0xe98] sm:$0xff] }
 0x2ec   : > { %24845 = vst [vmem:[#allocation178_spill] sm:$0xff] %v19191_v23  ;;  %24847 = vst [vmem:[#allocation180_spill] sm:$0xff] %v19217_v24  ;;  %v11073_v38 = vld [vmem:[%s24211_s4 + $0xbc0] sm:$0xff] }
 0x2ed   : > { %13813 = vmatpush1.bf16.msra.mxu0 %v19157_v39  ;;  %24846 = vst [vmem:[#allocation179_spill] sm:$0xff] %v19213_v52  ;;  %v11066_v39 = vld [vmem:[%s24211_s4 + $0xb88] sm:$0xff] }
 0x2ee   : > { %13942 = vmatpush1.bf16.msra.mxu1 %v19161_v12  ;;  %13815 = vmatprep.subr.bf16.mxu0 %v19163_v54  ;;  %v19219_v12 = vpack.c.bf16 %v11067_v27, %v11064_v18  ;;  %v11063_v54 = vld [vmem:[%s24211_s4 + $0xb70] sm:$0xff]  ;;  %v11324_v18 = vld [vmem:[%s24211_s4 + $0x1388] sm:$0xff]  ;;  %v11327_v27 = vld [vmem:[%s24211_s4 + $0x13a0] sm:$0xff] }
 0x2ef   : > { %13943 = vmatprep.subr.bf16.mxu1 %v24699_v29 }
 0x2f0   : > { %24848 = vst [vmem:[#allocation181_spill] sm:$0xff] %v19219_v12 }
 0x2f1   : > { %13817 = vmatpush1.bf16.msra.mxu0 %v19185_v25  ;;  %v19253_v25 = vpack.c.bf16 %v11073_v38, %v11070_v33  ;;  %v11079_v33 = vld [vmem:[%s24211_s4 + $0xbf0] sm:$0xff]  ;;  %v11330_v38 = vld [vmem:[%s24211_s4 + $0x13b8] sm:$0xff] }
 0x2f2   : > { %13945 = vmatpush1.bf16.msra.mxu1 %v19189_v32  ;;  %13819 = vmatprep.subr.bf16.mxu0 %v19191_v23  ;;  %v19247_v32 = vpack.c.bf16 %v11066_v39, %v11063_v54  ;;  %v19251_v23 = vpack.c.bf16 %v11164_v34, %v11161_v8  ;;  %v19262_v54 = vpack.c.bf16 %v11327_v27, %v11324_v18  ;;  %v11323_v39 = vld [vmem:[%s24211_s4 + $0x1380] sm:$0xff]  ;;  %v11326_v8 = vld [vmem:[%s24211_s4 + $0x1398] sm:$0xff]  ;;  %v11333_v18 = vld [vmem:[%s24211_s4 + $0x13d0] sm:$0xff] }
 0x2f3   : > { %13946 = vmatprep.subr.bf16.mxu1 %v24699_v29  ;;  %24851 = vst [vmem:[#allocation184_spill] sm:$0xff] %v19253_v25  ;;  %v11076_v34 = vld [vmem:[%s24211_s4 + $0xbd8] sm:$0xff]  ;;  %v19283_v27 = vpack.c.bf16 %v11072_v50, %v11069_v49  ;;  %v19301_v49 = vpack.c.bf16 %v11333_v18, %v11330_v38 }
 0x2f4   : > { %24849 = vst [vmem:[#allocation182_spill] sm:$0xff] %v19247_v32  ;;  %24850 = vst [vmem:[#allocation183_spill] sm:$0xff] %v19251_v23  ;;  %v19299_v50 = vpack.c.bf16 %v11079_v33, %v11076_v34  ;;  %v11339_v34 = vld [vmem:[%s24211_s4 + $0x1400] sm:$0xff] }
 0x2f5   : > { %13821 = vmatpush1.bf16.msra.mxu0 %v19213_v52  ;;  %24852 = vst [vmem:[#allocation185_spill] sm:$0xff] %v19262_v54  ;;  %24853 = vst [vmem:[#allocation186_spill] sm:$0xff] %v19283_v27  ;;  %v11078_v52 = vld [vmem:[%s24211_s4 + $0xbe8] sm:$0xff] }
 0x2f6   : > { %13948 = vmatpush1.bf16.msra.mxu1 %v19217_v24  ;;  %13823 = vmatprep.subr.bf16.mxu0 %v19219_v12  ;;  %v19287_v24 = vpack.c.bf16 %v11326_v8, %v11323_v39  ;;  %v11075_v12 = vld [vmem:[%s24211_s4 + $0xbd0] sm:$0xff]  ;;  %24855 = vst [vmem:[#allocation188_spill] sm:$0xff] %v19299_v50  ;;  %24856 = vst [vmem:[#allocation189_spill] sm:$0xff] %v19301_v49  ;;  %v11332_v39 = vld [vmem:[%s24211_s4 + $0x13c8] sm:$0xff] }
 0x2f7   : > { %13949 = vmatprep.subr.bf16.mxu1 %v24699_v29  ;;  %v11082_v8 = vld [vmem:[%s24211_s4 + $0xc08] sm:$0xff]  ;;  %v19320_v33 = vpack.c.bf16 %v11078_v52, %v11075_v12  ;;  %v11335_v12 = vld [vmem:[%s24211_s4 + $0x13e0] sm:$0xff]  ;;  %v11088_v52 = vld [vmem:[%s24211_s4 + $0xc38] sm:$0xff] }
 0x2f8   : > { %24854 = vst [vmem:[#allocation187_spill] sm:$0xff] %v19287_v24 }
 0x2f9   : > { %13825 = vmatpush1.bf16.msra.mxu0 %v19247_v32  ;;  %v11329_v32 = vld [vmem:[%s24211_s4 + $0x13b0] sm:$0xff]  ;;  %24857 = vst [vmem:[#allocation190_spill] sm:$0xff] %v19320_v33 }
 0x2fa   : > { %13951 = vmatpush1.bf16.msra.mxu1 %v19251_v23  ;;  %13827 = vmatprep.subr.bf16.mxu0 %v19253_v25  ;;  %v11085_v23 = vld [vmem:[%s24211_s4 + $0xc20] sm:$0xff]  ;;  %v11336_v25 = vld [vmem:[%s24211_s4 + $0x13e8] sm:$0xff]  ;;  %v19324_v38 = vpack.c.bf16 %v11332_v39, %v11329_v32  ;;  %v11091_v39 = vld [vmem:[%s24211_s4 + $0xc50] sm:$0xff] }
 0x2fb   : > { %13953 = vmatprep.subr.bf16.mxu1 %v19262_v54  ;;  %v19326_v18 = vpack.c.bf16 %v11085_v23, %v11082_v8  ;;  %v11081_v54 = vld [vmem:[%s24211_s4 + $0xc00] sm:$0xff]  ;;  %v19339_v32 = vpack.c.bf16 %v11339_v34, %v11336_v25  ;;  %v11338_v23 = vld [vmem:[%s24211_s4 + $0x13f8] sm:$0xff]  ;;  %v11345_v25 = vld [vmem:[%s24211_s4 + $0x1430] sm:$0xff] }
 0x2fc   : > { %24858 = vst [vmem:[#allocation191_spill] sm:$0xff] %v19324_v38  ;;  %v11342_v8 = vld [vmem:[%s24211_s4 + $0x1418] sm:$0xff]  ;;  %v19357_v34 = vpack.c.bf16 %v11084_v7, %v11081_v54  ;;  %v11341_v7 = vld [vmem:[%s24211_s4 + $0x1410] sm:$0xff] }
 0x2fd   : > { %4512 = vmatmul.mubr.f32.vlgmr.msra.gmra.mrb[26].mxu1 %v18227_v20  ;;  %13829 = vmatpush1.bf16.msra.mxu0 %v19283_v27  ;;  %24859 = vst [vmem:[#allocation192_spill] sm:$0xff] %v19326_v18  ;;  %24860 = vst [vmem:[#allocation193_spill] sm:$0xff] %v19339_v32  ;;  %v19363_v27 = vpack.c.bf16 %v11091_v39, %v11088_v52  ;;  %v19375_v54 = vpack.c.bf16 %v11345_v25, %v11342_v8  ;;  %v11097_v52 = vld [vmem:[%s24211_s4 + $0xc80] sm:$0xff]  ;;  %v11348_v39 = vld [vmem:[%s24211_s4 + $0x1448] sm:$0xff] }
 0x2fe   : > { %13955 = vmatpush1.bf16.msra.mxu1 %v19287_v24  ;;  %4898 = vmatprep.mubr.f32.mxu1 %v17824_v51  ;;  %24861 = vst [vmem:[#allocation194_spill] sm:$0xff] %v19357_v34  ;;  %v11090_v24 = vld [vmem:[%s24211_s4 + $0xc48] sm:$0xff]  ;;  %v11351_v8 = vld [vmem:[%s24211_s4 + $0x1460] sm:$0xff] }
 0x2ff   : > { %13831 = vmatprep.subr.bf16.mxu0 %v19299_v50  ;;  %13957 = vmatprep.subr.bf16.mxu1 %v19301_v49  ;;  %v19361_v50 = vpack.c.bf16 %v11338_v23, %v11335_v12  ;;  %24863 = vst [vmem:[#allocation196_spill] sm:$0xff] %v19363_v27  ;;  %v11087_v49 = vld [vmem:[%s24211_s4 + $0xc30] sm:$0xff]  ;;  %24864 = vst [vmem:[#allocation197_spill] sm:$0xff] %v19375_v54  ;;  %v11344_v12 = vld [vmem:[%s24211_s4 + $0x1428] sm:$0xff] }
 0x300   : > { %v11094_v23 = vld [vmem:[%s24211_s4 + $0xc68] sm:$0xff]  ;;  %v19393_v25 = vpack.c.bf16 %v11090_v24, %v11087_v49  ;;  %v11347_v24 = vld [vmem:[%s24211_s4 + $0x1440] sm:$0xff]  ;;  %v19411_v49 = vpack.c.bf16 %v11351_v8, %v11348_v39  ;;  %v11357_v39 = vld [vmem:[%s24211_s4 + $0x1490] sm:$0xff] }
 0x301   : > { %13833 = vmatpush1.bf16.msra.mxu0 %v19320_v33  ;;  %24862 = vst [vmem:[#allocation195_spill] sm:$0xff] %v19361_v50  ;;  %v19399_v33 = vpack.c.bf16 %v11097_v52, %v11094_v23  ;;  %v11103_v23 = vld [vmem:[%s24211_s4 + $0xcb0] sm:$0xff]  ;;  %v11354_v52 = vld [vmem:[%s24211_s4 + $0x1478] sm:$0xff] }
 0x302   : > { %13959 = vmatpush1.bf16.msra.mxu1 %v19324_v38  ;;  %13835 = vmatprep.subr.bf16.mxu0 %v19326_v18  ;;  %24865 = vst [vmem:[#allocation198_spill] sm:$0xff] %v19393_v25  ;;  %v19397_v18 = vpack.c.bf16 %v11344_v12, %v11341_v7  ;;  %v11096_v38 = vld [vmem:[%s24211_s4 + $0xc78] sm:$0xff]  ;;  %24868 = vst [vmem:[#allocation201_spill] sm:$0xff] %v19411_v49 }
 0x303   : > { %13961 = vmatprep.subr.bf16.mxu1 %v19339_v32  ;;  %24867 = vst [vmem:[#allocation200_spill] sm:$0xff] %v19399_v33  ;;  %v11093_v32 = vld [vmem:[%s24211_s4 + $0xc60] sm:$0xff]  ;;  %v11350_v7 = vld [vmem:[%s24211_s4 + $0x1458] sm:$0xff] }
 0x304   : > { %24866 = vst [vmem:[#allocation199_spill] sm:$0xff] %v19397_v18  ;;  %v11100_v12 = vld [vmem:[%s24211_s4 + $0xc98] sm:$0xff]  ;;  %v19429_v8 = vpack.c.bf16 %v11096_v38, %v11093_v32  ;;  %v11353_v38 = vld [vmem:[%s24211_s4 + $0x1470] sm:$0xff]  ;;  %v19447_v32 = vpack.c.bf16 %v11357_v39, %v11354_v52  ;;  %v11363_v52 = vld [vmem:[%s24211_s4 + $0x14c0] sm:$0xff] }
 0x305   : > { %13837 = vmatpush1.bf16.msra.mxu0 %v19357_v34  ;;  %v19435_v34 = vpack.c.bf16 %v11103_v23, %v11100_v12  ;;  %v11109_v12 = vld [vmem:[%s24211_s4 + $0xce0] sm:$0xff]  ;;  %v11360_v23 = vld [vmem:[%s24211_s4 + $0x14a8] sm:$0xff] }
 0x306   : > { %13963 = vmatpush1.bf16.msra.mxu1 %v19361_v50  ;;  %13839 = vmatprep.subr.bf16.mxu0 %v19363_v27  ;;  %24869 = vst [vmem:[#allocation202_spill] sm:$0xff] %v19429_v8  ;;  %v19433_v27 = vpack.c.bf16 %v11350_v7, %v11347_v24  ;;  %v11102_v50 = vld [vmem:[%s24211_s4 + $0xca8] sm:$0xff]  ;;  %24872 = vst [vmem:[#allocation205_spill] sm:$0xff] %v19447_v32 }
 0x307   : > { %13965 = vmatprep.subr.bf16.mxu1 %v19375_v54  ;;  %24871 = vst [vmem:[#allocation204_spill] sm:$0xff] %v19435_v34  ;;  %v11099_v54 = vld [vmem:[%s24211_s4 + $0xc90] sm:$0xff]  ;;  %v11356_v24 = vld [vmem:[%s24211_s4 + $0x1488] sm:$0xff] }
 0x308   : > { %24870 = vst [vmem:[#allocation203_spill] sm:$0xff] %v19433_v27  ;;  %v11106_v7 = vld [vmem:[%s24211_s4 + $0xcc8] sm:$0xff]  ;;  %v19465_v39 = vpack.c.bf16 %v11102_v50, %v11099_v54  ;;  %v11359_v50 = vld [vmem:[%s24211_s4 + $0x14a0] sm:$0xff]  ;;  %v19483_v54 = vpack.c.bf16 %v11363_v52, %v11360_v23  ;;  %v11369_v23 = vld [vmem:[%s24211_s4 + $0x14f0] sm:$0xff] }
 0x309   : > { %13841 = vmatpush1.bf16.msra.mxu0 %v19393_v25  ;;  %v19471_v25 = vpack.c.bf16 %v11109_v12, %v11106_v7  ;;  %v11115_v7 = vld [vmem:[%s24211_s4 + $0xd10] sm:$0xff]  ;;  %v11366_v12 = vld [vmem:[%s24211_s4 + $0x14d8] sm:$0xff] }
 0x30a   : > { %13967 = vmatpush1.bf16.msra.mxu1 %v19397_v18  ;;  %13843 = vmatprep.subr.bf16.mxu0 %v19399_v33  ;;  %24873 = vst [vmem:[#allocation206_spill] sm:$0xff] %v19465_v39  ;;  %v19469_v33 = vpack.c.bf16 %v11356_v24, %v11353_v38  ;;  %v11108_v18 = vld [vmem:[%s24211_s4 + $0xcd8] sm:$0xff]  ;;  %24876 = vst [vmem:[#allocation209_spill] sm:$0xff] %v19483_v54 }
 0x30b   : > { %13969 = vmatprep.subr.bf16.mxu1 %v19411_v49  ;;  %24875 = vst [vmem:[#allocation208_spill] sm:$0xff] %v19471_v25  ;;  %v11105_v49 = vld [vmem:[%s24211_s4 + $0xcc0] sm:$0xff]  ;;  %v11362_v38 = vld [vmem:[%s24211_s4 + $0x14b8] sm:$0xff] }
 0x30c   : > { %24874 = vst [vmem:[#allocation207_spill] sm:$0xff] %v19469_v33  ;;  %v11112_v24 = vld [vmem:[%s24211_s4 + $0xcf8] sm:$0xff]  ;;  %v19501_v52 = vpack.c.bf16 %v11108_v18, %v11105_v49  ;;  %v11365_v18 = vld [vmem:[%s24211_s4 + $0x14d0] sm:$0xff]  ;;  %v19519_v49 = vpack.c.bf16 %v11369_v23, %v11366_v12  ;;  %v11375_v12 = vld [vmem:[%s24211_s4 + $0x1520] sm:$0xff] }
 0x30d   : > { %13845 = vmatpush1.bf16.msra.mxu0 %v19429_v8  ;;  %v19507_v8 = vpack.c.bf16 %v11115_v7, %v11112_v24  ;;  %v11121_v24 = vld [vmem:[%s24211_s4 + $0xd40] sm:$0xff]  ;;  %v11372_v7 = vld [vmem:[%s24211_s4 + $0x1508] sm:$0xff] }
 0x30e   : > { %13971 = vmatpush1.bf16.msra.mxu1 %v19433_v27  ;;  %13847 = vmatprep.subr.bf16.mxu0 %v19435_v34  ;;  %24877 = vst [vmem:[#allocation210_spill] sm:$0xff] %v19501_v52  ;;  %v19505_v34 = vpack.c.bf16 %v11362_v38, %v11359_v50  ;;  %v11114_v27 = vld [vmem:[%s24211_s4 + $0xd08] sm:$0xff]  ;;  %24880 = vst [vmem:[#allocation213_spill] sm:$0xff] %v19519_v49 }
 0x30f   : > { %13973 = vmatprep.subr.bf16.mxu1 %v19447_v32  ;;  %24879 = vst [vmem:[#allocation212_spill] sm:$0xff] %v19507_v8  ;;  %v11111_v32 = vld [vmem:[%s24211_s4 + $0xcf0] sm:$0xff]  ;;  %v11368_v50 = vld [vmem:[%s24211_s4 + $0x14e8] sm:$0xff] }
 0x310   : > { %24878 = vst [vmem:[#allocation211_spill] sm:$0xff] %v19505_v34  ;;  %v11118_v38 = vld [vmem:[%s24211_s4 + $0xd28] sm:$0xff]  ;;  %v19540_v23 = vpack.c.bf16 %v11114_v27, %v11111_v32  ;;  %v11371_v27 = vld [vmem:[%s24211_s4 + $0x1500] sm:$0xff] }
 0x311   : > { %13849 = vmatpush1.bf16.msra.mxu0 %v19465_v39  ;;  %v19546_v39 = vpack.c.bf16 %v11121_v24, %v11118_v38  ;;  %v11127_v38 = vld [vmem:[%s24211_s4 + $0xd70] sm:$0xff] }
 0x312   : > { %13975 = vmatpush1.bf16.msra.mxu1 %v19469_v33  ;;  %13851 = vmatprep.subr.bf16.mxu0 %v19471_v25  ;;  %24881 = vst [vmem:[#allocation214_spill] sm:$0xff] %v19540_v23  ;;  %v19544_v25 = vpack.c.bf16 %v11368_v50, %v11365_v18  ;;  %v11374_v18 = vld [vmem:[%s24211_s4 + $0x1518] sm:$0xff] }
 0x313   : > { %13977 = vmatprep.subr.bf16.mxu1 %v19483_v54  ;;  %24883 = vst [vmem:[#allocation216_spill] sm:$0xff] %v19546_v39  ;;  %v11117_v54 = vld [vmem:[%s24211_s4 + $0xd20] sm:$0xff]  ;;  %v11124_v50 = vld [vmem:[%s24211_s4 + $0xd58] sm:$0xff]  ;;  %v19582_v33 = vpack.c.bf16 %v11374_v18, %v11371_v27  ;;  %v11380_v27 = vld [vmem:[%s24211_s4 + $0x1548] sm:$0xff] }
 0x314   : > { %4300 = vmatmul.mubr.f32.vlgmr.msra.gmra.mrb[28].mxu0 %v17935_v48  ;;  %24882 = vst [vmem:[#allocation215_spill] sm:$0xff] %v19544_v25  ;;  %v19584_v55 = vpack.c.bf16 %v11127_v38, %v11124_v50  ;;  %v11130_v18 = vld [vmem:[%s24211_s4 + $0xd88] sm:$0xff]  ;;  %v11133_v50 = vld [vmem:[%s24211_s4 + $0xda0] sm:$0xff] }
 0x315   : > { %13853 = vmatpush1.bf16.msra.mxu0 %v19501_v52  ;;  %11165 = vmatprep.mubr.msk.f32.mxu0 %vm3504_vm7, %v18238_v4  ;;  %v11120_v52 = vld [vmem:[%s24211_s4 + $0xd38] sm:$0xff]  ;;  %24886 = vst [vmem:[#allocation219_spill] sm:$0xff] %v19582_v33  ;;  %v11123_v4 = vld [vmem:[%s24211_s4 + $0xd50] sm:$0xff]  ;;  %v11384_v38 = vld [vmem:[%s24211_s4 + $0x1568] sm:$0xff] }
 0x316   : > { %13979 = vmatpush1.bf16.msra.mxu1 %v19505_v34  ;;  %13855 = vmatprep.subr.bf16.mxu0 %v19507_v8  ;;  %v19558_v8 = vpack.c.bf16 %v11375_v12, %v11372_v7  ;;  %v11378_v34 = vld [vmem:[%s24211_s4 + $0x1538] sm:$0xff]  ;;  %v11381_v7 = vld [vmem:[%s24211_s4 + $0x1550] sm:$0xff]  ;;  %24887 = vst [vmem:[#allocation220_spill] sm:$0xff] %v19584_v55 }
 0x317   : > { %v11924_v32 = vpop.f32.mrb[24].mxu1  ;;  %13981 = vmatprep.subr.bf16.mxu1 %v19519_v49  ;;  %v19578_v49 = vpack.c.bf16 %v11120_v52, %v11117_v54  ;;  %v11377_v54 = vld [vmem:[%s24211_s4 + $0x1530] sm:$0xff]  ;;  %v19596_v52 = vpack.c.bf16 %v11381_v7, %v11378_v34  ;;  %v11387_v34 = vld [vmem:[%s24211_s4 + $0x1580] sm:$0xff] }
 0x318   : > { %24884 = vst [vmem:[#allocation217_spill] sm:$0xff] %v19558_v8  ;;  %v11925_v24 = vpop.f32.mrb[25].mxu1  ;;  %v19618_v7 = vpack.c.bf16 %v11380_v27, %v11377_v54  ;;  %v11386_v54 = vld [vmem:[%s24211_s4 + $0x1578] sm:$0xff] }
 0x319   : > { %v19575_v12 = vadd.f32 %v11925_v24, %v11924_v32  ;;  %13857 = vmatpush1.bf16.msra.mxu0 %v19540_v23  ;;  %24885 = vst [vmem:[#allocation218_spill] sm:$0xff] %v19578_v49  ;;  %v11126_v32 = vld [vmem:[%s24211_s4 + $0xd68] sm:$0xff]  ;;  %24888 = vst [vmem:[#allocation221_spill] sm:$0xff] %v19596_v52  ;;  %v11129_v23 = vld [vmem:[%s24211_s4 + $0xd80] sm:$0xff] }
 0x31a   : > { %13983 = vmatpush1.bf16.msra.mxu1 %v19544_v25  ;;  %13859 = vmatprep.subr.bf16.mxu0 %v19546_v39  ;;  %v19614_v24 = vpack.c.bf16 %v11126_v32, %v11123_v4  ;;  %24890 = vst [vmem:[#allocation223_spill] sm:$0xff] %v19618_v7  ;;  %v19620_v39 = vpack.c.bf16 %v11133_v50, %v11130_v18  ;;  %v11383_v4 = vld [vmem:[%s24211_s4 + $0x1560] sm:$0xff]  ;;  %v11136_v27 = vld [vmem:[%s24211_s4 + $0xdb8] sm:$0xff]  ;;  %v11139_v18 = vld [vmem:[%s24211_s4 + $0xdd0] sm:$0xff] }
 0x31b   : > { %13985 = vmatprep.subr.bf16.mxu1 %v19558_v8  ;;  %v11132_v8 = vld [vmem:[%s24211_s4 + $0xd98] sm:$0xff]  ;;  %v19632_v32 = vpack.c.bf16 %v11387_v34, %v11384_v38  ;;  %v11393_v38 = vld [vmem:[%s24211_s4 + $0x15b0] sm:$0xff]  ;;  %v11512_v25 = vld [vmem:[%s24211_s4 + $0x1948] sm:$0xff] }
 0x31c   : > { %24889 = vst [vmem:[#allocation222_spill] sm:$0xff] %v19614_v24  ;;  %24891 = vst [vmem:[#allocation224_spill] sm:$0xff] %v19620_v39  ;;  %v11390_v50 = vld [vmem:[%s24211_s4 + $0x1598] sm:$0xff]  ;;  %v19650_v34 = vpack.c.bf16 %v11132_v8, %v11129_v23  ;;  %v11389_v8 = vld [vmem:[%s24211_s4 + $0x1590] sm:$0xff] }
 0x31d   : > { %13861 = vmatpush1.bf16.msra.mxu0 %v19578_v49  ;;  %24892 = vst [vmem:[#allocation225_spill] sm:$0xff] %v19632_v32  ;;  %v19656_v49 = vpack.c.bf16 %v11139_v18, %v11136_v27  ;;  %v19668_v23 = vpack.c.bf16 %v11393_v38, %v11390_v50  ;;  %v11145_v27 = vld [vmem:[%s24211_s4 + $0xe00] sm:$0xff]  ;;  %v11396_v18 = vld [vmem:[%s24211_s4 + $0x15c8] sm:$0xff] }
 0x31e   : > { %13987 = vmatpush1.bf16.msra.mxu1 %v19582_v33  ;;  %13863 = vmatprep.subr.bf16.mxu0 %v19584_v55  ;;  %24893 = vst [vmem:[#allocation226_spill] sm:$0xff] %v19650_v34  ;;  %v19654_v55 = vpack.c.bf16 %v11386_v54, %v11383_v4  ;;  %v11138_v33 = vld [vmem:[%s24211_s4 + $0xdc8] sm:$0xff]  ;;  %v11399_v50 = vld [vmem:[%s24211_s4 + $0x15e0] sm:$0xff] }
 0x31f   : > { %13989 = vmatprep.subr.bf16.mxu1 %v19596_v52  ;;  %24895 = vst [vmem:[#allocation228_spill] sm:$0xff] %v19656_v49  ;;  %v11135_v52 = vld [vmem:[%s24211_s4 + $0xdb0] sm:$0xff]  ;;  %24896 = vst [vmem:[#allocation229_spill] sm:$0xff] %v19668_v23  ;;  %v11392_v4 = vld [vmem:[%s24211_s4 + $0x15a8] sm:$0xff] }
 0x320   : > { %24894 = vst [vmem:[#allocation227_spill] sm:$0xff] %v19654_v55  ;;  %v11142_v54 = vld [vmem:[%s24211_s4 + $0xde8] sm:$0xff]  ;;  %v19686_v38 = vpack.c.bf16 %v11138_v33, %v11135_v52  ;;  %v11395_v33 = vld [vmem:[%s24211_s4 + $0x15c0] sm:$0xff]  ;;  %v19704_v52 = vpack.c.bf16 %v11399_v50, %v11396_v18  ;;  %v11405_v18 = vld [vmem:[%s24211_s4 + $0x1610] sm:$0xff] }
 0x321   : > { %13865 = vmatpush1.bf16.msra.mxu0 %v19614_v24  ;;  %v19692_v24 = vpack.c.bf16 %v11145_v27, %v11142_v54  ;;  %v11151_v54 = vld [vmem:[%s24211_s4 + $0xe30] sm:$0xff]  ;;  %v11402_v27 = vld [vmem:[%s24211_s4 + $0x15f8] sm:$0xff] }
 0x322   : > { %13991 = vmatpush1.bf16.msra.mxu1 %v19618_v7  ;;  %13867 = vmatprep.subr.bf16.mxu0 %v19620_v39  ;;  %24897 = vst [vmem:[#allocation230_spill] sm:$0xff] %v19686_v38  ;;  %v19690_v39 = vpack.c.bf16 %v11392_v4, %v11389_v8  ;;  %v11144_v7 = vld [vmem:[%s24211_s4 + $0xdf8] sm:$0xff]  ;;  %24900 = vst [vmem:[#allocation233_spill] sm:$0xff] %v19704_v52 }
 0x323   : > { %13993 = vmatprep.subr.bf16.mxu1 %v19632_v32  ;;  %24899 = vst [vmem:[#allocation232_spill] sm:$0xff] %v19692_v24  ;;  %v11141_v32 = vld [vmem:[%s24211_s4 + $0xde0] sm:$0xff]  ;;  %v11398_v8 = vld [vmem:[%s24211_s4 + $0x15d8] sm:$0xff] }
 0x324   : > { %24898 = vst [vmem:[#allocation231_spill] sm:$0xff] %v19690_v39  ;;  %v11148_v4 = vld [vmem:[%s24211_s4 + $0xe18] sm:$0xff]  ;;  %v19722_v50 = vpack.c.bf16 %v11144_v7, %v11141_v32  ;;  %v11401_v7 = vld [vmem:[%s24211_s4 + $0x15f0] sm:$0xff]  ;;  %v19740_v32 = vpack.c.bf16 %v11405_v18, %v11402_v27  ;;  %v11411_v27 = vld [vmem:[%s24211_s4 + $0x1640] sm:$0xff] }
 0x325   : > { %13869 = vmatpush1.bf16.msra.mxu0 %v19650_v34  ;;  %v19728_v34 = vpack.c.bf16 %v11151_v54, %v11148_v4  ;;  %v11157_v4 = vld [vmem:[%s24211_s4 + $0xe60] sm:$0xff]  ;;  %v11408_v54 = vld [vmem:[%s24211_s4 + $0x1628] sm:$0xff] }
 0x326   : > { %13995 = vmatpush1.bf16.msra.mxu1 %v19654_v55  ;;  %13871 = vmatprep.subr.bf16.mxu0 %v19656_v49  ;;  %24901 = vst [vmem:[#allocation234_spill] sm:$0xff] %v19722_v50  ;;  %v19726_v49 = vpack.c.bf16 %v11398_v8, %v11395_v33  ;;  %v11150_v55 = vld [vmem:[%s24211_s4 + $0xe28] sm:$0xff]  ;;  %24904 = vst [vmem:[#allocation237_spill] sm:$0xff] %v19740_v32 }
 0x327   : > { %13997 = vmatprep.subr.bf16.mxu1 %v19668_v23  ;;  %24903 = vst [vmem:[#allocation236_spill] sm:$0xff] %v19728_v34  ;;  %v11147_v23 = vld [vmem:[%s24211_s4 + $0xe10] sm:$0xff]  ;;  %v11404_v33 = vld [vmem:[%s24211_s4 + $0x1608] sm:$0xff] }
 0x328   : > { %24902 = vst [vmem:[#allocation235_spill] sm:$0xff] %v19726_v49  ;;  %v11154_v8 = vld [vmem:[%s24211_s4 + $0xe48] sm:$0xff]  ;;  %v19758_v18 = vpack.c.bf16 %v11150_v55, %v11147_v23  ;;  %v11407_v55 = vld [vmem:[%s24211_s4 + $0x1620] sm:$0xff]  ;;  %v19776_v23 = vpack.c.bf16 %v11411_v27, %v11408_v54  ;;  %v11417_v54 = vld [vmem:[%s24211_s4 + $0x1670] sm:$0xff] }
 0x329   : > { %13873 = vmatpush1.bf16.msra.mxu0 %v19686_v38  ;;  %v19764_v38 = vpack.c.bf16 %v11157_v4, %v11154_v8  ;;  %v11163_v8 = vld [vmem:[%s24211_s4 + $0xe90] sm:$0xff]  ;;  %v11414_v4 = vld [vmem:[%s24211_s4 + $0x1658] sm:$0xff] }
 0x32a   : > { %13999 = vmatpush1.bf16.msra.mxu1 %v19690_v39  ;;  %13875 = vmatprep.subr.bf16.mxu0 %v19692_v24  ;;  %24905 = vst [vmem:[#allocation238_spill] sm:$0xff] %v19758_v18  ;;  %v19762_v24 = vpack.c.bf16 %v11404_v33, %v11401_v7  ;;  %v11156_v39 = vld [vmem:[%s24211_s4 + $0xe58] sm:$0xff]  ;;  %24908 = vst [vmem:[#allocation241_spill] sm:$0xff] %v19776_v23 }
 0x32b   : > { %14001 = vmatprep.subr.bf16.mxu1 %v19704_v52  ;;  %24907 = vst [vmem:[#allocation240_spill] sm:$0xff] %v19764_v38  ;;  %v11153_v52 = vld [vmem:[%s24211_s4 + $0xe40] sm:$0xff]  ;;  %v11410_v7 = vld [vmem:[%s24211_s4 + $0x1638] sm:$0xff] }
 0x32c   : > { %24906 = vst [vmem:[#allocation239_spill] sm:$0xff] %v19762_v24  ;;  %v11160_v33 = vld [vmem:[%s24211_s4 + $0xe78] sm:$0xff]  ;;  %v19794_v27 = vpack.c.bf16 %v11156_v39, %v11153_v52  ;;  %v11413_v39 = vld [vmem:[%s24211_s4 + $0x1650] sm:$0xff]  ;;  %v19812_v52 = vpack.c.bf16 %v11417_v54, %v11414_v4  ;;  %v11423_v4 = vld [vmem:[%s24211_s4 + $0x16a0] sm:$0xff] }
 0x32d   : > { %13877 = vmatpush1.bf16.msra.mxu0 %v19722_v50  ;;  %v19800_v50 = vpack.c.bf16 %v11163_v8, %v11160_v33  ;;  %v11376_v33 = vld [vmem:[%s24211_s4 + $0x1528] sm:$0xff] }
 0x32e   : > { %14003 = vmatpush1.bf16.msra.mxu1 %v19726_v49  ;;  %13879 = vmatprep.subr.bf16.mxu0 %v19728_v34  ;;  %24909 = vst [vmem:[#allocation242_spill] sm:$0xff] %v19794_v27  ;;  %v19798_v34 = vpack.c.bf16 %v11410_v7, %v11407_v55  ;;  %v11162_v49 = vld [vmem:[%s24211_s4 + $0xe88] sm:$0xff]  ;;  %24912 = vst [vmem:[#allocation245_spill] sm:$0xff] %v19812_v52  ;;  %v11373_v7 = vld [vmem:[%s24211_s4 + $0x1510] sm:$0xff] }
 0x32f   : > { %14005 = vmatprep.subr.bf16.mxu1 %v19740_v32  ;;  %24911 = vst [vmem:[#allocation244_spill] sm:$0xff] %v19800_v50  ;;  %v11159_v32 = vld [vmem:[%s24211_s4 + $0xe70] sm:$0xff]  ;;  %v11416_v55 = vld [vmem:[%s24211_s4 + $0x1668] sm:$0xff] }
 0x330   : > { %24910 = vst [vmem:[#allocation243_spill] sm:$0xff] %v19798_v34  ;;  %v11420_v8 = vld [vmem:[%s24211_s4 + $0x1688] sm:$0xff]  ;;  %v19830_v54 = vpack.c.bf16 %v11162_v49, %v11159_v32  ;;  %v11419_v32 = vld [vmem:[%s24211_s4 + $0x1680] sm:$0xff] }
 0x331   : > { %13881 = vmatpush1.bf16.msra.mxu0 %v19758_v18  ;;  %v19836_v18 = vpack.c.bf16 %v11376_v33, %v11373_v7  ;;  %v19845_v49 = vpack.c.bf16 %v11423_v4, %v11420_v8  ;;  %v11429_v7 = vld [vmem:[%s24211_s4 + $0x16d0] sm:$0xff]  ;;  %v11379_v8 = vld [vmem:[%s24211_s4 + $0x1540] sm:$0xff]  ;;  %v11382_v4 = vld [vmem:[%s24211_s4 + $0x1558] sm:$0xff] }
 0x332   : > { %14007 = vmatpush1.bf16.msra.mxu1 %v19762_v24  ;;  %13883 = vmatprep.subr.bf16.mxu0 %v19764_v38  ;;  %24913 = vst [vmem:[#allocation246_spill] sm:$0xff] %v19830_v54  ;;  %v19834_v38 = vpack.c.bf16 %v11416_v55, %v11413_v39  ;;  %v11328_v24 = vld [vmem:[%s24211_s4 + $0x13a8] sm:$0xff]  ;;  %v11422_v39 = vld [vmem:[%s24211_s4 + $0x1698] sm:$0xff] }
 0x333   : > { %14009 = vmatprep.subr.bf16.mxu1 %v19776_v23  ;;  %24915 = vst [vmem:[#allocation248_spill] sm:$0xff] %v19836_v18  ;;  %v11325_v23 = vld [vmem:[%s24211_s4 + $0x1390] sm:$0xff]  ;;  %24916 = vst [vmem:[#allocation249_spill] sm:$0xff] %v19845_v49  ;;  %v11426_v55 = vld [vmem:[%s24211_s4 + $0x16b8] sm:$0xff] }
 0x334   : > { %24914 = vst [vmem:[#allocation247_spill] sm:$0xff] %v19834_v38  ;;  %v19860_v33 = vpack.c.bf16 %v11328_v24, %v11325_v23  ;;  %v11331_v24 = vld [vmem:[%s24211_s4 + $0x13c0] sm:$0xff]  ;;  %v11334_v23 = vld [vmem:[%s24211_s4 + $0x13d8] sm:$0xff] }
 0x335   : > { %13885 = vmatpush1.bf16.msra.mxu0 %v19794_v27  ;;  %v19882_v27 = vpack.c.bf16 %v11429_v7, %v11426_v55  ;;  %v11432_v55 = vld [vmem:[%s24211_s4 + $0x16e8] sm:$0xff]  ;;  %v11435_v7 = vld [vmem:[%s24211_s4 + $0x1700] sm:$0xff] }
 0x336   : > { %14011 = vmatpush1.bf16.msra.mxu1 %v19798_v34  ;;  %13887 = vmatprep.subr.bf16.mxu0 %v19800_v50  ;;  %24917 = vst [vmem:[#allocation250_spill] sm:$0xff] %v19860_v33  ;;  %v19870_v50 = vpack.c.bf16 %v11422_v39, %v11419_v32  ;;  %v11428_v32 = vld [vmem:[%s24211_s4 + $0x16c8] sm:$0xff]  ;;  %v11385_v39 = vld [vmem:[%s24211_s4 + $0x1570] sm:$0xff] }
 0x337   : > { %14013 = vmatprep.subr.bf16.mxu1 %v19812_v52  ;;  %24919 = vst [vmem:[#allocation252_spill] sm:$0xff] %v19882_v27  ;;  %v11431_v52 = vld [vmem:[%s24211_s4 + $0x16e0] sm:$0xff]  ;;  %v11337_v34 = vld [vmem:[%s24211_s4 + $0x13f0] sm:$0xff] }
 0x338   : > { %24918 = vst [vmem:[#allocation251_spill] sm:$0xff] %v19870_v50 }
 0x339   : > { %13889 = vmatpush1.bf16.msra.mxu0 %v19830_v54  ;;  %v11425_v54 = vld [vmem:[%s24211_s4 + $0x16b0] sm:$0xff] }
 0x33a   : > { %14015 = vmatpush1.bf16.msra.mxu1 %v19834_v38  ;;  %14057 = vmatprep.subr.bf16.mxu0 %v19836_v18  ;;  %v11388_v18 = vld [vmem:[%s24211_s4 + $0x1588] sm:$0xff]  ;;  %v19894_v38 = vpack.c.bf16 %v11382_v4, %v11379_v8  ;;  %v19909_v8 = vpack.c.bf16 %v11428_v32, %v11425_v54  ;;  %v19924_v54 = vpack.c.bf16 %v11435_v7, %v11432_v55  ;;  %v11394_v32 = vld [vmem:[%s24211_s4 + $0x15b8] sm:$0xff]  ;;  %v11441_v55 = vld [vmem:[%s24211_s4 + $0x1730] sm:$0xff] }
 0x33b   : > { %14017 = vmatprep.subr.bf16.mxu1 %v19845_v49  ;;  %v19904_v49 = vpack.c.bf16 %v11334_v23, %v11331_v24  ;;  %v19911_v4 = vpack.c.bf16 %v11388_v18, %v11385_v39  ;;  %v11340_v24 = vld [vmem:[%s24211_s4 + $0x1408] sm:$0xff]  ;;  %v11434_v18 = vld [vmem:[%s24211_s4 + $0x16f8] sm:$0xff]  ;;  %v11391_v23 = vld [vmem:[%s24211_s4 + $0x15a0] sm:$0xff] }
 0x33c   : > { %4371 = vmatmul.mubr.f32.vlgmr.msra.gmra.mrb[28].mxu0 %v18227_v20  ;;  %24920 = vst [vmem:[#allocation253_spill] sm:$0xff] %v19894_v38  ;;  %24922 = vst [vmem:[#allocation255_spill] sm:$0xff] %v19909_v8  ;;  %v11438_v39 = vld [vmem:[%s24211_s4 + $0x1718] sm:$0xff]  ;;  %v19943_v7 = vpack.c.bf16 %v11340_v24, %v11337_v34 }
 0x33d   : > { %4899 = vmatmul.mubr.f32.vlgmr.msra.gmra.mrb[32].mxu1 %v17815_v45  ;;  %14059 = vmatpush3.bf16.msra.mxu0 %v19860_v33  ;;  %24921 = vst [vmem:[#allocation254_spill] sm:$0xff] %v19904_v49  ;;  %24923 = vst [vmem:[#allocation256_spill] sm:$0xff] %v19911_v4  ;;  %v19947_v33 = vpack.c.bf16 %v11434_v18, %v11431_v52  ;;  %v11346_v34 = vld [vmem:[%s24211_s4 + $0x1438] sm:$0xff]  ;;  %v19961_v24 = vpack.c.bf16 %v11441_v55, %v11438_v39  ;;  %v11440_v52 = vld [vmem:[%s24211_s4 + $0x1728] sm:$0xff] }
 0x33e   : > { %14019 = vmatpush1.bf16.msra.mxu1 %v19870_v50  ;;  %11479 = vmatprep.mubr.msk.f32.mxu1 %vm3504_vm7, %v17791_v35  ;;  %24924 = vst [vmem:[#allocation257_spill] sm:$0xff] %v19924_v54  ;;  %24925 = vst [vmem:[#allocation258_spill] sm:$0xff] %v19943_v7  ;;  %v11343_v50 = vld [vmem:[%s24211_s4 + $0x1420] sm:$0xff]  ;;  %v11397_v18 = vld [vmem:[%s24211_s4 + $0x15d0] sm:$0xff] }
 0x33f   : > { %5040 = vmatprep.mubr.f32.mxu0 %v17824_v51  ;;  %14021 = vmatprep.subr.bf16.mxu1 %v19882_v27  ;;  %24926 = vst [vmem:[#allocation259_spill] sm:$0xff] %v19947_v33  ;;  %v19949_v27 = vpack.c.bf16 %v11394_v32, %v11391_v23  ;;  %24928 = vst [vmem:[#allocation261_spill] sm:$0xff] %v19961_v24  ;;  %v11400_v23 = vld [vmem:[%s24211_s4 + $0x15e8] sm:$0xff]  ;;  %v11447_v39 = vld [vmem:[%s24211_s4 + $0x1760] sm:$0xff]  ;;  %v19979_v55 = vpack.c.bf16 %v11346_v34, %v11343_v50 }
 0x340   : > { %14061 = vmatprep.subr.bf16.mxu0 %v19894_v38  ;;  %v11437_v38 = vld [vmem:[%s24211_s4 + $0x1710] sm:$0xff]  ;;  %v11444_v32 = vld [vmem:[%s24211_s4 + $0x1748] sm:$0xff] }
 0x341   : > { %14063 = vmatpush3.bf16.msra.mxu0 %v19904_v49  ;;  %24927 = vst [vmem:[#allocation260_spill] sm:$0xff] %v19949_v27  ;;  %24929 = vst [vmem:[#allocation262_spill] sm:$0xff] %v19979_v55  ;;  %v19985_v49 = vpack.c.bf16 %v11400_v23, %v11397_v18  ;;  %v11352_v50 = vld [vmem:[%s24211_s4 + $0x1468] sm:$0xff]  ;;  %v19997_v34 = vpack.c.bf16 %v11447_v39, %v11444_v32  ;;  %v11406_v18 = vld [vmem:[%s24211_s4 + $0x1618] sm:$0xff] }
 0x342   : > { %14023 = vmatpush1.bf16.msra.mxu1 %v19909_v8  ;;  %14065 = vmatprep.subr.bf16.mxu0 %v19911_v4  ;;  %v19983_v4 = vpack.c.bf16 %v11440_v52, %v11437_v38  ;;  %v11349_v8 = vld [vmem:[%s24211_s4 + $0x1450] sm:$0xff]  ;;  %v11446_v38 = vld [vmem:[%s24211_s4 + $0x1758] sm:$0xff]  ;;  %v11403_v52 = vld [vmem:[%s24211_s4 + $0x1600] sm:$0xff] }
 0x343   : > { %14025 = vmatprep.subr.bf16.mxu1 %v19924_v54  ;;  %24931 = vst [vmem:[#allocation264_spill] sm:$0xff] %v19985_v49  ;;  %v11443_v54 = vld [vmem:[%s24211_s4 + $0x1740] sm:$0xff]  ;;  %24932 = vst [vmem:[#allocation265_spill] sm:$0xff] %v19997_v34  ;;  %v11450_v23 = vld [vmem:[%s24211_s4 + $0x1778] sm:$0xff]  ;;  %v20015_v39 = vpack.c.bf16 %v11352_v50, %v11349_v8 }
 0x344   : > { %24930 = vst [vmem:[#allocation263_spill] sm:$0xff] %v19983_v4  ;;  %v11453_v32 = vld [vmem:[%s24211_s4 + $0x1790] sm:$0xff]  ;;  %v11358_v8 = vld [vmem:[%s24211_s4 + $0x1498] sm:$0xff] }
 0x345   : > { %14067 = vmatpush3.bf16.msra.mxu0 %v19943_v7  ;;  %24933 = vst [vmem:[#allocation266_spill] sm:$0xff] %v20015_v39  ;;  %v20021_v7 = vpack.c.bf16 %v11406_v18, %v11403_v52  ;;  %v20033_v50 = vpack.c.bf16 %v11453_v32, %v11450_v23  ;;  %v11412_v52 = vld [vmem:[%s24211_s4 + $0x1648] sm:$0xff]  ;;  %v11459_v23 = vld [vmem:[%s24211_s4 + $0x17c0] sm:$0xff] }
 0x346   : > { %14027 = vmatpush1.bf16.msra.mxu1 %v19947_v33  ;;  %14069 = vmatprep.subr.bf16.mxu0 %v19949_v27  ;;  %v20019_v27 = vpack.c.bf16 %v11446_v38, %v11443_v54  ;;  %v11355_v33 = vld [vmem:[%s24211_s4 + $0x1480] sm:$0xff]  ;;  %v11452_v54 = vld [vmem:[%s24211_s4 + $0x1788] sm:$0xff]  ;;  %v11409_v38 = vld [vmem:[%s24211_s4 + $0x1630] sm:$0xff] }
 0x347   : > { %14029 = vmatprep.subr.bf16.mxu1 %v19961_v24  ;;  %24935 = vst [vmem:[#allocation268_spill] sm:$0xff] %v20021_v7  ;;  %v11449_v24 = vld [vmem:[%s24211_s4 + $0x1770] sm:$0xff]  ;;  %24936 = vst [vmem:[#allocation269_spill] sm:$0xff] %v20033_v50  ;;  %v11456_v18 = vld [vmem:[%s24211_s4 + $0x17a8] sm:$0xff]  ;;  %v20051_v32 = vpack.c.bf16 %v11358_v8, %v11355_v33 }
 0x348   : > { %24934 = vst [vmem:[#allocation267_spill] sm:$0xff] %v20019_v27  ;;  %v11364_v33 = vld [vmem:[%s24211_s4 + $0x14c8] sm:$0xff]  ;;  %v20069_v8 = vpack.c.bf16 %v11459_v23, %v11456_v18  ;;  %v11465_v18 = vld [vmem:[%s24211_s4 + $0x17f0] sm:$0xff] }
 0x349   : > { %14071 = vmatpush3.bf16.msra.mxu0 %v19979_v55  ;;  %24937 = vst [vmem:[#allocation270_spill] sm:$0xff] %v20051_v32  ;;  %v20057_v55 = vpack.c.bf16 %v11412_v52, %v11409_v38  ;;  %v11418_v38 = vld [vmem:[%s24211_s4 + $0x1678] sm:$0xff] }
 0x34a   : > { %14031 = vmatpush1.bf16.msra.mxu1 %v19983_v4  ;;  %14073 = vmatprep.subr.bf16.mxu0 %v19985_v49  ;;  %v20055_v49 = vpack.c.bf16 %v11452_v54, %v11449_v24  ;;  %v11361_v4 = vld [vmem:[%s24211_s4 + $0x14b0] sm:$0xff]  ;;  %24940 = vst [vmem:[#allocation273_spill] sm:$0xff] %v20069_v8  ;;  %v11458_v24 = vld [vmem:[%s24211_s4 + $0x17b8] sm:$0xff]  ;;  %v11415_v54 = vld [vmem:[%s24211_s4 + $0x1660] sm:$0xff] }
 0x34b   : > { %14033 = vmatprep.subr.bf16.mxu1 %v19997_v34  ;;  %24939 = vst [vmem:[#allocation272_spill] sm:$0xff] %v20057_v55  ;;  %v11455_v34 = vld [vmem:[%s24211_s4 + $0x17a0] sm:$0xff]  ;;  %v11462_v52 = vld [vmem:[%s24211_s4 + $0x17d8] sm:$0xff]  ;;  %v20087_v23 = vpack.c.bf16 %v11364_v33, %v11361_v4 }
 0x34c   : > { %24938 = vst [vmem:[#allocation271_spill] sm:$0xff] %v20055_v49  ;;  %v11370_v4 = vld [vmem:[%s24211_s4 + $0x14f8] sm:$0xff]  ;;  %v20105_v33 = vpack.c.bf16 %v11465_v18, %v11462_v52  ;;  %v11471_v52 = vld [vmem:[%s24211_s4 + $0x1820] sm:$0xff] }
 0x34d   : > { %14075 = vmatpush3.bf16.msra.mxu0 %v20015_v39  ;;  %24941 = vst [vmem:[#allocation274_spill] sm:$0xff] %v20087_v23  ;;  %v20093_v39 = vpack.c.bf16 %v11418_v38, %v11415_v54  ;;  %v11220_v54 = vld [vmem:[%s24211_s4 + $0x1048] sm:$0xff] }
 0x34e   : > { %14035 = vmatpush1.bf16.msra.mxu1 %v20019_v27  ;;  %14077 = vmatprep.subr.bf16.mxu0 %v20021_v7  ;;  %v20091_v7 = vpack.c.bf16 %v11458_v24, %v11455_v34  ;;  %v11367_v27 = vld [vmem:[%s24211_s4 + $0x14e0] sm:$0xff]  ;;  %24944 = vst [vmem:[#allocation277_spill] sm:$0xff] %v20105_v33  ;;  %v11464_v34 = vld [vmem:[%s24211_s4 + $0x17e8] sm:$0xff]  ;;  %v11217_v24 = vld [vmem:[%s24211_s4 + $0x1030] sm:$0xff] }
 0x34f   : > { %14037 = vmatprep.subr.bf16.mxu1 %v20033_v50  ;;  %24943 = vst [vmem:[#allocation276_spill] sm:$0xff] %v20093_v39  ;;  %v11461_v50 = vld [vmem:[%s24211_s4 + $0x17d0] sm:$0xff]  ;;  %v11468_v38 = vld [vmem:[%s24211_s4 + $0x1808] sm:$0xff]  ;;  %v20123_v18 = vpack.c.bf16 %v11370_v4, %v11367_v27 }
 0x350   : > { %24942 = vst [vmem:[#allocation275_spill] sm:$0xff] %v20091_v7  ;;  %v11172_v27 = vld [vmem:[%s24211_s4 + $0xec8] sm:$0xff]  ;;  %v20141_v4 = vpack.c.bf16 %v11471_v52, %v11468_v38  ;;  %v11477_v38 = vld [vmem:[%s24211_s4 + $0x1850] sm:$0xff] }
 0x351   : > { %14079 = vmatpush3.bf16.msra.mxu0 %v20051_v32  ;;  %24945 = vst [vmem:[#allocation278_spill] sm:$0xff] %v20123_v18  ;;  %v20129_v32 = vpack.c.bf16 %v11220_v54, %v11217_v24  ;;  %v11226_v24 = vld [vmem:[%s24211_s4 + $0x1078] sm:$0xff] }
 0x352   : > { %14039 = vmatpush1.bf16.msra.mxu1 %v20055_v49  ;;  %14081 = vmatprep.subr.bf16.mxu0 %v20057_v55  ;;  %v20127_v55 = vpack.c.bf16 %v11464_v34, %v11461_v50  ;;  %v11169_v49 = vld [vmem:[%s24211_s4 + $0xeb0] sm:$0xff]  ;;  %24948 = vst [vmem:[#allocation281_spill] sm:$0xff] %v20141_v4  ;;  %v11470_v50 = vld [vmem:[%s24211_s4 + $0x1818] sm:$0xff]  ;;  %v11223_v34 = vld [vmem:[%s24211_s4 + $0x1060] sm:$0xff] }
 0x353   : > { %14041 = vmatprep.subr.bf16.mxu1 %v20069_v8  ;;  %24947 = vst [vmem:[#allocation280_spill] sm:$0xff] %v20129_v32  ;;  %v11467_v8 = vld [vmem:[%s24211_s4 + $0x1800] sm:$0xff]  ;;  %v11474_v54 = vld [vmem:[%s24211_s4 + $0x1838] sm:$0xff]  ;;  %v20159_v52 = vpack.c.bf16 %v11172_v27, %v11169_v49 }
 0x354   : > { %24946 = vst [vmem:[#allocation279_spill] sm:$0xff] %v20127_v55  ;;  %v11178_v49 = vld [vmem:[%s24211_s4 + $0xef8] sm:$0xff]  ;;  %v20177_v27 = vpack.c.bf16 %v11477_v38, %v11474_v54 }
 0x355   : > { %14083 = vmatpush3.bf16.msra.mxu0 %v20087_v23  ;;  %24949 = vst [vmem:[#allocation282_spill] sm:$0xff] %v20159_v52  ;;  %v20165_v23 = vpack.c.bf16 %v11226_v24, %v11223_v34  ;;  %v11232_v34 = vld [vmem:[%s24211_s4 + $0x10a8] sm:$0xff] }
 0x356   : > { %14043 = vmatpush1.bf16.msra.mxu1 %v20091_v7  ;;  %14085 = vmatprep.subr.bf16.mxu0 %v20093_v39  ;;  %v20163_v39 = vpack.c.bf16 %v11470_v50, %v11467_v8  ;;  %v11175_v7 = vld [vmem:[%s24211_s4 + $0xee0] sm:$0xff]  ;;  %24952 = vst [vmem:[#allocation285_spill] sm:$0xff] %v20177_v27  ;;  %v11476_v8 = vld [vmem:[%s24211_s4 + $0x1848] sm:$0xff]  ;;  %v11229_v50 = vld [vmem:[%s24211_s4 + $0x1090] sm:$0xff] }
 0x357   : > { %14045 = vmatprep.subr.bf16.mxu1 %v20105_v33  ;;  %24951 = vst [vmem:[#allocation284_spill] sm:$0xff] %v20165_v23  ;;  %v11473_v33 = vld [vmem:[%s24211_s4 + $0x1830] sm:$0xff]  ;;  %v20191_v24 = vpack.c.bf16 %v11178_v49, %v11175_v7  ;;  %v20197_v38 = vpack.c.bf16 %v11232_v34, %v11229_v50  ;;  %v11238_v50 = vld [vmem:[%s24211_s4 + $0x10d8] sm:$0xff] }
 0x358   : > { %24950 = vst [vmem:[#allocation283_spill] sm:$0xff] %v20163_v39  ;;  %v20195_v54 = vpack.c.bf16 %v11476_v8, %v11473_v33  ;;  %v11421_v7 = vld [vmem:[%s24211_s4 + $0x1690] sm:$0xff]  ;;  %v11424_v33 = vld [vmem:[%s24211_s4 + $0x16a8] sm:$0xff]  ;;  %v11235_v8 = vld [vmem:[%s24211_s4 + $0x10c0] sm:$0xff] }
 0x359   : > { %14087 = vmatpush3.bf16.msra.mxu0 %v20123_v18  ;;  %24953 = vst [vmem:[#allocation286_spill] sm:$0xff] %v20191_v24  ;;  %24955 = vst [vmem:[#allocation288_spill] sm:$0xff] %v20197_v38  ;;  %v11181_v18 = vld [vmem:[%s24211_s4 + $0xf10] sm:$0xff] }
 0x35a   : > { %14047 = vmatpush1.bf16.msra.mxu1 %v20127_v55  ;;  %14223 = vmatprep.subr.bf16.mxu0 %v20129_v32  ;;  %24954 = vst [vmem:[#allocation287_spill] sm:$0xff] %v20195_v54  ;;  %v11509_v55 = vld [vmem:[%s24211_s4 + $0x1930] sm:$0xff] }
 0x35b   : > { %14049 = vmatprep.subr.bf16.mxu1 %v20141_v4  ;;  %v11187_v4 = vld [vmem:[%s24211_s4 + $0xf40] sm:$0xff] }
 0x35c   : > { %5041 = vmatmul.mubr.f32.vlgmr.msra.gmra.mrb[30].mxu0 %v17815_v45 }
 0x35d   : > { %14225 = vmatpush3.bf16.msra.mxu0 %v20159_v52  ;;  %5322 = vmatprep.mubr.f32.mxu0 %v17798_v1  ;;  %v11184_v52 = vld [vmem:[%s24211_s4 + $0xf28] sm:$0xff] }
 0x35e   : > { %14051 = vmatpush1.bf16.msra.mxu1 %v20163_v39  ;;  %14227 = vmatprep.subr.bf16.mxu0 %v20165_v23  ;;  %v20219_v23 = vpack.c.bf16 %v11184_v52, %v11181_v18  ;;  %v11427_v39 = vld [vmem:[%s24211_s4 + $0x16c0] sm:$0xff]  ;;  %v11190_v18 = vld [vmem:[%s24211_s4 + $0xf58] sm:$0xff]  ;;  %v20234_v52 = vpop.f32.mrb[26].mxu0 }
 0x35f   : > { %14053 = vmatprep.subr.bf16.mxu1 %v20177_v27  ;;  %v20223_v27 = vpack.c.bf16 %v11424_v33, %v11421_v7  ;;  %24958 = vst [vmem:[#allocation291_spill] sm:$0xff] %v20234_v52  ;;  %v11430_v7 = vld [vmem:[%s24211_s4 + $0x16d8] sm:$0xff]  ;;  %v11241_v33 = vld [vmem:[%s24211_s4 + $0x10f0] sm:$0xff] }
 0x360   : > { %v11959_v49 = vpop.f32.mrb[28].mxu1  ;;  %24956 = vst [vmem:[#allocation289_spill] sm:$0xff] %v20219_v23  ;;  %v11521_v52 = vld [vmem:[%s24211_s4 + $0x1990] sm:$0xff] }
 0x361   : > { %v11960_v34 = vpop.f32.mrb[29].mxu1  ;;  %14229 = vmatpush3.bf16.msra.mxu0 %v20191_v24  ;;  %24957 = vst [vmem:[#allocation290_spill] sm:$0xff] %v20223_v27 }
 0x362   : > { %v11961_v32 = vadd.f32 %v11960_v34, %v11959_v49  ;;  %14055 = vmatpush1.bf16.msra.mxu1 %v20195_v54  ;;  %14231 = vmatprep.subr.bf16.mxu0 %v20197_v38  ;;  %v20237_v49 = vpack.c.bf16 %v11238_v50, %v11235_v8  ;;  %v11244_v34 = vld [vmem:[%s24211_s4 + $0x1108] sm:$0xff]  ;;  %v20248_v38 = vpop.f32.mrb[27].mxu0  ;;  %v20255_v8 = vpack.c.bf16 %v11190_v18, %v11187_v4  ;;  %v11247_v18 = vld [vmem:[%s24211_s4 + $0x1120] sm:$0xff] }
 0x363   : > { %14088 = vmatprep.subr.bf16.mxu1 %v24699_v29  ;;  %v20260_v50 = vpack.c.bf16 %v11430_v7, %v11427_v39  ;;  %v20262_v54 = vpack.c.bf16 %v11244_v34, %v11241_v33  ;;  %v11196_v4 = vld [vmem:[%s24211_s4 + $0xf88] sm:$0xff]  ;;  %v11250_v7 = vld [vmem:[%s24211_s4 + $0x1138] sm:$0xff] }
 0x364   : > { %24959 = vst [vmem:[#allocation292_spill] sm:$0xff] %v20237_v49  ;;  %v20251_v24 = vadd.f32 %v11961_v32, %v19575_v12  ;;  %24960 = vst [vmem:[#allocation293_spill] sm:$0xff] %v20255_v8  ;;  %v11433_v12 = vld [vmem:[%s24211_s4 + $0x16f0] sm:$0xff]  ;;  %v11436_v39 = vld [vmem:[%s24211_s4 + $0x1708] sm:$0xff] }
 0x365   : > { %4970 = vmatmul.mubr.f32.vlgmr.msra.gmra.mrb[32].mxu1 %v17789_v28  ;;  %14233 = vmatpush3.bf16.msra.mxu0 %v20219_v23  ;;  %24961 = vst [vmem:[#allocation294_spill] sm:$0xff] %v20260_v50  ;;  %24962 = vst [vmem:[#allocation295_spill] sm:$0xff] %v20262_v54  ;;  %v11193_v32 = vld [vmem:[%s24211_s4 + $0xf70] sm:$0xff]  ;;  %v20289_v34 = vpack.c.bf16 %v11436_v39, %v11433_v12  ;;  %v11199_v23 = vld [vmem:[%s24211_s4 + $0xfa0] sm:$0xff] }
 0x366   : > { %14090 = vmatpush1.bf16.msra.mxu1 %v20223_v27  ;;  %11480 = vmatprep.mubr.msk.f32.mxu1 %vm3504_vm7, %v17791_v35  ;;  %v20285_v33 = vpack.c.bf16 %v11196_v4, %v11193_v32  ;;  %v11439_v27 = vld [vmem:[%s24211_s4 + $0x1720] sm:$0xff]  ;;  %v11202_v32 = vld [vmem:[%s24211_s4 + $0xfb8] sm:$0xff]  ;;  %v11253_v4 = vld [vmem:[%s24211_s4 + $0x1150] sm:$0xff] }
 0x367   : > { %14091 = vmatprep.subr.bf16.mxu1 %v24699_v29  ;;  %14235 = vmatprep.subr.bf16.mxu0 %v20237_v49  ;;  %24964 = vst [vmem:[#allocation297_spill] sm:$0xff] %v20289_v34  ;;  %v20291_v49 = vpack.c.bf16 %v11250_v7, %v11247_v18  ;;  %v11442_v12 = vld [vmem:[%s24211_s4 + $0x1738] sm:$0xff]  ;;  %v11256_v39 = vld [vmem:[%s24211_s4 + $0x1168] sm:$0xff]  ;;  %v20313_v18 = vpack.c.bf16 %v11202_v32, %v11199_v23  ;;  %v11259_v32 = vld [vmem:[%s24211_s4 + $0x1180] sm:$0xff] }
 0x368   : > { %24963 = vst [vmem:[#allocation296_spill] sm:$0xff] %v20285_v33  ;;  %v20317_v7 = vpack.c.bf16 %v11442_v12, %v11439_v27  ;;  %v11208_v23 = vld [vmem:[%s24211_s4 + $0xfe8] sm:$0xff]  ;;  %v11262_v12 = vld [vmem:[%s24211_s4 + $0x1198] sm:$0xff] }
 0x369   : > { %14237 = vmatpush3.bf16.msra.mxu0 %v20255_v8  ;;  %24965 = vst [vmem:[#allocation298_spill] sm:$0xff] %v20291_v49  ;;  %24966 = vst [vmem:[#allocation299_spill] sm:$0xff] %v20313_v18  ;;  %v11205_v8 = vld [vmem:[%s24211_s4 + $0xfd0] sm:$0xff]  ;;  %v11448_v27 = vld [vmem:[%s24211_s4 + $0x1768] sm:$0xff] }
 0x36a   : > { %14093 = vmatpush1.bf16.msra.mxu1 %v20260_v50  ;;  %14239 = vmatprep.subr.bf16.mxu0 %v20262_v54  ;;  %24967 = vst [vmem:[#allocation300_spill] sm:$0xff] %v20317_v7  ;;  %v20319_v54 = vpack.c.bf16 %v11256_v39, %v11253_v4  ;;  %v11445_v50 = vld [vmem:[%s24211_s4 + $0x1750] sm:$0xff]  ;;  %v20341_v4 = vpack.c.bf16 %v11208_v23, %v11205_v8  ;;  %v11214_v8 = vld [vmem:[%s24211_s4 + $0x1018] sm:$0xff] }
 0x36b   : > { %14094 = vmatprep.subr.bf16.mxu1 %v24699_v29  ;;  %v20345_v39 = vpack.c.bf16 %v11448_v27, %v11445_v50  ;;  %v11454_v50 = vld [vmem:[%s24211_s4 + $0x1798] sm:$0xff]  ;;  %v11533_v23 = vld [vmem:[%s24211_s4 + $0x19f0] sm:$0xff]  ;;  %v11536_v27 = vld [vmem:[%s24211_s4 + $0x1a08] sm:$0xff] }
 0x36c   : > { %24968 = vst [vmem:[#allocation301_spill] sm:$0xff] %v20319_v54  ;;  %24969 = vst [vmem:[#allocation302_spill] sm:$0xff] %v20341_v4 }
 0x36d   : > { %14241 = vmatpush3.bf16.msra.mxu0 %v20285_v33  ;;  %24970 = vst [vmem:[#allocation303_spill] sm:$0xff] %v20345_v39  ;;  %v11211_v33 = vld [vmem:[%s24211_s4 + $0x1000] sm:$0xff] }
 0x36e   : > { %14096 = vmatpush1.bf16.msra.mxu1 %v20289_v34  ;;  %14243 = vmatprep.subr.bf16.mxu0 %v20291_v49  ;;  %v20347_v49 = vpack.c.bf16 %v11262_v12, %v11259_v32  ;;  %v11451_v34 = vld [vmem:[%s24211_s4 + $0x1780] sm:$0xff]  ;;  %v20369_v32 = vpack.c.bf16 %v11214_v8, %v11211_v33  ;;  %v11488_v33 = vld [vmem:[%s24211_s4 + $0x1888] sm:$0xff] }
 0x36f   : > { %14097 = vmatprep.subr.bf16.mxu1 %v24699_v29  ;;  %v20373_v12 = vpack.c.bf16 %v11454_v50, %v11451_v34  ;;  %v11460_v34 = vld [vmem:[%s24211_s4 + $0x17c8] sm:$0xff]  ;;  %v11539_v8 = vld [vmem:[%s24211_s4 + $0x1a20] sm:$0xff]  ;;  %v11542_v50 = vld [vmem:[%s24211_s4 + $0x1a38] sm:$0xff] }
 0x370   : > { %24971 = vst [vmem:[#allocation304_spill] sm:$0xff] %v20347_v49  ;;  %24972 = vst [vmem:[#allocation305_spill] sm:$0xff] %v20369_v32 }
 0x371   : > { %14245 = vmatpush3.bf16.msra.mxu0 %v20313_v18  ;;  %24973 = vst [vmem:[#allocation306_spill] sm:$0xff] %v20373_v12  ;;  %v11485_v18 = vld [vmem:[%s24211_s4 + $0x1870] sm:$0xff] }
 0x372   : > { %14099 = vmatpush1.bf16.msra.mxu1 %v20317_v7  ;;  %14247 = vmatprep.subr.bf16.mxu0 %v20319_v54  ;;  %v20375_v54 = vpack.c.bf16 %v11536_v27, %v11533_v23  ;;  %v11457_v7 = vld [vmem:[%s24211_s4 + $0x17b0] sm:$0xff]  ;;  %v20397_v23 = vpack.c.bf16 %v11488_v33, %v11485_v18  ;;  %v11494_v18 = vld [vmem:[%s24211_s4 + $0x18b8] sm:$0xff] }
 0x373   : > { %14100 = vmatprep.subr.bf16.mxu1 %v24699_v29  ;;  %v20401_v27 = vpack.c.bf16 %v11460_v34, %v11457_v7  ;;  %v11466_v7 = vld [vmem:[%s24211_s4 + $0x17f8] sm:$0xff]  ;;  %v11545_v33 = vld [vmem:[%s24211_s4 + $0x1a50] sm:$0xff]  ;;  %v11548_v34 = vld [vmem:[%s24211_s4 + $0x1a68] sm:$0xff] }
 0x374   : > { %24974 = vst [vmem:[#allocation307_spill] sm:$0xff] %v20375_v54  ;;  %24975 = vst [vmem:[#allocation308_spill] sm:$0xff] %v20397_v23 }
 0x375   : > { %14249 = vmatpush3.bf16.msra.mxu0 %v20341_v4  ;;  %24976 = vst [vmem:[#allocation309_spill] sm:$0xff] %v20401_v27  ;;  %v11491_v4 = vld [vmem:[%s24211_s4 + $0x18a0] sm:$0xff] }
 0x376   : > { %14102 = vmatpush1.bf16.msra.mxu1 %v20345_v39  ;;  %14251 = vmatprep.subr.bf16.mxu0 %v20347_v49  ;;  %v20403_v49 = vpack.c.bf16 %v11542_v50, %v11539_v8  ;;  %v11463_v39 = vld [vmem:[%s24211_s4 + $0x17e0] sm:$0xff]  ;;  %v20427_v8 = vpack.c.bf16 %v11494_v18, %v11491_v4  ;;  %v11500_v4 = vld [vmem:[%s24211_s4 + $0x18e8] sm:$0xff] }
 0x377   : > { %14103 = vmatprep.subr.bf16.mxu1 %v24699_v29  ;;  %v20431_v50 = vpack.c.bf16 %v11466_v7, %v11463_v39  ;;  %v11472_v39 = vld [vmem:[%s24211_s4 + $0x1828] sm:$0xff]  ;;  %v11551_v18 = vld [vmem:[%s24211_s4 + $0x1a80] sm:$0xff]  ;;  %v11554_v7 = vld [vmem:[%s24211_s4 + $0x1a98] sm:$0xff] }
 0x378   : > { %24977 = vst [vmem:[#allocation310_spill] sm:$0xff] %v20403_v49  ;;  %24978 = vst [vmem:[#allocation311_spill] sm:$0xff] %v20427_v8 }
 0x379   : > { %14253 = vmatpush3.bf16.msra.mxu0 %v20369_v32  ;;  %24979 = vst [vmem:[#allocation312_spill] sm:$0xff] %v20431_v50  ;;  %v11503_v32 = vld [vmem:[%s24211_s4 + $0x1900] sm:$0xff] }
 0x37a   : > { %14105 = vmatpush1.bf16.msra.mxu1 %v20373_v12  ;;  %14389 = vmatprep.subr.bf16.mxu0 %v20375_v54  ;;  %v20433_v54 = vpack.c.bf16 %v11548_v34, %v11545_v33  ;;  %v11469_v12 = vld [vmem:[%s24211_s4 + $0x1810] sm:$0xff] }
 0x37b   : > { %14106 = vmatprep.subr.bf16.mxu1 %v24699_v29  ;;  %v20459_v34 = vpack.c.bf16 %v11472_v39, %v11469_v12  ;;  %v11478_v12 = vld [vmem:[%s24211_s4 + $0x1858] sm:$0xff]  ;;  %v11560_v39 = vld [vmem:[%s24211_s4 + $0x1ac8] sm:$0xff] }
 0x37c   : > { %5323 = vmatmul.mubr.f32.vlgmr.msra.gmra.mrb[32].mxu0 %v17793_v61  ;;  %24980 = vst [vmem:[#allocation313_spill] sm:$0xff] %v20433_v54 }
 0x37d   : > { %14391 = vmatpush3.bf16.msra.mxu0 %v20397_v23  ;;  %5761 = vmatprep.mubr.f32.mxu0 %v17959_v42  ;;  %v11497_v23 = vld [vmem:[%s24211_s4 + $0x18d0] sm:$0xff]  ;;  %24982 = vst [vmem:[#allocation315_spill] sm:$0xff] %v20459_v34 }
 0x37e   : > { %14108 = vmatpush1.bf16.msra.mxu1 %v20401_v27  ;;  %14393 = vmatprep.subr.bf16.mxu0 %v20403_v49  ;;  %v20455_v33 = vpack.c.bf16 %v11500_v4, %v11497_v23  ;;  %v20461_v49 = vpack.c.bf16 %v11554_v7, %v11551_v18  ;;  %v11475_v27 = vld [vmem:[%s24211_s4 + $0x1840] sm:$0xff]  ;;  %v11506_v23 = vld [vmem:[%s24211_s4 + $0x1918] sm:$0xff]  ;;  %v11557_v4 = vld [vmem:[%s24211_s4 + $0x1ab0] sm:$0xff] }
 0x37f   : > { %14109 = vmatprep.subr.bf16.mxu1 %v24699_v29  ;;  %v11168_v18 = vld [vmem:[%s24211_s4 + $0xea8] sm:$0xff]  ;;  %v11171_v7 = vld [vmem:[%s24211_s4 + $0xec0] sm:$0xff] }
 0x380   : > { %24981 = vst [vmem:[#allocation314_spill] sm:$0xff] %v20455_v33  ;;  %24983 = vst [vmem:[#allocation316_spill] sm:$0xff] %v20461_v49 }
 0x381   : > { %14395 = vmatpush3.bf16.msra.mxu0 %v20427_v8  ;;  %v20495_v8 = vpack.c.bf16 %v11560_v39, %v11557_v4  ;;  %v11177_v4 = vld [vmem:[%s24211_s4 + $0xef0] sm:$0xff]  ;;  %v11563_v39 = vld [vmem:[%s24211_s4 + $0x1ae0] sm:$0xff] }
 0x382   : > { %14111 = vmatpush1.bf16.msra.mxu1 %v20431_v50  ;;  %14397 = vmatprep.subr.bf16.mxu0 %v20433_v54  ;;  %v20489_v54 = vpack.c.bf16 %v11506_v23, %v11503_v32  ;;  %v20493_v50 = vpack.c.bf16 %v11478_v12, %v11475_v27  ;;  %v20504_v32 = vpack.c.bf16 %v11171_v7, %v11168_v18  ;;  %v11167_v23 = vld [vmem:[%s24211_s4 + $0xea0] sm:$0xff]  ;;  %v11170_v27 = vld [vmem:[%s24211_s4 + $0xeb8] sm:$0xff] }
 0x383   : > { %14112 = vmatprep.subr.bf16.mxu1 %v24699_v29  ;;  %24986 = vst [vmem:[#allocation319_spill] sm:$0xff] %v20495_v8  ;;  %v11174_v12 = vld [vmem:[%s24211_s4 + $0xed8] sm:$0xff]  ;;  %v20525_v7 = vpack.c.bf16 %v11512_v25, %v11509_v55 }
 0x384   : > { %24984 = vst [vmem:[#allocation317_spill] sm:$0xff] %v20489_v54  ;;  %24985 = vst [vmem:[#allocation318_spill] sm:$0xff] %v20493_v50  ;;  %v11566_v18 = vld [vmem:[%s24211_s4 + $0x1af8] sm:$0xff]  ;;  %v20541_v25 = vpack.c.bf16 %v11177_v4, %v11174_v12  ;;  %v11183_v12 = vld [vmem:[%s24211_s4 + $0xf20] sm:$0xff] }
 0x385   : > { %14399 = vmatpush3.bf16.msra.mxu0 %v20455_v33  ;;  %24987 = vst [vmem:[#allocation320_spill] sm:$0xff] %v20504_v32  ;;  %v11515_v33 = vld [vmem:[%s24211_s4 + $0x1960] sm:$0xff]  ;;  %v20543_v55 = vpack.c.bf16 %v11566_v18, %v11563_v39 }
 0x386   : > { %14114 = vmatpush1.bf16.msra.mxu1 %v20459_v34  ;;  %14401 = vmatprep.subr.bf16.mxu0 %v20461_v49  ;;  %v20529_v49 = vpack.c.bf16 %v11170_v27, %v11167_v23  ;;  %v11173_v34 = vld [vmem:[%s24211_s4 + $0xed0] sm:$0xff]  ;;  %24989 = vst [vmem:[#allocation322_spill] sm:$0xff] %v20541_v25  ;;  %v11176_v23 = vld [vmem:[%s24211_s4 + $0xee8] sm:$0xff] }
 0x387   : > { %14115 = vmatprep.subr.bf16.mxu1 %v24699_v29  ;;  %24990 = vst [vmem:[#allocation323_spill] sm:$0xff] %v20543_v55  ;;  %v11569_v27 = vld [vmem:[%s24211_s4 + $0x1b10] sm:$0xff]  ;;  %v20566_v39 = vpack.c.bf16 %v11176_v23, %v11173_v34  ;;  %v11578_v34 = vld [vmem:[%s24211_s4 + $0x1b58] sm:$0xff] }
 0x388   : > { %24988 = vst [vmem:[#allocation321_spill] sm:$0xff] %v20529_v49  ;;  %v11186_v23 = vld [vmem:[%s24211_s4 + $0xf38] sm:$0xff] }
 0x389   : > { %14403 = vmatpush3.bf16.msra.mxu0 %v20489_v54  ;;  %v11518_v54 = vld [vmem:[%s24211_s4 + $0x1978] sm:$0xff] }
 0x38a   : > { %14117 = vmatpush1.bf16.msra.mxu1 %v20493_v50  ;;  %14405 = vmatprep.subr.bf16.mxu0 %v20495_v8  ;;  %v11572_v8 = vld [vmem:[%s24211_s4 + $0x1b28] sm:$0xff]  ;;  %v20562_v4 = vpack.c.bf16 %v11518_v54, %v11515_v33  ;;  %v11179_v50 = vld [vmem:[%s24211_s4 + $0xf00] sm:$0xff] }
 0x38b   : > { %14119 = vmatprep.subr.bf16.mxu1 %v20504_v32  ;;  %v11180_v32 = vld [vmem:[%s24211_s4 + $0xf08] sm:$0xff]  ;;  %v20568_v18 = vpack.c.bf16 %v11572_v8, %v11569_v27  ;;  %v11182_v8 = vld [vmem:[%s24211_s4 + $0xf18] sm:$0xff]  ;;  %v11575_v33 = vld [vmem:[%s24211_s4 + $0x1b40] sm:$0xff] }
 0x38c   : > { %v11524_v54 = vld [vmem:[%s24211_s4 + $0x19a8] sm:$0xff] }
 0x38d   : > { %5111 = vmatmul.mubr.f32.vlgmr.msra.gmra.mrb[34].mxu1 %v17789_v28  ;;  %14407 = vmatpush3.bf16.msra.mxu0 %v20525_v7  ;;  %v20599_v27 = vpack.c.bf16 %v11524_v54, %v11521_v52  ;;  %v11185_v54 = vld [vmem:[%s24211_s4 + $0xf30] sm:$0xff] }
 0x38e   : > { %14121 = vmatpush1.bf16.msra.mxu1 %v20529_v49  ;;  %5180 = vmatprep.mubr.f32.mxu1 %v17798_v1  ;;  %v20581_v1 = vpack.c.bf16 %v11183_v12, %v11180_v32  ;;  %v11189_v32 = vld [vmem:[%s24211_s4 + $0xf50] sm:$0xff]  ;;  %v20603_v12 = vpack.c.bf16 %v11182_v8, %v11179_v50  ;;  %v11530_v49 = vld [vmem:[%s24211_s4 + $0x19d8] sm:$0xff]  ;;  %v11188_v50 = vld [vmem:[%s24211_s4 + $0xf48] sm:$0xff] }
 0x38f   : > { %14123 = vmatprep.subr.bf16.mxu1 %v20541_v25  ;;  %14409 = vmatprep.subr.bf16.mxu0 %v20543_v55  ;;  %24992 = vst [vmem:[#allocation325_spill] sm:$0xff] %v20599_v27  ;;  %v20605_v55 = vpack.c.bf16 %v11578_v34, %v11575_v33  ;;  %v11527_v25 = vld [vmem:[%s24211_s4 + $0x19c0] sm:$0xff]  ;;  %v20614_v52 = vpack.c.bf16 %v11189_v32, %v11186_v23  ;;  %v11192_v8 = vld [vmem:[%s24211_s4 + $0xf68] sm:$0xff] }
 0x390   : > { %24991 = vst [vmem:[#allocation324_spill] sm:$0xff] %v20581_v1  ;;  %v11195_v33 = vld [vmem:[%s24211_s4 + $0xf80] sm:$0xff]  ;;  %v20629_v34 = vpack.c.bf16 %v11530_v49, %v11527_v25  ;;  %v20633_v23 = vpack.c.bf16 %v11188_v50, %v11185_v54  ;;  %v11198_v49 = vld [vmem:[%s24211_s4 + $0xf98] sm:$0xff]  ;;  %v11201_v25 = vld [vmem:[%s24211_s4 + $0xfb0] sm:$0xff] }
 0x391   : > { %14411 = vmatpush3.bf16.msra.mxu0 %v20562_v4  ;;  %v20636_v32 = vpack.c.bf16 %v11195_v33, %v11192_v8  ;;  %v20656_v50 = vpack.c.bf16 %v11201_v25, %v11198_v49  ;;  %v11197_v8 = vld [vmem:[%s24211_s4 + $0xf90] sm:$0xff]  ;;  %v11200_v33 = vld [vmem:[%s24211_s4 + $0xfa8] sm:$0xff]  ;;  %v11203_v25 = vld [vmem:[%s24211_s4 + $0xfc0] sm:$0xff] }
 0x392   : > { %14125 = vmatpush1.bf16.msra.mxu1 %v20566_v39  ;;  %14413 = vmatprep.subr.bf16.mxu0 %v20568_v18 }
 0x393   : > { %14127 = vmatprep.subr.bf16.mxu1 %v20581_v1  ;;  %v11191_v1 = vld [vmem:[%s24211_s4 + $0xf60] sm:$0xff] }
 0x395   : > { %14415 = vmatpush3.bf16.msra.mxu0 %v20599_v27  ;;  %v11194_v27 = vld [vmem:[%s24211_s4 + $0xf78] sm:$0xff] }
 0x396   : > { %14129 = vmatpush1.bf16.msra.mxu1 %v20603_v12  ;;  %14417 = vmatprep.subr.bf16.mxu0 %v20605_v55  ;;  %v20653_v54 = vpack.c.bf16 %v11194_v27, %v11191_v1  ;;  %v11207_v1 = vld [vmem:[%s24211_s4 + $0xfe0] sm:$0xff]  ;;  %v20675_v27 = vpack.c.bf16 %v11200_v33, %v11197_v8 }
 0x397   : > { %14131 = vmatprep.subr.bf16.mxu1 %v20614_v52 }
 0x398   : > { %24993 = vst [vmem:[#allocation326_spill] sm:$0xff] %v20653_v54 }
 0x399   : > { %14419 = vmatpush3.bf16.msra.mxu0 %v20629_v34 }
 0x39a   : > { %14133 = vmatpush1.bf16.msra.mxu1 %v20633_v23  ;;  %14451 = vmatprep.subr.bf16.mxu0 %v17416_v22  ;;  %v11204_v22 = vld [vmem:[%s24211_s4 + $0xfc8] sm:$0xff] }
 0x39b   : > { %14135 = vmatprep.subr.bf16.mxu1 %v20636_v32  ;;  %v20678_v49 = vpack.c.bf16 %v11207_v1, %v11204_v22  ;;  %v11209_v22 = vld [vmem:[%s24211_s4 + $0xff0] sm:$0xff]  ;;  %v11212_v1 = vld [vmem:[%s24211_s4 + $0x1008] sm:$0xff] }
 0x39c   : > { %5762 = vmatmul.mubr.f32.vlgmr.msra.gmra.mrb[34].mxu0 %v17935_v48 }
 0x39d   : > { %14453 = vmatpush1.bf16.msra.mxu0 %v17453_v6  ;;  %5907 = vmatprep.mubr.f32.mxu0 %v17959_v42  ;;  %24994 = vst [vmem:[#allocation327_spill] sm:$0xff] %v20678_v49  ;;  %v11206_v6 = vld [vmem:[%s24211_s4 + $0xfd8] sm:$0xff] }
 0x39e   : > { %14137 = vmatpush1.bf16.msra.mxu1 %v20653_v54  ;;  %14455 = vmatprep.subr.bf16.mxu0 %v17456_v10  ;;  %v11210_v54 = vld [vmem:[%s24211_s4 + $0xff8] sm:$0xff]  ;;  %v11213_v10 = vld [vmem:[%s24211_s4 + $0x1010] sm:$0xff]  ;;  %v20695_v8 = vpack.c.bf16 %v11206_v6, %v11203_v25  ;;  %v11215_v6 = vld [vmem:[%s24211_s4 + $0x1020] sm:$0xff] }
 0x39f   : > { %14139 = vmatprep.subr.bf16.mxu1 %v20656_v50  ;;  %v20698_v33 = vpack.c.bf16 %v11213_v10, %v11210_v54  ;;  %v20715_v54 = vpack.c.bf16 %v11212_v1, %v11209_v22  ;;  %v11218_v10 = vld [vmem:[%s24211_s4 + $0x1038] sm:$0xff] }
 0x3a0   : > { %24995 = vst [vmem:[#allocation328_spill] sm:$0xff] %v20695_v8 }
 0x3a1   : > { %14457 = vmatpush1.bf16.msra.mxu0 %v17490_v56  ;;  %24996 = vst [vmem:[#allocation329_spill] sm:$0xff] %v20698_v33  ;;  %v11216_v56 = vld [vmem:[%s24211_s4 + $0x1028] sm:$0xff] }
 0x3a2   : > { %14141 = vmatpush1.bf16.msra.mxu1 %v20675_v27  ;;  %14459 = vmatprep.subr.bf16.mxu0 %v17493_v60  ;;  %v11219_v60 = vld [vmem:[%s24211_s4 + $0x1040] sm:$0xff] }
 0x3a3   : > { %14143 = vmatprep.subr.bf16.mxu1 %v20678_v49  ;;  %v20718_v25 = vpack.c.bf16 %v11219_v60, %v11216_v56  ;;  %v20735_v56 = vpack.c.bf16 %v11218_v10, %v11215_v6 }
 0x3a5   : > { %14461 = vmatpush1.bf16.msra.mxu0 %v17520_v63  ;;  %v11222_v63 = vld [vmem:[%s24211_s4 + $0x1058] sm:$0xff] }
 0x3a6   : > { %14145 = vmatpush1.bf16.msra.mxu1 %v20695_v8  ;;  %14463 = vmatprep.subr.bf16.mxu0 %v17523_v11  ;;  %v11225_v11 = vld [vmem:[%s24211_s4 + $0x1070] sm:$0xff]  ;;  %v11224_v8 = vld [vmem:[%s24211_s4 + $0x1068] sm:$0xff] }
 0x3a7   : > { %14147 = vmatprep.subr.bf16.mxu1 %v20698_v33  ;;  %v20738_v60 = vpack.c.bf16 %v11225_v11, %v11222_v63  ;;  %v11221_v33 = vld [vmem:[%s24211_s4 + $0x1050] sm:$0xff]  ;;  %v11227_v63 = vld [vmem:[%s24211_s4 + $0x1080] sm:$0xff] }
 0x3a8   : > { %v11994_v49 = vpop.f32.mrb[30].mxu1  ;;  %v20758_v6 = vpack.c.bf16 %v11224_v8, %v11221_v33  ;;  %v11233_v11 = vld [vmem:[%s24211_s4 + $0x10b0] sm:$0xff] }
 0x3a9   : > { %v11995_v22 = vpop.f32.mrb[31].mxu1  ;;  %14465 = vmatpush1.bf16.msra.mxu0 %v17542_v31  ;;  %v11228_v31 = vld [vmem:[%s24211_s4 + $0x1088] sm:$0xff] }
 0x3aa   : > { %v11996_v1 = vadd.f32 %v11995_v22, %v11994_v49  ;;  %14149 = vmatpush1.bf16.msra.mxu1 %v20715_v54  ;;  %14467 = vmatprep.subr.bf16.mxu0 %v17545_v57  ;;  %v11231_v57 = vld [vmem:[%s24211_s4 + $0x10a0] sm:$0xff]  ;;  %v11236_v22 = vld [vmem:[%s24211_s4 + $0x10c8] sm:$0xff] }
 0x3ab   : > { %14151 = vmatprep.subr.bf16.mxu1 %v20718_v25  ;;  %v20761_v10 = vpack.c.bf16 %v11231_v57, %v11228_v31  ;;  %v11239_v57 = vld [vmem:[%s24211_s4 + $0x10e0] sm:$0xff] }
 0x3ac   : > { %v20753_v49 = vadd.f32 %v20251_v24, %v11996_v1  ;;  %v11230_v24 = vld [vmem:[%s24211_s4 + $0x1098] sm:$0xff]  ;;  %v20798_v1 = vpack.c.bf16 %v11236_v22, %v11233_v11  ;;  %v11248_v11 = vld [vmem:[%s24211_s4 + $0x1128] sm:$0xff] }
 0x3ad   : > { %14469 = vmatpush1.bf16.msra.mxu0 %v17561_v3  ;;  %v11234_v3 = vld [vmem:[%s24211_s4 + $0x10b8] sm:$0xff]  ;;  %v20778_v8 = vpack.c.bf16 %v11230_v24, %v11227_v63 }
 0x3ae   : > { %14153 = vmatpush1.bf16.msra.mxu1 %v20735_v56  ;;  %14471 = vmatprep.subr.bf16.mxu0 %v17564_v9  ;;  %v11237_v9 = vld [vmem:[%s24211_s4 + $0x10d0] sm:$0xff]  ;;  %v11242_v63 = vld [vmem:[%s24211_s4 + $0x10f8] sm:$0xff] }
 0x3af   : > { %14155 = vmatprep.subr.bf16.mxu1 %v20738_v60  ;;  %v20781_v33 = vpack.c.bf16 %v11237_v9, %v11234_v3  ;;  %v20818_v24 = vpack.c.bf16 %v11242_v63, %v11239_v57  ;;  %v11245_v9 = vld [vmem:[%s24211_s4 + $0x1110] sm:$0xff]  ;;  %v11254_v57 = vld [vmem:[%s24211_s4 + $0x1158] sm:$0xff] }
 0x3b0   : > { %v20838_v22 = vpack.c.bf16 %v11248_v11, %v11245_v9  ;;  %v11260_v9 = vld [vmem:[%s24211_s4 + $0x1188] sm:$0xff] }
 0x3b1   : > { %14473 = vmatpush1.bf16.msra.mxu0 %v17579_v15  ;;  %v11240_v15 = vld [vmem:[%s24211_s4 + $0x10e8] sm:$0xff] }
 0x3b2   : > { %14157 = vmatpush1.bf16.msra.mxu1 %v20758_v6  ;;  %14475 = vmatprep.subr.bf16.mxu0 %v17582_v30  ;;  %v11243_v30 = vld [vmem:[%s24211_s4 + $0x1100] sm:$0xff] }
 0x3b3   : > { %14159 = vmatprep.subr.bf16.mxu1 %v20761_v10  ;;  %v20801_v31 = vpack.c.bf16 %v11243_v30, %v11240_v15  ;;  %v11251_v30 = vld [vmem:[%s24211_s4 + $0x1140] sm:$0xff] }
 0x3b4   : > { %v20858_v63 = vpack.c.bf16 %v11254_v57, %v11251_v30  ;;  %v11266_v30 = vld [vmem:[%s24211_s4 + $0x11b8] sm:$0xff] }
 0x3b5   : > { %14477 = vmatpush1.bf16.msra.mxu0 %v17597_v2  ;;  %v11246_v2 = vld [vmem:[%s24211_s4 + $0x1118] sm:$0xff] }
 0x3b6   : > { %14161 = vmatpush1.bf16.msra.mxu1 %v20778_v8  ;;  %14479 = vmatprep.subr.bf16.mxu0 %v17600_v14  ;;  %v11249_v14 = vld [vmem:[%s24211_s4 + $0x1130] sm:$0xff] }
 0x3b7   : > { %14163 = vmatprep.subr.bf16.mxu1 %v20781_v33  ;;  %v20821_v3 = vpack.c.bf16 %v11249_v14, %v11246_v2  ;;  %v11257_v14 = vld [vmem:[%s24211_s4 + $0x1170] sm:$0xff] }
 0x3b8   : > { %v20878_v11 = vpack.c.bf16 %v11260_v9, %v11257_v14  ;;  %v11272_v14 = vld [vmem:[%s24211_s4 + $0x11e8] sm:$0xff] }
 0x3b9   : > { %14481 = vmatpush1.bf16.msra.mxu0 %v17615_v41  ;;  %v11252_v41 = vld [vmem:[%s24211_s4 + $0x1148] sm:$0xff] }
 0x3ba   : > { %14165 = vmatpush1.bf16.msra.mxu1 %v20798_v1  ;;  %14483 = vmatprep.subr.bf16.mxu0 %v17618_v47  ;;  %v11255_v47 = vld [vmem:[%s24211_s4 + $0x1160] sm:$0xff] }
 0x3bb   : > { %14167 = vmatprep.subr.bf16.mxu1 %v20801_v31  ;;  %v20841_v15 = vpack.c.bf16 %v11255_v47, %v11252_v41  ;;  %v11263_v47 = vld [vmem:[%s24211_s4 + $0x11a0] sm:$0xff] }
 0x3bc   : > { %v20898_v57 = vpack.c.bf16 %v11266_v30, %v11263_v47  ;;  %v11282_v47 = vld [vmem:[%s24211_s4 + $0x1238] sm:$0xff]  ;;  %v11285_v30 = vld [vmem:[%s24211_s4 + $0x1250] sm:$0xff] }
 0x3bd   : > { %14485 = vmatpush1.bf16.msra.mxu0 %v17633_v40  ;;  %v11258_v40 = vld [vmem:[%s24211_s4 + $0x1178] sm:$0xff] }
 0x3be   : > { %14169 = vmatpush1.bf16.msra.mxu1 %v20818_v24  ;;  %14487 = vmatprep.subr.bf16.mxu0 %v17636_v53  ;;  %v11261_v53 = vld [vmem:[%s24211_s4 + $0x1190] sm:$0xff] }
 0x3bf   : > { %14171 = vmatprep.subr.bf16.mxu1 %v20821_v3  ;;  %v20861_v2 = vpack.c.bf16 %v11261_v53, %v11258_v40  ;;  %v11269_v53 = vld [vmem:[%s24211_s4 + $0x11d0] sm:$0xff] }
 0x3c0   : > { %v20920_v9 = vpack.c.bf16 %v11272_v14, %v11269_v53  ;;  %v20947_v53 = vpack.c.bf16 %v11285_v30, %v11282_v47  ;;  %v11281_v14 = vld [vmem:[%s24211_s4 + $0x1230] sm:$0xff] }
 0x3c1   : > { %14489 = vmatpush1.bf16.msra.mxu0 %v17651_v44  ;;  %v11264_v44 = vld [vmem:[%s24211_s4 + $0x11a8] sm:$0xff]  ;;  %v11293_v30 = vld [vmem:[%s24211_s4 + $0x1290] sm:$0xff] }
 0x3c2   : > { %14173 = vmatpush1.bf16.msra.mxu1 %v20838_v22  ;;  %14491 = vmatprep.subr.bf16.mxu0 %v17654_v59  ;;  %v11267_v59 = vld [vmem:[%s24211_s4 + $0x11c0] sm:$0xff]  ;;  %24997 = vst [vmem:[#allocation330_spill] sm:$0xff] %v20947_v53 }
 0x3c3   : > { %14175 = vmatprep.subr.bf16.mxu1 %v20841_v15  ;;  %v20881_v41 = vpack.c.bf16 %v11267_v59, %v11264_v44  ;;  %v11275_v59 = vld [vmem:[%s24211_s4 + $0x1200] sm:$0xff] }
 0x3c5   : > { %14493 = vmatpush1.bf16.msra.mxu0 %v17669_v17  ;;  %v11270_v17 = vld [vmem:[%s24211_s4 + $0x11d8] sm:$0xff] }
 0x3c6   : > { %14177 = vmatpush1.bf16.msra.mxu1 %v20858_v63  ;;  %14495 = vmatprep.subr.bf16.mxu0 %v17672_v21  ;;  %v11273_v21 = vld [vmem:[%s24211_s4 + $0x11f0] sm:$0xff] }
 0x3c7   : > { %14179 = vmatprep.subr.bf16.mxu1 %v20861_v2  ;;  %v20901_v40 = vpack.c.bf16 %v11273_v21, %v11270_v17 }
 0x3c9   : > { %14497 = vmatpush1.bf16.msra.mxu0 %v17687_v62  ;;  %v11276_v62 = vld [vmem:[%s24211_s4 + $0x1208] sm:$0xff] }
 0x3ca   : > { %14181 = vmatpush1.bf16.msra.mxu1 %v20878_v11  ;;  %14499 = vmatprep.subr.bf16.mxu0 %v17690_v19  ;;  %v11279_v19 = vld [vmem:[%s24211_s4 + $0x1220] sm:$0xff] }
 0x3cb   : > { %14183 = vmatprep.subr.bf16.mxu1 %v20881_v41  ;;  %v20924_v44 = vpack.c.bf16 %v11279_v19, %v11276_v62 }
 0x3cd   : > { %5181 = vmatmul.mubr.f32.vlgmr.msra.gmra.mrb[32].mxu1 %v17793_v61  ;;  %14501 = vmatpush1.bf16.msra.mxu0 %v17705_v0  ;;  %v11278_v0 = vld [vmem:[%s24211_s4 + $0x1218] sm:$0xff] }
 0x3ce   : > { %14185 = vmatpush1.bf16.msra.mxu1 %v20898_v57  ;;  %11481 = vmatprep.mubr.msk.f32.mxu1 %vm3504_vm7, %v17787_v37  ;;  %v20944_v21 = vpack.c.bf16 %v11278_v0, %v11275_v59  ;;  %v11287_v59 = vld [vmem:[%s24211_s4 + $0x1260] sm:$0xff]  ;;  %v11290_v0 = vld [vmem:[%s24211_s4 + $0x1278] sm:$0xff] }
 0x3cf   : > { %14187 = vmatprep.subr.bf16.mxu1 %v20901_v40  ;;  %14503 = vmatprep.subr.bf16.mxu0 %v17708_v5 }
 0x3d0   : > { %v4513_v61 = vpop.f32.mrb[26].mxu1 }
 0x3d1   : > { %v20939_v5 = vadd.f32 %v20753_v49, %v4513_v61  ;;  %v4515_v17 = vpop.f32.mrb[27].mxu1  ;;  %14505 = vmatpush1.bf16.msra.mxu0 %v17723_v36  ;;  %v11284_v49 = vld [vmem:[%s24211_s4 + $0x1248] sm:$0xff]  ;;  %v20984_v61 = vpack.c.bf16 %v11290_v0, %v11287_v59  ;;  %v11299_v59 = vld [vmem:[%s24211_s4 + $0x12c0] sm:$0xff]  ;;  %v11306_v0 = vld [vmem:[%s24211_s4 + $0x12f8] sm:$0xff] }
 0x3d2   : > { %14189 = vmatpush1.bf16.msra.mxu1 %v20920_v9  ;;  %14507 = vmatprep.subr.bf16.mxu0 %v17726_v43  ;;  %v11288_v36 = vld [vmem:[%s24211_s4 + $0x1268] sm:$0xff]  ;;  %v11291_v43 = vld [vmem:[%s24211_s4 + $0x1280] sm:$0xff]  ;;  %v20964_v62 = vpack.c.bf16 %v11284_v49, %v11281_v14  ;;  %v25003_v49 = vld [vmem:[#allocation30_spill] sm:$0xff] }
 0x3d3   : > { %14191 = vmatprep.subr.bf16.mxu1 %v20924_v44  ;;  %v20967_v19 = vpack.c.bf16 %v11291_v43, %v11288_v36  ;;  %25000 = vst [vmem:[#allocation333_spill] sm:$0xff] %v20984_v61  ;;  %v11296_v17 = vld [vmem:[%s24211_s4 + $0x12a8] sm:$0xff] }
 0x3d4   : > { %24998 = vst [vmem:[#allocation331_spill] sm:$0xff] %v20964_v62  ;;  %v25002_v14 = vld [vmem:[#allocation72_spill] sm:$0xff]  ;;  %v21007_v36 = vpack.c.bf16 %v11296_v17, %v11293_v30  ;;  %v25007_v30 = vld [vmem:[#allocation33_spill] sm:$0xff] }
 0x3d5   : > { %14509 = vmatpush1.bf16.msra.mxu0 %v17735_v13  ;;  %24999 = vst [vmem:[#allocation332_spill] sm:$0xff] %v20967_v19  ;;  %v11294_v13 = vld [vmem:[%s24211_s4 + $0x1298] sm:$0xff] }
 0x3d6   : > { %14193 = vmatpush1.bf16.msra.mxu1 %v20944_v21  ;;  %14511 = vmatprep.subr.bf16.mxu0 %v17748_v58  ;;  %v11297_v58 = vld [vmem:[%s24211_s4 + $0x12b0] sm:$0xff]  ;;  %25004 = vst [vmem:[#allocation72_spill] sm:$0xff] %v21007_v36 }
 0x3d7   : > { %14195 = vmatprep.subr.bf16.mxu1 %v20947_v53  ;;  %v20987_v47 = vpack.c.bf16 %v11297_v58, %v11294_v13  ;;  %v11309_v13 = vld [vmem:[%s24211_s4 + $0x1310] sm:$0xff]  ;;  %v25006_v58 = vld [vmem:[#allocation31_spill] sm:$0xff] }
 0x3d8   : > { %v11573_v53 = vld [vmem:[%s24211_s4 + $0x1b30] sm:$0xff] }
 0x3d9   : > { %14513 = vmatpush1.bf16.msra.mxu0 %v17761_v16  ;;  %25001 = vst [vmem:[#allocation334_spill] sm:$0xff] %v20987_v47  ;;  %v11300_v16 = vld [vmem:[%s24211_s4 + $0x12c8] sm:$0xff] }
 0x3da   : > { %14197 = vmatpush1.bf16.msra.mxu1 %v20964_v62  ;;  %14515 = vmatprep.subr.bf16.mxu0 %v17781_v26  ;;  %v11303_v26 = vld [vmem:[%s24211_s4 + $0x12e0] sm:$0xff] }
 0x3db   : > { %14199 = vmatprep.subr.bf16.mxu1 %v20967_v19  ;;  %v21010_v43 = vpack.c.bf16 %v11303_v26, %v11300_v16  ;;  %v21030_v16 = vpack.c.bf16 %v11309_v13, %v11306_v0  ;;  %v11305_v26 = vld [vmem:[%s24211_s4 + $0x12f0] sm:$0xff]  ;;  %v25011_v0 = vld [vmem:[#allocation36_spill] sm:$0xff] }
 0x3dc   : > { %5908 = vmatmul.mubr.f32.vlgmr.msra.gmra.mrb[36].mxu0 %v17935_v48 }
 0x3dd   : > { %14517 = vmatpush1.bf16.msra.mxu0 %v17817_v46  ;;  %11641 = vmatprep.mubr.msk.f32.mxu0 %vm3504_vm7, %v25002_v14  ;;  %25005 = vst [vmem:[#allocation30_spill] sm:$0xff] %v21010_v43  ;;  %v11302_v46 = vld [vmem:[%s24211_s4 + $0x12d8] sm:$0xff]  ;;  %25009 = vst [vmem:[#allocation33_spill] sm:$0xff] %v21030_v16 }
 0x3de   : > { %14201 = vmatpush1.bf16.msra.mxu1 %v20984_v61  ;;  %14519 = vmatprep.subr.bf16.mxu0 %v25003_v49  ;;  %v21027_v17 = vpack.c.bf16 %v11302_v46, %v11299_v59  ;;  %v11308_v49 = vld [vmem:[%s24211_s4 + $0x1308] sm:$0xff]  ;;  %v11315_v59 = vld [vmem:[%s24211_s4 + $0x1340] sm:$0xff]  ;;  %v25010_v46 = vld [vmem:[#allocation34_spill] sm:$0xff] }
 0x3df   : > { %14203 = vmatprep.subr.bf16.mxu1 %v20987_v47  ;;  %v21047_v13 = vpack.c.bf16 %v11308_v49, %v11305_v26  ;;  %v11321_v26 = vld [vmem:[%s24211_s4 + $0x1370] sm:$0xff]  ;;  %v25018_v47 = vld [vmem:[#allocation40_spill] sm:$0xff] }
 0x3e0   : > { %25008 = vst [vmem:[#allocation31_spill] sm:$0xff] %v21027_v17  ;;  %v25014_v49 = vld [vmem:[#allocation37_spill] sm:$0xff] }
 0x3e1   : > { %14521 = vmatpush1.bf16.msra.mxu0 %v25006_v58  ;;  %v11312_v58 = vld [vmem:[%s24211_s4 + $0x1328] sm:$0xff]  ;;  %25012 = vst [vmem:[#allocation34_spill] sm:$0xff] %v21047_v13 }
 0x3e2   : > { %14205 = vmatpush1.bf16.msra.mxu1 %v21007_v36  ;;  %14523 = vmatprep.subr.bf16.mxu0 %v25007_v30  ;;  %v21050_v30 = vpack.c.bf16 %v11315_v59, %v11312_v58  ;;  %v11314_v36 = vld [vmem:[%s24211_s4 + $0x1338] sm:$0xff]  ;;  %v11492_v61 = vld [vmem:[%s24211_s4 + $0x18a8] sm:$0xff] }
 0x3e3   : > { %14207 = vmatprep.subr.bf16.mxu1 %v21010_v43  ;;  %v11311_v43 = vld [vmem:[%s24211_s4 + $0x1320] sm:$0xff] }
 0x3e4   : > { %25013 = vst [vmem:[#allocation36_spill] sm:$0xff] %v21050_v30  ;;  %v25015_v58 = vld [vmem:[#allocation39_spill] sm:$0xff]  ;;  %v21067_v59 = vpack.c.bf16 %v11314_v36, %v11311_v43  ;;  %v11265_v43 = vld [vmem:[%s24211_s4 + $0x11b0] sm:$0xff] }
 0x3e5   : > { %14525 = vmatpush1.bf16.msra.mxu0 %v25010_v46  ;;  %v11318_v46 = vld [vmem:[%s24211_s4 + $0x1358] sm:$0xff] }
 0x3e6   : > { %14209 = vmatpush1.bf16.msra.mxu1 %v21027_v17  ;;  %14527 = vmatprep.subr.bf16.mxu0 %v25011_v0  ;;  %25016 = vst [vmem:[#allocation37_spill] sm:$0xff] %v21067_v59  ;;  %v21070_v0 = vpack.c.bf16 %v11321_v26, %v11318_v46  ;;  %v11320_v17 = vld [vmem:[%s24211_s4 + $0x1368] sm:$0xff]  ;;  %v25021_v26 = vld [vmem:[#allocation43_spill] sm:$0xff] }
 0x3e7   : > { %14211 = vmatprep.subr.bf16.mxu1 %v21030_v16  ;;  %v11317_v16 = vld [vmem:[%s24211_s4 + $0x1350] sm:$0xff]  ;;  %v11268_v46 = vld [vmem:[%s24211_s4 + $0x11c8] sm:$0xff] }
 0x3e8   : > { %25017 = vst [vmem:[#allocation39_spill] sm:$0xff] %v21070_v0  ;;  %v21081_v36 = vpack.c.bf16 %v11320_v17, %v11317_v16  ;;  %v11271_v17 = vld [vmem:[%s24211_s4 + $0x11e0] sm:$0xff]  ;;  %v11274_v16 = vld [vmem:[%s24211_s4 + $0x11f8] sm:$0xff] }
 0x3e9   : > { %14529 = vmatpush1.bf16.msra.mxu0 %v25014_v49  ;;  %v25019_v49 = vld [vmem:[#allocation42_spill] sm:$0xff] }
 0x3ea   : > { %14213 = vmatpush1.bf16.msra.mxu1 %v21047_v13  ;;  %14531 = vmatprep.subr.bf16.mxu0 %v25015_v58  ;;  %25020 = vst [vmem:[#allocation40_spill] sm:$0xff] %v21081_v36  ;;  %v21093_v58 = vpack.c.bf16 %v11268_v46, %v11265_v43  ;;  %v21107_v43 = vpack.c.bf16 %v11274_v16, %v11271_v17  ;;  %v25027_v46 = vld [vmem:[#allocation48_spill] sm:$0xff]  ;;  %v11286_v16 = vld [vmem:[%s24211_s4 + $0x1258] sm:$0xff] }
 0x3eb   : > { %14215 = vmatprep.subr.bf16.mxu1 %v21050_v30  ;;  %v11283_v17 = vld [vmem:[%s24211_s4 + $0x1240] sm:$0xff]  ;;  %v11486_v13 = vld [vmem:[%s24211_s4 + $0x1878] sm:$0xff] }
 0x3ec   : > { %25023 = vst [vmem:[#allocation42_spill] sm:$0xff] %v21093_v58  ;;  %25026 = vst [vmem:[#allocation43_spill] sm:$0xff] %v21107_v43  ;;  %v11483_v30 = vld [vmem:[%s24211_s4 + $0x1860] sm:$0xff] }
 0x3ed   : > { %14533 = vmatpush1.bf16.msra.mxu0 %v25018_v47  ;;  %v25022_v47 = vld [vmem:[#allocation45_spill] sm:$0xff] }
 0x3ee   : > { %14217 = vmatpush1.bf16.msra.mxu1 %v21067_v59  ;;  %14535 = vmatprep.subr.bf16.mxu0 %v25019_v49  ;;  %v25024_v49 = vld [vmem:[#allocation28_spill] sm:$0xff] }
 0x3ef   : > { %14219 = vmatprep.subr.bf16.mxu1 %v21070_v0  ;;  %v25025_v0 = vld [vmem:[#allocation46_spill] sm:$0xff] }
 0x3f1   : > { %14537 = vmatpush1.bf16.msra.mxu0 %v25021_v26  ;;  %v11277_v26 = vld [vmem:[%s24211_s4 + $0x1210] sm:$0xff] }
 0x3f2   : > { %14221 = vmatpush1.bf16.msra.mxu1 %v21081_v36  ;;  %14539 = vmatprep.subr.bf16.mxu0 %v25022_v47  ;;  %v11280_v47 = vld [vmem:[%s24211_s4 + $0x1228] sm:$0xff] }
 0x3f3   : > { %14254 = vmatprep.subr.bf16.mxu1 %v24699_v29 }
 0x3f5   : > { %5252 = vmatmul.mubr.f32.vlgmr.msra.gmra.mrb[32].mxu1 %v25024_v49  ;;  %14541 = vmatpush1.bf16.msra.mxu0 %v25025_v0  ;;  %v25028_v0 = vld [vmem:[#allocation49_spill] sm:$0xff] }
 0x3f6   : > { %14256 = vmatpush1.bf16.msra.mxu1 %v21093_v58  ;;  %11482 = vmatprep.mubr.msk.f32.mxu1 %vm3504_vm7, %v17787_v37  ;;  %v25029_v58 = vld [vmem:[#allocation51_spill] sm:$0xff]  ;;  %v21120_v37 = vpack.c.bf16 %v11280_v47, %v11277_v26  ;;  %v11292_v26 = vld [vmem:[%s24211_s4 + $0x1288] sm:$0xff] }
 0x3f7   : > { %14257 = vmatprep.subr.bf16.mxu1 %v24699_v29  ;;  %14543 = vmatprep.subr.bf16.mxu0 %v25027_v46  ;;  %v25031_v46 = vld [vmem:[#allocation52_spill] sm:$0xff]  ;;  %v25034_v47 = vld [vmem:[#allocation55_spill] sm:$0xff] }
 0x3f8   : > { %25030 = vst [vmem:[#allocation45_spill] sm:$0xff] %v21120_v37 }
 0x3f9   : > { %14545 = vmatpush1.bf16.msra.mxu0 %v25028_v0  ;;  %v25032_v0 = vld [vmem:[#allocation54_spill] sm:$0xff] }
 0x3fa   : > { %14259 = vmatpush1.bf16.msra.mxu1 %v21107_v43  ;;  %14547 = vmatprep.subr.bf16.mxu0 %v25029_v58  ;;  %v21132_v43 = vpack.c.bf16 %v11286_v16, %v11283_v17  ;;  %v11289_v58 = vld [vmem:[%s24211_s4 + $0x1270] sm:$0xff]  ;;  %v11295_v17 = vld [vmem:[%s24211_s4 + $0x12a0] sm:$0xff]  ;;  %v11298_v16 = vld [vmem:[%s24211_s4 + $0x12b8] sm:$0xff] }
 0x3fb   : > { %14260 = vmatprep.subr.bf16.mxu1 %v24699_v29 }
 0x3fc   : > { %25033 = vst [vmem:[#allocation28_spill] sm:$0xff] %v21132_v43 }
 0x3fd   : > { %14549 = vmatpush1.bf16.msra.mxu0 %v25031_v46  ;;  %v25035_v46 = vld [vmem:[#allocation12_spill] sm:$0xff] }
 0x3fe   : > { %14262 = vmatpush1.bf16.msra.mxu1 %v21120_v37  ;;  %14551 = vmatprep.subr.bf16.mxu0 %v25032_v0  ;;  %v21144_v37 = vpack.c.bf16 %v11292_v26, %v11289_v58  ;;  %v25037_v0 = vld [vmem:[#allocation13_spill] sm:$0xff]  ;;  %v25038_v58 = vld [vmem:[#allocation14_spill] sm:$0xff]  ;;  %v21158_v26 = vpack.c.bf16 %v11298_v16, %v11295_v17  ;;  %v11307_v17 = vld [vmem:[%s24211_s4 + $0x1300] sm:$0xff] }
 0x3ff   : > { %14263 = vmatprep.subr.bf16.mxu1 %v24699_v29  ;;  %v11310_v16 = vld [vmem:[%s24211_s4 + $0x1318] sm:$0xff] }
 0x400   : > { %25036 = vst [vmem:[#allocation46_spill] sm:$0xff] %v21144_v37  ;;  %25039 = vst [vmem:[#allocation48_spill] sm:$0xff] %v21158_v26 }
 0x401   : > { %14553 = vmatpush1.bf16.msra.mxu0 %v25034_v47  ;;  %v11301_v47 = vld [vmem:[%s24211_s4 + $0x12d0] sm:$0xff] }
 0x402   : > { %14265 = vmatpush1.bf16.msra.mxu1 %v21132_v43  ;;  %14555 = vmatprep.subr.bf16.mxu0 %v25035_v46  ;;  %v11304_v46 = vld [vmem:[%s24211_s4 + $0x12e8] sm:$0xff]  ;;  %v25040_v43 = vld [vmem:[#allocation15_spill] sm:$0xff] }
 0x403   : > { %14266 = vmatprep.subr.bf16.mxu1 %v24699_v29 }
 0x404   : > { %5979 = vmatmul.mubr.f32.vlgmr.msra.gmra.mrb[36].mxu0 %v18227_v20 }
 0x405   : > { %14557 = vmatpush3.bf16.msra.mxu0 %v25037_v0  ;;  %6049 = vmatprep.mubr.f32.mxu0 %v17959_v42  ;;  %v25041_v0 = vld [vmem:[#allocation16_spill] sm:$0xff] }
 0x406   : > { %14268 = vmatpush1.bf16.msra.mxu1 %v21144_v37  ;;  %14559 = vmatprep.subr.bf16.mxu0 %v25038_v58  ;;  %v21170_v37 = vpack.c.bf16 %v11304_v46, %v11301_v47  ;;  %v25043_v58 = vld [vmem:[#allocation17_spill] sm:$0xff] }
 0x407   : > { %14269 = vmatprep.subr.bf16.mxu1 %v24699_v29  ;;  %v11313_v46 = vld [vmem:[%s24211_s4 + $0x1330] sm:$0xff] }
 0x408   : > { %25042 = vst [vmem:[#allocation49_spill] sm:$0xff] %v21170_v37 }
 0x409   : > { %14561 = vmatpush3.bf16.msra.mxu0 %v25040_v43  ;;  %v25044_v43 = vld [vmem:[#allocation18_spill] sm:$0xff] }
 0x40a   : > { %14271 = vmatpush1.bf16.msra.mxu1 %v21158_v26  ;;  %14563 = vmatprep.subr.bf16.mxu0 %v25041_v0  ;;  %v21182_v26 = vpack.c.bf16 %v11310_v16, %v11307_v17  ;;  %v11316_v0 = vld [vmem:[%s24211_s4 + $0x1348] sm:$0xff] }
 0x40b   : > { %14272 = vmatprep.subr.bf16.mxu1 %v24699_v29  ;;  %v25047_v17 = vld [vmem:[#allocation20_spill] sm:$0xff]  ;;  %v21198_v16 = vpack.c.bf16 %v11316_v0, %v11313_v46  ;;  %v25049_v46 = vld [vmem:[#allocation21_spill] sm:$0xff]  ;;  %v25050_v0 = vld [vmem:[#allocation22_spill] sm:$0xff] }
 0x40c   : > { %25045 = vst [vmem:[#allocation51_spill] sm:$0xff] %v21182_v26 }
 0x40d   : > { %14565 = vmatpush3.bf16.msra.mxu0 %v25043_v58  ;;  %v25046_v58 = vld [vmem:[#allocation19_spill] sm:$0xff]  ;;  %25048 = vst [vmem:[#allocation52_spill] sm:$0xff] %v21198_v16 }
 0x40e   : > { %14274 = vmatpush1.bf16.msra.mxu1 %v21170_v37  ;;  %14567 = vmatprep.subr.bf16.mxu0 %v25044_v43  ;;  %v11319_v43 = vld [vmem:[%s24211_s4 + $0x1360] sm:$0xff]  ;;  %v11322_v37 = vld [vmem:[%s24211_s4 + $0x1378] sm:$0xff] }
 0x40f   : > { %v21184_v47 = vpop.f32.mrb[28].mxu0  ;;  %14275 = vmatprep.subr.bf16.mxu1 %v24699_v29 }
 0x410   : > { %v21193_v36 = vpop.f32.mrb[29].mxu0 }
 0x411   : > { %14569 = vmatpush3.bf16.msra.mxu0 %v25046_v58  ;;  %v11484_v58 = vld [vmem:[%s24211_s4 + $0x1868] sm:$0xff] }
 0x412   : > { %14277 = vmatpush1.bf16.msra.mxu1 %v21182_v26  ;;  %14571 = vmatprep.subr.bf16.mxu0 %v25047_v17  ;;  %v11487_v17 = vld [vmem:[%s24211_s4 + $0x1880] sm:$0xff]  ;;  %v21216_v26 = vpack.c.bf16 %v11322_v37, %v11319_v43  ;;  %v11493_v37 = vld [vmem:[%s24211_s4 + $0x18b0] sm:$0xff] }
 0x413   : > { %14278 = vmatprep.subr.bf16.mxu1 %v24699_v29  ;;  %v21219_v59 = vpack.c.bf16 %v11487_v17, %v11484_v58  ;;  %v25053_v43 = vld [vmem:[#allocation23_spill] sm:$0xff]  ;;  %v25054_v58 = vld [vmem:[#allocation24_spill] sm:$0xff]  ;;  %v21236_v17 = vpack.c.bf16 %v11486_v13, %v11483_v30  ;;  %v25057_v30 = vld [vmem:[#allocation25_spill] sm:$0xff] }
 0x414   : > { %25051 = vst [vmem:[#allocation54_spill] sm:$0xff] %v21216_v26  ;;  %v11499_v13 = vld [vmem:[%s24211_s4 + $0x18e0] sm:$0xff] }
 0x415   : > { %14573 = vmatpush3.bf16.msra.mxu0 %v25049_v46  ;;  %25052 = vst [vmem:[#allocation55_spill] sm:$0xff] %v21219_v59  ;;  %v11490_v46 = vld [vmem:[%s24211_s4 + $0x1898] sm:$0xff]  ;;  %25055 = vst [vmem:[#allocation12_spill] sm:$0xff] %v21236_v17 }
 0x416   : > { %14280 = vmatpush1.bf16.msra.mxu1 %v21198_v16  ;;  %14575 = vmatprep.subr.bf16.mxu0 %v25050_v0  ;;  %v21239_v0 = vpack.c.bf16 %v11493_v37, %v11490_v46  ;;  %v11489_v16 = vld [vmem:[%s24211_s4 + $0x1890] sm:$0xff] }
 0x417   : > { %14281 = vmatprep.subr.bf16.mxu1 %v24699_v29  ;;  %v21257_v46 = vpack.c.bf16 %v11492_v61, %v11489_v16  ;;  %v25059_v37 = vld [vmem:[#allocation26_spill] sm:$0xff]  ;;  %v25061_v16 = vld [vmem:[#allocation27_spill] sm:$0xff] }
 0x418   : > { %25056 = vst [vmem:[#allocation13_spill] sm:$0xff] %v21239_v0  ;;  %v11505_v61 = vld [vmem:[%s24211_s4 + $0x1910] sm:$0xff] }
 0x419   : > { %14577 = vmatpush3.bf16.msra.mxu0 %v25053_v43  ;;  %v11496_v43 = vld [vmem:[%s24211_s4 + $0x18c8] sm:$0xff]  ;;  %25058 = vst [vmem:[#allocation14_spill] sm:$0xff] %v21257_v46 }
 0x41a   : > { %14283 = vmatpush1.bf16.msra.mxu1 %v21216_v26  ;;  %14579 = vmatprep.subr.bf16.mxu0 %v25054_v58  ;;  %v21261_v58 = vpack.c.bf16 %v11499_v13, %v11496_v43  ;;  %v11525_v26 = vld [vmem:[%s24211_s4 + $0x19b0] sm:$0xff] }
 0x41b   : > { %14285 = vmatprep.subr.bf16.mxu1 %v21219_v59  ;;  %v11495_v59 = vld [vmem:[%s24211_s4 + $0x18c0] sm:$0xff] }
 0x41c   : > { %25060 = vst [vmem:[#allocation15_spill] sm:$0xff] %v21261_v58 }
 0x41d   : > { %5393 = vmatmul.mubr.f32.vlgmr.msra.gmra.mrb[34].mxu1 %v25024_v49  ;;  %14581 = vmatpush3.bf16.msra.mxu0 %v25057_v30  ;;  %v11498_v49 = vld [vmem:[%s24211_s4 + $0x18d8] sm:$0xff] }
 0x41e   : > { %14287 = vmatpush1.bf16.msra.mxu1 %v21236_v17  ;;  %5619 = vmatprep.mubr.f32.mxu1 %v17959_v42  ;;  %v11502_v30 = vld [vmem:[%s24211_s4 + $0x18f8] sm:$0xff]  ;;  %v21278_v43 = vpack.c.bf16 %v11498_v49, %v11495_v59  ;;  %v11511_v59 = vld [vmem:[%s24211_s4 + $0x1940] sm:$0xff]  ;;  %v25064_v49 = vld [vmem:[#allocation29_spill] sm:$0xff] }
 0x41f   : > { %14289 = vmatprep.subr.bf16.mxu1 %v21239_v0  ;;  %14583 = vmatprep.subr.bf16.mxu0 %v25059_v37  ;;  %v21281_v13 = vpack.c.bf16 %v11505_v61, %v11502_v30  ;;  %v11501_v37 = vld [vmem:[%s24211_s4 + $0x18f0] sm:$0xff]  ;;  %v11504_v0 = vld [vmem:[%s24211_s4 + $0x1908] sm:$0xff]  ;;  %v11522_v17 = vld [vmem:[%s24211_s4 + $0x1998] sm:$0xff] }
 0x420   : > { %25062 = vst [vmem:[#allocation16_spill] sm:$0xff] %v21278_v43  ;;  %v21301_v30 = vpack.c.bf16 %v11504_v0, %v11501_v37  ;;  %v11517_v0 = vld [vmem:[%s24211_s4 + $0x1970] sm:$0xff]  ;;  %v25067_v37 = vld [vmem:[#allocation32_spill] sm:$0xff] }
 0x421   : > { %14585 = vmatpush3.bf16.msra.mxu0 %v25061_v16  ;;  %25063 = vst [vmem:[#allocation17_spill] sm:$0xff] %v21281_v13  ;;  %v11508_v16 = vld [vmem:[%s24211_s4 + $0x1928] sm:$0xff] }
 0x422   : > { %14291 = vmatpush1.bf16.msra.mxu1 %v21257_v46  ;;  %14586 = vmatprep.subr.bf16.mxu0 %v24699_v29  ;;  %25065 = vst [vmem:[#allocation18_spill] sm:$0xff] %v21301_v30  ;;  %v21304_v61 = vpack.c.bf16 %v11511_v59, %v11508_v16  ;;  %v11516_v46 = vld [vmem:[%s24211_s4 + $0x1968] sm:$0xff] }
 0x423   : > { %14293 = vmatprep.subr.bf16.mxu1 %v21261_v58  ;;  %v11507_v58 = vld [vmem:[%s24211_s4 + $0x1920] sm:$0xff] }
 0x424   : > { %6050 = vmatmul.mubr.f32.vlgmr.msra.gmra.mrb[38].mxu0 %v17935_v48  ;;  %25066 = vst [vmem:[#allocation19_spill] sm:$0xff] %v21304_v61 }
 0x425   : > { %14588 = vmatpush1.bf16.msra.mxu0 %v25064_v49  ;;  %11642 = vmatprep.mubr.msk.f32.mxu0 %vm3504_vm7, %v25002_v14  ;;  %v11510_v49 = vld [vmem:[%s24211_s4 + $0x1938] sm:$0xff] }
 0x426   : > { %14295 = vmatpush1.bf16.msra.mxu1 %v21278_v43  ;;  %14589 = vmatprep.subr.bf16.mxu0 %v24699_v29  ;;  %v11514_v43 = vld [vmem:[%s24211_s4 + $0x1958] sm:$0xff]  ;;  %v21321_v16 = vpack.c.bf16 %v11510_v49, %v11507_v58  ;;  %v11523_v58 = vld [vmem:[%s24211_s4 + $0x19a0] sm:$0xff] }
 0x427   : > { %14297 = vmatprep.subr.bf16.mxu1 %v21281_v13  ;;  %v21324_v59 = vpack.c.bf16 %v11517_v0, %v11514_v43  ;;  %v11513_v13 = vld [vmem:[%s24211_s4 + $0x1950] sm:$0xff]  ;;  %v25070_v49 = vld [vmem:[#allocation35_spill] sm:$0xff] }
 0x428   : > { %25068 = vst [vmem:[#allocation20_spill] sm:$0xff] %v21321_v16  ;;  %v21341_v43 = vpack.c.bf16 %v11516_v46, %v11513_v13  ;;  %v11529_v46 = vld [vmem:[%s24211_s4 + $0x19d0] sm:$0xff] }
 0x429   : > { %14591 = vmatpush1.bf16.msra.mxu0 %v25067_v37  ;;  %25069 = vst [vmem:[#allocation21_spill] sm:$0xff] %v21324_v59  ;;  %v11520_v37 = vld [vmem:[%s24211_s4 + $0x1988] sm:$0xff] }
 0x42a   : > { %14299 = vmatpush1.bf16.msra.mxu1 %v21301_v30  ;;  %14592 = vmatprep.subr.bf16.mxu0 %v24699_v29  ;;  %25071 = vst [vmem:[#allocation22_spill] sm:$0xff] %v21341_v43  ;;  %v11519_v30 = vld [vmem:[%s24211_s4 + $0x1980] sm:$0xff] }
 0x42b   : > { %14301 = vmatprep.subr.bf16.mxu1 %v21304_v61  ;;  %v21344_v61 = vpack.c.bf16 %v11523_v58, %v11520_v37  ;;  %v25073_v37 = vld [vmem:[#allocation38_spill] sm:$0xff]  ;;  %v21363_v58 = vpack.c.bf16 %v11522_v17, %v11519_v30  ;;  %v11535_v17 = vld [vmem:[%s24211_s4 + $0x1a00] sm:$0xff]  ;;  %v25076_v30 = vld [vmem:[#allocation41_spill] sm:$0xff] }
 0x42d   : > { %14594 = vmatpush1.bf16.msra.mxu0 %v25070_v49  ;;  %25072 = vst [vmem:[#allocation23_spill] sm:$0xff] %v21344_v61  ;;  %25074 = vst [vmem:[#allocation24_spill] sm:$0xff] %v21363_v58 }
 0x42e   : > { %14303 = vmatpush1.bf16.msra.mxu1 %v21321_v16  ;;  %14595 = vmatprep.subr.bf16.mxu0 %v24699_v29  ;;  %v11526_v16 = vld [vmem:[%s24211_s4 + $0x19b8] sm:$0xff] }
 0x42f   : > { %v12029_v0 = vpop.f32.mrb[30].mxu0  ;;  %14305 = vmatprep.subr.bf16.mxu1 %v21324_v59  ;;  %v21366_v59 = vpack.c.bf16 %v11529_v46, %v11526_v16 }
 0x430   : > { %v12030_v49 = vpop.f32.mrb[31].mxu0 }
 0x431   : > { %v21358_v13 = vadd.f32 %v12030_v49, %v12029_v0  ;;  %14597 = vmatpush1.bf16.msra.mxu0 %v25073_v37  ;;  %25075 = vst [vmem:[#allocation25_spill] sm:$0xff] %v21366_v59  ;;  %v11528_v0 = vld [vmem:[%s24211_s4 + $0x19c8] sm:$0xff]  ;;  %v11531_v37 = vld [vmem:[%s24211_s4 + $0x19e0] sm:$0xff] }
 0x432   : > { %14307 = vmatpush1.bf16.msra.mxu1 %v21341_v43  ;;  %14598 = vmatprep.subr.bf16.mxu0 %v24699_v29  ;;  %v11532_v49 = vld [vmem:[%s24211_s4 + $0x19e8] sm:$0xff]  ;;  %v21383_v16 = vpack.c.bf16 %v11528_v0, %v11525_v26  ;;  %v11541_v26 = vld [vmem:[%s24211_s4 + $0x1a30] sm:$0xff] }
 0x433   : > { %14309 = vmatprep.subr.bf16.mxu1 %v21344_v61  ;;  %v21386_v46 = vpack.c.bf16 %v11535_v17, %v11532_v49  ;;  %v11534_v61 = vld [vmem:[%s24211_s4 + $0x19f8] sm:$0xff]  ;;  %v25079_v0 = vld [vmem:[#allocation44_spill] sm:$0xff] }
 0x434   : > { %25077 = vst [vmem:[#allocation26_spill] sm:$0xff] %v21383_v16  ;;  %v21403_v49 = vpack.c.bf16 %v11534_v61, %v11531_v37  ;;  %v11547_v61 = vld [vmem:[%s24211_s4 + $0x1a60] sm:$0xff]  ;;  %v11564_v43 = vld [vmem:[%s24211_s4 + $0x1ae8] sm:$0xff] }
 0x435   : > { %14600 = vmatpush1.bf16.msra.mxu0 %v25076_v30  ;;  %25078 = vst [vmem:[#allocation27_spill] sm:$0xff] %v21386_v46  ;;  %v11538_v30 = vld [vmem:[%s24211_s4 + $0x1a18] sm:$0xff] }
 0x436   : > { %14311 = vmatpush1.bf16.msra.mxu1 %v21363_v58  ;;  %14601 = vmatprep.subr.bf16.mxu0 %v24699_v29  ;;  %25080 = vst [vmem:[#allocation29_spill] sm:$0xff] %v21403_v49  ;;  %v21406_v17 = vpack.c.bf16 %v11541_v26, %v11538_v30  ;;  %v11540_v58 = vld [vmem:[%s24211_s4 + $0x1a28] sm:$0xff]  ;;  %v25082_v37 = vld [vmem:[#allocation47_spill] sm:$0xff] }
 0x437   : > { %14313 = vmatprep.subr.bf16.mxu1 %v21366_v59  ;;  %v11537_v59 = vld [vmem:[%s24211_s4 + $0x1a10] sm:$0xff] }
 0x438   : > { %25081 = vst [vmem:[#allocation32_spill] sm:$0xff] %v21406_v17  ;;  %v21423_v30 = vpack.c.bf16 %v11540_v58, %v11537_v59  ;;  %v11553_v59 = vld [vmem:[%s24211_s4 + $0x1a90] sm:$0xff] }
 0x439   : > { %14603 = vmatpush1.bf16.msra.mxu0 %v25079_v0  ;;  %v11544_v0 = vld [vmem:[%s24211_s4 + $0x1a48] sm:$0xff]  ;;  %v25085_v58 = vld [vmem:[#allocation50_spill] sm:$0xff] }
 0x43a   : > { %14315 = vmatpush1.bf16.msra.mxu1 %v21383_v16  ;;  %14604 = vmatprep.subr.bf16.mxu0 %v24699_v29  ;;  %25083 = vst [vmem:[#allocation35_spill] sm:$0xff] %v21423_v30  ;;  %v21426_v26 = vpack.c.bf16 %v11547_v61, %v11544_v0  ;;  %v11546_v16 = vld [vmem:[%s24211_s4 + $0x1a58] sm:$0xff] }
 0x43b   : > { %14317 = vmatprep.subr.bf16.mxu1 %v21386_v46  ;;  %v11543_v46 = vld [vmem:[%s24211_s4 + $0x1a40] sm:$0xff] }
 0x43c   : > { %25084 = vst [vmem:[#allocation38_spill] sm:$0xff] %v21426_v26  ;;  %v21443_v0 = vpack.c.bf16 %v11546_v16, %v11543_v46  ;;  %v11559_v16 = vld [vmem:[%s24211_s4 + $0x1ac0] sm:$0xff]  ;;  %v25088_v46 = vld [vmem:[#allocation53_spill] sm:$0xff] }
 0x43d   : > { %14606 = vmatpush1.bf16.msra.mxu0 %v25082_v37  ;;  %v11550_v37 = vld [vmem:[%s24211_s4 + $0x1a78] sm:$0xff] }
 0x43e   : > { %14319 = vmatpush1.bf16.msra.mxu1 %v21403_v49  ;;  %14607 = vmatprep.subr.bf16.mxu0 %v24699_v29  ;;  %25086 = vst [vmem:[#allocation41_spill] sm:$0xff] %v21443_v0  ;;  %v21446_v61 = vpack.c.bf16 %v11553_v59, %v11550_v37  ;;  %v11552_v49 = vld [vmem:[%s24211_s4 + $0x1a88] sm:$0xff] }
 0x43f   : > { %14321 = vmatprep.subr.bf16.mxu1 %v21406_v17  ;;  %v11549_v17 = vld [vmem:[%s24211_s4 + $0x1a70] sm:$0xff] }
 0x440   : > { %25087 = vst [vmem:[#allocation44_spill] sm:$0xff] %v21446_v61  ;;  %v21463_v37 = vpack.c.bf16 %v11552_v49, %v11549_v17  ;;  %v11565_v49 = vld [vmem:[%s24211_s4 + $0x1af0] sm:$0xff]  ;;  %v25091_v17 = vld [vmem:[#allocation56_spill] sm:$0xff] }
 0x441   : > { %14609 = vmatpush1.bf16.msra.mxu0 %v25085_v58  ;;  %v11556_v58 = vld [vmem:[%s24211_s4 + $0x1aa8] sm:$0xff] }
 0x442   : > { %14323 = vmatpush1.bf16.msra.mxu1 %v21423_v30  ;;  %14610 = vmatprep.subr.bf16.mxu0 %v24699_v29  ;;  %25089 = vst [vmem:[#allocation47_spill] sm:$0xff] %v21463_v37  ;;  %v21466_v59 = vpack.c.bf16 %v11559_v16, %v11556_v58  ;;  %v11558_v30 = vld [vmem:[%s24211_s4 + $0x1ab8] sm:$0xff]  ;;  %v25092_v58 = vld [vmem:[#allocation57_spill] sm:$0xff] }
 0x443   : > { %14325 = vmatprep.subr.bf16.mxu1 %v21426_v26  ;;  %v11555_v26 = vld [vmem:[%s24211_s4 + $0x1aa0] sm:$0xff] }
 0x444   : > { %25090 = vst [vmem:[#allocation50_spill] sm:$0xff] %v21466_v59  ;;  %v21483_v16 = vpack.c.bf16 %v11558_v30, %v11555_v26  ;;  %v11571_v30 = vld [vmem:[%s24211_s4 + $0x1b20] sm:$0xff] }
 0x445   : > { %14612 = vmatpush1.bf16.msra.mxu0 %v25088_v46  ;;  %v11562_v46 = vld [vmem:[%s24211_s4 + $0x1ad8] sm:$0xff] }
 0x446   : > { %14327 = vmatpush1.bf16.msra.mxu1 %v21443_v0  ;;  %14613 = vmatprep.subr.bf16.mxu0 %v24699_v29  ;;  %25093 = vst [vmem:[#allocation53_spill] sm:$0xff] %v21483_v16  ;;  %v11561_v0 = vld [vmem:[%s24211_s4 + $0x1ad0] sm:$0xff]  ;;  %v25095_v26 = vld [vmem:[#allocation59_spill] sm:$0xff] }
 0x447   : > { %14329 = vmatprep.subr.bf16.mxu1 %v21446_v61  ;;  %v21486_v61 = vpack.c.bf16 %v11565_v49, %v11562_v46  ;;  %v25096_v46 = vld [vmem:[#allocation61_spill] sm:$0xff]  ;;  %v21505_v49 = vpack.c.bf16 %v11564_v43, %v11561_v0 }
 0x448   : > { %v11577_v43 = vld [vmem:[%s24211_s4 + $0x1b50] sm:$0xff] }
 0x449   : > { %14615 = vmatpush1.bf16.msra.mxu0 %v25091_v17  ;;  %25094 = vst [vmem:[#allocation56_spill] sm:$0xff] %v21486_v61  ;;  %v11568_v17 = vld [vmem:[%s24211_s4 + $0x1b08] sm:$0xff] }
 0x44a   : > { %14331 = vmatpush1.bf16.msra.mxu1 %v21463_v37  ;;  %14617 = vmatprep.subr.bf16.mxu0 %v25092_v58  ;;  %v11567_v37 = vld [vmem:[%s24211_s4 + $0x1b00] sm:$0xff] }
 0x44b   : > { %14333 = vmatprep.subr.bf16.mxu1 %v21466_v59  ;;  %v21508_v59 = vpack.c.bf16 %v11571_v30, %v11568_v17  ;;  %v25098_v17 = vld [vmem:[#allocation63_spill] sm:$0xff]  ;;  %v25099_v30 = vld [vmem:[#allocation65_spill] sm:$0xff] }
 0x44c   : > { %6120 = vmatmul.mubr.f32.vlgmr.msra.gmra.mrb[40].mxu0 %v18227_v20 }
 0x44d   : > { %14619 = vmatpush1.bf16.msra.mxu0 %v25095_v26  ;;  %6189 = vmatprep.mubr.f32.mxu0 %v17824_v51  ;;  %25097 = vst [vmem:[#allocation57_spill] sm:$0xff] %v21508_v59  ;;  %v11570_v26 = vld [vmem:[%s24211_s4 + $0x1b18] sm:$0xff] }
 0x44e   : > { %14335 = vmatpush1.bf16.msra.mxu1 %v21483_v16  ;;  %14621 = vmatprep.subr.bf16.mxu0 %v25096_v46  ;;  %v11574_v46 = vld [vmem:[%s24211_s4 + $0x1b38] sm:$0xff] }
 0x44f   : > { %v12064_v58 = vpop.f32.mrb[32].mxu0  ;;  %14337 = vmatprep.subr.bf16.mxu1 %v21486_v61  ;;  %v21525_v61 = vpack.c.bf16 %v11570_v26, %v11567_v37  ;;  %v21531_v62 = vpack.c.bf16 %v11577_v43, %v11574_v46  ;;  %v11580_v37 = vld [vmem:[%s24211_s4 + $0x1b68] sm:$0xff] }
 0x450   : > { %v12065_v19 = vpop.f32.mrb[33].mxu0  ;;  %v25103_v26 = vld [vmem:[#allocation69_spill] sm:$0xff] }
 0x451   : > { %v12066_v0 = vadd.f32 %v12065_v19, %v12064_v58  ;;  %14623 = vmatpush1.bf16.msra.mxu0 %v25098_v17  ;;  %25100 = vst [vmem:[#allocation59_spill] sm:$0xff] %v21525_v61  ;;  %25101 = vst [vmem:[#allocation61_spill] sm:$0xff] %v21531_v62  ;;  %v11576_v19 = vld [vmem:[%s24211_s4 + $0x1b48] sm:$0xff]  ;;  %v25102_v58 = vld [vmem:[#allocation67_spill] sm:$0xff] }
 0x452   : > { %14339 = vmatpush1.bf16.msra.mxu1 %v21505_v49  ;;  %14625 = vmatprep.subr.bf16.mxu0 %v25099_v30  ;;  %v21548_v46 = vpack.c.bf16 %v11576_v19, %v11573_v53  ;;  %v11582_v17 = vld [vmem:[%s24211_s4 + $0x1b78] sm:$0xff]  ;;  %v11589_v53 = vld [vmem:[%s24211_s4 + $0x1bb0] sm:$0xff] }
 0x453   : > { %v21528_v16 = vadd.f32 %v12066_v0, %v21358_v13  ;;  %14341 = vmatprep.subr.bf16.mxu1 %v21508_v59  ;;  %v11583_v13 = vld [vmem:[%s24211_s4 + $0x1b80] sm:$0xff]  ;;  %v11586_v30 = vld [vmem:[%s24211_s4 + $0x1b98] sm:$0xff]  ;;  %v11621_v59 = vld [vmem:[%s24211_s4 + $0x1cb0] sm:$0xff] }
 0x454   : > { %25104 = vst [vmem:[#allocation63_spill] sm:$0xff] %v21548_v46  ;;  %v21551_v43 = vpack.c.bf16 %v11583_v13, %v11580_v37  ;;  %v11579_v0 = vld [vmem:[%s24211_s4 + $0x1b60] sm:$0xff]  ;;  %v25107_v37 = vld [vmem:[#allocation74_spill] sm:$0xff] }
 0x455   : > { %14627 = vmatpush1.bf16.msra.mxu0 %v25102_v58  ;;  %v25106_v19 = vld [vmem:[#allocation71_spill] sm:$0xff]  ;;  %v21568_v13 = vpack.c.bf16 %v11582_v17, %v11579_v0  ;;  %v21571_v58 = vpack.c.bf16 %v11589_v53, %v11586_v30  ;;  %v25110_v17 = vld [vmem:[#allocation77_spill] sm:$0xff]  ;;  %v25112_v53 = vld [vmem:[#allocation80_spill] sm:$0xff] }
 0x456   : > { %14343 = vmatpush1.bf16.msra.mxu1 %v21525_v61  ;;  %14629 = vmatprep.subr.bf16.mxu0 %v25103_v26  ;;  %25105 = vst [vmem:[#allocation65_spill] sm:$0xff] %v21551_v43  ;;  %v11585_v26 = vld [vmem:[%s24211_s4 + $0x1b90] sm:$0xff]  ;;  %v11595_v0 = vld [vmem:[%s24211_s4 + $0x1be0] sm:$0xff]  ;;  %v11618_v61 = vld [vmem:[%s24211_s4 + $0x1c98] sm:$0xff] }
 0x457   : > { %14345 = vmatprep.subr.bf16.mxu1 %v21531_v62  ;;  %25108 = vst [vmem:[#allocation67_spill] sm:$0xff] %v21568_v13  ;;  %25109 = vst [vmem:[#allocation69_spill] sm:$0xff] %v21571_v58  ;;  %v11588_v62 = vld [vmem:[%s24211_s4 + $0x1ba8] sm:$0xff] }
 0x458   : > { %v21590_v30 = vpack.c.bf16 %v11588_v62, %v11585_v26  ;;  %v11601_v62 = vld [vmem:[%s24211_s4 + $0x1c10] sm:$0xff] }
 0x459   : > { %14631 = vmatpush1.bf16.msra.mxu0 %v25106_v19  ;;  %v11592_v19 = vld [vmem:[%s24211_s4 + $0x1bc8] sm:$0xff]  ;;  %v25114_v26 = vld [vmem:[#allocation82_spill] sm:$0xff] }
 0x45a   : > { %14347 = vmatpush1.bf16.msra.mxu1 %v21548_v46  ;;  %14633 = vmatprep.subr.bf16.mxu0 %v25107_v37  ;;  %25111 = vst [vmem:[#allocation71_spill] sm:$0xff] %v21590_v30  ;;  %v21594_v37 = vpack.c.bf16 %v11595_v0, %v11592_v19  ;;  %v25115_v19 = vld [vmem:[#allocation84_spill] sm:$0xff] }
 0x45b   : > { %14349 = vmatprep.subr.bf16.mxu1 %v21551_v43  ;;  %v11591_v43 = vld [vmem:[%s24211_s4 + $0x1bc0] sm:$0xff]  ;;  %v11600_v46 = vld [vmem:[%s24211_s4 + $0x1c08] sm:$0xff] }
 0x45c   : > { %25113 = vst [vmem:[#allocation74_spill] sm:$0xff] %v21594_v37 }
 0x45d   : > { %5620 = vmatmul.mubr.f32.vlgmr.msra.gmra.mrb[32].mxu1 %v17935_v48  ;;  %14635 = vmatpush1.bf16.msra.mxu0 %v25110_v17  ;;  %v11594_v17 = vld [vmem:[%s24211_s4 + $0x1bd8] sm:$0xff] }
 0x45e   : > { %14351 = vmatpush1.bf16.msra.mxu1 %v21568_v13  ;;  %11639 = vmatprep.mubr.msk.f32.mxu1 %vm3504_vm7, %v25002_v14  ;;  %v11598_v13 = vld [vmem:[%s24211_s4 + $0x1bf8] sm:$0xff]  ;;  %v21611_v0 = vpack.c.bf16 %v11594_v17, %v11591_v43  ;;  %v11607_v43 = vld [vmem:[%s24211_s4 + $0x1c40] sm:$0xff] }
 0x45f   : > { %14353 = vmatprep.subr.bf16.mxu1 %v21571_v58  ;;  %14637 = vmatprep.subr.bf16.mxu0 %v25112_v53  ;;  %v21614_v53 = vpack.c.bf16 %v11601_v62, %v11598_v13  ;;  %v11597_v58 = vld [vmem:[%s24211_s4 + $0x1bf0] sm:$0xff]  ;;  %v25119_v13 = vld [vmem:[#allocation88_spill] sm:$0xff] }
 0x460   : > { %25116 = vst [vmem:[#allocation77_spill] sm:$0xff] %v21611_v0  ;;  %v25118_v17 = vld [vmem:[#allocation86_spill] sm:$0xff]  ;;  %v21631_v62 = vpack.c.bf16 %v11600_v46, %v11597_v58 }
 0x461   : > { %14639 = vmatpush1.bf16.msra.mxu0 %v25114_v26  ;;  %25117 = vst [vmem:[#allocation80_spill] sm:$0xff] %v21614_v53  ;;  %v11604_v26 = vld [vmem:[%s24211_s4 + $0x1c28] sm:$0xff]  ;;  %v11613_v46 = vld [vmem:[%s24211_s4 + $0x1c70] sm:$0xff] }
 0x462   : > { %14355 = vmatpush1.bf16.msra.mxu1 %v21590_v30  ;;  %14641 = vmatprep.subr.bf16.mxu0 %v25115_v19  ;;  %25120 = vst [vmem:[#allocation82_spill] sm:$0xff] %v21631_v62  ;;  %v21634_v19 = vpack.c.bf16 %v11607_v43, %v11604_v26  ;;  %v11606_v30 = vld [vmem:[%s24211_s4 + $0x1c38] sm:$0xff]  ;;  %v25123_v26 = vld [vmem:[#allocation92_spill] sm:$0xff] }
 0x463   : > { %14357 = vmatprep.subr.bf16.mxu1 %v21594_v37  ;;  %v11603_v37 = vld [vmem:[%s24211_s4 + $0x1c20] sm:$0xff]  ;;  %v25122_v58 = vld [vmem:[#allocation90_spill] sm:$0xff] }
 0x464   : > { %25121 = vst [vmem:[#allocation84_spill] sm:$0xff] %v21634_v19  ;;  %v21651_v43 = vpack.c.bf16 %v11606_v30, %v11603_v37  ;;  %v11619_v30 = vld [vmem:[%s24211_s4 + $0x1ca0] sm:$0xff]  ;;  %v25126_v37 = vld [vmem:[#allocation93_spill] sm:$0xff] }
 0x465   : > { %14643 = vmatpush1.bf16.msra.mxu0 %v25118_v17  ;;  %v11610_v17 = vld [vmem:[%s24211_s4 + $0x1c58] sm:$0xff] }
 0x466   : > { %14359 = vmatpush1.bf16.msra.mxu1 %v21611_v0  ;;  %14645 = vmatprep.subr.bf16.mxu0 %v25119_v13  ;;  %25124 = vst [vmem:[#allocation86_spill] sm:$0xff] %v21651_v43  ;;  %v21654_v13 = vpack.c.bf16 %v11613_v46, %v11610_v17  ;;  %v11612_v0 = vld [vmem:[%s24211_s4 + $0x1c68] sm:$0xff]  ;;  %v25127_v17 = vld [vmem:[#allocation95_spill] sm:$0xff] }
 0x467   : > { %14361 = vmatprep.subr.bf16.mxu1 %v21614_v53  ;;  %v11609_v53 = vld [vmem:[%s24211_s4 + $0x1c50] sm:$0xff] }
 0x468   : > { %25125 = vst [vmem:[#allocation88_spill] sm:$0xff] %v21654_v13  ;;  %v21671_v46 = vpack.c.bf16 %v11612_v0, %v11609_v53  ;;  %v11625_v0 = vld [vmem:[%s24211_s4 + $0x1cd0] sm:$0xff] }
 0x469   : > { %14647 = vmatpush1.bf16.msra.mxu0 %v25122_v58  ;;  %v11616_v58 = vld [vmem:[%s24211_s4 + $0x1c88] sm:$0xff] }
 0x46a   : > { %14363 = vmatpush1.bf16.msra.mxu1 %v21631_v62  ;;  %14649 = vmatprep.subr.bf16.mxu0 %v25123_v26  ;;  %25128 = vst [vmem:[#allocation90_spill] sm:$0xff] %v21671_v46  ;;  %v11615_v62 = vld [vmem:[%s24211_s4 + $0x1c80] sm:$0xff] }
 0x46b   : > { %14365 = vmatprep.subr.bf16.mxu1 %v21634_v19  ;;  %v21674_v19 = vpack.c.bf16 %v11619_v30, %v11616_v58  ;;  %v25130_v58 = vld [vmem:[#allocation96_spill] sm:$0xff]  ;;  %v25131_v30 = vld [vmem:[#allocation98_spill] sm:$0xff] }
 0x46d   : > { %14651 = vmatpush1.bf16.msra.mxu0 %v25126_v37  ;;  %25129 = vst [vmem:[#allocation92_spill] sm:$0xff] %v21674_v19 }
 0x46e   : > { %14367 = vmatpush1.bf16.msra.mxu1 %v21651_v43  ;;  %14653 = vmatprep.subr.bf16.mxu0 %v25127_v17  ;;  %v11622_v17 = vld [vmem:[%s24211_s4 + $0x1cb8] sm:$0xff] }
 0x46f   : > { %v12099_v26 = vpop.f32.mrb[34].mxu0  ;;  %14369 = vmatprep.subr.bf16.mxu1 %v21654_v13  ;;  %v21691_v13 = vpack.c.bf16 %v11618_v61, %v11615_v62  ;;  %v21694_v43 = vpack.c.bf16 %v11625_v0, %v11622_v17  ;;  %v11628_v61 = vld [vmem:[%s24211_s4 + $0x1ce8] sm:$0xff]  ;;  %v11631_v62 = vld [vmem:[%s24211_s4 + $0x1d00] sm:$0xff] }
 0x470   : > { %v12100_v37 = vpop.f32.mrb[35].mxu0  ;;  %v25134_v17 = vld [vmem:[#allocation99_spill] sm:$0xff]  ;;  %v25135_v0 = vld [vmem:[#allocation101_spill] sm:$0xff] }
 0x471   : > { %v12101_v53 = vadd.f32 %v12100_v37, %v12099_v26  ;;  %14655 = vmatpush1.bf16.msra.mxu0 %v25130_v58  ;;  %25132 = vst [vmem:[#allocation93_spill] sm:$0xff] %v21691_v13  ;;  %25133 = vst [vmem:[#allocation95_spill] sm:$0xff] %v21694_v43  ;;  %v11624_v26 = vld [vmem:[%s24211_s4 + $0x1cc8] sm:$0xff] }
 0x472   : > { %14371 = vmatpush1.bf16.msra.mxu1 %v21671_v46  ;;  %14657 = vmatprep.subr.bf16.mxu0 %v25131_v30  ;;  %v21714_v58 = vpack.c.bf16 %v11624_v26, %v11621_v59  ;;  %v11630_v30 = vld [vmem:[%s24211_s4 + $0x1cf8] sm:$0xff]  ;;  %v11637_v59 = vld [vmem:[%s24211_s4 + $0x1d30] sm:$0xff] }
 0x473   : > { %14373 = vmatprep.subr.bf16.mxu1 %v21674_v19  ;;  %v21703_v37 = vadd.f32 %v21528_v16, %v12101_v53  ;;  %v21717_v16 = vpack.c.bf16 %v11631_v62, %v11628_v61  ;;  %v11627_v53 = vld [vmem:[%s24211_s4 + $0x1ce0] sm:$0xff]  ;;  %v25138_v26 = vld [vmem:[#allocation102_spill] sm:$0xff]  ;;  %v25142_v19 = vld [vmem:[#allocation105_spill] sm:$0xff] }
 0x474   : > { %25136 = vst [vmem:[#allocation96_spill] sm:$0xff] %v21714_v58  ;;  %v25139_v61 = vld [vmem:[#allocation104_spill] sm:$0xff]  ;;  %v21734_v62 = vpack.c.bf16 %v11630_v30, %v11627_v53  ;;  %v11581_v30 = vld [vmem:[%s24211_s4 + $0x1b70] sm:$0xff] }
 0x475   : > { %14659 = vmatpush1.bf16.msra.mxu0 %v25134_v17  ;;  %25137 = vst [vmem:[#allocation98_spill] sm:$0xff] %v21717_v16  ;;  %v11634_v17 = vld [vmem:[%s24211_s4 + $0x1d18] sm:$0xff]  ;;  %v25293_v46 = vld [vmem:[#allocation245_spill] sm:$0xff] }
 0x476   : > { %14375 = vmatpush1.bf16.msra.mxu1 %v21691_v13  ;;  %14661 = vmatprep.subr.bf16.mxu0 %v25135_v0  ;;  %25140 = vst [vmem:[#allocation99_spill] sm:$0xff] %v21734_v62  ;;  %v21737_v0 = vpack.c.bf16 %v11637_v59, %v11634_v17  ;;  %v11636_v13 = vld [vmem:[%s24211_s4 + $0x1d28] sm:$0xff] }
 0x477   : > { %14377 = vmatprep.subr.bf16.mxu1 %v21694_v43  ;;  %v11633_v43 = vld [vmem:[%s24211_s4 + $0x1d10] sm:$0xff]  ;;  %v11584_v17 = vld [vmem:[%s24211_s4 + $0x1b88] sm:$0xff] }
 0x478   : > { %25141 = vst [vmem:[#allocation101_spill] sm:$0xff] %v21737_v0  ;;  %v21748_v53 = vpack.c.bf16 %v11636_v13, %v11633_v43  ;;  %v25145_v59 = vld [vmem:[#allocation108_spill] sm:$0xff]  ;;  %v11590_v13 = vld [vmem:[%s24211_s4 + $0x1bb8] sm:$0xff] }
 0x479   : > { %14663 = vmatpush1.bf16.msra.mxu0 %v25138_v26  ;;  %v25143_v26 = vld [vmem:[#allocation107_spill] sm:$0xff] }
 0x47a   : > { %14379 = vmatpush1.bf16.msra.mxu1 %v21714_v58  ;;  %14665 = vmatprep.subr.bf16.mxu0 %v25139_v61  ;;  %25144 = vst [vmem:[#allocation102_spill] sm:$0xff] %v21748_v53  ;;  %v21760_v61 = vpack.c.bf16 %v11584_v17, %v11581_v30  ;;  %v11587_v43 = vld [vmem:[%s24211_s4 + $0x1ba0] sm:$0xff]  ;;  %v25150_v17 = vld [vmem:[#allocation113_spill] sm:$0xff] }
 0x47b   : > { %14381 = vmatprep.subr.bf16.mxu1 %v21717_v16  ;;  %v21774_v30 = vpack.c.bf16 %v11590_v13, %v11587_v43  ;;  %v11599_v13 = vld [vmem:[%s24211_s4 + $0x1c00] sm:$0xff]  ;;  %v25244_v16 = vld [vmem:[#allocation197_spill] sm:$0xff] }
 0x47c   : > { %25147 = vst [vmem:[#allocation104_spill] sm:$0xff] %v21760_v61 }
 0x47d   : > { %14667 = vmatpush1.bf16.msra.mxu0 %v25142_v19  ;;  %v25146_v19 = vld [vmem:[#allocation110_spill] sm:$0xff]  ;;  %25149 = vst [vmem:[#allocation105_spill] sm:$0xff] %v21774_v30 }
 0x47e   : > { %14383 = vmatpush1.bf16.msra.mxu1 %v21734_v62  ;;  %14669 = vmatprep.subr.bf16.mxu0 %v25143_v26  ;;  %v25148_v26 = vld [vmem:[#allocation111_spill] sm:$0xff] }
 0x47f   : > { %14385 = vmatprep.subr.bf16.mxu1 %v21737_v0  ;;  %v25178_v0 = vld [vmem:[#allocation148_spill] sm:$0xff]  ;;  %v25227_v62 = vld [vmem:[#allocation151_spill] sm:$0xff] }
 0x481   : > { %14671 = vmatpush1.bf16.msra.mxu0 %v25145_v59  ;;  %v11593_v59 = vld [vmem:[%s24211_s4 + $0x1bd0] sm:$0xff] }
 0x482   : > { %14387 = vmatpush1.bf16.msra.mxu1 %v21748_v53  ;;  %14673 = vmatprep.subr.bf16.mxu0 %v25146_v19  ;;  %v11596_v19 = vld [vmem:[%s24211_s4 + $0x1be8] sm:$0xff] }
 0x483   : > { %14420 = vmatprep.subr.bf16.mxu1 %v24699_v29  ;;  %v21787_v43 = vpack.c.bf16 %v11596_v19, %v11593_v59  ;;  %v25154_v53 = vld [vmem:[#allocation117_spill] sm:$0xff] }
 0x484   : > { %v11605_v19 = vld [vmem:[%s24211_s4 + $0x1c30] sm:$0xff] }
 0x485   : > { %5691 = vmatmul.mubr.f32.vlgmr.msra.gmra.mrb[32].mxu1 %v18227_v20  ;;  %14675 = vmatpush1.bf16.msra.mxu0 %v25148_v26  ;;  %v25151_v26 = vld [vmem:[#allocation114_spill] sm:$0xff]  ;;  %25153 = vst [vmem:[#allocation107_spill] sm:$0xff] %v21787_v43 }
 0x486   : > { %14422 = vmatpush1.bf16.msra.mxu1 %v21760_v61  ;;  %11640 = vmatprep.mubr.msk.f32.mxu1 %vm3504_vm7, %v25002_v14  ;;  %v25152_v61 = vld [vmem:[#allocation116_spill] sm:$0xff] }
 0x487   : > { %14423 = vmatprep.subr.bf16.mxu1 %v24699_v29  ;;  %14677 = vmatprep.subr.bf16.mxu0 %v25150_v17  ;;  %v11602_v17 = vld [vmem:[%s24211_s4 + $0x1c18] sm:$0xff] }
 0x488   : > { %v21802_v59 = vpack.c.bf16 %v11602_v17, %v11599_v13  ;;  %v11611_v13 = vld [vmem:[%s24211_s4 + $0x1c60] sm:$0xff]  ;;  %v11614_v17 = vld [vmem:[%s24211_s4 + $0x1c78] sm:$0xff] }
 0x489   : > { %14679 = vmatpush1.bf16.msra.mxu0 %v25151_v26  ;;  %v11608_v26 = vld [vmem:[%s24211_s4 + $0x1c48] sm:$0xff] }
 0x48a   : > { %14425 = vmatpush1.bf16.msra.mxu1 %v21774_v30  ;;  %14681 = vmatprep.subr.bf16.mxu0 %v25152_v61  ;;  %v25155_v61 = vld [vmem:[#allocation119_spill] sm:$0xff]  ;;  %25156 = vst [vmem:[#allocation108_spill] sm:$0xff] %v21802_v59  ;;  %v25158_v30 = vld [vmem:[#allocation122_spill] sm:$0xff] }
 0x48b   : > { %14426 = vmatprep.subr.bf16.mxu1 %v24699_v29 }
 0x48c   : > { %6190 = vmatmul.mubr.f32.vlgmr.msra.gmra.mrb[36].mxu0 %v17815_v45 }
 0x48d   : > { %14683 = vmatpush1.bf16.msra.mxu0 %v25154_v53  ;;  %11643 = vmatprep.mubr.msk.f32.mxu0 %vm3504_vm7, %v17791_v35  ;;  %v25157_v53 = vld [vmem:[#allocation120_spill] sm:$0xff] }
 0x48e   : > { %14428 = vmatpush1.bf16.msra.mxu1 %v21787_v43  ;;  %14685 = vmatprep.subr.bf16.mxu0 %v25155_v61  ;;  %v21814_v43 = vpack.c.bf16 %v11608_v26, %v11605_v19  ;;  %v25160_v61 = vld [vmem:[#allocation124_spill] sm:$0xff] }
 0x48f   : > { %14429 = vmatprep.subr.bf16.mxu1 %v24699_v29  ;;  %v11620_v19 = vld [vmem:[%s24211_s4 + $0x1ca8] sm:$0xff] }
 0x490   : > { %25159 = vst [vmem:[#allocation110_spill] sm:$0xff] %v21814_v43  ;;  %v25163_v26 = vld [vmem:[#allocation128_spill] sm:$0xff] }
 0x491   : > { %14687 = vmatpush1.bf16.msra.mxu0 %v25157_v53  ;;  %v25161_v53 = vld [vmem:[#allocation126_spill] sm:$0xff] }
 0x492   : > { %14431 = vmatpush1.bf16.msra.mxu1 %v21802_v59  ;;  %14689 = vmatprep.subr.bf16.mxu0 %v25158_v30  ;;  %v21826_v59 = vpack.c.bf16 %v11614_v17, %v11611_v13  ;;  %v11617_v30 = vld [vmem:[%s24211_s4 + $0x1c90] sm:$0xff]  ;;  %v11623_v13 = vld [vmem:[%s24211_s4 + $0x1cc0] sm:$0xff]  ;;  %v11626_v17 = vld [vmem:[%s24211_s4 + $0x1cd8] sm:$0xff] }
 0x493   : > { %14432 = vmatprep.subr.bf16.mxu1 %v24699_v29 }
 0x494   : > { %25162 = vst [vmem:[#allocation111_spill] sm:$0xff] %v21826_v59 }
 0x495   : > { %14691 = vmatpush1.bf16.msra.mxu0 %v25160_v61  ;;  %v25164_v61 = vld [vmem:[#allocation130_spill] sm:$0xff] }
 0x496   : > { %14434 = vmatpush1.bf16.msra.mxu1 %v21814_v43  ;;  %14693 = vmatprep.subr.bf16.mxu0 %v25161_v53  ;;  %v21838_v43 = vpack.c.bf16 %v11620_v19, %v11617_v30  ;;  %v25166_v53 = vld [vmem:[#allocation132_spill] sm:$0xff]  ;;  %v11629_v30 = vld [vmem:[%s24211_s4 + $0x1cf0] sm:$0xff] }
 0x497   : > { %14435 = vmatprep.subr.bf16.mxu1 %v24699_v29  ;;  %v11632_v19 = vld [vmem:[%s24211_s4 + $0x1d08] sm:$0xff] }
 0x498   : > { %25165 = vst [vmem:[#allocation113_spill] sm:$0xff] %v21838_v43 }
 0x499   : > { %14695 = vmatpush1.bf16.msra.mxu0 %v25163_v26  ;;  %v25167_v26 = vld [vmem:[#allocation134_spill] sm:$0xff] }
 0x49a   : > { %14437 = vmatpush1.bf16.msra.mxu1 %v21826_v59  ;;  %14697 = vmatprep.subr.bf16.mxu0 %v25164_v61  ;;  %v21850_v59 = vpack.c.bf16 %v11626_v17, %v11623_v13  ;;  %v25169_v61 = vld [vmem:[#allocation136_spill] sm:$0xff]  ;;  %v11638_v17 = vld [vmem:[%s24211_s4 + $0x1d38] sm:$0xff] }
 0x49b   : > { %14438 = vmatprep.subr.bf16.mxu1 %v24699_v29  ;;  %v11635_v13 = vld [vmem:[%s24211_s4 + $0x1d20] sm:$0xff] }
 0x49c   : > { %25168 = vst [vmem:[#allocation114_spill] sm:$0xff] %v21850_v59 }
 0x49d   : > { %14699 = vmatpush1.bf16.msra.mxu0 %v25166_v53  ;;  %v25170_v53 = vld [vmem:[#allocation138_spill] sm:$0xff] }
 0x49e   : > { %14440 = vmatpush1.bf16.msra.mxu1 %v21838_v43  ;;  %14701 = vmatprep.subr.bf16.mxu0 %v25167_v26  ;;  %v21862_v43 = vpack.c.bf16 %v11632_v19, %v11629_v30  ;;  %v25172_v26 = vld [vmem:[#allocation140_spill] sm:$0xff]  ;;  %v25176_v19 = vld [vmem:[#allocation146_spill] sm:$0xff] }
 0x49f   : > { %14441 = vmatprep.subr.bf16.mxu1 %v24699_v29  ;;  %v25175_v30 = vld [vmem:[#allocation144_spill] sm:$0xff] }
 0x4a0   : > { %25171 = vst [vmem:[#allocation116_spill] sm:$0xff] %v21862_v43 }
 0x4a1   : > { %14703 = vmatpush1.bf16.msra.mxu0 %v25169_v61  ;;  %v25173_v61 = vld [vmem:[#allocation142_spill] sm:$0xff] }
 0x4a2   : > { %14443 = vmatpush1.bf16.msra.mxu1 %v21850_v59  ;;  %14705 = vmatprep.subr.bf16.mxu0 %v25170_v53  ;;  %v21874_v59 = vpack.c.bf16 %v11638_v17, %v11635_v13  ;;  %v25177_v53 = vld [vmem:[#allocation58_spill] sm:$0xff] }
 0x4a3   : > { %14444 = vmatprep.subr.bf16.mxu1 %v24699_v29  ;;  %v25180_v13 = vld [vmem:[#allocation150_spill] sm:$0xff] }
 0x4a4   : > { %25174 = vst [vmem:[#allocation117_spill] sm:$0xff] %v21874_v59  ;;  %v25181_v17 = vld [vmem:[#allocation62_spill] sm:$0xff] }
 0x4a5   : > { %14707 = vmatpush1.bf16.msra.mxu0 %v25172_v26  ;;  %v25179_v26 = vld [vmem:[#allocation60_spill] sm:$0xff] }
 0x4a6   : > { %14446 = vmatpush1.bf16.msra.mxu1 %v21862_v43  ;;  %14709 = vmatprep.subr.bf16.mxu0 %v25173_v61  ;;  %v25182_v61 = vld [vmem:[#allocation152_spill] sm:$0xff]  ;;  %v25225_v43 = vld [vmem:[#allocation149_spill] sm:$0xff] }
 0x4a7   : > { %14447 = vmatprep.subr.bf16.mxu1 %v24699_v29 }
 0x4a9   : > { %14711 = vmatpush1.bf16.msra.mxu0 %v25175_v30  ;;  %v25183_v30 = vld [vmem:[#allocation64_spill] sm:$0xff] }
 0x4aa   : > { %14449 = vmatpush1.bf16.msra.mxu1 %v21874_v59  ;;  %14713 = vmatprep.subr.bf16.mxu0 %v25176_v19  ;;  %v25184_v19 = vld [vmem:[#allocation66_spill] sm:$0xff]  ;;  %v25195_v59 = vld [vmem:[#allocation83_spill] sm:$0xff] }
 0x4ab   : > { %14721 = vmatprep.subr.bf16.mxu1 %v25177_v53  ;;  %v25185_v53 = vld [vmem:[#allocation94_spill] sm:$0xff] }
 0x4ad   : > { %5832 = vmatmul.mubr.f32.vlgmr.msra.gmra.mrb[34].mxu1 %v18227_v20  ;;  %14715 = vmatpush1.bf16.msra.mxu0 %v25178_v0  ;;  %v25186_v0 = vld [vmem:[#allocation68_spill] sm:$0xff] }
 0x4ae   : > { %14723 = vmatpush3.bf16.msra.mxu1 %v25179_v26  ;;  %6331 = vmatprep.mubr.f32.mxu1 %v17824_v51  ;;  %v25187_v26 = vld [vmem:[#allocation70_spill] sm:$0xff] }
 0x4af   : > { %14717 = vmatprep.subr.bf16.mxu0 %v25180_v13  ;;  %14725 = vmatprep.subr.bf16.mxu1 %v25181_v17  ;;  %v25188_v13 = vld [vmem:[#allocation97_spill] sm:$0xff] }
 0x4b0   : > { %v25189_v17 = vld [vmem:[#allocation73_spill] sm:$0xff] }
 0x4b1   : > { %14719 = vmatpush1.bf16.msra.mxu0 %v25182_v61  ;;  %v25190_v61 = vld [vmem:[#allocation75_spill] sm:$0xff] }
 0x4b2   : > { %14727 = vmatpush3.bf16.msra.mxu1 %v25183_v30  ;;  %14752 = vmatprep.subr.bf16.mxu0 %v24699_v29  ;;  %v25191_v30 = vld [vmem:[#allocation100_spill] sm:$0xff] }
 0x4b3   : > { %14729 = vmatprep.subr.bf16.mxu1 %v25184_v19  ;;  %v25192_v19 = vld [vmem:[#allocation79_spill] sm:$0xff] }
 0x4b4   : > { %6261 = vmatmul.mubr.f32.vlgmr.msra.gmra.mrb[36].mxu0 %v17789_v28 }
 0x4b5   : > { %14754 = vmatpush1.bf16.msra.mxu0 %v25185_v53  ;;  %11644 = vmatprep.mubr.msk.f32.mxu0 %vm3504_vm7, %v17791_v35  ;;  %v25193_v53 = vld [vmem:[#allocation81_spill] sm:$0xff] }
 0x4b6   : > { %14731 = vmatpush3.bf16.msra.mxu1 %v25186_v0  ;;  %14755 = vmatprep.subr.bf16.mxu0 %v24699_v29  ;;  %v25194_v0 = vld [vmem:[#allocation103_spill] sm:$0xff] }
 0x4b7   : > { %14733 = vmatprep.subr.bf16.mxu1 %v25187_v26  ;;  %v25196_v26 = vld [vmem:[#allocation85_spill] sm:$0xff] }
 0x4b9   : > { %14757 = vmatpush1.bf16.msra.mxu0 %v25188_v13  ;;  %v25197_v13 = vld [vmem:[#allocation106_spill] sm:$0xff] }
 0x4ba   : > { %14735 = vmatpush3.bf16.msra.mxu1 %v25189_v17  ;;  %14758 = vmatprep.subr.bf16.mxu0 %v24699_v29  ;;  %v25198_v17 = vld [vmem:[#allocation87_spill] sm:$0xff] }
 0x4bb   : > { %14737 = vmatprep.subr.bf16.mxu1 %v25190_v61  ;;  %v25199_v61 = vld [vmem:[#allocation89_spill] sm:$0xff] }
 0x4bd   : > { %14760 = vmatpush1.bf16.msra.mxu0 %v25191_v30  ;;  %v25200_v30 = vld [vmem:[#allocation109_spill] sm:$0xff] }
 0x4be   : > { %14739 = vmatpush3.bf16.msra.mxu1 %v25192_v19  ;;  %14761 = vmatprep.subr.bf16.mxu0 %v24699_v29  ;;  %v25201_v19 = vld [vmem:[#allocation91_spill] sm:$0xff] }
 0x4bf   : > { %14741 = vmatprep.subr.bf16.mxu1 %v25193_v53  ;;  %v25202_v53 = vld [vmem:[#allocation123_spill] sm:$0xff] }
 0x4c1   : > { %14763 = vmatpush1.bf16.msra.mxu0 %v25194_v0  ;;  %v25204_v0 = vld [vmem:[#allocation125_spill] sm:$0xff] }
 0x4c2   : > { %14743 = vmatpush3.bf16.msra.mxu1 %v25195_v59  ;;  %14764 = vmatprep.subr.bf16.mxu0 %v24699_v29  ;;  %v25203_v59 = vld [vmem:[#allocation112_spill] sm:$0xff] }
 0x4c3   : > { %14745 = vmatprep.subr.bf16.mxu1 %v25196_v26  ;;  %v25205_v26 = vld [vmem:[#allocation127_spill] sm:$0xff] }
 0x4c5   : > { %14766 = vmatpush1.bf16.msra.mxu0 %v25197_v13  ;;  %v25206_v13 = vld [vmem:[#allocation115_spill] sm:$0xff] }
 0x4c6   : > { %14747 = vmatpush3.bf16.msra.mxu1 %v25198_v17  ;;  %14767 = vmatprep.subr.bf16.mxu0 %v24699_v29  ;;  %v25207_v17 = vld [vmem:[#allocation129_spill] sm:$0xff] }
 0x4c7   : > { %14749 = vmatprep.subr.bf16.mxu1 %v25199_v61  ;;  %v25208_v61 = vld [vmem:[#allocation131_spill] sm:$0xff] }
 0x4c9   : > { %14769 = vmatpush1.bf16.msra.mxu0 %v25200_v30  ;;  %v25209_v30 = vld [vmem:[#allocation118_spill] sm:$0xff] }
 0x4ca   : > { %14751 = vmatpush3.bf16.msra.mxu1 %v25201_v19  ;;  %14770 = vmatprep.subr.bf16.mxu0 %v24699_v29  ;;  %v25210_v19 = vld [vmem:[#allocation133_spill] sm:$0xff] }
 0x4cb   : > { %14887 = vmatprep.subr.bf16.mxu1 %v25202_v53  ;;  %v25211_v53 = vld [vmem:[#allocation135_spill] sm:$0xff] }
 0x4cd   : > { %6332 = vmatmul.mubr.f32.vlgmr.msra.gmra.mrb[36].mxu1 %v17815_v45  ;;  %14772 = vmatpush1.bf16.msra.mxu0 %v25203_v59  ;;  %v25212_v59 = vld [vmem:[#allocation121_spill] sm:$0xff] }
 0x4ce   : > { %14889 = vmatpush3.bf16.msra.mxu1 %v25204_v0  ;;  %6616 = vmatprep.mubr.f32.mxu1 %v20248_v38  ;;  %v25213_v0 = vld [vmem:[#allocation137_spill] sm:$0xff] }
 0x4cf   : > { %14773 = vmatprep.subr.bf16.mxu0 %v24699_v29  ;;  %14891 = vmatprep.subr.bf16.mxu1 %v25205_v26  ;;  %v25214_v26 = vld [vmem:[#allocation154_spill] sm:$0xff] }
 0x4d1   : > { %14775 = vmatpush1.bf16.msra.mxu0 %v25206_v13  ;;  %v25215_v13 = vld [vmem:[#allocation139_spill] sm:$0xff] }
 0x4d2   : > { %14893 = vmatpush3.bf16.msra.mxu1 %v25207_v17  ;;  %14776 = vmatprep.subr.bf16.mxu0 %v24699_v29  ;;  %v25216_v17 = vld [vmem:[#allocation155_spill] sm:$0xff] }
 0x4d3   : > { %14895 = vmatprep.subr.bf16.mxu1 %v25208_v61  ;;  %v25217_v61 = vld [vmem:[#allocation141_spill] sm:$0xff] }
 0x4d5   : > { %14778 = vmatpush1.bf16.msra.mxu0 %v25209_v30  ;;  %v25218_v30 = vld [vmem:[#allocation157_spill] sm:$0xff] }
 0x4d6   : > { %14897 = vmatpush3.bf16.msra.mxu1 %v25210_v19  ;;  %14779 = vmatprep.subr.bf16.mxu0 %v24699_v29  ;;  %v25219_v19 = vld [vmem:[#allocation143_spill] sm:$0xff] }
 0x4d7   : > { %14899 = vmatprep.subr.bf16.mxu1 %v25211_v53  ;;  %v25220_v53 = vld [vmem:[#allocation158_spill] sm:$0xff] }
 0x4d9   : > { %14781 = vmatpush1.bf16.msra.mxu0 %v25212_v59  ;;  %v25221_v59 = vld [vmem:[#allocation145_spill] sm:$0xff] }
 0x4da   : > { %14901 = vmatpush3.bf16.msra.mxu1 %v25213_v0  ;;  %14783 = vmatprep.subr.bf16.mxu0 %v25214_v26  ;;  %v25222_v0 = vld [vmem:[#allocation160_spill] sm:$0xff]  ;;  %v25223_v26 = vld [vmem:[#allocation147_spill] sm:$0xff] }
 0x4db   : > { %14903 = vmatprep.subr.bf16.mxu1 %v25215_v13  ;;  %v25224_v13 = vld [vmem:[#allocation161_spill] sm:$0xff] }
 0x4dc   : > { %6402 = vmatmul.mubr.f32.vlgmr.msra.gmra.mrb[40].mxu0 %v17789_v28 }
 0x4dd   : > { %14785 = vmatpush1.bf16.msra.mxu0 %v25216_v17  ;;  %6474 = vmatprep.mubr.f32.mxu0 %v20248_v38  ;;  %v25226_v17 = vld [vmem:[#allocation163_spill] sm:$0xff] }
 0x4de   : > { %14905 = vmatpush3.bf16.msra.mxu1 %v25217_v61  ;;  %14787 = vmatprep.subr.bf16.mxu0 %v25218_v30  ;;  %v25228_v61 = vld [vmem:[#allocation164_spill] sm:$0xff]  ;;  %v25229_v30 = vld [vmem:[#allocation153_spill] sm:$0xff] }
 0x4df   : > { %14907 = vmatprep.subr.bf16.mxu1 %v25219_v19  ;;  %v25230_v19 = vld [vmem:[#allocation166_spill] sm:$0xff] }
 0x4e1   : > { %14789 = vmatpush1.bf16.msra.mxu0 %v25220_v53  ;;  %v25231_v53 = vld [vmem:[#allocation185_spill] sm:$0xff] }
 0x4e2   : > { %14909 = vmatpush3.bf16.msra.mxu1 %v25221_v59  ;;  %14791 = vmatprep.subr.bf16.mxu0 %v25222_v0  ;;  %v25232_v59 = vld [vmem:[#allocation291_spill] sm:$0xff] }
 0x4e3   : > { %14911 = vmatprep.subr.bf16.mxu1 %v25223_v26  ;;  %v25233_v0 = vld [vmem:[#allocation167_spill] sm:$0xff] }
 0x4e4   : > { %v25234_v26 = vld [vmem:[#allocation187_spill] sm:$0xff] }
 0x4e5   : > { %14793 = vmatpush1.bf16.msra.mxu0 %v25224_v13  ;;  %v25236_v13 = vld [vmem:[#allocation189_spill] sm:$0xff] }
 0x4e6   : > { %14913 = vmatpush3.bf16.msra.mxu1 %v25225_v43  ;;  %14795 = vmatprep.subr.bf16.mxu0 %v25226_v17  ;;  %v25235_v43 = vld [vmem:[#allocation169_spill] sm:$0xff]  ;;  %v25238_v17 = vld [vmem:[#allocation191_spill] sm:$0xff] }
 0x4e7   : > { %14915 = vmatprep.subr.bf16.mxu1 %v25227_v62  ;;  %v25237_v62 = vld [vmem:[#allocation170_spill] sm:$0xff] }
 0x4e9   : > { %14797 = vmatpush1.bf16.msra.mxu0 %v25228_v61  ;;  %v25239_v61 = vld [vmem:[#allocation172_spill] sm:$0xff] }
 0x4ea   : > { %14917 = vmatpush3.bf16.msra.mxu1 %v25229_v30  ;;  %14799 = vmatprep.subr.bf16.mxu0 %v25230_v19  ;;  %v25240_v30 = vld [vmem:[#allocation193_spill] sm:$0xff] }
 0x4eb   : > { %14949 = vmatprep.subr.bf16.mxu1 %v25231_v53  ;;  %v25241_v19 = vld [vmem:[#allocation173_spill] sm:$0xff]  ;;  %v25242_v53 = vld [vmem:[#allocation195_spill] sm:$0xff] }
 0x4ed   : > { %6617 = vmatmul.mubr.f32.vlgmr.msra.gmra.mrb[38].mxu1 %v25232_v59  ;;  %14801 = vmatpush1.bf16.msra.mxu0 %v25233_v0  ;;  %v25243_v0 = vld [vmem:[#allocation175_spill] sm:$0xff] }
 0x4ee   : > { %14951 = vmatpush1.bf16.msra.mxu1 %v25234_v26  ;;  %6762 = vmatprep.mubr.f32.mxu1 %v17959_v42 }
 0x4ef   : > { %14803 = vmatprep.subr.bf16.mxu0 %v25235_v43  ;;  %14953 = vmatprep.subr.bf16.mxu1 %v25236_v13  ;;  %v25245_v13 = vld [vmem:[#allocation176_spill] sm:$0xff] }
 0x4f1   : > { %14805 = vmatpush1.bf16.msra.mxu0 %v25237_v62  ;;  %v25246_v62 = vld [vmem:[#allocation199_spill] sm:$0xff] }
 0x4f2   : > { %14955 = vmatpush1.bf16.msra.mxu1 %v25238_v17  ;;  %14807 = vmatprep.subr.bf16.mxu0 %v25239_v61  ;;  %v25247_v17 = vld [vmem:[#allocation178_spill] sm:$0xff]  ;;  %v25248_v61 = vld [vmem:[#allocation201_spill] sm:$0xff] }
 0x4f3   : > { %14957 = vmatprep.subr.bf16.mxu1 %v25240_v30  ;;  %v25249_v30 = vld [vmem:[#allocation179_spill] sm:$0xff] }
 0x4f5   : > { %14809 = vmatpush1.bf16.msra.mxu0 %v25241_v19  ;;  %v25250_v19 = vld [vmem:[#allocation203_spill] sm:$0xff] }
 0x4f6   : > { %14959 = vmatpush1.bf16.msra.mxu1 %v25242_v53  ;;  %14811 = vmatprep.subr.bf16.mxu0 %v25243_v0  ;;  %v25251_v53 = vld [vmem:[#allocation181_spill] sm:$0xff] }
 0x4f7   : > { %v12134_v26 = vpop.f32.mrb[38].mxu0  ;;  %14961 = vmatprep.subr.bf16.mxu1 %v25244_v16  ;;  %v25252_v0 = vld [vmem:[#allocation205_spill] sm:$0xff]  ;;  %v25253_v16 = vld [vmem:[#allocation182_spill] sm:$0xff] }
 0x4f8   : > { %v12135_v43 = vpop.f32.mrb[39].mxu0 }
 0x4f9   : > { %v21968_v58 = vadd.f32 %v12135_v43, %v12134_v26  ;;  %14813 = vmatpush1.bf16.msra.mxu0 %v25245_v13  ;;  %v25254_v26 = vld [vmem:[#allocation207_spill] sm:$0xff]  ;;  %v25255_v43 = vld [vmem:[#allocation184_spill] sm:$0xff]  ;;  %v25256_v13 = vld [vmem:[#allocation209_spill] sm:$0xff] }
 0x4fa   : > { %14963 = vmatpush1.bf16.msra.mxu1 %v25246_v62  ;;  %14815 = vmatprep.subr.bf16.mxu0 %v25247_v17  ;;  %v25257_v62 = vld [vmem:[#allocation186_spill] sm:$0xff]  ;;  %v25258_v17 = vld [vmem:[#allocation211_spill] sm:$0xff] }
 0x4fb   : > { %14965 = vmatprep.subr.bf16.mxu1 %v25248_v61  ;;  %v25259_v61 = vld [vmem:[#allocation188_spill] sm:$0xff] }
 0x4fd   : > { %14817 = vmatpush1.bf16.msra.mxu0 %v25249_v30  ;;  %v25260_v30 = vld [vmem:[#allocation213_spill] sm:$0xff] }
 0x4fe   : > { %14967 = vmatpush1.bf16.msra.mxu1 %v25250_v19  ;;  %14819 = vmatprep.subr.bf16.mxu0 %v25251_v53  ;;  %v25261_v19 = vld [vmem:[#allocation190_spill] sm:$0xff]  ;;  %v25262_v53 = vld [vmem:[#allocation215_spill] sm:$0xff] }
 0x4ff   : > { %14969 = vmatprep.subr.bf16.mxu1 %v25252_v0  ;;  %v25263_v0 = vld [vmem:[#allocation192_spill] sm:$0xff] }
 0x501   : > { %14821 = vmatpush1.bf16.msra.mxu0 %v25253_v16  ;;  %v25264_v16 = vld [vmem:[#allocation217_spill] sm:$0xff] }
 0x502   : > { %14971 = vmatpush1.bf16.msra.mxu1 %v25254_v26  ;;  %14823 = vmatprep.subr.bf16.mxu0 %v25255_v43  ;;  %v25265_v26 = vld [vmem:[#allocation194_spill] sm:$0xff]  ;;  %v25266_v43 = vld [vmem:[#allocation219_spill] sm:$0xff] }
 0x503   : > { %14973 = vmatprep.subr.bf16.mxu1 %v25256_v13  ;;  %v25267_v13 = vld [vmem:[#allocation196_spill] sm:$0xff] }
 0x505   : > { %14825 = vmatpush1.bf16.msra.mxu0 %v25257_v62  ;;  %v25268_v62 = vld [vmem:[#allocation221_spill] sm:$0xff] }
 0x506   : > { %14975 = vmatpush1.bf16.msra.mxu1 %v25258_v17  ;;  %14827 = vmatprep.subr.bf16.mxu0 %v25259_v61  ;;  %v25269_v17 = vld [vmem:[#allocation198_spill] sm:$0xff]  ;;  %v25270_v61 = vld [vmem:[#allocation223_spill] sm:$0xff] }
 0x507   : > { %14977 = vmatprep.subr.bf16.mxu1 %v25260_v30  ;;  %v25271_v30 = vld [vmem:[#allocation200_spill] sm:$0xff] }
 0x509   : > { %14829 = vmatpush1.bf16.msra.mxu0 %v25261_v19  ;;  %v25272_v19 = vld [vmem:[#allocation225_spill] sm:$0xff] }
 0x50a   : > { %14979 = vmatpush1.bf16.msra.mxu1 %v25262_v53  ;;  %14831 = vmatprep.subr.bf16.mxu0 %v25263_v0  ;;  %v25273_v53 = vld [vmem:[#allocation202_spill] sm:$0xff]  ;;  %v25274_v0 = vld [vmem:[#allocation227_spill] sm:$0xff] }
 0x50b   : > { %14981 = vmatprep.subr.bf16.mxu1 %v25264_v16  ;;  %v25275_v16 = vld [vmem:[#allocation204_spill] sm:$0xff] }
 0x50d   : > { %14833 = vmatpush1.bf16.msra.mxu0 %v25265_v26  ;;  %v25276_v26 = vld [vmem:[#allocation229_spill] sm:$0xff] }
 0x50e   : > { %14983 = vmatpush1.bf16.msra.mxu1 %v25266_v43  ;;  %14835 = vmatprep.subr.bf16.mxu0 %v25267_v13  ;;  %v25277_v43 = vld [vmem:[#allocation206_spill] sm:$0xff]  ;;  %v25278_v13 = vld [vmem:[#allocation231_spill] sm:$0xff] }
 0x50f   : > { %14985 = vmatprep.subr.bf16.mxu1 %v25268_v62  ;;  %v25279_v62 = vld [vmem:[#allocation208_spill] sm:$0xff] }
 0x511   : > { %14837 = vmatpush1.bf16.msra.mxu0 %v25269_v17  ;;  %v25280_v17 = vld [vmem:[#allocation233_spill] sm:$0xff] }
 0x512   : > { %14987 = vmatpush1.bf16.msra.mxu1 %v25270_v61  ;;  %14839 = vmatprep.subr.bf16.mxu0 %v25271_v30  ;;  %v25281_v61 = vld [vmem:[#allocation210_spill] sm:$0xff] }
 0x513   : > { %14989 = vmatprep.subr.bf16.mxu1 %v25272_v19  ;;  %v25282_v30 = vld [vmem:[#allocation78_spill] sm:$0xff]  ;;  %v25283_v19 = vld [vmem:[#allocation235_spill] sm:$0xff] }
 0x515   : > { %14841 = vmatpush1.bf16.msra.mxu0 %v25273_v53  ;;  %v25284_v53 = vld [vmem:[#allocation212_spill] sm:$0xff] }
 0x516   : > { %14991 = vmatpush1.bf16.msra.mxu1 %v25274_v0  ;;  %14843 = vmatprep.subr.bf16.mxu0 %v25275_v16  ;;  %v25285_v0 = vld [vmem:[#allocation237_spill] sm:$0xff]  ;;  %v25286_v16 = vld [vmem:[#allocation214_spill] sm:$0xff] }
 0x517   : > { %14993 = vmatprep.subr.bf16.mxu1 %v25276_v26  ;;  %v25287_v26 = vld [vmem:[#allocation239_spill] sm:$0xff] }
 0x519   : > { %14845 = vmatpush1.bf16.msra.mxu0 %v25277_v43  ;;  %v25288_v43 = vld [vmem:[#allocation216_spill] sm:$0xff] }
 0x51a   : > { %14995 = vmatpush1.bf16.msra.mxu1 %v25278_v13  ;;  %14847 = vmatprep.subr.bf16.mxu0 %v25279_v62  ;;  %v25289_v13 = vld [vmem:[#allocation241_spill] sm:$0xff]  ;;  %v25290_v62 = vld [vmem:[#allocation218_spill] sm:$0xff] }
 0x51b   : > { %14997 = vmatprep.subr.bf16.mxu1 %v25280_v17  ;;  %v25291_v17 = vld [vmem:[#allocation243_spill] sm:$0xff] }
 0x51c   : > { %6475 = vmatmul.mubr.f32.vlgmr.msra.gmra.mrb[36].mxu0 %v25232_v59 }
 0x51d   : > { %14849 = vmatpush1.bf16.msra.mxu0 %v25281_v61  ;;  %11645 = vmatprep.mubr.msk.f32.mxu0 %vm3504_vm7, %v25282_v30  ;;  %v25292_v61 = vld [vmem:[#allocation220_spill] sm:$0xff] }
 0x51e   : > { %14999 = vmatpush1.bf16.msra.mxu1 %v25283_v19  ;;  %14851 = vmatprep.subr.bf16.mxu0 %v25284_v53  ;;  %v25294_v19 = vld [vmem:[#allocation222_spill] sm:$0xff]  ;;  %v25295_v53 = vld [vmem:[#allocation247_spill] sm:$0xff] }
 0x51f   : > { %15001 = vmatprep.subr.bf16.mxu1 %v25285_v0  ;;  %v25296_v0 = vld [vmem:[#allocation224_spill] sm:$0xff] }
 0x521   : > { %14853 = vmatpush1.bf16.msra.mxu0 %v25286_v16  ;;  %v25297_v16 = vld [vmem:[#allocation249_spill] sm:$0xff] }
 0x522   : > { %15003 = vmatpush1.bf16.msra.mxu1 %v25287_v26  ;;  %14855 = vmatprep.subr.bf16.mxu0 %v25288_v43  ;;  %v25298_v26 = vld [vmem:[#allocation226_spill] sm:$0xff]  ;;  %v25299_v43 = vld [vmem:[#allocation251_spill] sm:$0xff] }
 0x523   : > { %15005 = vmatprep.subr.bf16.mxu1 %v25289_v13  ;;  %v25300_v13 = vld [vmem:[#allocation228_spill] sm:$0xff] }
 0x525   : > { %14857 = vmatpush1.bf16.msra.mxu0 %v25290_v62  ;;  %v25302_v62 = vld [vmem:[#allocation230_spill] sm:$0xff] }
 0x526   : > { %15007 = vmatpush1.bf16.msra.mxu1 %v25291_v17  ;;  %14859 = vmatprep.subr.bf16.mxu0 %v25292_v61  ;;  %v25303_v17 = vld [vmem:[#allocation255_spill] sm:$0xff]  ;;  %v25304_v61 = vld [vmem:[#allocation232_spill] sm:$0xff] }
 0x527   : > { %15009 = vmatprep.subr.bf16.mxu1 %v25293_v46  ;;  %v25301_v46 = vld [vmem:[#allocation252_spill] sm:$0xff] }
 0x529   : > { %14861 = vmatpush1.bf16.msra.mxu0 %v25294_v19  ;;  %v25305_v19 = vld [vmem:[#allocation257_spill] sm:$0xff] }
 0x52a   : > { %15011 = vmatpush1.bf16.msra.mxu1 %v25295_v53  ;;  %14863 = vmatprep.subr.bf16.mxu0 %v25296_v0  ;;  %v25306_v53 = vld [vmem:[#allocation234_spill] sm:$0xff]  ;;  %v25307_v0 = vld [vmem:[#allocation259_spill] sm:$0xff] }
 0x52b   : > { %15013 = vmatprep.subr.bf16.mxu1 %v25297_v16  ;;  %v25308_v16 = vld [vmem:[#allocation236_spill] sm:$0xff] }
 0x52d   : > { %6763 = vmatmul.mubr.f32.vlgmr.msra.gmra.mrb[40].mxu1 %v17935_v48  ;;  %14865 = vmatpush1.bf16.msra.mxu0 %v25298_v26  ;;  %v25309_v26 = vld [vmem:[#allocation261_spill] sm:$0xff] }
 0x52e   : > { %15015 = vmatpush1.bf16.msra.mxu1 %v25299_v43  ;;  %11647 = vmatprep.mubr.msk.f32.mxu1 %vm3504_vm7, %v25002_v14  ;;  %v25310_v43 = vld [vmem:[#allocation238_spill] sm:$0xff] }
 0x52f   : > { %14867 = vmatprep.subr.bf16.mxu0 %v25300_v13  ;;  %15017 = vmatprep.subr.bf16.mxu1 %v25301_v46  ;;  %v25311_v13 = vld [vmem:[#allocation263_spill] sm:$0xff]  ;;  %v25312_v46 = vld [vmem:[#allocation240_spill] sm:$0xff] }
 0x531   : > { %14869 = vmatpush1.bf16.msra.mxu0 %v25302_v62  ;;  %v25313_v62 = vld [vmem:[#allocation265_spill] sm:$0xff] }
 0x532   : > { %15019 = vmatpush1.bf16.msra.mxu1 %v25303_v17  ;;  %14871 = vmatprep.subr.bf16.mxu0 %v25304_v61  ;;  %v25314_v17 = vld [vmem:[#allocation242_spill] sm:$0xff]  ;;  %v25315_v61 = vld [vmem:[#allocation267_spill] sm:$0xff] }
 0x533   : > { %15021 = vmatprep.subr.bf16.mxu1 %v25305_v19  ;;  %v25316_v19 = vld [vmem:[#allocation244_spill] sm:$0xff] }
 0x535   : > { %14873 = vmatpush1.bf16.msra.mxu0 %v25306_v53  ;;  %v25317_v53 = vld [vmem:[#allocation269_spill] sm:$0xff] }
 0x536   : > { %15023 = vmatpush1.bf16.msra.mxu1 %v25307_v0  ;;  %14875 = vmatprep.subr.bf16.mxu0 %v25308_v16  ;;  %v25318_v0 = vld [vmem:[#allocation246_spill] sm:$0xff]  ;;  %v25319_v16 = vld [vmem:[#allocation271_spill] sm:$0xff] }
 0x537   : > { %15025 = vmatprep.subr.bf16.mxu1 %v25309_v26  ;;  %v25320_v26 = vld [vmem:[#allocation273_spill] sm:$0xff] }
 0x539   : > { %14877 = vmatpush1.bf16.msra.mxu0 %v25310_v43  ;;  %v25321_v43 = vld [vmem:[#allocation76_spill] sm:$0xff] }
 0x53a   : > { %15027 = vmatpush1.bf16.msra.mxu1 %v25311_v13  ;;  %14879 = vmatprep.subr.bf16.mxu0 %v25312_v46  ;;  %v25322_v13 = vld [vmem:[#allocation156_spill] sm:$0xff]  ;;  %v25323_v46 = vld [vmem:[#allocation275_spill] sm:$0xff] }
 0x53b   : > { %15029 = vmatprep.subr.bf16.mxu1 %v25313_v62  ;;  %v25324_v62 = vld [vmem:[#allocation277_spill] sm:$0xff] }
 0x53d   : > { %14881 = vmatpush1.bf16.msra.mxu0 %v25314_v17  ;;  %v25325_v17 = vld [vmem:[#allocation159_spill] sm:$0xff] }
 0x53e   : > { %15031 = vmatpush1.bf16.msra.mxu1 %v25315_v61  ;;  %14883 = vmatprep.subr.bf16.mxu0 %v25316_v19  ;;  %v25326_v61 = vld [vmem:[#allocation279_spill] sm:$0xff]  ;;  %v25327_v19 = vld [vmem:[#allocation281_spill] sm:$0xff] }
 0x53f   : > { %15033 = vmatprep.subr.bf16.mxu1 %v25317_v53  ;;  %v25328_v53 = vld [vmem:[#allocation162_spill] sm:$0xff] }
 0x541   : > { %14885 = vmatpush1.bf16.msra.mxu0 %v25318_v0  ;;  %v25329_v0 = vld [vmem:[#allocation283_spill] sm:$0xff] }
 0x542   : > { %15035 = vmatpush1.bf16.msra.mxu1 %v25319_v16  ;;  %14918 = vmatprep.subr.bf16.mxu0 %v24699_v29  ;;  %v25330_v16 = vld [vmem:[#allocation285_spill] sm:$0xff] }
 0x543   : > { %15037 = vmatprep.subr.bf16.mxu1 %v25320_v26  ;;  %v25331_v26 = vld [vmem:[#allocation165_spill] sm:$0xff] }
 0x544   : > { %6546 = vmatmul.mubr.f32.vlgmr.msra.gmra.mrb[36].mxu0 %v25321_v43 }
 0x545   : > { %14920 = vmatpush1.bf16.msra.mxu0 %v25322_v13  ;;  %11646 = vmatprep.mubr.msk.f32.mxu0 %vm3504_vm7, %v25282_v30  ;;  %v25332_v13 = vld [vmem:[#allocation287_spill] sm:$0xff] }
 0x546   : > { %15039 = vmatpush1.bf16.msra.mxu1 %v25323_v46  ;;  %14921 = vmatprep.subr.bf16.mxu0 %v24699_v29  ;;  %v25333_v46 = vld [vmem:[#allocation248_spill] sm:$0xff] }
 0x547   : > { %15041 = vmatprep.subr.bf16.mxu1 %v25324_v62  ;;  %v25334_v62 = vld [vmem:[#allocation168_spill] sm:$0xff] }
 0x549   : > { %14923 = vmatpush1.bf16.msra.mxu0 %v25325_v17  ;;  %v25335_v17 = vld [vmem:[#allocation250_spill] sm:$0xff] }
 0x54a   : > { %15043 = vmatpush1.bf16.msra.mxu1 %v25326_v61  ;;  %14924 = vmatprep.subr.bf16.mxu0 %v24699_v29  ;;  %v25336_v61 = vld [vmem:[#allocation253_spill] sm:$0xff] }
 0x54b   : > { %15045 = vmatprep.subr.bf16.mxu1 %v25327_v19 }
 0x54d   : > { %14926 = vmatpush1.bf16.msra.mxu0 %v25328_v53  ;;  %v25347_v53 = vld [vmem:[#allocation266_spill] sm:$0xff] }
 0x54e   : > { %15047 = vmatpush1.bf16.msra.mxu1 %v25329_v0  ;;  %14927 = vmatprep.subr.bf16.mxu0 %v24699_v29 }
 0x54f   : > { %15049 = vmatprep.subr.bf16.mxu1 %v25330_v16  ;;  %v25337_v16 = vld [vmem:[#allocation171_spill] sm:$0xff] }
 0x551   : > { %14929 = vmatpush1.bf16.msra.mxu0 %v25331_v26  ;;  %v25345_v26 = vld [vmem:[#allocation264_spill] sm:$0xff] }
 0x552   : > { %15051 = vmatpush1.bf16.msra.mxu1 %v25332_v13  ;;  %14930 = vmatprep.subr.bf16.mxu0 %v24699_v29  ;;  %v25338_v13 = vld [vmem:[#allocation254_spill] sm:$0xff] }
 0x553   : > { %15053 = vmatprep.subr.bf16.mxu1 %v25333_v46  ;;  %v25340_v46 = vld [vmem:[#allocation174_spill] sm:$0xff] }
 0x555   : > { %6834 = vmatmul.mubr.f32.vlgmr.msra.gmra.mrb[40].mxu1 %v18227_v20  ;;  %14932 = vmatpush1.bf16.msra.mxu0 %v25334_v62  ;;  %v25341_v62 = vld [vmem:[#allocation258_spill] sm:$0xff] }
 0x556   : > { %15055 = vmatpush3.bf16.msra.mxu1 %v25335_v17  ;;  %6904 = vmatprep.mubr.f32.mxu1 %v17959_v42  ;;  %v25339_v42 = vld [vmem:[#allocation256_spill] sm:$0xff] }
 0x557   : > { %14933 = vmatprep.subr.bf16.mxu0 %v24699_v29  ;;  %15057 = vmatprep.subr.bf16.mxu1 %v25336_v61  ;;  %v25342_v17 = vld [vmem:[#allocation260_spill] sm:$0xff]  ;;  %v25343_v61 = vld [vmem:[#allocation177_spill] sm:$0xff] }
 0x558   : > { %v22077_v19 = vpop.f32.mrb[32].mxu1 }
 0x559   : > { %v22081_v0 = vpop.f32.mrb[33].mxu1  ;;  %14935 = vmatpush1.bf16.msra.mxu0 %v25337_v16  ;;  %v25344_v16 = vld [vmem:[#allocation262_spill] sm:$0xff] }
 0x55a   : > { %15059 = vmatpush3.bf16.msra.mxu1 %v25338_v13  ;;  %14936 = vmatprep.subr.bf16.mxu0 %v24699_v29  ;;  %v25346_v13 = vld [vmem:[#allocation180_spill] sm:$0xff] }
 0x55b   : > { %15061 = vmatprep.subr.bf16.mxu1 %v25339_v42  ;;  %v25348_v42 = vld [vmem:[#allocation268_spill] sm:$0xff] }
 0x55d   : > { %14938 = vmatpush1.bf16.msra.mxu0 %v25340_v46  ;;  %v25349_v46 = vld [vmem:[#allocation183_spill] sm:$0xff] }
 0x55e   : > { %15063 = vmatpush3.bf16.msra.mxu1 %v25341_v62  ;;  %14939 = vmatprep.subr.bf16.mxu0 %v24699_v29  ;;  %v25350_v62 = vld [vmem:[#allocation270_spill] sm:$0xff] }
 0x55f   : > { %15065 = vmatprep.subr.bf16.mxu1 %v25342_v17  ;;  %v25351_v17 = vld [vmem:[#allocation280_spill] sm:$0xff] }
 0x561   : > { %14941 = vmatpush1.bf16.msra.mxu0 %v25343_v61  ;;  %v25352_v61 = vld [vmem:[#allocation272_spill] sm:$0xff] }
 0x562   : > { %15067 = vmatpush3.bf16.msra.mxu1 %v25344_v16  ;;  %14942 = vmatprep.subr.bf16.mxu0 %v24699_v29  ;;  %v25353_v16 = vld [vmem:[#allocation282_spill] sm:$0xff] }
 0x563   : > { %15069 = vmatprep.subr.bf16.mxu1 %v25345_v26  ;;  %v25354_v26 = vld [vmem:[#allocation274_spill] sm:$0xff] }
 0x565   : > { %14944 = vmatpush1.bf16.msra.mxu0 %v25346_v13  ;;  %v25356_v13 = vld [vmem:[#allocation276_spill] sm:$0xff] }
 0x566   : > { %15071 = vmatpush3.bf16.msra.mxu1 %v25347_v53  ;;  %14945 = vmatprep.subr.bf16.mxu0 %v24699_v29  ;;  %v25355_v53 = vld [vmem:[#allocation284_spill] sm:$0xff] }
 0x567   : > { %15073 = vmatprep.subr.bf16.mxu1 %v25348_v42  ;;  %v25357_v42 = vld [vmem:[#allocation286_spill] sm:$0xff] }
 0x569   : > { %14947 = vmatpush1.bf16.msra.mxu0 %v25349_v46  ;;  %v25358_v46 = vld [vmem:[#allocation278_spill] sm:$0xff] }
 0x56a   : > { %15075 = vmatpush3.bf16.msra.mxu1 %v25350_v62  ;;  %15219 = vmatprep.subr.bf16.mxu0 %v25351_v17  ;;  %v25359_v62 = vld [vmem:[#allocation288_spill] sm:$0xff]  ;;  %v25360_v17 = vld [vmem:[#allocation289_spill] sm:$0xff] }
 0x56b   : > { %15077 = vmatprep.subr.bf16.mxu1 %v25352_v61  ;;  %v25361_v61 = vld [vmem:[#allocation290_spill] sm:$0xff] }
 0x56c   : > { %6687 = vmatmul.mubr.f32.vlgmr.msra.gmra.mrb[40].mxu0 %v25321_v43 }
 0x56d   : > { %15221 = vmatpush3.bf16.msra.mxu0 %v25353_v16  ;;  %7186 = vmatprep.mubr.f32.mxu0 %v17824_v51  ;;  %v25362_v16 = vld [vmem:[#allocation292_spill] sm:$0xff] }
 0x56e   : > { %15079 = vmatpush3.bf16.msra.mxu1 %v25354_v26  ;;  %15223 = vmatprep.subr.bf16.mxu0 %v25355_v53  ;;  %v25363_v26 = vld [vmem:[#allocation293_spill] sm:$0xff]  ;;  %v25364_v53 = vld [vmem:[#allocation294_spill] sm:$0xff] }
 0x56f   : > { %15081 = vmatprep.subr.bf16.mxu1 %v25356_v13  ;;  %v25365_v13 = vld [vmem:[#allocation295_spill] sm:$0xff] }
 0x571   : > { %15225 = vmatpush3.bf16.msra.mxu0 %v25357_v42  ;;  %v25367_v42 = vld [vmem:[#allocation297_spill] sm:$0xff] }
 0x572   : > { %15083 = vmatpush3.bf16.msra.mxu1 %v25358_v46  ;;  %15227 = vmatprep.subr.bf16.mxu0 %v25359_v62  ;;  %v25368_v46 = vld [vmem:[#allocation298_spill] sm:$0xff] }
 0x573   : > { %15084 = vmatprep.subr.bf16.mxu1 %v24699_v29 }
 0x575   : > { %6905 = vmatmul.mubr.f32.vlgmr.msra.gmra.mrb[42].mxu1 %v17935_v48  ;;  %15229 = vmatpush3.bf16.msra.mxu0 %v25360_v17  ;;  %v25366_v48 = vld [vmem:[#allocation296_spill] sm:$0xff] }
 0x576   : > { %15086 = vmatpush1.bf16.msra.mxu1 %v25361_v61  ;;  %11648 = vmatprep.mubr.msk.f32.mxu1 %vm3504_vm7, %v25002_v14  ;;  %v25369_v61 = vld [vmem:[#allocation299_spill] sm:$0xff] }
 0x577   : > { %15087 = vmatprep.subr.bf16.mxu1 %v24699_v29  ;;  %15231 = vmatprep.subr.bf16.mxu0 %v25362_v16  ;;  %v25370_v16 = vld [vmem:[#allocation300_spill] sm:$0xff] }
 0x579   : > { %15233 = vmatpush3.bf16.msra.mxu0 %v25363_v26  ;;  %v25371_v26 = vld [vmem:[#allocation301_spill] sm:$0xff] }
 0x57a   : > { %15089 = vmatpush1.bf16.msra.mxu1 %v25364_v53  ;;  %15235 = vmatprep.subr.bf16.mxu0 %v25365_v13  ;;  %v25372_v13 = vld [vmem:[#allocation302_spill] sm:$0xff] }
 0x57b   : > { %15090 = vmatprep.subr.bf16.mxu1 %v24699_v29 }
 0x57d   : > { %15237 = vmatpush3.bf16.msra.mxu0 %v25366_v48  ;;  %v25373_v48 = vld [vmem:[#allocation303_spill] sm:$0xff] }
 0x57e   : > { %15092 = vmatpush1.bf16.msra.mxu1 %v25367_v42  ;;  %15239 = vmatprep.subr.bf16.mxu0 %v25368_v46  ;;  %v25374_v42 = vld [vmem:[#allocation304_spill] sm:$0xff]  ;;  %v25376_v46 = vld [vmem:[#allocation306_spill] sm:$0xff] }
 0x57f   : > { %15093 = vmatprep.subr.bf16.mxu1 %v24699_v29 }
 0x580   : > { %v5833_v14 = vpop.f32.mrb[34].mxu1 }
 0x581   : > { %v22131_v62 = vadd.f32 %v21703_v37, %v5833_v14  ;;  %v5835_v17 = vpop.f32.mrb[35].mxu1  ;;  %15241 = vmatpush3.bf16.msra.mxu0 %v25369_v61  ;;  %v25375_v37 = vld [vmem:[#allocation305_spill] sm:$0xff]  ;;  %v25377_v14 = vld [vmem:[#allocation307_spill] sm:$0xff] }
 0x582   : > { %15095 = vmatpush1.bf16.msra.mxu1 %v25370_v16  ;;  %15243 = vmatprep.subr.bf16.mxu0 %v25371_v26  ;;  %v25378_v17 = vld [vmem:[#allocation308_spill] sm:$0xff]  ;;  %v25379_v61 = vld [vmem:[#allocation309_spill] sm:$0xff]  ;;  %v25380_v16 = vld [vmem:[#allocation310_spill] sm:$0xff] }
 0x583   : > { %v5842_v53 = vmax.f32 %v20939_v5, %v22131_v62  ;;  %15096 = vmatprep.subr.bf16.mxu1 %v24699_v29  ;;  %v25381_v26 = vld [vmem:[#allocation311_spill] sm:$0xff]  ;;  %v25445_v5 = vld [vmem:[#allocation32_spill] sm:$0xff] }
 0x584   : > { %v25446_v62 = vld [vmem:[#allocation35_spill] sm:$0xff] }
 0x585   : > { %15245 = vmatpush3.bf16.msra.mxu0 %v25372_v13  ;;  %v25382_v13 = vld [vmem:[#allocation312_spill] sm:$0xff] }
 0x586   : > { %15098 = vmatpush1.bf16.msra.mxu1 %v25373_v48  ;;  %15247 = vmatprep.subr.bf16.mxu0 %v25374_v42  ;;  %v25383_v48 = vld [vmem:[#allocation313_spill] sm:$0xff]  ;;  %v25384_v42 = vld [vmem:[#allocation314_spill] sm:$0xff] }
 0x587   : > { %15099 = vmatprep.subr.bf16.mxu1 %v24699_v29 }
 0x589   : > { %15249 = vmatpush3.bf16.msra.mxu0 %v25375_v37  ;;  %v25385_v37 = vld [vmem:[#allocation315_spill] sm:$0xff] }
 0x58a   : > { %15101 = vmatpush1.bf16.msra.mxu1 %v25376_v46  ;;  %15385 = vmatprep.subr.bf16.mxu0 %v25377_v14  ;;  %v25386_v46 = vld [vmem:[#allocation316_spill] sm:$0xff]  ;;  %v25387_v14 = vld [vmem:[#allocation317_spill] sm:$0xff] }
 0x58b   : > { %15102 = vmatprep.subr.bf16.mxu1 %v24699_v29 }
 0x58c   : > { %7187 = vmatmul.mubr.f32.vlgmr.msra.gmra.mrb[42].mxu0 %v17815_v45 }
 0x58d   : > { %15387 = vmatpush3.bf16.msra.mxu0 %v25378_v17  ;;  %7468 = vmatprep.mubr.f32.mxu0 %v20248_v38  ;;  %v25388_v17 = vld [vmem:[#allocation318_spill] sm:$0xff] }
 0x58e   : > { %15104 = vmatpush1.bf16.msra.mxu1 %v25379_v61  ;;  %15389 = vmatprep.subr.bf16.mxu0 %v25380_v16  ;;  %v25389_v61 = vld [vmem:[#allocation319_spill] sm:$0xff]  ;;  %v25390_v16 = vld [vmem:[#allocation320_spill] sm:$0xff] }
 0x58f   : > { %15105 = vmatprep.subr.bf16.mxu1 %v24699_v29 }
 0x591   : > { %15391 = vmatpush3.bf16.msra.mxu0 %v25381_v26  ;;  %v25391_v26 = vld [vmem:[#allocation321_spill] sm:$0xff] }
 0x592   : > { %15107 = vmatpush1.bf16.msra.mxu1 %v25382_v13  ;;  %15393 = vmatprep.subr.bf16.mxu0 %v25383_v48  ;;  %v25392_v13 = vld [vmem:[#allocation322_spill] sm:$0xff]  ;;  %v25393_v48 = vld [vmem:[#allocation323_spill] sm:$0xff] }
 0x593   : > { %15108 = vmatprep.subr.bf16.mxu1 %v24699_v29 }
 0x595   : > { %15395 = vmatpush3.bf16.msra.mxu0 %v25384_v42 }
 0x596   : > { %15110 = vmatpush1.bf16.msra.mxu1 %v25385_v37  ;;  %15397 = vmatprep.subr.bf16.mxu0 %v25386_v46 }
 0x597   : > { %15111 = vmatprep.subr.bf16.mxu1 %v24699_v29 }
 0x599   : > { %15399 = vmatpush3.bf16.msra.mxu0 %v25387_v14  ;;  %v25395_v14 = vld [vmem:[#allocation325_spill] sm:$0xff] }
 0x59a   : > { %15113 = vmatpush1.bf16.msra.mxu1 %v25388_v17  ;;  %15401 = vmatprep.subr.bf16.mxu0 %v25389_v61  ;;  %v25430_v17 = vld [vmem:[#allocation14_spill] sm:$0xff]  ;;  %v25431_v61 = vld [vmem:[#allocation15_spill] sm:$0xff] }
 0x59b   : > { %15115 = vmatprep.subr.bf16.mxu1 %v25390_v16  ;;  %v25432_v16 = vld [vmem:[#allocation16_spill] sm:$0xff] }
 0x59d   : > { %6975 = vmatmul.mubr.f32.vlgmr.msra.gmra.mrb[44].mxu1 %v18227_v20  ;;  %15403 = vmatpush3.bf16.msra.mxu0 %v20525_v7  ;;  %v25394_v20 = vld [vmem:[#allocation324_spill] sm:$0xff] }
 0x59e   : > { %15117 = vmatpush1.bf16.msra.mxu1 %v25391_v26  ;;  %7044 = vmatprep.mubr.f32.mxu1 %v17824_v51  ;;  %v25396_v51 = vmov 0.0   ;;  %v25433_v26 = vld [vmem:[#allocation17_spill] sm:$0xff] }
 0x59f   : > { %15119 = vmatprep.subr.bf16.mxu1 %v25392_v13  ;;  %15405 = vmatprep.subr.bf16.mxu0 %v25393_v48  ;;  %v25434_v13 = vld [vmem:[#allocation18_spill] sm:$0xff]  ;;  %v25435_v48 = vld [vmem:[#allocation19_spill] sm:$0xff] }
 0x5a0   : > { %v12169_v42 = vpop.f32.mrb[36].mxu1 }
 0x5a1   : > { %v12170_v37 = vpop.f32.mrb[37].mxu1  ;;  %15407 = vmatpush3.bf16.msra.mxu0 %v20562_v4  ;;  %v25397_v4 = vld [vmem:[#allocation326_spill] sm:$0xff] }
 0x5a2   : > { %v12171_v46 = vadd.f32 %v12170_v37, %v12169_v42  ;;  %15121 = vmatpush1.bf16.msra.mxu1 %v20566_v39  ;;  %15409 = vmatprep.subr.bf16.mxu0 %v20568_v18  ;;  %v25398_v39 = vld [vmem:[#allocation327_spill] sm:$0xff]  ;;  %v25400_v18 = vld [vmem:[#allocation329_spill] sm:$0xff]  ;;  %v25436_v42 = vld [vmem:[#allocation20_spill] sm:$0xff] }
 0x5a3   : > { %15123 = vmatprep.subr.bf16.mxu1 %v25394_v20  ;;  %v25437_v37 = vld [vmem:[#allocation21_spill] sm:$0xff] }
 0x5a4   : > { %v16112_v7 = vadd.f32 %v12171_v46, %v21968_v58  ;;  %v25426_v58 = vld [vmem:[#allocation54_spill] sm:$0xff] }
 0x5a5   : > { %15411 = vmatpush3.bf16.msra.mxu0 %v25395_v14  ;;  %v25439_v14 = vld [vmem:[#allocation23_spill] sm:$0xff] }
 0x5a6   : > { %15125 = vmatpush1.bf16.msra.mxu1 %v20603_v12  ;;  %15413 = vmatprep.subr.bf16.mxu0 %v20605_v55  ;;  %v25399_v55 = vld [vmem:[#allocation328_spill] sm:$0xff] }
 0x5a7   : > { %15127 = vmatprep.subr.bf16.mxu1 %v20614_v52 }
 0x5a9   : > { %15415 = vmatpush3.bf16.msra.mxu0 %v20629_v34 }
 0x5aa   : > { %15129 = vmatpush1.bf16.msra.mxu1 %v20633_v23 }
 0x5ab   : > { %15131 = vmatprep.subr.bf16.mxu1 %v20636_v32  ;;  %v25401_v32 = vld [vmem:[#allocation330_spill] sm:$0xff] }
 0x5ac   : > { %7469 = vmatmul.mubr.f32.vlgmr.msra.gmra.mrb[44].mxu0 %v25232_v59 }
 0x5ad   : > { %7651 = vmatprep.mubr.f32.mxu0 %v25396_v51 }
 0x5ae   : > { %15133 = vmatpush1.bf16.msra.mxu1 %v25397_v4  ;;  %v25440_v4 = vld [vmem:[#allocation24_spill] sm:$0xff] }
 0x5af   : > { %15135 = vmatprep.subr.bf16.mxu1 %v20656_v50  ;;  %v25402_v50 = vld [vmem:[#allocation331_spill] sm:$0xff] }
 0x5b2   : > { %15137 = vmatpush1.bf16.msra.mxu1 %v20675_v27  ;;  %v25403_v27 = vld [vmem:[#allocation332_spill] sm:$0xff] }
 0x5b3   : > { %15139 = vmatprep.subr.bf16.mxu1 %v25398_v39  ;;  %v25441_v39 = vld [vmem:[#allocation25_spill] sm:$0xff] }
 0x5b6   : > { %15141 = vmatpush1.bf16.msra.mxu1 %v25399_v55 }
 0x5b7   : > { %15143 = vmatprep.subr.bf16.mxu1 %v25400_v18 }
 0x5ba   : > { %15145 = vmatpush1.bf16.msra.mxu1 %v20715_v54  ;;  %v25405_v54 = vld [vmem:[#allocation334_spill] sm:$0xff] }
 0x5bb   : > { %15147 = vmatprep.subr.bf16.mxu1 %v20718_v25  ;;  %v25406_v25 = vld [vmem:[#allocation72_spill] sm:$0xff] }
 0x5be   : > { %15149 = vmatpush1.bf16.msra.mxu1 %v20735_v56  ;;  %v25407_v56 = vld [vmem:[#allocation30_spill] sm:$0xff] }
 0x5bf   : > { %15151 = vmatprep.subr.bf16.mxu1 %v20738_v60  ;;  %v25408_v60 = vld [vmem:[#allocation31_spill] sm:$0xff] }
 0x5c0   : > { %v12204_v12 = vpop.f32.mrb[38].mxu1 }
 0x5c1   : > { %v12205_v52 = vpop.f32.mrb[39].mxu1 }
 0x5c2   : > { %v12206_v34 = vadd.f32 %v12205_v52, %v12204_v12  ;;  %15153 = vmatpush1.bf16.msra.mxu1 %v20758_v6  ;;  %v25409_v6 = vld [vmem:[#allocation33_spill] sm:$0xff]  ;;  %v25442_v52 = vld [vmem:[#allocation26_spill] sm:$0xff] }
 0x5c3   : > { %15155 = vmatprep.subr.bf16.mxu1 %v20761_v10  ;;  %v25410_v10 = vld [vmem:[#allocation34_spill] sm:$0xff] }
 0x5c4   : > { %v22197_v23 = vadd.f32 %v16112_v7, %v12206_v34  ;;  %v25438_v7 = vld [vmem:[#allocation22_spill] sm:$0xff]  ;;  %v25443_v34 = vld [vmem:[#allocation27_spill] sm:$0xff] }
 0x5c6   : > { %15157 = vmatpush1.bf16.msra.mxu1 %v20778_v8  ;;  %v25411_v8 = vld [vmem:[#allocation36_spill] sm:$0xff] }
 0x5c7   : > { %15159 = vmatprep.subr.bf16.mxu1 %v20781_v33  ;;  %v25412_v33 = vld [vmem:[#allocation37_spill] sm:$0xff] }
 0x5ca   : > { %15161 = vmatpush1.bf16.msra.mxu1 %v20798_v1  ;;  %v25413_v1 = vld [vmem:[#allocation39_spill] sm:$0xff] }
 0x5cb   : > { %15163 = vmatprep.subr.bf16.mxu1 %v20801_v31  ;;  %v25414_v31 = vld [vmem:[#allocation40_spill] sm:$0xff] }
 0x5ce   : > { %15165 = vmatpush1.bf16.msra.mxu1 %v20818_v24  ;;  %v25415_v24 = vld [vmem:[#allocation42_spill] sm:$0xff] }
 0x5cf   : > { %15167 = vmatprep.subr.bf16.mxu1 %v20821_v3  ;;  %v25416_v3 = vld [vmem:[#allocation43_spill] sm:$0xff] }
 0x5d2   : > { %15169 = vmatpush1.bf16.msra.mxu1 %v20838_v22  ;;  %v25417_v22 = vld [vmem:[#allocation45_spill] sm:$0xff] }
 0x5d3   : > { %15171 = vmatprep.subr.bf16.mxu1 %v20841_v15  ;;  %v25418_v15 = vld [vmem:[#allocation28_spill] sm:$0xff] }
 0x5d6   : > { %15173 = vmatpush1.bf16.msra.mxu1 %v20858_v63  ;;  %v25419_v63 = vld [vmem:[#allocation46_spill] sm:$0xff] }
 0x5d7   : > { %15175 = vmatprep.subr.bf16.mxu1 %v20861_v2 }
 0x5da   : > { %15177 = vmatpush1.bf16.msra.mxu1 %v20878_v11 }
 0x5db   : > { %15179 = vmatprep.subr.bf16.mxu1 %v20881_v41 }
 0x5dd   : > { %7045 = vmatmul.mubr.f32.vlgmr.msra.gmra.mrb[40].mxu1 %v17815_v45  ;;  %v25404_v45 = vld [vmem:[#allocation333_spill] sm:$0xff] }
 0x5de   : > { %15181 = vmatpush1.bf16.msra.mxu1 %v20898_v57  ;;  %11649 = vmatprep.mubr.msk.f32.mxu1 %vm3504_vm7, %v17791_v35  ;;  %v25421_v57 = vmax.f32 %v21193_v36, %v22081_v0  ;;  %v25427_v36 = vld [vmem:[#allocation55_spill] sm:$0xff]  ;;  %v25429_v0 = vld [vmem:[#allocation13_spill] sm:$0xff] }
 0x5df   : > { %15183 = vmatprep.subr.bf16.mxu1 %v20901_v40 }
 0x5e2   : > { %15185 = vmatpush1.bf16.msra.mxu1 %v20920_v9  ;;  %v25422_v9 = vld [vmem:[#allocation48_spill] sm:$0xff] }
 0x5e3   : > { %15187 = vmatprep.subr.bf16.mxu1 %v20924_v44  ;;  %v25423_v44 = vld [vmem:[#allocation49_spill] sm:$0xff] }
 0x5e6   : > { %15189 = vmatpush1.bf16.msra.mxu1 %v20944_v21  ;;  %v25424_v21 = vld [vmem:[#allocation51_spill] sm:$0xff] }
 0x5e7   : > { %15191 = vmatprep.subr.bf16.mxu1 %v25401_v32  ;;  %v25448_v32 = vld [vmem:[#allocation41_spill] sm:$0xff] }
 0x5ea   : > { %15193 = vmatpush1.bf16.msra.mxu1 %v25402_v50  ;;  %v25449_v50 = vld [vmem:[#allocation44_spill] sm:$0xff] }
 0x5eb   : > { %15195 = vmatprep.subr.bf16.mxu1 %v25403_v27  ;;  %v25450_v27 = vld [vmem:[#allocation47_spill] sm:$0xff] }
 0x5ee   : > { %15197 = vmatpush1.bf16.msra.mxu1 %v25404_v45  ;;  %v25451_v45 = vld [vmem:[#allocation50_spill] sm:$0xff] }
 0x5ef   : > { %15199 = vmatprep.subr.bf16.mxu1 %v25405_v54  ;;  %v25452_v54 = vld [vmem:[#allocation53_spill] sm:$0xff] }
 0x5f2   : > { %15201 = vmatpush1.bf16.msra.mxu1 %v25406_v25 }
 0x5f3   : > { %15203 = vmatprep.subr.bf16.mxu1 %v25407_v56  ;;  %v25453_v56 = vld [vmem:[#allocation56_spill] sm:$0xff] }
 0x5f6   : > { %15205 = vmatpush1.bf16.msra.mxu1 %v25408_v60 }
 0x5f7   : > { %15207 = vmatprep.subr.bf16.mxu1 %v25409_v6 }
 0x5fa   : > { %15209 = vmatpush1.bf16.msra.mxu1 %v25410_v10 }
 0x5fb   : > { %15211 = vmatprep.subr.bf16.mxu1 %v25411_v8  ;;  %v25454_v8 = vld [vmem:[#allocation57_spill] sm:$0xff] }
 0x5fe   : > { %15213 = vmatpush1.bf16.msra.mxu1 %v25412_v33  ;;  %v25455_v33 = vld [vmem:[#allocation59_spill] sm:$0xff] }
 0x5ff   : > { %15215 = vmatprep.subr.bf16.mxu1 %v25413_v1  ;;  %v25456_v1 = vld [vmem:[#allocation61_spill] sm:$0xff] }
 0x602   : > { %15217 = vmatpush1.bf16.msra.mxu1 %v25414_v31  ;;  %v25457_v31 = vld [vmem:[#allocation63_spill] sm:$0xff] }
 0x603   : > { %15250 = vmatprep.subr.bf16.mxu1 %v24699_v29 }
 0x605   : > { %7116 = vmatmul.mubr.f32.vlgmr.msra.gmra.mrb[40].mxu1 %v17789_v28 }
 0x606   : > { %15252 = vmatpush1.bf16.msra.mxu1 %v25415_v24  ;;  %11650 = vmatprep.mubr.msk.f32.mxu1 %vm3504_vm7, %v17791_v35  ;;  %v25420_v35 = vmax.f32 %v21184_v47, %v22077_v19  ;;  %v25425_v47 = vld [vmem:[#allocation52_spill] sm:$0xff]  ;;  %v25458_v24 = vld [vmem:[#allocation65_spill] sm:$0xff] }
 0x607   : > { %15253 = vmatprep.subr.bf16.mxu1 %v24699_v29  ;;  %v25428_v19 = vld [vmem:[#allocation12_spill] sm:$0xff] }
 0x60a   : > { %15255 = vmatpush1.bf16.msra.mxu1 %v25416_v3  ;;  %v25459_v3 = vld [vmem:[#allocation67_spill] sm:$0xff] }
 0x60b   : > { %15256 = vmatprep.subr.bf16.mxu1 %v24699_v29 }
 0x60e   : > { %15258 = vmatpush1.bf16.msra.mxu1 %v25417_v22  ;;  %v25460_v22 = vld [vmem:[#allocation69_spill] sm:$0xff] }
 0x60f   : > { %15259 = vmatprep.subr.bf16.mxu1 %v24699_v29 }
 0x612   : > { %15261 = vmatpush1.bf16.msra.mxu1 %v25418_v15  ;;  %v25462_v15 = vld [vmem:[#allocation74_spill] sm:$0xff] }
 0x613   : > { %15262 = vmatprep.subr.bf16.mxu1 %v24699_v29 }
 0x616   : > { %15264 = vmatpush1.bf16.msra.mxu1 %v25419_v63  ;;  %v25463_v63 = vld [vmem:[#allocation77_spill] sm:$0xff] }
 0x617   : > { %v6547_v2 = vpop.f32.mrb[36].mxu0  ;;  %15265 = vmatprep.subr.bf16.mxu1 %v24699_v29 }
 0x618   : > { %v22250_v11 = vmax.f32 %v25420_v35, %v6547_v2  ;;  %v6549_v41 = vpop.f32.mrb[37].mxu0  ;;  %v25464_v2 = vld [vmem:[#allocation80_spill] sm:$0xff]  ;;  %v25465_v35 = vld [vmem:[#allocation82_spill] sm:$0xff] }
 0x619   : > { %v22255_v40 = vmax.f32 %v25421_v57, %v6549_v41  ;;  %v25466_v41 = vld [vmem:[#allocation84_spill] sm:$0xff] }
 0x61a   : > { %15267 = vmatpush1.bf16.msra.mxu1 %v25422_v9  ;;  %v25468_v9 = vld [vmem:[#allocation88_spill] sm:$0xff] }
 0x61b   : > { %15268 = vmatprep.subr.bf16.mxu1 %v24699_v29 }
 0x61e   : > { %15270 = vmatpush1.bf16.msra.mxu1 %v25423_v44 }
 0x61f   : > { %15271 = vmatprep.subr.bf16.mxu1 %v24699_v29 }
 0x622   : > { %15273 = vmatpush1.bf16.msra.mxu1 %v25424_v21 }
 0x623   : > { %15274 = vmatprep.subr.bf16.mxu1 %v24699_v29 }
 0x626   : > { %15276 = vmatpush1.bf16.msra.mxu1 %v25425_v47  ;;  %v25469_v47 = vld [vmem:[#allocation90_spill] sm:$0xff] }
 0x627   : > { %15277 = vmatprep.subr.bf16.mxu1 %v24699_v29 }
 0x62a   : > { %15279 = vmatpush1.bf16.msra.mxu1 %v25426_v58  ;;  %v25470_v58 = vld [vmem:[#allocation92_spill] sm:$0xff] }
 0x62b   : > { %15281 = vmatprep.subr.bf16.mxu1 %v25427_v36 }
 0x62d   : > { %7257 = vmatmul.mubr.f32.vlgmr.msra.gmra.mrb[44].mxu1 %v17789_v28 }
 0x62e   : > { %15283 = vmatpush1.bf16.msra.mxu1 %v25428_v19  ;;  %7326 = vmatprep.mubr.f32.mxu1 %v20248_v38  ;;  %v25471_v19 = vld [vmem:[#allocation93_spill] sm:$0xff] }
 0x62f   : > { %15285 = vmatprep.subr.bf16.mxu1 %v25429_v0  ;;  %v25472_v0 = vld [vmem:[#allocation95_spill] sm:$0xff] }
 0x632   : > { %15287 = vmatpush1.bf16.msra.mxu1 %v25430_v17  ;;  %v25473_v17 = vld [vmem:[#allocation96_spill] sm:$0xff] }
 0x633   : > { %15289 = vmatprep.subr.bf16.mxu1 %v25431_v61  ;;  %v25474_v61 = vld [vmem:[#allocation98_spill] sm:$0xff] }
 0x636   : > { %15291 = vmatpush1.bf16.msra.mxu1 %v25432_v16  ;;  %v25475_v16 = vld [vmem:[#allocation99_spill] sm:$0xff] }
 0x637   : > { %15293 = vmatprep.subr.bf16.mxu1 %v25433_v26  ;;  %v25476_v26 = vld [vmem:[#allocation101_spill] sm:$0xff] }
 0x63a   : > { %15295 = vmatpush1.bf16.msra.mxu1 %v25434_v13  ;;  %v25477_v13 = vld [vmem:[#allocation102_spill] sm:$0xff] }
 0x63b   : > { %15297 = vmatprep.subr.bf16.mxu1 %v25435_v48  ;;  %v25478_v48 = vld [vmem:[#allocation104_spill] sm:$0xff] }
 0x63e   : > { %15299 = vmatpush1.bf16.msra.mxu1 %v25436_v42  ;;  %v25479_v42 = vld [vmem:[#allocation105_spill] sm:$0xff] }
 0x63f   : > { %v6688_v28 = vpop.f32.mrb[40].mxu0  ;;  %15301 = vmatprep.subr.bf16.mxu1 %v25437_v37  ;;  %v25481_v37 = vld [vmem:[#allocation108_spill] sm:$0xff] }
 0x640   : > { %v16114_v38 = vadd.f32 %v22197_v23, %v6688_v28  ;;  %v6690_v46 = vpop.f32.mrb[41].mxu0  ;;  %v25444_v23 = vld [vmem:[#allocation29_spill] sm:$0xff]  ;;  %v25480_v28 = vld [vmem:[#allocation107_spill] sm:$0xff] }
 0x641   : > { %v25483_v46 = vld [vmem:[#allocation111_spill] sm:$0xff] }
 0x642   : > { %v22283_v20 = vmax.f32 %v5842_v53, %v16114_v38  ;;  %15303 = vmatpush1.bf16.msra.mxu1 %v25438_v7  ;;  %v25447_v53 = vld [vmem:[#allocation38_spill] sm:$0xff] }
 0x643   : > { %15305 = vmatprep.subr.bf16.mxu1 %v25439_v14  ;;  %v25482_v38 = vld [vmem:[#allocation110_spill] sm:$0xff]  ;;  %v25486_v14 = vld [vmem:[#allocation116_spill] sm:$0xff] }
 0x644   : > { %v25485_v7 = vld [vmem:[#allocation114_spill] sm:$0xff] }
 0x646   : > { %15307 = vmatpush1.bf16.msra.mxu1 %v25440_v4  ;;  %v25487_v4 = vld [vmem:[#allocation117_spill] sm:$0xff] }
 0x647   : > { %15309 = vmatprep.subr.bf16.mxu1 %v25441_v39  ;;  %v11857_v39 = vld [vmem:[%s24214_s7 + $0x6c0] sm:$0xff] }
 0x648   : > { %v12239_v55 = vpop.f32.mrb[42].mxu1 }
 0x649   : > { %v12240_v18 = vpop.f32.mrb[43].mxu1 }
 0x64a   : > { %v12241_v12 = vadd.f32 %v12240_v18, %v12239_v55  ;;  %15311 = vmatpush1.bf16.msra.mxu1 %v25442_v52  ;;  %v11858_v55 = vld [vmem:[%s24214_s7 + $0x6c8] sm:$0xff] }
 0x64b   : > { %15313 = vmatprep.subr.bf16.mxu1 %v25443_v34  ;;  %v22361_v18 = vpack.c.bf16 %v11858_v55, %v11857_v39  ;;  %v11859_v34 = vld [vmem:[%s24214_s7 + $0x6d0] sm:$0xff] }
 0x64d   : > { %25488 = vst [vmem:[#allocation119_spill] sm:$0xff] %v22361_v18 }
 0x64e   : > { %15315 = vmatpush1.bf16.msra.mxu1 %v25444_v23  ;;  %v11860_v23 = vld [vmem:[%s24214_s7 + $0x6d8] sm:$0xff] }
 0x64f   : > { %15317 = vmatprep.subr.bf16.mxu1 %v25445_v5  ;;  %v22378_v5 = vpack.c.bf16 %v11860_v23, %v11859_v34  ;;  %v11696_v34 = vld [vmem:[%s24214_s7 + $0x1e0] sm:$0xff]  ;;  %v11697_v23 = vld [vmem:[%s24214_s7 + $0x1e8] sm:$0xff] }
 0x651   : > { %25490 = vst [vmem:[#allocation122_spill] sm:$0xff] %v22378_v5 }
 0x652   : > { %15319 = vmatpush1.bf16.msra.mxu1 %v25446_v62  ;;  %v11843_v62 = vld [vmem:[%s24214_s7 + $0x650] sm:$0xff] }
 0x653   : > { %15321 = vmatprep.subr.bf16.mxu1 %v25447_v53  ;;  %v11844_v53 = vld [vmem:[%s24214_s7 + $0x658] sm:$0xff] }
 0x656   : > { %15323 = vmatpush1.bf16.msra.mxu1 %v25448_v32  ;;  %v22388_v32 = vpack.c.bf16 %v11844_v53, %v11843_v62  ;;  %v22543_v53 = vpack.c.bf16 %v11697_v23, %v11696_v34  ;;  %v11853_v34 = vld [vmem:[%s24214_s7 + $0x6a0] sm:$0xff]  ;;  %v11854_v23 = vld [vmem:[%s24214_s7 + $0x6a8] sm:$0xff] }
 0x657   : > { %15325 = vmatprep.subr.bf16.mxu1 %v25449_v50  ;;  %v11861_v50 = vld [vmem:[%s24214_s7 + $0x6e0] sm:$0xff] }
 0x658   : > { %25491 = vst [vmem:[#allocation124_spill] sm:$0xff] %v22388_v32 }
 0x65a   : > { %15327 = vmatpush1.bf16.msra.mxu1 %v25450_v27  ;;  %v11862_v27 = vld [vmem:[%s24214_s7 + $0x6e8] sm:$0xff] }
 0x65b   : > { %15329 = vmatprep.subr.bf16.mxu1 %v25451_v45  ;;  %v22396_v45 = vpack.c.bf16 %v11862_v27, %v11861_v50  ;;  %v11680_v50 = vld [vmem:[%s24214_s7 + $0x160] sm:$0xff]  ;;  %v11681_v27 = vld [vmem:[%s24214_s7 + $0x168] sm:$0xff] }
 0x65d   : > { %25492 = vst [vmem:[#allocation126_spill] sm:$0xff] %v22396_v45 }
 0x65e   : > { %15331 = vmatpush1.bf16.msra.mxu1 %v25452_v54  ;;  %v11845_v54 = vld [vmem:[%s24214_s7 + $0x660] sm:$0xff] }
 0x65f   : > { %v12274_v25 = vpop.f32.mrb[42].mxu0  ;;  %15333 = vmatprep.subr.bf16.mxu1 %v25453_v56 }
 0x660   : > { %v12275_v60 = vpop.f32.mrb[43].mxu0 }
 0x661   : > { %v12276_v6 = vadd.f32 %v12275_v60, %v12274_v25  ;;  %v11846_v25 = vld [vmem:[%s24214_s7 + $0x668] sm:$0xff]  ;;  %v11863_v60 = vld [vmem:[%s24214_s7 + $0x6f0] sm:$0xff] }
 0x662   : > { %15335 = vmatpush1.bf16.msra.mxu1 %v21505_v49  ;;  %v25461_v49 = vld [vmem:[#allocation71_spill] sm:$0xff]  ;;  %v22406_v56 = vpack.c.bf16 %v11846_v25, %v11845_v54  ;;  %v11698_v54 = vld [vmem:[%s24214_s7 + $0x1f0] sm:$0xff] }
 0x663   : > { %v16115_v10 = vadd.f32 %v12276_v6, %v12241_v12  ;;  %15337 = vmatprep.subr.bf16.mxu1 %v25454_v8  ;;  %v11841_v12 = vld [vmem:[%s24214_s7 + $0x640] sm:$0xff]  ;;  %v11864_v6 = vld [vmem:[%s24214_s7 + $0x6f8] sm:$0xff]  ;;  %v11847_v8 = vld [vmem:[%s24214_s7 + $0x670] sm:$0xff] }
 0x664   : > { %25493 = vst [vmem:[#allocation128_spill] sm:$0xff] %v22406_v56  ;;  %v11699_v25 = vld [vmem:[%s24214_s7 + $0x1f8] sm:$0xff] }
 0x666   : > { %15339 = vmatpush1.bf16.msra.mxu1 %v25455_v33  ;;  %v11848_v33 = vld [vmem:[%s24214_s7 + $0x678] sm:$0xff] }
 0x667   : > { %15341 = vmatprep.subr.bf16.mxu1 %v25456_v1  ;;  %v22424_v1 = vpack.c.bf16 %v11848_v33, %v11847_v8  ;;  %v11682_v8 = vld [vmem:[%s24214_s7 + $0x170] sm:$0xff]  ;;  %v11683_v33 = vld [vmem:[%s24214_s7 + $0x178] sm:$0xff] }
 0x669   : > { %25495 = vst [vmem:[#allocation132_spill] sm:$0xff] %v22424_v1 }
 0x66a   : > { %15343 = vmatpush1.bf16.msra.mxu1 %v25457_v31  ;;  %v11865_v31 = vld [vmem:[%s24214_s7 + $0x700] sm:$0xff] }
 0x66b   : > { %15345 = vmatprep.subr.bf16.mxu1 %v25458_v24  ;;  %v11866_v24 = vld [vmem:[%s24214_s7 + $0x708] sm:$0xff] }
 0x66d   : > { %7327 = vmatmul.mubr.f32.vlgmr.msra.gmra.mrb[40].mxu1 %v25232_v59  ;;  %v25467_v59 = vld [vmem:[#allocation86_spill] sm:$0xff] }
 0x66e   : > { %15347 = vmatpush1.bf16.msra.mxu1 %v25459_v3  ;;  %11651 = vmatprep.mubr.msk.f32.mxu1 %vm3504_vm7, %v25282_v30  ;;  %v22432_v3 = vpack.c.bf16 %v11866_v24, %v11865_v31  ;;  %v11700_v31 = vld [vmem:[%s24214_s7 + $0x200] sm:$0xff]  ;;  %v11701_v24 = vld [vmem:[%s24214_s7 + $0x208] sm:$0xff] }
 0x66f   : > { %15349 = vmatprep.subr.bf16.mxu1 %v25460_v22  ;;  %v11849_v22 = vld [vmem:[%s24214_s7 + $0x680] sm:$0xff] }
 0x670   : > { %25496 = vst [vmem:[#allocation134_spill] sm:$0xff] %v22432_v3 }
 0x672   : > { %15351 = vmatpush1.bf16.msra.mxu1 %v25461_v49  ;;  %v11850_v49 = vld [vmem:[%s24214_s7 + $0x688] sm:$0xff] }
 0x673   : > { %15353 = vmatprep.subr.bf16.mxu1 %v25462_v15  ;;  %v22442_v15 = vpack.c.bf16 %v11850_v49, %v11849_v22  ;;  %v22576_v22 = vpack.c.bf16 %v11683_v33, %v11682_v8  ;;  %v22579_v49 = vpack.c.bf16 %v11701_v24, %v11700_v31  ;;  %v11855_v8 = vld [vmem:[%s24214_s7 + $0x6b0] sm:$0xff]  ;;  %v11856_v33 = vld [vmem:[%s24214_s7 + $0x6b8] sm:$0xff] }
 0x674   : > { %v22698_v31 = vpack.c.bf16 %v11856_v33, %v11855_v8  ;;  %v8166_v8 = vld [vmem:[%s24214_s7] sm:$0xff]  ;;  %v8167_v33 = vld [vmem:[%s24214_s7 + $0x8] sm:$0xff] }
 0x675   : > { %25497 = vst [vmem:[#allocation136_spill] sm:$0xff] %v22442_v15 }
 0x676   : > { %15355 = vmatpush1.bf16.msra.mxu1 %v25463_v63  ;;  %v7550_v63 = vld [vmem:[%s24212_s5] sm:$0x7]  ;;  %25506 = vst [vmem:[#allocation58_spill] sm:$0xff] %v22698_v31 }
 0x677   : > { %15357 = vmatprep.subr.bf16.mxu1 %v25464_v2  ;;  %v25498_v2 = vld [vmem:[#allocation10_spill] sm:$0xff] }
 0x67a   : > { %15359 = vmatpush1.bf16.msra.mxu1 %v25465_v35  ;;  %v7555_v35 = vrot.slane %v7550_v63, %v25498_v2  ;;  %v8201_v2 = vld [vmem:[%s24214_s7 + $0x118] sm:$0xff] }
 0x67b   : > { %15361 = vmatprep.subr.bf16.mxu1 %v25466_v41 }
 0x67e   : > { %15363 = vmatpush1.bf16.msra.mxu1 %v25467_v59  ;;  %v25499_v59 = vld [vmem:[#allocation11_spill] sm:$0xff] }
 0x67f   : > { %v12309_v57 = vpop.f32.mrb[44].mxu0  ;;  %15365 = vmatprep.subr.bf16.mxu1 %v25468_v9 }
 0x680   : > { %v12310_v44 = vpop.f32.mrb[45].mxu0 }
 0x681   : > { %v12311_v21 = vadd.f32 %v12310_v44, %v12309_v57  ;;  %v7559_v57 = vrot.slane %v7550_v63, %v25499_v59  ;;  %v8200_v59 = vld [vmem:[%s24214_s7 + $0x110] sm:$0xff] }
 0x682   : > { %15367 = vmatpush1.bf16.msra.mxu1 %v25469_v47 }
 0x683   : > { %15369 = vmatprep.subr.bf16.mxu1 %v25470_v58  ;;  %v22322_v36 = vadd.f32 %v16115_v10, %v12311_v21  ;;  %v22414_v10 = vpack.c.bf16 %v11864_v6, %v11863_v60  ;;  %v22558_v60 = vpack.c.bf16 %v11681_v27, %v11680_v50  ;;  %v22561_v6 = vpack.c.bf16 %v11699_v25, %v11698_v54  ;;  %v11871_v27 = vld [vmem:[%s24214_s7 + $0x730] sm:$0xff]  ;;  %v11872_v54 = vld [vmem:[%s24214_s7 + $0x738] sm:$0xff] }
 0x684   : > { %v22680_v50 = vpack.c.bf16 %v11854_v23, %v11853_v34  ;;  %v22689_v25 = vpack.c.bf16 %v11872_v54, %v11871_v27  ;;  %v8183_v34 = vld [vmem:[%s24214_s7 + $0x88] sm:$0xff] }
 0x685   : > { %25494 = vst [vmem:[#allocation130_spill] sm:$0xff] %v22414_v10 }
 0x686   : > { %15371 = vmatpush1.bf16.msra.mxu1 %v25471_v19  ;;  %25504 = vst [vmem:[#allocation144_spill] sm:$0xff] %v22680_v50  ;;  %25505 = vst [vmem:[#allocation146_spill] sm:$0xff] %v22689_v25 }
 0x687   : > { %15373 = vmatprep.subr.bf16.mxu1 %v25472_v0 }
 0x68a   : > { %15375 = vmatpush1.bf16.msra.mxu1 %v25473_v17  ;;  %v7573_v17 = vld [vmem:[%s24213_s6] sm:$0x1] }
 0x68b   : > { %15377 = vmatprep.subr.bf16.mxu1 %v25474_v61  ;;  %v25500_v61 = vld [vmem:[#allocation9_spill] sm:$0xff] }
 0x68e   : > { %15379 = vmatpush1.bf16.msra.mxu1 %v25475_v16  ;;  %v7563_v16 = vrot.slane %v7550_v63, %v25500_v61  ;;  %v11684_v63 = vld [vmem:[%s24214_s7 + $0x180] sm:$0xff] }
 0x68f   : > { %15381 = vmatprep.subr.bf16.mxu1 %v25476_v26 }
 0x692   : > { %15383 = vmatpush1.bf16.msra.mxu1 %v25477_v13 }
 0x693   : > { %15416 = vmatprep.subr.bf16.mxu1 %v24699_v29 }
 0x695   : > { %7398 = vmatmul.mubr.f32.vlgmr.msra.gmra.mrb[40].mxu1 %v25321_v43 }
 0x696   : > { %15418 = vmatpush1.bf16.msra.mxu1 %v25478_v48  ;;  %11652 = vmatprep.mubr.msk.f32.mxu1 %vm3504_vm7, %v25282_v30  ;;  %v25484_v30 = vld [vmem:[#allocation113_spill] sm:$0xff] }
 0x697   : > { %15419 = vmatprep.subr.bf16.mxu1 %v24699_v29 }
 0x69a   : > { %15421 = vmatpush1.bf16.msra.mxu1 %v25479_v42 }
 0x69b   : > { %15422 = vmatprep.subr.bf16.mxu1 %v24699_v29 }
 0x69e   : > { %15424 = vmatpush1.bf16.msra.mxu1 %v25480_v28  ;;  %v11692_v28 = vld [vmem:[%s24214_s7 + $0x1c0] sm:$0xff] }
 0x69f   : > { %15425 = vmatprep.subr.bf16.mxu1 %v24699_v29 }
 0x6a2   : > { %15427 = vmatpush1.bf16.msra.mxu1 %v25481_v37  ;;  %v11693_v37 = vld [vmem:[%s24214_s7 + $0x1c8] sm:$0xff] }
 0x6a3   : > { %15428 = vmatprep.subr.bf16.mxu1 %v24699_v29 }
 0x6a6   : > { %15430 = vmatpush1.bf16.msra.mxu1 %v25482_v38  ;;  %v11670_v38 = vld [vmem:[%s24213_s6 + $0x3] sm:$0x1] }
 0x6a7   : > { %15431 = vmatprep.subr.bf16.mxu1 %v24699_v29 }
 0x6aa   : > { %15433 = vmatpush1.bf16.msra.mxu1 %v25483_v46  ;;  %v22503_v46 = vpack.c.bf16 %v11693_v37, %v11692_v28  ;;  %v11691_v28 = vld [vmem:[%s24214_s7 + $0x1b8] sm:$0xff] }
 0x6ab   : > { %15434 = vmatprep.subr.bf16.mxu1 %v24699_v29 }
 0x6ae   : > { %15436 = vmatpush1.bf16.msra.mxu1 %v25484_v30  ;;  %v11676_v30 = vld [vmem:[%s24214_s7 + $0x140] sm:$0xff] }
 0x6af   : > { %15437 = vmatprep.subr.bf16.mxu1 %v24699_v29 }
 0x6b2   : > { %15439 = vmatpush1.bf16.msra.mxu1 %v25485_v7  ;;  %v11677_v7 = vld [vmem:[%s24214_s7 + $0x148] sm:$0xff] }
 0x6b3   : > { %15440 = vmatprep.subr.bf16.mxu1 %v24699_v29  ;;  %v22521_v39 = vpack.c.bf16 %v11677_v7, %v11676_v30  ;;  %v11851_v30 = vld [vmem:[%s24214_s7 + $0x690] sm:$0xff]  ;;  %v11852_v7 = vld [vmem:[%s24214_s7 + $0x698] sm:$0xff] }
 0x6b6   : > { %15442 = vmatpush1.bf16.msra.mxu1 %v25486_v14  ;;  %v11694_v14 = vld [vmem:[%s24214_s7 + $0x1d0] sm:$0xff] }
 0x6b7   : > { %15443 = vmatprep.subr.bf16.mxu1 %v24699_v29 }
 0x6ba   : > { %15445 = vmatpush1.bf16.msra.mxu1 %v25487_v4  ;;  %v11695_v4 = vld [vmem:[%s24214_s7 + $0x1d8] sm:$0xff] }
 0x6bb   : > { %15667 = vmatprep.subr.bf16.mxu1 %v22361_v18  ;;  %v22524_v55 = vpack.c.bf16 %v11695_v4, %v11694_v14  ;;  %v22659_v14 = vpack.c.bf16 %v11852_v7, %v11851_v30  ;;  %v11869_v4 = vld [vmem:[%s24214_s7 + $0x720] sm:$0xff]  ;;  %v11714_v7 = vld [vmem:[%s24214_s7 + $0x270] sm:$0xff]  ;;  %v11757_v18 = vld [vmem:[%s24214_s7 + $0x3b8] sm:$0xff] }
 0x6bd   : > { %7539 = vmatmul.mubr.f32.vlgmr.msra.gmra.mrb[44].mxu1 %v25321_v43  ;;  %v11842_v43 = vld [vmem:[%s24214_s7 + $0x648] sm:$0xff]  ;;  %25502 = vst [vmem:[#allocation140_spill] sm:$0xff] %v22659_v14 }
 0x6be   : > { %v22370_v52 = vpack.c.bf16 %v11842_v43, %v11841_v12  ;;  %v11678_v12 = vld [vmem:[%s24214_s7 + $0x150] sm:$0xff]  ;;  %v11679_v43 = vld [vmem:[%s24214_s7 + $0x158] sm:$0xff] }
 0x6bf   : > { %v22540_v62 = vpack.c.bf16 %v11679_v43, %v11678_v12  ;;  %v11870_v12 = vld [vmem:[%s24214_s7 + $0x728] sm:$0xff] }
 0x6c0   : > { %25489 = vst [vmem:[#allocation120_spill] sm:$0xff] %v22370_v52  ;;  %15669 = vmatpush3.bf16.msra.mxu1 %v22370_v52  ;;  %v22671_v43 = vpack.c.bf16 %v11870_v12, %v11869_v4  ;;  %v11715_v4 = vld [vmem:[%s24214_s7 + $0x278] sm:$0xff]  ;;  %v8182_v12 = vld [vmem:[%s24214_s7 + $0x80] sm:$0xff]  ;;  %v11756_v52 = vld [vmem:[%s24214_s7 + $0x3b0] sm:$0xff] }
 0x6c1   : > { %15671 = vmatprep.subr.bf16.mxu1 %v22378_v5  ;;  %v22766_v23 = vpack.c.bf16 %v11715_v4, %v11714_v7  ;;  %v22772_v54 = vpack.c.bf16 %v8183_v34, %v8182_v12  ;;  %v8170_v4 = vld [vmem:[%s24214_s7 + $0x20] sm:$0xff]  ;;  %v8171_v12 = vld [vmem:[%s24214_s7 + $0x28] sm:$0xff]  ;;  %v8188_v34 = vld [vmem:[%s24214_s7 + $0xb0] sm:$0xff] }
 0x6c2   : > { %25503 = vst [vmem:[#allocation142_spill] sm:$0xff] %v22671_v43  ;;  %v11755_v5 = vld [vmem:[%s24214_s7 + $0x3a8] sm:$0xff] }
 0x6c4   : > { %15673 = vmatpush3.bf16.msra.mxu1 %v22388_v32 }
 0x6c5   : > { %15675 = vmatprep.subr.bf16.mxu1 %v22396_v45  ;;  %v11817_v45 = vld [vmem:[%s24214_s7 + $0x590] sm:$0xff] }
 0x6c8   : > { %15677 = vmatpush3.bf16.msra.mxu1 %v22406_v56  ;;  %v11731_v56 = vld [vmem:[%s24214_s7 + $0x2e8] sm:$0xff] }
 0x6c9   : > { %15679 = vmatprep.subr.bf16.mxu1 %v22414_v10  ;;  %v11730_v10 = vld [vmem:[%s24214_s7 + $0x2e0] sm:$0xff] }
 0x6cc   : > { %15681 = vmatpush3.bf16.msra.mxu1 %v22424_v1 }
 0x6cd   : > { %15683 = vmatprep.subr.bf16.mxu1 %v22432_v3  ;;  %v8205_v3 = vld [vmem:[%s24214_s7 + $0x138] sm:$0xff] }
 0x6d0   : > { %15685 = vmatpush3.bf16.msra.mxu1 %v22442_v15  ;;  %v8204_v15 = vld [vmem:[%s24214_s7 + $0x130] sm:$0xff] }
 0x768   : > { %v7399_v41 = vpop.f32.mrb[40].mxu1 }
 0x769   : > { %v7547_v9 = vmax.f32 %v22250_v11, %v7399_v41  ;;  %v7401_v44 = vpop.f32.mrb[41].mxu1  ;;  %v11702_v41 = vld [vmem:[%s24214_s7 + $0x210] sm:$0xff] }
 0x76a   : > { %v7548_v21 = vmax.f32 %v22255_v40, %v7401_v44 }
 0x76b   : > { %v7567_v47 = vadd.f32 %v7555_v35, %v7547_v9  ;;  %v11685_v35 = vld [vmem:[%s24214_s7 + $0x188] sm:$0xff] }
 0x76c   : > { %v7568_v58 = vadd.f32 %v7559_v57, %v7548_v21  ;;  %v11703_v57 = vld [vmem:[%s24214_s7 + $0x218] sm:$0xff]  ;;  %v22594_v9 = vpack.c.bf16 %v11685_v35, %v11684_v63  ;;  %v11686_v21 = vld [vmem:[%s24214_s7 + $0x190] sm:$0xff] }
 0x76d   : > { %v7570_v0 = vmax.f32 %v7567_v47, 0.0  ;;  %v22597_v44 = vpack.c.bf16 %v11703_v57, %v11702_v41  ;;  %v11687_v47 = vld [vmem:[%s24214_s7 + $0x198] sm:$0xff]  ;;  %v11708_v57 = vld [vmem:[%s24214_s7 + $0x240] sm:$0xff] }
 0x76e   : > { %v7571_v19 = vmax.f32 %v7568_v58, 0.0  ;;  %v11704_v58 = vld [vmem:[%s24214_s7 + $0x220] sm:$0xff] }
 0x770   : > { %11653 = vmatprep.subr.msk.mxu0 %vm2595_vm4, %v7571_v19 }
 0x771   : > { %11654 = vmatpush1.msk.msra.mxu0 %vm2595_vm4, %v7570_v0 }
 0x772   : > { %11655 = vmatmul.mubr.msk.f32.vlgmr.msra.gmra.mrb[46].mxu0 %vm7574_vm8, %v7573_v17  ;;  %12918 = vmatprep.subr.mxu0 %v25396_v51 }
 0x773   : > { %12920 = vmatprep.mubr.msk.f32.mxu0 %vm16376_vm9, %v25396_v51 }
 0x790   : > { %v7540_v11 = vpop.f32.mrb[44].mxu1 }
 0x791   : > { %v16117_v40 = vadd.f32 %v22322_v36, %v7540_v11  ;;  %v7542_v26 = vpop.f32.mrb[45].mxu1  ;;  %v11658_v36 = vld [vmem:[%s24213_s6 + $0x1] sm:$0x1] }
 0x792   : > { %v11688_v11 = vld [vmem:[%s24214_s7 + $0x1a0] sm:$0xff]  ;;  %v11706_v26 = vld [vmem:[%s24214_s7 + $0x230] sm:$0xff] }
 0x793   : > { %v7549_v13 = vmax.f32 %v22283_v20, %v16117_v40  ;;  %v11664_v20 = vld [vmem:[%s24213_s6 + $0x2] sm:$0x1]  ;;  %v11689_v40 = vld [vmem:[%s24214_s7 + $0x1a8] sm:$0xff] }
 0x795   : > { %v7569_v48 = vadd.f32 %v7563_v16, %v7549_v13  ;;  %v22624_v16 = vpack.c.bf16 %v11689_v40, %v11688_v11  ;;  %v11707_v13 = vld [vmem:[%s24214_s7 + $0x238] sm:$0xff] }
 0x796   : > { %v11711_v11 = vld [vmem:[%s24214_s7 + $0x258] sm:$0xff] }
 0x797   : > { %v7572_v42 = vmax.f32 %v7569_v48, 0.0  ;;  %v11867_v48 = vld [vmem:[%s24214_s7 + $0x710] sm:$0xff] }
 0x799   : > { %12919 = vmatpush3.msk.msra.mxu0 %vm2595_vm4, %v7572_v42 }
 0x79a   : > { %12921 = vmatmul.mubr.msk.f32.vlgmr.msra.gmra.mrb[48].mxu0 %vm7574_vm8, %v7573_v17  ;;  %11659 = vmatprep.subr.msk.mxu0 %vm2595_vm4, %v7571_v19 }
 0x79b   : > { %11660 = vmatpush1.msk.msra.mxu0 %vm2595_vm4, %v7570_v0  ;;  %7797 = vmatprep.mubr.f32.mxu0 %v25396_v51 }
 0x79c   : > { %12923 = vmatprep.subr.mxu0 %v25396_v51 }
 0x79e   : > { %11661 = vmatmul.mubr.msk.f32.vlgmr.msra.gmra.mrb[50].mxu0 %vm7574_vm8, %v11658_v36 }
 0x79f   : > { %12924 = vmatpush3.msk.msra.mxu0 %vm2595_vm4, %v7572_v42  ;;  %12925 = vmatprep.mubr.msk.f32.mxu0 %vm16376_vm9, %v25396_v51 }
 0x7a0   : > { %11665 = vmatprep.subr.msk.mxu0 %vm2595_vm4, %v7571_v19 }
 0x7a2   : > { %12926 = vmatmul.mubr.msk.f32.vlgmr.msra.gmra.mrb[52].mxu0 %vm7574_vm8, %v11658_v36  ;;  %v11868_v36 = vld [vmem:[%s24214_s7 + $0x718] sm:$0xff] }
 0x7a3   : > { %11666 = vmatpush1.msk.msra.mxu0 %vm2595_vm4, %v7570_v0  ;;  %7943 = vmatprep.mubr.f32.mxu0 %v25396_v51  ;;  %v22648_v37 = vpack.c.bf16 %v11868_v36, %v11867_v48  ;;  %v11712_v48 = vld [vmem:[%s24214_s7 + $0x260] sm:$0xff]  ;;  %v11713_v36 = vld [vmem:[%s24214_s7 + $0x268] sm:$0xff] }
 0x7a4   : > { %12928 = vmatprep.subr.mxu0 %v25396_v51 }
 0x7a5   : > { %25501 = vst [vmem:[#allocation138_spill] sm:$0xff] %v22648_v37  ;;  %15687 = vmatprep.subr.bf16.mxu1 %v22648_v37 }
 0x7a6   : > { %11667 = vmatmul.mubr.msk.f32.vlgmr.msra.gmra.mrb[54].mxu0 %vm7574_vm8, %v11664_v20  ;;  %15689 = vmatpush3.bf16.msra.mxu1 %v22659_v14 }
 0x7a7   : > { %12929 = vmatpush3.msk.msra.mxu0 %vm2595_vm4, %v7572_v42  ;;  %12930 = vmatprep.mubr.msk.f32.mxu0 %vm16376_vm9, %v25396_v51 }
 0x7a8   : > { %11671 = vmatprep.subr.msk.mxu0 %vm2595_vm4, %v7571_v19  ;;  %v11705_v19 = vld [vmem:[%s24214_s7 + $0x228] sm:$0xff]  ;;  %15691 = vmatprep.subr.bf16.mxu1 %v22671_v43  ;;  %v11745_v43 = vld [vmem:[%s24214_s7 + $0x358] sm:$0xff] }
 0x7a9   : > { %v22615_v17 = vpack.c.bf16 %v11705_v19, %v11704_v58  ;;  %v11710_v19 = vld [vmem:[%s24214_s7 + $0x250] sm:$0xff] }
 0x7aa   : > { %12931 = vmatmul.mubr.msk.f32.vlgmr.msra.gmra.mrb[56].mxu0 %vm7574_vm8, %v11664_v20  ;;  %v11690_v20 = vld [vmem:[%s24214_s7 + $0x1b0] sm:$0xff]  ;;  %15693 = vmatpush3.bf16.msra.mxu1 %v22680_v50  ;;  %v8203_v50 = vld [vmem:[%s24214_s7 + $0x128] sm:$0xff] }
 0x7ab   : > { %11672 = vmatpush1.msk.msra.mxu0 %vm2595_vm4, %v7570_v0  ;;  %8089 = vmatprep.mubr.f32.mxu0 %v25396_v51  ;;  %v22612_v0 = vpack.c.bf16 %v11687_v47, %v11686_v21  ;;  %v11709_v21 = vld [vmem:[%s24214_s7 + $0x248] sm:$0xff] }
 0x7ac   : > { %12933 = vmatprep.subr.mxu0 %v25396_v51  ;;  %15695 = vmatprep.subr.bf16.mxu1 %v22689_v25  ;;  %v22716_v58 = vpack.c.bf16 %v11709_v21, %v11708_v57  ;;  %v8185_v57 = vld [vmem:[%s24214_s7 + $0x98] sm:$0xff]  ;;  %v8202_v25 = vld [vmem:[%s24214_s7 + $0x120] sm:$0xff] }
 0x7ae   : > { %11673 = vmatmul.mubr.msk.f32.vlgmr.msra.gmra.mrb[58].mxu0 %vm7574_vm8, %v11670_v38  ;;  %15697 = vmatpush3.bf16.msra.mxu1 %v22698_v31 }
 0x7af   : > { %12934 = vmatpush3.msk.msra.mxu0 %vm2595_vm4, %v7572_v42  ;;  %12935 = vmatprep.mubr.msk.f32.mxu0 %vm16376_vm9, %v25396_v51  ;;  %v22637_v42 = vpack.c.bf16 %v11707_v13, %v11706_v26  ;;  %v22731_v26 = vpack.c.bf16 %v11711_v11, %v11710_v19  ;;  %v8168_v11 = vld [vmem:[%s24214_s7 + $0x10] sm:$0xff] }
 0x7b0   : > { %15447 = vmatprep.subr.bf16.mxu0 %v22503_v46  ;;  %15711 = vmatprep.subr.bf16.mxu1 %v22503_v46 }
 0x7b2   : > { %12936 = vmatmul.mubr.msk.f32.vlgmr.msra.gmra.mrb[60].mxu0 %vm7574_vm8, %v11670_v38  ;;  %v22650_v38 = vpack.c.bf16 %v11691_v28, %v11690_v20  ;;  %v22745_v28 = vpack.c.bf16 %v11713_v36, %v11712_v48  ;;  %v8186_v48 = vld [vmem:[%s24214_s7 + $0xa0] sm:$0xff] }
 0x7b3   : > { %15449 = vmatpush3.bf16.msra.mxu0 %v22521_v39 }
 0x7b4   : > { %15451 = vmatprep.subr.bf16.mxu0 %v22524_v55 }
 0x7b7   : > { %15453 = vmatpush3.bf16.msra.mxu0 %v22540_v62 }
 0x7b8   : > { %15455 = vmatprep.subr.bf16.mxu0 %v22543_v53 }
 0x7bb   : > { %15457 = vmatpush3.bf16.msra.mxu0 %v22558_v60 }
 0x7bc   : > { %15459 = vmatprep.subr.bf16.mxu0 %v22561_v6 }
 0x7bf   : > { %15461 = vmatpush3.bf16.msra.mxu0 %v22576_v22 }
 0x7c0   : > { %15463 = vmatprep.subr.bf16.mxu0 %v22579_v49 }
 0x7c3   : > { %15465 = vmatpush3.bf16.msra.mxu0 %v22594_v9 }
 0x7c4   : > { %15467 = vmatprep.subr.bf16.mxu0 %v22597_v44 }
 0x7c7   : > { %15469 = vmatpush3.bf16.msra.mxu0 %v22612_v0 }
 0x7c8   : > { %15471 = vmatprep.subr.bf16.mxu0 %v22615_v17 }
 0x7cb   : > { %15473 = vmatpush3.bf16.msra.mxu0 %v22624_v16 }
 0x7cc   : > { %15475 = vmatprep.subr.bf16.mxu0 %v22637_v42 }
 0x7cf   : > { %15477 = vmatpush3.bf16.msra.mxu0 %v22650_v38 }
 0x7d0   : > { %15478 = vmatprep.subr.bf16.mxu0 %v24699_v29 }
 0x845   : > { %v22702_v24 = vpop.f32.mrb[46].mxu0 }
 0x846   : > { %v22704_v63 = vpop.f32.mrb[47].mxu0 }
 0x86d   : > { %v22706_v35 = vpop.f32.mrb[48].mxu0 }
 0x86e   : > { %v12922_v41 = vpop.f32.mrb[49].mxu0 }
 0x871   : > { %v22714_v47 = vpop.f32.mrb[50].mxu0 }
 0x872   : > { %v22718_v46 = vpop.f32.mrb[51].mxu0 }
 0x873   : > { %8315 = vmatprep.mubr.f32.mxu0 %v22718_v46 }
 0x874   : > { %8316 = vmatmul.mubr.f32.vlgmr.msra.gmra.mrb[62].mxu0 %v22714_v47 }
 0x875   : > { %15480 = vmatpush3.bf16.msra.mxu0 %v22716_v58  ;;  %v22729_v40 = vpop.f32.mrb[52].mxu0  ;;  %12954 = vmatprep.mubr.msk.f32.mxu0 %vm16376_vm9, %v25396_v51 }
 0x876   : > { %15481 = vmatprep.subr.bf16.mxu0 %v24699_v29  ;;  %v12927_v13 = vpop.f32.mrb[53].mxu0 }
 0x877   : > { %v8169_v13 = vld [vmem:[%s24214_s7 + $0x18] sm:$0xff] }
 0x878   : > { %v22815_v36 = vpack.c.bf16 %v8169_v13, %v8168_v11  ;;  %v8175_v13 = vld [vmem:[%s24214_s7 + $0x48] sm:$0xff] }
 0x879   : > { %15483 = vmatpush3.bf16.msra.mxu0 %v22731_v26  ;;  %v22743_v20 = vpop.f32.mrb[54].mxu0 }
 0x87a   : > { %v22747_v30 = vpop.f32.mrb[55].mxu0  ;;  %15484 = vmatprep.subr.bf16.mxu0 %v24699_v29 }
 0x87b   : > { %9186 = vmatprep.mubr.f32.mxu1 %v22747_v30 }
 0x87c   : > { %9187 = vmatmul.mubr.f32.vlgmr.msra.gmra.mrb[46].mxu1 %v22743_v20 }
 0x87d   : > { %15486 = vmatpush3.bf16.msra.mxu0 %v22745_v28  ;;  %15713 = vmatpush3.bf16.msra.mxu1 %v22521_v39  ;;  %v22768_v27 = vpop.f32.mrb[56].mxu0  ;;  %v8184_v39 = vld [vmem:[%s24214_s7 + $0x90] sm:$0xff] }
 0x87e   : > { %15487 = vmatprep.subr.bf16.mxu0 %v24699_v29  ;;  %15715 = vmatprep.subr.bf16.mxu1 %v22524_v55  ;;  %v12932_v41 = vpop.f32.mrb[57].mxu0  ;;  %v22789_v55 = vpack.c.bf16 %v8167_v33, %v8166_v8  ;;  %v22795_v19 = vpack.c.bf16 %v8185_v57, %v8184_v39  ;;  %v22835_v8 = vpack.c.bf16 %v8171_v12, %v8170_v4  ;;  %v8190_v39 = vld [vmem:[%s24214_s7 + $0xc0] sm:$0xff]  ;;  %v8177_v12 = vld [vmem:[%s24214_s7 + $0x58] sm:$0xff] }
 0x87f   : > { %9328 = vmatprep.mubr.f32.mxu1 %v22747_v30  ;;  %v8173_v41 = vld [vmem:[%s24214_s7 + $0x38] sm:$0xff] }
 0x881   : > { %15489 = vmatpush3.bf16.msra.mxu0 %v22766_v23  ;;  %15717 = vmatpush3.bf16.msra.mxu1 %v22540_v62  ;;  %v22791_v21 = vpop.f32.mrb[58].mxu0 }
 0x882   : > { %25507 = vst [vmem:[#allocation148_spill] sm:$0xff] %v22791_v21  ;;  %15491 = vmatprep.subr.bf16.mxu0 %v22772_v54  ;;  %15719 = vmatprep.subr.bf16.mxu1 %v22543_v53  ;;  %v22803_v62 = vpop.f32.mrb[59].mxu0  ;;  %v8187_v53 = vld [vmem:[%s24214_s7 + $0xa8] sm:$0xff] }
 0x883   : > { %25508 = vst [vmem:[#allocation60_spill] sm:$0xff] %v22803_v62  ;;  %v22819_v7 = vpack.c.bf16 %v8187_v53, %v8186_v48  ;;  %v8192_v48 = vld [vmem:[%s24214_s7 + $0xd0] sm:$0xff] }
 0x884   : > { %12955 = vmatmul.mubr.msk.f32.vlgmr.msra.gmra.mrb[64].mxu0 %vm8247_vm10, %v22729_v40 }
 0x885   : > { %15493 = vmatpush3.bf16.msra.mxu0 %v22789_v55  ;;  %8458 = vmatprep.mubr.f32.mxu0 %v22704_v63  ;;  %v23053_v14 = vpop.f32.mrb[60].mxu0 }
 0x886   : > { %15721 = vmatpush3.bf16.msra.mxu1 %v22558_v60  ;;  %15495 = vmatprep.subr.bf16.mxu0 %v22795_v19  ;;  %v8189_v60 = vld [vmem:[%s24214_s7 + $0xb8] sm:$0xff]  ;;  %25509 = vst [vmem:[#allocation150_spill] sm:$0xff] %v23053_v14 }
 0x887   : > { %15723 = vmatprep.subr.bf16.mxu1 %v22561_v6  ;;  %v22839_v33 = vpack.c.bf16 %v8189_v60, %v8188_v34  ;;  %v8172_v6 = vld [vmem:[%s24214_s7 + $0x30] sm:$0xff]  ;;  %v8194_v34 = vld [vmem:[%s24214_s7 + $0xe0] sm:$0xff] }
 0x888   : > { %v22855_v57 = vpack.c.bf16 %v8173_v41, %v8172_v6  ;;  %v11734_v60 = vld [vmem:[%s24214_s7 + $0x300] sm:$0xff]  ;;  %v11735_v6 = vld [vmem:[%s24214_s7 + $0x308] sm:$0xff] }
 0x889   : > { %15497 = vmatpush3.bf16.msra.mxu0 %v22815_v36 }
 0x88a   : > { %15725 = vmatpush3.bf16.msra.mxu1 %v22576_v22  ;;  %15499 = vmatprep.subr.bf16.mxu0 %v22819_v7  ;;  %v8191_v22 = vld [vmem:[%s24214_s7 + $0xc8] sm:$0xff] }
 0x88b   : > { %15727 = vmatprep.subr.bf16.mxu1 %v22579_v49  ;;  %v22859_v11 = vpack.c.bf16 %v8191_v22, %v8190_v39  ;;  %v8174_v49 = vld [vmem:[%s24214_s7 + $0x40] sm:$0xff]  ;;  %v8179_v22 = vld [vmem:[%s24214_s7 + $0x68] sm:$0xff] }
 0x88c   : > { %v22875_v53 = vpack.c.bf16 %v8175_v13, %v8174_v49  ;;  %v8178_v39 = vld [vmem:[%s24214_s7 + $0x60] sm:$0xff]  ;;  %v22917_v13 = vpack.c.bf16 %v11735_v6, %v11734_v60  ;;  %v8180_v60 = vld [vmem:[%s24214_s7 + $0x70] sm:$0xff]  ;;  %v8181_v6 = vld [vmem:[%s24214_s7 + $0x78] sm:$0xff] }
 0x88d   : > { %15501 = vmatpush3.bf16.msra.mxu0 %v22835_v8  ;;  %v11718_v49 = vld [vmem:[%s24214_s7 + $0x280] sm:$0xff] }
 0x88e   : > { %15729 = vmatpush3.bf16.msra.mxu1 %v22594_v9  ;;  %15503 = vmatprep.subr.bf16.mxu0 %v22839_v33  ;;  %v8193_v9 = vld [vmem:[%s24214_s7 + $0xd8] sm:$0xff] }
 0x88f   : > { %15731 = vmatprep.subr.bf16.mxu1 %v22597_v44  ;;  %v22879_v4 = vpack.c.bf16 %v8193_v9, %v8192_v48  ;;  %v8176_v44 = vld [vmem:[%s24214_s7 + $0x50] sm:$0xff]  ;;  %v8197_v9 = vld [vmem:[%s24214_s7 + $0xf8] sm:$0xff] }
 0x890   : > { %v22901_v41 = vpack.c.bf16 %v8177_v12, %v8176_v44  ;;  %v8196_v48 = vld [vmem:[%s24214_s7 + $0xf0] sm:$0xff]  ;;  %v22935_v12 = vpack.c.bf16 %v8179_v22, %v8178_v39  ;;  %v11721_v22 = vld [vmem:[%s24214_s7 + $0x298] sm:$0xff] }
 0x891   : > { %15505 = vmatpush3.bf16.msra.mxu0 %v22855_v57  ;;  %v11736_v44 = vld [vmem:[%s24214_s7 + $0x310] sm:$0xff] }
 0x892   : > { %15733 = vmatpush3.bf16.msra.mxu1 %v22612_v0  ;;  %15507 = vmatprep.subr.bf16.mxu0 %v22859_v11  ;;  %v8195_v0 = vld [vmem:[%s24214_s7 + $0xe8] sm:$0xff] }
 0x893   : > { %15735 = vmatprep.subr.bf16.mxu1 %v22615_v17  ;;  %v22905_v17 = vpack.c.bf16 %v8195_v0, %v8194_v34  ;;  %v22941_v0 = vpack.c.bf16 %v8197_v9, %v8196_v48  ;;  %v22966_v48 = vpack.c.bf16 %v8181_v6, %v8180_v60  ;;  %v11722_v60 = vld [vmem:[%s24214_s7 + $0x2a0] sm:$0xff]  ;;  %v11723_v6 = vld [vmem:[%s24214_s7 + $0x2a8] sm:$0xff] }
 0x895   : > { %15509 = vmatpush3.bf16.msra.mxu0 %v22875_v53 }
 0x896   : > { %15737 = vmatpush3.bf16.msra.mxu1 %v22624_v16  ;;  %15511 = vmatprep.subr.bf16.mxu0 %v22879_v4  ;;  %v11719_v16 = vld [vmem:[%s24214_s7 + $0x288] sm:$0xff] }
 0x897   : > { %15739 = vmatprep.subr.bf16.mxu1 %v22637_v42  ;;  %v11737_v42 = vld [vmem:[%s24214_s7 + $0x318] sm:$0xff]  ;;  %v22939_v34 = vpack.c.bf16 %v11719_v16, %v11718_v49  ;;  %v11738_v49 = vld [vmem:[%s24214_s7 + $0x320] sm:$0xff]  ;;  %v11739_v16 = vld [vmem:[%s24214_s7 + $0x328] sm:$0xff] }
 0x898   : > { %v22950_v39 = vpack.c.bf16 %v11737_v42, %v11736_v44  ;;  %v8198_v44 = vld [vmem:[%s24214_s7 + $0x100] sm:$0xff]  ;;  %v8199_v42 = vld [vmem:[%s24214_s7 + $0x108] sm:$0xff]  ;;  %v22979_v61 = vpack.c.bf16 %v11739_v16, %v11738_v49  ;;  %v22999_v16 = vpack.c.bf16 %v11723_v6, %v11722_v60 }
 0x899   : > { %15513 = vmatpush3.bf16.msra.mxu0 %v22901_v41  ;;  %v22995_v49 = vpack.c.bf16 %v8199_v42, %v8198_v44  ;;  %v11724_v44 = vld [vmem:[%s24214_s7 + $0x2b0] sm:$0xff]  ;;  %v11725_v42 = vld [vmem:[%s24214_s7 + $0x2b8] sm:$0xff]  ;;  %v11742_v60 = vld [vmem:[%s24214_s7 + $0x340] sm:$0xff] }
 0x89a   : > { %15741 = vmatpush3.bf16.msra.mxu1 %v22650_v38  ;;  %15515 = vmatprep.subr.bf16.mxu0 %v22905_v17  ;;  %v11720_v38 = vld [vmem:[%s24214_s7 + $0x290] sm:$0xff]  ;;  %v11743_v6 = vld [vmem:[%s24214_s7 + $0x348] sm:$0xff] }
 0x89b   : > { %15799 = vmatprep.subr.bf16.mxu1 %v22917_v13  ;;  %v22970_v9 = vpack.c.bf16 %v11721_v22, %v11720_v38  ;;  %v11740_v38 = vld [vmem:[%s24214_s7 + $0x330] sm:$0xff]  ;;  %v11741_v22 = vld [vmem:[%s24214_s7 + $0x338] sm:$0xff] }
 0x89c   : > { %v23008_v31 = vpack.c.bf16 %v11741_v22, %v11740_v38  ;;  %v23024_v38 = vpack.c.bf16 %v8201_v2, %v8200_v59  ;;  %v23030_v22 = vpack.c.bf16 %v11725_v42, %v11724_v44  ;;  %v23039_v2 = vpack.c.bf16 %v11743_v6, %v11742_v60  ;;  %v11726_v59 = vld [vmem:[%s24214_s7 + $0x2c0] sm:$0xff]  ;;  %v11727_v44 = vld [vmem:[%s24214_s7 + $0x2c8] sm:$0xff]  ;;  %v11744_v42 = vld [vmem:[%s24214_s7 + $0x350] sm:$0xff]  ;;  %v12937_v6 = vpop.f32.mrb[61].mxu0 }
 0x89d   : > { %15517 = vmatpush3.bf16.msra.mxu0 %v22935_v12  ;;  %9329 = vmatmul.mubr.f32.vlgmr.msra.gmra.mrb[48].mxu1 %v22743_v20  ;;  %v23056_v60 = vpack.c.bf16 %v8203_v50, %v8202_v25  ;;  %v23060_v37 = vpack.c.bf16 %v11727_v44, %v11726_v59  ;;  %v23069_v1 = vpack.c.bf16 %v11745_v43, %v11744_v42  ;;  %v11728_v50 = vld [vmem:[%s24214_s7 + $0x2d0] sm:$0xff]  ;;  %v11729_v25 = vld [vmem:[%s24214_s7 + $0x2d8] sm:$0xff]  ;;  %v11746_v59 = vld [vmem:[%s24214_s7 + $0x360] sm:$0xff] }
 0x89e   : > { %15801 = vmatpush3.bf16.msra.mxu1 %v22939_v34  ;;  %15519 = vmatprep.subr.bf16.mxu0 %v22941_v0  ;;  %v11747_v44 = vld [vmem:[%s24214_s7 + $0x368] sm:$0xff]  ;;  %v23084_v43 = vpack.c.bf16 %v8205_v3, %v8204_v15  ;;  %v23088_v42 = vpack.c.bf16 %v11729_v25, %v11728_v50  ;;  %v11748_v3 = vld [vmem:[%s24214_s7 + $0x370] sm:$0xff]  ;;  %v11749_v15 = vld [vmem:[%s24214_s7 + $0x378] sm:$0xff]  ;;  %v23108_v50 = vpack.c.bf16 %v11731_v56, %v11730_v10 }
 0x89f   : > { %15803 = vmatprep.subr.bf16.mxu1 %v22950_v39  ;;  %9611 = vmatprep.mubr.f32.mxu1 %v22803_v62  ;;  %v23091_v6 = vpack.c.bf16 %v11747_v44, %v11746_v59  ;;  %v23111_v25 = vpack.c.bf16 %v11749_v15, %v11748_v3  ;;  %v11732_v59 = vld [vmem:[%s24214_s7 + $0x2f0] sm:$0xff]  ;;  %v11733_v44 = vld [vmem:[%s24214_s7 + $0x2f8] sm:$0xff]  ;;  %v11815_v56 = vld [vmem:[%s24214_s7 + $0x580] sm:$0xff] }
 0x8a0   : > { %v11816_v10 = vld [vmem:[%s24214_s7 + $0x588] sm:$0xff]  ;;  %v11799_v15 = vld [vmem:[%s24214_s7 + $0x500] sm:$0xff]  ;;  %v11778_v62 = vld [vmem:[%s24214_s7 + $0x458] sm:$0xff] }
 0x8a1   : > { %15521 = vmatpush3.bf16.msra.mxu0 %v22966_v48  ;;  %v23134_v3 = vpack.c.bf16 %v11816_v10, %v11815_v56  ;;  %v11801_v56 = vld [vmem:[%s24214_s7 + $0x510] sm:$0xff]  ;;  %v11802_v10 = vld [vmem:[%s24214_s7 + $0x518] sm:$0xff] }
 0x8a2   : > { %15805 = vmatpush3.bf16.msra.mxu1 %v22970_v9  ;;  %15522 = vmatprep.subr.bf16.mxu0 %v24699_v29 }
 0x8a3   : > { %15807 = vmatprep.subr.bf16.mxu1 %v22979_v61 }
 0x8a4   : > { %8459 = vmatmul.mubr.f32.vlgmr.msra.gmra.mrb[66].mxu0 %v22702_v24 }
 0x8a5   : > { %15524 = vmatpush3.bf16.msra.mxu0 %v22995_v49  ;;  %12973 = vmatprep.mubr.msk.f32.mxu0 %vm16376_vm9, %v25396_v51 }
 0x8a6   : > { %15809 = vmatpush3.bf16.msra.mxu1 %v22999_v16  ;;  %15525 = vmatprep.subr.bf16.mxu0 %v24699_v29 }
 0x8a7   : > { %15811 = vmatprep.subr.bf16.mxu1 %v23008_v31 }
 0x8a9   : > { %15527 = vmatpush3.bf16.msra.mxu0 %v23024_v38 }
 0x8aa   : > { %15813 = vmatpush3.bf16.msra.mxu1 %v23030_v22  ;;  %15528 = vmatprep.subr.bf16.mxu0 %v24699_v29 }
 0x8ab   : > { %15815 = vmatprep.subr.bf16.mxu1 %v23039_v2 }
 0x8ad   : > { %15530 = vmatpush3.bf16.msra.mxu0 %v23056_v60 }
 0x8ae   : > { %15817 = vmatpush3.bf16.msra.mxu1 %v23060_v37  ;;  %15531 = vmatprep.subr.bf16.mxu0 %v24699_v29 }
 0x8af   : > { %15819 = vmatprep.subr.bf16.mxu1 %v23069_v1 }
 0x8b1   : > { %15533 = vmatpush3.bf16.msra.mxu0 %v23084_v43 }
 0x8b2   : > { %15821 = vmatpush3.bf16.msra.mxu1 %v23088_v42  ;;  %15535 = vmatprep.subr.bf16.mxu0 %v22917_v13  ;;  %v23131_v13 = vpack.c.bf16 %v11733_v44, %v11732_v59 }
 0x8b3   : > { %15823 = vmatprep.subr.bf16.mxu1 %v23091_v6 }
 0x8b4   : > { %12974 = vmatmul.mubr.msk.f32.vlgmr.msra.gmra.mrb[64].mxu0 %vm8247_vm10, %v22706_v35 }
 0x8b5   : > { %15537 = vmatpush3.bf16.msra.mxu0 %v22939_v34  ;;  %8642 = vmatprep.mubr.f32.mxu0 %v22747_v30  ;;  %v11800_v34 = vld [vmem:[%s24214_s7 + $0x508] sm:$0xff] }
 0x8b6   : > { %15825 = vmatpush3.bf16.msra.mxu1 %v23108_v50  ;;  %15539 = vmatprep.subr.bf16.mxu0 %v22950_v39  ;;  %v11818_v39 = vld [vmem:[%s24214_s7 + $0x598] sm:$0xff]  ;;  %v23151_v59 = vpack.c.bf16 %v11800_v34, %v11799_v15  ;;  %v11803_v34 = vld [vmem:[%s24214_s7 + $0x520] sm:$0xff] }
 0x8b7   : > { %15827 = vmatprep.subr.bf16.mxu1 %v23111_v25  ;;  %v23154_v44 = vpack.c.bf16 %v11818_v39, %v11817_v45  ;;  %v23172_v45 = vpack.c.bf16 %v11802_v10, %v11801_v56  ;;  %v11822_v39 = vld [vmem:[%s24214_s7 + $0x5b8] sm:$0xff] }
 0x8b9   : > { %15541 = vmatpush3.bf16.msra.mxu0 %v22970_v9  ;;  %v11819_v9 = vld [vmem:[%s24214_s7 + $0x5a0] sm:$0xff] }
 0x8ba   : > { %15829 = vmatpush3.bf16.msra.mxu1 %v23131_v13  ;;  %15543 = vmatprep.subr.bf16.mxu0 %v22979_v61  ;;  %v11820_v61 = vld [vmem:[%s24214_s7 + $0x5a8] sm:$0xff] }
 0x8bb   : > { %15843 = vmatprep.subr.bf16.mxu1 %v23134_v3  ;;  %v23175_v15 = vpack.c.bf16 %v11820_v61, %v11819_v9  ;;  %v11806_v9 = vld [vmem:[%s24214_s7 + $0x538] sm:$0xff] }
 0x8bd   : > { %15545 = vmatpush3.bf16.msra.mxu0 %v22999_v16  ;;  %9612 = vmatmul.mubr.f32.vlgmr.msra.gmra.mrb[50].mxu1 %v22791_v21  ;;  %v11804_v16 = vld [vmem:[%s24214_s7 + $0x528] sm:$0xff]  ;;  %v11753_v21 = vld [vmem:[%s24214_s7 + $0x398] sm:$0xff] }
 0x8be   : > { %15845 = vmatpush3.bf16.msra.mxu1 %v23151_v59  ;;  %15547 = vmatprep.subr.bf16.mxu0 %v23008_v31  ;;  %v11821_v31 = vld [vmem:[%s24214_s7 + $0x5b0] sm:$0xff]  ;;  %v23193_v56 = vpack.c.bf16 %v11804_v16, %v11803_v34  ;;  %v11807_v16 = vld [vmem:[%s24214_s7 + $0x540] sm:$0xff] }
 0x8bf   : > { %15847 = vmatprep.subr.bf16.mxu1 %v23154_v44  ;;  %9753 = vmatprep.mubr.f32.mxu1 %v22747_v30  ;;  %v23196_v10 = vpack.c.bf16 %v11822_v39, %v11821_v31  ;;  %v11805_v30 = vld [vmem:[%s24214_s7 + $0x530] sm:$0xff]  ;;  %v11808_v31 = vld [vmem:[%s24214_s7 + $0x548] sm:$0xff] }
 0x8c0   : > { %v23213_v61 = vpack.c.bf16 %v11806_v9, %v11805_v30  ;;  %v23233_v39 = vpack.c.bf16 %v11808_v31, %v11807_v16  ;;  %v11809_v9 = vld [vmem:[%s24214_s7 + $0x550] sm:$0xff]  ;;  %v11750_v16 = vld [vmem:[%s24214_s7 + $0x380] sm:$0xff]  ;;  %v11751_v31 = vld [vmem:[%s24214_s7 + $0x388] sm:$0xff] }
 0x8c1   : > { %15549 = vmatpush3.bf16.msra.mxu0 %v23030_v22  ;;  %v11823_v22 = vld [vmem:[%s24214_s7 + $0x5c0] sm:$0xff] }
 0x8c2   : > { %15849 = vmatpush3.bf16.msra.mxu1 %v23172_v45  ;;  %15551 = vmatprep.subr.bf16.mxu0 %v23039_v2  ;;  %v11824_v2 = vld [vmem:[%s24214_s7 + $0x5c8] sm:$0xff] }
 0x8c3   : > { %15851 = vmatprep.subr.bf16.mxu1 %v23175_v15  ;;  %v23216_v34 = vpack.c.bf16 %v11824_v2, %v11823_v22  ;;  %v11810_v22 = vld [vmem:[%s24214_s7 + $0x558] sm:$0xff] }
 0x8c4   : > { %v23253_v2 = vpack.c.bf16 %v11810_v22, %v11809_v9  ;;  %v11830_v9 = vld [vmem:[%s24214_s7 + $0x5f8] sm:$0xff]  ;;  %v23277_v22 = vpack.c.bf16 %v11751_v31, %v11750_v16  ;;  %v11775_v31 = vld [vmem:[%s24214_s7 + $0x440] sm:$0xff] }
 0x8c5   : > { %15553 = vmatpush3.bf16.msra.mxu0 %v23060_v37  ;;  %v11825_v37 = vld [vmem:[%s24214_s7 + $0x5d0] sm:$0xff]  ;;  %v11814_v16 = vld [vmem:[%s24214_s7 + $0x578] sm:$0xff] }
 0x8c6   : > { %15853 = vmatpush3.bf16.msra.mxu1 %v23193_v56  ;;  %15555 = vmatprep.subr.bf16.mxu0 %v23069_v1  ;;  %v11826_v1 = vld [vmem:[%s24214_s7 + $0x5d8] sm:$0xff] }
 0x8c7   : > { %15855 = vmatprep.subr.bf16.mxu1 %v23196_v10  ;;  %v23236_v30 = vpack.c.bf16 %v11826_v1, %v11825_v37  ;;  %v11829_v1 = vld [vmem:[%s24214_s7 + $0x5f0] sm:$0xff] }
 0x8c8   : > { %v23290_v32 = vpack.c.bf16 %v11830_v9, %v11829_v1  ;;  %v11754_v9 = vld [vmem:[%s24214_s7 + $0x3a0] sm:$0xff] }
 0x8c9   : > { %15557 = vmatpush3.bf16.msra.mxu0 %v23088_v42  ;;  %v11827_v42 = vld [vmem:[%s24214_s7 + $0x5e0] sm:$0xff] }
 0x8ca   : > { %15857 = vmatpush3.bf16.msra.mxu1 %v23213_v61  ;;  %15559 = vmatprep.subr.bf16.mxu0 %v23091_v6  ;;  %v11828_v6 = vld [vmem:[%s24214_s7 + $0x5e8] sm:$0xff] }
 0x8cb   : > { %15859 = vmatprep.subr.bf16.mxu1 %v23216_v34  ;;  %v23262_v37 = vpack.c.bf16 %v11828_v6, %v11827_v42  ;;  %v11752_v6 = vld [vmem:[%s24214_s7 + $0x390] sm:$0xff] }
 0x8cd   : > { %15561 = vmatpush3.bf16.msra.mxu0 %v23108_v50  ;;  %v11811_v50 = vld [vmem:[%s24214_s7 + $0x560] sm:$0xff] }
 0x8ce   : > { %15861 = vmatpush3.bf16.msra.mxu1 %v23233_v39  ;;  %15563 = vmatprep.subr.bf16.mxu0 %v23111_v25  ;;  %v11812_v25 = vld [vmem:[%s24214_s7 + $0x568] sm:$0xff] }
 0x8cf   : > { %15863 = vmatprep.subr.bf16.mxu1 %v23236_v30  ;;  %v23281_v42 = vpack.c.bf16 %v11812_v25, %v11811_v50  ;;  %v11776_v50 = vld [vmem:[%s24214_s7 + $0x448] sm:$0xff]  ;;  %v23306_v25 = vpack.c.bf16 %v11753_v21, %v11752_v6  ;;  %v11759_v6 = vld [vmem:[%s24214_s7 + $0x3c0] sm:$0xff] }
 0x8d0   : > { %v23321_v21 = vpack.c.bf16 %v11776_v50, %v11775_v31  ;;  %v23336_v31 = vpack.c.bf16 %v11755_v5, %v11754_v9  ;;  %v11761_v5 = vld [vmem:[%s24214_s7 + $0x3d0] sm:$0xff]  ;;  %v11762_v9 = vld [vmem:[%s24214_s7 + $0x3d8] sm:$0xff] }
 0x8d1   : > { %15565 = vmatpush3.bf16.msra.mxu0 %v23131_v13  ;;  %v11813_v13 = vld [vmem:[%s24214_s7 + $0x570] sm:$0xff]  ;;  %25510 = vst [vmem:[#allocation62_spill] sm:$0xff] %v23306_v25 }
 0x8d2   : > { %15865 = vmatpush3.bf16.msra.mxu1 %v23253_v2  ;;  %15566 = vmatprep.subr.bf16.mxu0 %v24699_v29  ;;  %v23312_v1 = vpack.c.bf16 %v11814_v16, %v11813_v13  ;;  %v11760_v13 = vld [vmem:[%s24214_s7 + $0x3c8] sm:$0xff]  ;;  %v11777_v16 = vld [vmem:[%s24214_s7 + $0x450] sm:$0xff]  ;;  %25511 = vst [vmem:[#allocation152_spill] sm:$0xff] %v23336_v31 }
 0x8d3   : > { %15867 = vmatprep.subr.bf16.mxu1 %v23262_v37  ;;  %v23340_v50 = vpack.c.bf16 %v11760_v13, %v11759_v6  ;;  %v23349_v14 = vpack.c.bf16 %v11778_v62, %v11777_v16  ;;  %v11779_v6 = vld [vmem:[%s24214_s7 + $0x460] sm:$0xff]  ;;  %v11780_v13 = vld [vmem:[%s24214_s7 + $0x468] sm:$0xff]  ;;  %v23365_v62 = vpack.c.bf16 %v11757_v18, %v11756_v52  ;;  %v23369_v16 = vpack.c.bf16 %v11762_v9, %v11761_v5  ;;  %v11781_v52 = vld [vmem:[%s24214_s7 + $0x470] sm:$0xff] }
 0x8d4   : > { %8643 = vmatmul.mubr.f32.vlgmr.msra.gmra.mrb[68].mxu0 %v22743_v20  ;;  %v11764_v18 = vld [vmem:[%s24214_s7 + $0x3e8] sm:$0xff]  ;;  %v11782_v5 = vld [vmem:[%s24214_s7 + $0x478] sm:$0xff] }
 0x8d5   : > { %15568 = vmatpush3.bf16.msra.mxu0 %v23277_v22  ;;  %12992 = vmatprep.mubr.msk.f32.mxu0 %vm16376_vm9, %v25396_v51  ;;  %25512 = vst [vmem:[#allocation64_spill] sm:$0xff] %v23365_v62 }
 0x8d6   : > { %15869 = vmatpush3.bf16.msra.mxu1 %v23281_v42  ;;  %15569 = vmatprep.subr.bf16.mxu0 %v24699_v29 }
 0x8d7   : > { %15871 = vmatprep.subr.bf16.mxu1 %v23290_v32 }
 0x8d9   : > { %15571 = vmatpush3.bf16.msra.mxu0 %v23306_v25  ;;  %v23373_v25 = vpack.c.bf16 %v11780_v13, %v11779_v6  ;;  %v23393_v6 = vpack.c.bf16 %v11782_v5, %v11781_v52  ;;  %v11765_v13 = vld [vmem:[%s24214_s7 + $0x3f0] sm:$0xff]  ;;  %v11767_v5 = vld [vmem:[%s24214_s7 + $0x400] sm:$0xff] }
 0x8da   : > { %15873 = vmatpush3.bf16.msra.mxu1 %v23312_v1  ;;  %15572 = vmatprep.subr.bf16.mxu0 %v24699_v29 }
 0x8db   : > { %15887 = vmatprep.subr.bf16.mxu1 %v23321_v21 }
 0x8dd   : > { %9754 = vmatmul.mubr.f32.vlgmr.msra.gmra.mrb[52].mxu1 %v22743_v20  ;;  %15574 = vmatpush3.bf16.msra.mxu0 %v23336_v31  ;;  %v11763_v20 = vld [vmem:[%s24214_s7 + $0x3e0] sm:$0xff]  ;;  %v11766_v31 = vld [vmem:[%s24214_s7 + $0x3f8] sm:$0xff] }
 0x8de   : > { %15889 = vmatpush3.bf16.msra.mxu1 %v23340_v50  ;;  %9893 = vmatprep.mubr.f32.mxu1 %v22718_v46  ;;  %v23390_v9 = vpack.c.bf16 %v11764_v18, %v11763_v20  ;;  %v11784_v20 = vld [vmem:[%s24214_s7 + $0x488] sm:$0xff]  ;;  %v23413_v18 = vpack.c.bf16 %v11766_v31, %v11765_v13 }
 0x8df   : > { %15575 = vmatprep.subr.bf16.mxu0 %v24699_v29  ;;  %15891 = vmatprep.subr.bf16.mxu1 %v23349_v14 }
 0x8e1   : > { %15577 = vmatpush3.bf16.msra.mxu0 %v23365_v62  ;;  %v11785_v62 = vld [vmem:[%s24214_s7 + $0x490] sm:$0xff] }
 0x8e2   : > { %15893 = vmatpush3.bf16.msra.mxu1 %v23369_v16  ;;  %15579 = vmatprep.subr.bf16.mxu0 %v23134_v3  ;;  %v11783_v3 = vld [vmem:[%s24214_s7 + $0x480] sm:$0xff] }
 0x8e3   : > { %15895 = vmatprep.subr.bf16.mxu1 %v23373_v25  ;;  %v23416_v52 = vpack.c.bf16 %v11784_v20, %v11783_v3  ;;  %v11769_v3 = vld [vmem:[%s24214_s7 + $0x410] sm:$0xff]  ;;  %v11770_v20 = vld [vmem:[%s24214_s7 + $0x418] sm:$0xff] }
 0x8e4   : > { %12993 = vmatmul.mubr.msk.f32.vlgmr.msra.gmra.mrb[64].mxu0 %vm8247_vm10, %v22768_v27 }
 0x8e5   : > { %15581 = vmatpush3.bf16.msra.mxu0 %v23151_v59  ;;  %8865 = vmatprep.mubr.f32.mxu0 %v22718_v46  ;;  %v11768_v59 = vld [vmem:[%s24214_s7 + $0x408] sm:$0xff] }
 0x8e6   : > { %15897 = vmatpush3.bf16.msra.mxu1 %v23390_v9  ;;  %15583 = vmatprep.subr.bf16.mxu0 %v23154_v44  ;;  %v11786_v44 = vld [vmem:[%s24214_s7 + $0x498] sm:$0xff]  ;;  %v23433_v31 = vpack.c.bf16 %v11768_v59, %v11767_v5  ;;  %v11771_v59 = vld [vmem:[%s24214_s7 + $0x420] sm:$0xff] }
 0x8e7   : > { %15899 = vmatprep.subr.bf16.mxu1 %v23393_v6  ;;  %v23436_v13 = vpack.c.bf16 %v11786_v44, %v11785_v62  ;;  %v15644_v62 = vpack.c.bf16 %v11770_v20, %v11769_v3  ;;  %v11772_v44 = vld [vmem:[%s24214_s7 + $0x428] sm:$0xff] }
 0x8e8   : > { %v15648_v3 = vpack.c.bf16 %v11772_v44, %v11771_v59  ;;  %v11837_v44 = vld [vmem:[%s24214_s7 + $0x630] sm:$0xff] }
 0x8e9   : > { %15585 = vmatpush3.bf16.msra.mxu0 %v23172_v45  ;;  %v11787_v45 = vld [vmem:[%s24214_s7 + $0x4a0] sm:$0xff] }
 0x8ea   : > { %15901 = vmatpush3.bf16.msra.mxu1 %v23413_v18  ;;  %15587 = vmatprep.subr.bf16.mxu0 %v23175_v15  ;;  %v11788_v15 = vld [vmem:[%s24214_s7 + $0x4a8] sm:$0xff] }
 0x8eb   : > { %15903 = vmatprep.subr.bf16.mxu1 %v23416_v52  ;;  %v15646_v5 = vpack.c.bf16 %v11788_v15, %v11787_v45  ;;  %v11773_v45 = vld [vmem:[%s24214_s7 + $0x430] sm:$0xff]  ;;  %v11774_v15 = vld [vmem:[%s24214_s7 + $0x438] sm:$0xff] }
 0x8ed   : > { %15589 = vmatpush3.bf16.msra.mxu0 %v23193_v56  ;;  %v11789_v56 = vld [vmem:[%s24214_s7 + $0x4b0] sm:$0xff] }
 0x8ee   : > { %15905 = vmatpush3.bf16.msra.mxu1 %v23433_v31  ;;  %15591 = vmatprep.subr.bf16.mxu0 %v23196_v10  ;;  %v11790_v10 = vld [vmem:[%s24214_s7 + $0x4b8] sm:$0xff] }
 0x8ef   : > { %15907 = vmatprep.subr.bf16.mxu1 %v23436_v13  ;;  %v15650_v20 = vpack.c.bf16 %v11790_v10, %v11789_v56  ;;  %v11838_v56 = vld [vmem:[%s24214_s7 + $0x638] sm:$0xff] }
 0x8f0   : > { %v23522_v10 = vpack.c.bf16 %v11838_v56, %v11837_v44 }
 0x8f1   : > { %15593 = vmatpush3.bf16.msra.mxu0 %v23213_v61  ;;  %v15652_v61 = vpack.c.bf16 %v11774_v15, %v11773_v45  ;;  %v11877_v15 = vld [vmem:[%s24214_s7 + $0x760] sm:$0xff] }
 0x8f2   : > { %15909 = vmatpush3.bf16.msra.mxu1 %v15644_v62  ;;  %15595 = vmatprep.subr.bf16.mxu0 %v23216_v34  ;;  %v11831_v34 = vld [vmem:[%s24214_s7 + $0x600] sm:$0xff] }
 0x8f3   : > { %15911 = vmatprep.subr.bf16.mxu1 %v15646_v5 }
 0x8f5   : > { %15597 = vmatpush3.bf16.msra.mxu0 %v23233_v39  ;;  %v11832_v39 = vld [vmem:[%s24214_s7 + $0x608] sm:$0xff] }
 0x8f6   : > { %15913 = vmatpush3.bf16.msra.mxu1 %v15648_v3  ;;  %15599 = vmatprep.subr.bf16.mxu0 %v23236_v30  ;;  %v23489_v30 = vpack.c.bf16 %v11832_v39, %v11831_v34 }
 0x8f7   : > { %15915 = vmatprep.subr.bf16.mxu1 %v15650_v20 }
 0x8f9   : > { %15601 = vmatpush3.bf16.msra.mxu0 %v23253_v2  ;;  %v11834_v2 = vld [vmem:[%s24214_s7 + $0x618] sm:$0xff] }
 0x8fa   : > { %15917 = vmatpush3.bf16.msra.mxu1 %v15652_v61  ;;  %15603 = vmatprep.subr.bf16.mxu0 %v23262_v37 }
 0x8fd   : > { %9894 = vmatmul.mubr.f32.vlgmr.msra.gmra.mrb[54].mxu1 %v22714_v47  ;;  %15605 = vmatpush3.bf16.msra.mxu0 %v23281_v42  ;;  %v11835_v42 = vld [vmem:[%s24214_s7 + $0x620] sm:$0xff] }
 0x8fe   : > { %15607 = vmatprep.subr.bf16.mxu0 %v23290_v32  ;;  %10264 = vmatprep.mubr.f32.mxu1 %v25396_v51  ;;  %v11833_v32 = vld [vmem:[%s24214_s7 + $0x610] sm:$0xff] }
 0x8ff   : > { %v23500_v37 = vpack.c.bf16 %v11834_v2, %v11833_v32  ;;  %v11879_v2 = vld [vmem:[%s24214_s7 + $0x770] sm:$0xff] }
 0x901   : > { %15609 = vmatpush3.bf16.msra.mxu0 %v23312_v1  ;;  %v11836_v1 = vld [vmem:[%s24214_s7 + $0x628] sm:$0xff] }
 0x902   : > { %15610 = vmatprep.subr.bf16.mxu0 %v24699_v29  ;;  %v23512_v59 = vpack.c.bf16 %v11836_v1, %v11835_v42  ;;  %v11880_v42 = vld [vmem:[%s24214_s7 + $0x778] sm:$0xff] }
 0x903   : > { %v23623_v1 = vpack.c.bf16 %v11880_v42, %v11879_v2  ;;  %v10122_v42 = vld [vmem:[%s24216_s9 + $0x40] sm:$0xff] }
 0x904   : > { %8866 = vmatmul.mubr.f32.vlgmr.msra.gmra.mrb[70].mxu0 %v22714_v47 }
 0x905   : > { %15612 = vmatpush3.bf16.msra.mxu0 %v23489_v30  ;;  %13011 = vmatprep.mubr.msk.f32.mxu0 %vm16376_vm9, %v25396_v51 }
 0x906   : > { %15613 = vmatprep.subr.bf16.mxu0 %v24699_v29 }
 0x909   : > { %15615 = vmatpush3.bf16.msra.mxu0 %v23500_v37 }
 0x90a   : > { %15616 = vmatprep.subr.bf16.mxu0 %v24699_v29 }
 0x90d   : > { %15618 = vmatpush3.bf16.msra.mxu0 %v23512_v59 }
 0x90e   : > { %15619 = vmatprep.subr.bf16.mxu0 %v24699_v29 }
 0x911   : > { %15621 = vmatpush3.bf16.msra.mxu0 %v23522_v10 }
 0x912   : > { %15623 = vmatprep.subr.bf16.mxu0 %v23321_v21  ;;  %v11793_v21 = vld [vmem:[%s24214_s7 + $0x4d0] sm:$0xff] }
 0x914   : > { %13012 = vmatmul.mubr.msk.f32.vlgmr.msra.gmra.mrb[72].mxu0 %vm8247_vm10, %v22729_v40 }
 0x915   : > { %15625 = vmatpush3.bf16.msra.mxu0 %v23340_v50  ;;  %9005 = vmatprep.mubr.f32.mxu0 %v22704_v63  ;;  %v11792_v63 = vld [vmem:[%s24214_s7 + $0x4c8] sm:$0xff]  ;;  %v11794_v50 = vld [vmem:[%s24214_s7 + $0x4d8] sm:$0xff] }
 0x916   : > { %15627 = vmatprep.subr.bf16.mxu0 %v23349_v14  ;;  %v11791_v14 = vld [vmem:[%s24214_s7 + $0x4c0] sm:$0xff] }
 0x919   : > { %15629 = vmatpush3.bf16.msra.mxu0 %v23369_v16  ;;  %v23557_v16 = vpack.c.bf16 %v11794_v50, %v11793_v21  ;;  %v25525_v21 = vld [vmem:[#allocation132_spill] sm:$0xff] }
 0x91a   : > { %15631 = vmatprep.subr.bf16.mxu0 %v23373_v25  ;;  %v23546_v25 = vpack.c.bf16 %v11792_v63, %v11791_v14 }
 0x91d   : > { %15633 = vmatpush3.bf16.msra.mxu0 %v23390_v9  ;;  %v11795_v9 = vld [vmem:[%s24214_s7 + $0x4e0] sm:$0xff] }
 0x91e   : > { %15635 = vmatprep.subr.bf16.mxu0 %v23393_v6  ;;  %v11796_v6 = vld [vmem:[%s24214_s7 + $0x4e8] sm:$0xff] }
 0x921   : > { %15637 = vmatpush3.bf16.msra.mxu0 %v23413_v18  ;;  %v11797_v18 = vld [vmem:[%s24214_s7 + $0x4f0] sm:$0xff] }
 0x922   : > { %15639 = vmatprep.subr.bf16.mxu0 %v23416_v52  ;;  %v11798_v52 = vld [vmem:[%s24214_s7 + $0x4f8] sm:$0xff] }
 0x925   : > { %15641 = vmatpush3.bf16.msra.mxu0 %v23433_v31  ;;  %v23579_v31 = vpack.c.bf16 %v11798_v52, %v11797_v18 }
 0x926   : > { %15643 = vmatprep.subr.bf16.mxu0 %v23436_v13  ;;  %v11873_v13 = vld [vmem:[%s24214_s7 + $0x740] sm:$0xff] }
 0x929   : > { %15645 = vmatpush3.bf16.msra.mxu0 %v15644_v62  ;;  %v11874_v62 = vld [vmem:[%s24214_s7 + $0x748] sm:$0xff] }
 0x92a   : > { %15647 = vmatprep.subr.bf16.mxu0 %v15646_v5  ;;  %v23589_v5 = vpack.c.bf16 %v11874_v62, %v11873_v13  ;;  %v25530_v13 = vld [vmem:[#allocation142_spill] sm:$0xff]  ;;  %v25531_v62 = vld [vmem:[#allocation144_spill] sm:$0xff] }
 0x92d   : > { %15649 = vmatpush3.bf16.msra.mxu0 %v15648_v3  ;;  %v11875_v3 = vld [vmem:[%s24214_s7 + $0x750] sm:$0xff] }
 0x92e   : > { %15651 = vmatprep.subr.bf16.mxu0 %v15650_v20  ;;  %v11876_v20 = vld [vmem:[%s24214_s7 + $0x758] sm:$0xff] }
 0x92f   : > { %v23601_v45 = vpack.c.bf16 %v11876_v20, %v11875_v3  ;;  %v25532_v3 = vld [vmem:[#allocation146_spill] sm:$0xff] }
 0x930   : > { %v25533_v20 = vld [vmem:[#allocation58_spill] sm:$0xff] }
 0x931   : > { %15653 = vmatpush3.bf16.msra.mxu0 %v15652_v61  ;;  %v11878_v61 = vld [vmem:[%s24214_s7 + $0x768] sm:$0xff] }
 0x932   : > { %15654 = vmatprep.subr.bf16.mxu0 %v24699_v29  ;;  %v23613_v32 = vpack.c.bf16 %v11878_v61, %v11877_v15  ;;  %v25534_v15 = vld [vmem:[#allocation148_spill] sm:$0xff] }
 0x933   : > { %v10119_v61 = vld [vmem:[%s24216_s9 + $0x28] sm:$0xff] }
 0x934   : > { %9006 = vmatmul.mubr.f32.vlgmr.msra.gmra.mrb[74].mxu0 %v22702_v24  ;;  %v23569_v24 = vpack.c.bf16 %v11796_v6, %v11795_v9  ;;  %v25527_v9 = vld [vmem:[#allocation136_spill] sm:$0xff]  ;;  %v25528_v6 = vld [vmem:[#allocation138_spill] sm:$0xff] }
 0x935   : > { %15656 = vmatpush3.bf16.msra.mxu0 %v23546_v25  ;;  %13030 = vmatprep.mubr.msk.f32.mxu0 %vm16376_vm9, %v25396_v51 }
 0x936   : > { %15657 = vmatprep.subr.bf16.mxu0 %v24699_v29 }
 0x939   : > { %15659 = vmatpush3.bf16.msra.mxu0 %v23557_v16 }
 0x93a   : > { %15660 = vmatprep.subr.bf16.mxu0 %v24699_v29 }
 0x93d   : > { %15662 = vmatpush3.bf16.msra.mxu0 %v23569_v24 }
 0x93e   : > { %15663 = vmatprep.subr.bf16.mxu0 %v24699_v29 }
 0x941   : > { %15665 = vmatpush3.bf16.msra.mxu0 %v23579_v31 }
 0x942   : > { %15698 = vmatprep.subr.bf16.mxu0 %v24699_v29 }
 0x944   : > { %13031 = vmatmul.mubr.msk.f32.vlgmr.msra.gmra.mrb[72].mxu0 %vm8247_vm10, %v22706_v35 }
 0x945   : > { %15700 = vmatpush3.bf16.msra.mxu0 %v23589_v5  ;;  %13049 = vmatprep.mubr.msk.f32.mxu0 %vm16376_vm9, %v25396_v51 }
 0x946   : > { %15701 = vmatprep.subr.bf16.mxu0 %v24699_v29 }
 0x947   : > { %v12352_v34 = vpop.f32.mrb[62].mxu0 }
 0x948   : > { %v12353_v39 = vpop.f32.mrb[63].mxu0 }
 0x949   : > { %15703 = vmatpush3.bf16.msra.mxu0 %v23601_v45  ;;  %v12354_v35 = vadd.f32 %v12353_v39, %v12352_v34  ;;  %v10123_v39 = vld [vmem:[%s24216_s9 + $0x48] sm:$0xff] }
 0x94a   : > { %15704 = vmatprep.subr.bf16.mxu0 %v24699_v29 }
 0x94d   : > { %15706 = vmatpush3.bf16.msra.mxu0 %v23613_v32 }
 0x94e   : > { %15707 = vmatprep.subr.bf16.mxu0 %v24699_v29 }
 0x94f   : > { %v12572_v44 = vpop.f32.mrb[46].mxu1 }
 0x950   : > { %v12573_v56 = vpop.f32.mrb[47].mxu1 }
 0x951   : > { %15709 = vmatpush3.bf16.msra.mxu0 %v23623_v1  ;;  %v23627_v14 = vadd.f32 %v12573_v56, %v12572_v44 }
 0x952   : > { %15742 = vmatprep.subr.bf16.mxu0 %v24699_v29 }
 0x954   : > { %13050 = vmatmul.mubr.msk.f32.vlgmr.msra.gmra.mrb[72].mxu0 %vm8247_vm10, %v22768_v27 }
 0x955   : > { %15744 = vmatpush3.bf16.msra.mxu0 %v22716_v58  ;;  %13068 = vmatprep.mubr.msk.f32.mxu0 %vm16376_vm9, %v25396_v51 }
 0x956   : > { %15745 = vmatprep.subr.bf16.mxu0 %v24699_v29 }
 0x959   : > { %15747 = vmatpush3.bf16.msra.mxu0 %v22731_v26 }
 0x95a   : > { %15748 = vmatprep.subr.bf16.mxu0 %v24699_v29 }
 0x95d   : > { %15750 = vmatpush3.bf16.msra.mxu0 %v22745_v28 }
 0x95e   : > { %15751 = vmatprep.subr.bf16.mxu0 %v24699_v29 }
 0x961   : > { %15753 = vmatpush3.bf16.msra.mxu0 %v22766_v23 }
 0x962   : > { %15755 = vmatprep.subr.bf16.mxu0 %v22772_v54 }
 0x964   : > { %13069 = vmatmul.mubr.msk.f32.vlgmr.msra.gmra.mrb[76].mxu0 %vm8247_vm10, %v22768_v27 }
 0x965   : > { %15757 = vmatpush3.bf16.msra.mxu0 %v22789_v55  ;;  %9468 = vmatprep.mubr.f32.mxu0 %v22718_v46 }
 0x966   : > { %15759 = vmatprep.subr.bf16.mxu0 %v22795_v19 }
 0x969   : > { %15761 = vmatpush3.bf16.msra.mxu0 %v22815_v36 }
 0x96a   : > { %15763 = vmatprep.subr.bf16.mxu0 %v22819_v7  ;;  %v25513_v7 = vld [vmem:[#allocation62_spill] sm:$0xff] }
 0x96d   : > { %15765 = vmatpush3.bf16.msra.mxu0 %v22835_v8  ;;  %v25514_v8 = vld [vmem:[#allocation152_spill] sm:$0xff] }
 0x96e   : > { %15767 = vmatprep.subr.bf16.mxu0 %v22839_v33  ;;  %v25515_v33 = vld [vmem:[#allocation64_spill] sm:$0xff] }
 0x970   : > { %v12616_v58 = vpop.f32.mrb[48].mxu1 }
 0x971   : > { %15769 = vmatpush3.bf16.msra.mxu0 %v22855_v57  ;;  %v12617_v26 = vpop.f32.mrb[49].mxu1  ;;  %v25516_v57 = vld [vmem:[#allocation150_spill] sm:$0xff] }
 0x972   : > { %15771 = vmatprep.subr.bf16.mxu0 %v22859_v11  ;;  %v23653_v28 = vadd.f32 %v12617_v26, %v12616_v58 }
 0x975   : > { %15773 = vmatpush3.bf16.msra.mxu0 %v22875_v53 }
 0x976   : > { %15775 = vmatprep.subr.bf16.mxu0 %v22879_v4 }
 0x977   : > { %v12396_v46 = vpop.f32.mrb[66].mxu0 }
 0x978   : > { %v12397_v23 = vpop.f32.mrb[67].mxu0 }
 0x979   : > { %v12398_v54 = vadd.f32 %v12397_v23, %v12396_v46  ;;  %15777 = vmatpush3.bf16.msra.mxu0 %v22901_v41 }
 0x97a   : > { %15779 = vmatprep.subr.bf16.mxu0 %v22905_v17 }
 0x97b   : > { %v16118_v55 = vadd.f32 %v12398_v54, %v12354_v35  ;;  %v10127_v35 = vld [vmem:[%s24216_s9 + $0x68] sm:$0xff] }
 0x97c   : > { %v15978_v2 = vpack.c.bf16 %v10127_v35, %v10123_v39  ;;  %v10362_v35 = vld [vmem:[%s24218_s11 + $0x80] sm:$0xff] }
 0x97d   : > { %15781 = vmatpush3.bf16.msra.mxu0 %v22935_v12 }
 0x97e   : > { %15783 = vmatprep.subr.bf16.mxu0 %v22941_v0 }
 0x981   : > { %15785 = vmatpush3.bf16.msra.mxu0 %v22966_v48 }
 0x982   : > { %15786 = vmatprep.subr.bf16.mxu0 %v24699_v29 }
 0x984   : > { %9469 = vmatmul.mubr.f32.vlgmr.msra.gmra.mrb[78].mxu0 %v22714_v47 }
 0x985   : > { %15788 = vmatpush3.bf16.msra.mxu0 %v22995_v49  ;;  %13087 = vmatprep.mubr.msk.f32.mxu0 %vm16376_vm9, %v25396_v51 }
 0x986   : > { %15789 = vmatprep.subr.bf16.mxu0 %v24699_v29 }
 0x989   : > { %15791 = vmatpush3.bf16.msra.mxu0 %v23024_v38 }
 0x98a   : > { %15792 = vmatprep.subr.bf16.mxu0 %v24699_v29 }
 0x98d   : > { %15794 = vmatpush3.bf16.msra.mxu0 %v23056_v60  ;;  %v25518_v60 = vld [vmem:[#allocation120_spill] sm:$0xff] }
 0x98e   : > { %15795 = vmatprep.subr.bf16.mxu0 %v24699_v29 }
 0x990   : > { %v12704_v19 = vpop.f32.mrb[50].mxu1 }
 0x991   : > { %15797 = vmatpush3.bf16.msra.mxu0 %v23084_v43  ;;  %v12705_v36 = vpop.f32.mrb[51].mxu1  ;;  %v25519_v43 = vld [vmem:[#allocation60_spill] sm:$0xff] }
 0x992   : > { %15830 = vmatprep.subr.bf16.mxu0 %v24699_v29  ;;  %v23674_v47 = vadd.f32 %v12705_v36, %v12704_v19 }
 0x994   : > { %13088 = vmatmul.mubr.msk.f32.vlgmr.msra.gmra.mrb[76].mxu0 %vm8247_vm10, %v22729_v40 }
 0x995   : > { %15832 = vmatpush3.bf16.msra.mxu0 %v23277_v22  ;;  %13106 = vmatprep.mubr.msk.f32.mxu0 %vm16376_vm9, %v25396_v51  ;;  %v25520_v22 = vld [vmem:[#allocation122_spill] sm:$0xff] }
 0x996   : > { %15833 = vmatprep.subr.bf16.mxu0 %v24699_v29 }
 0x999   : > { %15835 = vmatpush3.bf16.msra.mxu0 %v25513_v7  ;;  %v10131_v7 = vld [vmem:[%s24216_s9 + $0x88] sm:$0xff] }
 0x99a   : > { %15836 = vmatprep.subr.bf16.mxu0 %v24699_v29 }
 0x99d   : > { %15838 = vmatpush3.bf16.msra.mxu0 %v25514_v8  ;;  %v10135_v8 = vld [vmem:[%s24216_s9 + $0xa8] sm:$0xff] }
 0x99e   : > { %15839 = vmatprep.subr.bf16.mxu0 %v24699_v29 }
 0x9a1   : > { %15841 = vmatpush3.bf16.msra.mxu0 %v25515_v33  ;;  %v15982_v33 = vpack.c.bf16 %v10135_v8, %v10131_v7  ;;  %v10350_v7 = vld [vmem:[%s24218_s11 + $0x20] sm:$0xff]  ;;  %v10351_v8 = vld [vmem:[%s24218_s11 + $0x28] sm:$0xff] }
 0x9a2   : > { %15874 = vmatprep.subr.bf16.mxu0 %v24699_v29 }
 0x9a4   : > { %13107 = vmatmul.mubr.msk.f32.vlgmr.msra.gmra.mrb[76].mxu0 %vm8247_vm10, %v25516_v57 }
 0x9a5   : > { %15876 = vmatpush3.bf16.msra.mxu0 %v23489_v30  ;;  %13125 = vmatprep.mubr.msk.f32.mxu0 %vm16376_vm9, %v25396_v51  ;;  %v25521_v30 = vld [vmem:[#allocation124_spill] sm:$0xff] }
 0x9a6   : > { %15877 = vmatprep.subr.bf16.mxu0 %v24699_v29 }
 0x9a7   : > { %v12440_v11 = vpop.f32.mrb[68].mxu0 }
 0x9a8   : > { %v12441_v53 = vpop.f32.mrb[69].mxu0 }
 0x9a9   : > { %v12442_v4 = vadd.f32 %v12441_v53, %v12440_v11  ;;  %15879 = vmatpush3.bf16.msra.mxu0 %v23500_v37  ;;  %v25522_v37 = vld [vmem:[#allocation126_spill] sm:$0xff]  ;;  %v10139_v53 = vld [vmem:[%s24216_s9 + $0xc8] sm:$0xff] }
 0x9aa   : > { %15880 = vmatprep.subr.bf16.mxu0 %v24699_v29 }
 0x9ab   : > { %v16119_v41 = vadd.f32 %v16118_v55, %v12442_v4  ;;  %v10143_v4 = vld [vmem:[%s24216_s9 + $0xe8] sm:$0xff] }
 0x9ad   : > { %15882 = vmatpush3.bf16.msra.mxu0 %v23512_v59  ;;  %v25523_v59 = vld [vmem:[#allocation128_spill] sm:$0xff] }
 0x9ae   : > { %15883 = vmatprep.subr.bf16.mxu0 %v24699_v29 }
 0x9b0   : > { %v12748_v17 = vpop.f32.mrb[52].mxu1 }
 0x9b1   : > { %v12749_v12 = vpop.f32.mrb[53].mxu1  ;;  %15885 = vmatpush3.bf16.msra.mxu0 %v23522_v10  ;;  %v25524_v10 = vld [vmem:[#allocation130_spill] sm:$0xff] }
 0x9b2   : > { %v12750_v0 = vadd.f32 %v12749_v12, %v12748_v17  ;;  %15918 = vmatprep.subr.bf16.mxu0 %v24699_v29  ;;  %v15986_v17 = vpack.c.bf16 %v10143_v4, %v10139_v53  ;;  %v10142_v12 = vld [vmem:[%s24216_s9 + $0xe0] sm:$0xff]  ;;  %v16048_v4 = vpack.c.bf16 %v10351_v8, %v10350_v7  ;;  %v10152_v7 = vld [vmem:[%s24216_s9 + $0x130] sm:$0xff]  ;;  %v10157_v8 = vld [vmem:[%s24216_s9 + $0x158] sm:$0xff] }
 0x9b4   : > { %13126 = vmatmul.mubr.msk.f32.vlgmr.msra.gmra.mrb[80].mxu0 %vm8247_vm10, %v22768_v27  ;;  %v25517_v27 = vld [vmem:[#allocation119_spill] sm:$0xff] }
 0x9b5   : > { %15920 = vmatpush3.bf16.msra.mxu0 %v23546_v25  ;;  %13144 = vmatprep.mubr.msk.f32.mxu0 %vm16376_vm9, %v25396_v51 }
 0x9b6   : > { %15921 = vmatprep.subr.bf16.mxu0 %v24699_v29 }
 0x9b7   : > { %v8714_v48 = vpop.f32.mrb[64].mxu0 }
 0x9b8   : > { %v23706_v49 = vadd.f32 %v16119_v41, %v8714_v48  ;;  %v12994_v38 = vpop.f32.mrb[65].mxu0  ;;  %v10138_v41 = vld [vmem:[%s24216_s9 + $0xc0] sm:$0xff]  ;;  %v10151_v48 = vld [vmem:[%s24216_s9 + $0x128] sm:$0xff] }
 0x9b9   : > { %15923 = vmatpush3.bf16.msra.mxu0 %v23557_v16  ;;  %v15988_v38 = vpack.c.bf16 %v10142_v12, %v10138_v41  ;;  %v10353_v12 = vld [vmem:[%s24218_s11 + $0x38] sm:$0xff] }
 0x9ba   : > { %15924 = vmatprep.subr.bf16.mxu0 %v24699_v29 }
 0x9bd   : > { %15926 = vmatpush3.bf16.msra.mxu0 %v23569_v24 }
 0x9be   : > { %15927 = vmatprep.subr.bf16.mxu0 %v24699_v29 }
 0x9c1   : > { %15929 = vmatpush3.bf16.msra.mxu0 %v23579_v31  ;;  %v25529_v31 = vld [vmem:[#allocation140_spill] sm:$0xff] }
 0x9c2   : > { %15931 = vmatprep.subr.bf16.mxu0 %v25517_v27 }
 0x9c4   : > { %13145 = vmatmul.mubr.msk.f32.vlgmr.msra.gmra.mrb[80].mxu0 %vm8247_vm10, %v22729_v40  ;;  %v25526_v40 = vld [vmem:[#allocation134_spill] sm:$0xff] }
 0x9c5   : > { %15933 = vmatpush3.bf16.msra.mxu0 %v25518_v60  ;;  %10033 = vmatprep.mubr.f32.mxu0 %v25519_v43  ;;  %v10146_v60 = vld [vmem:[%s24216_s9 + $0x100] sm:$0xff] }
 0x9c6   : > { %15935 = vmatprep.subr.bf16.mxu0 %v25520_v22  ;;  %v10150_v43 = vld [vmem:[%s24216_s9 + $0x120] sm:$0xff]  ;;  %v10155_v22 = vld [vmem:[%s24216_s9 + $0x148] sm:$0xff] }
 0x9c9   : > { %15937 = vmatpush3.bf16.msra.mxu0 %v25521_v30  ;;  %v10159_v30 = vld [vmem:[%s24216_s9 + $0x168] sm:$0xff] }
 0x9ca   : > { %15939 = vmatprep.subr.bf16.mxu0 %v25522_v37  ;;  %v15992_v37 = vpack.c.bf16 %v10150_v43, %v10146_v60  ;;  %v10354_v43 = vld [vmem:[%s24218_s11 + $0x40] sm:$0xff] }
 0x9cd   : > { %15941 = vmatpush3.bf16.msra.mxu0 %v25523_v59  ;;  %v15994_v59 = vpack.c.bf16 %v10159_v30, %v10155_v22 }
 0x9ce   : > { %15943 = vmatprep.subr.bf16.mxu0 %v25524_v10  ;;  %v10154_v10 = vld [vmem:[%s24216_s9 + $0x140] sm:$0xff] }
 0x9d0   : > { %v12792_v63 = vpop.f32.mrb[54].mxu1 }
 0x9d1   : > { %v12793_v25 = vpop.f32.mrb[55].mxu1  ;;  %15945 = vmatpush3.bf16.msra.mxu0 %v25525_v21  ;;  %v10163_v21 = vld [vmem:[%s24216_s9 + $0x188] sm:$0xff] }
 0x9d2   : > { %v12794_v50 = vadd.f32 %v12793_v25, %v12792_v63  ;;  %15947 = vmatprep.subr.bf16.mxu0 %v25526_v40  ;;  %v10158_v63 = vld [vmem:[%s24216_s9 + $0x160] sm:$0xff] }
 0x9d3   : > { %v15996_v25 = vpack.c.bf16 %v10158_v63, %v10154_v10  ;;  %v10374_v10 = vld [vmem:[%s24218_s11 + $0xe0] sm:$0xff]  ;;  %v10375_v63 = vld [vmem:[%s24218_s11 + $0xe8] sm:$0xff] }
 0x9d4   : > { %v23725_v16 = vadd.f32 %v12794_v50, %v12750_v0  ;;  %v10147_v0 = vld [vmem:[%s24216_s9 + $0x108] sm:$0xff] }
 0x9d5   : > { %15949 = vmatpush3.bf16.msra.mxu0 %v25527_v9  ;;  %v15990_v27 = vpack.c.bf16 %v10151_v48, %v10147_v0  ;;  %v10167_v50 = vld [vmem:[%s24216_s9 + $0x1a8] sm:$0xff]  ;;  %v10162_v9 = vld [vmem:[%s24216_s9 + $0x180] sm:$0xff] }
 0x9d6   : > { %15951 = vmatprep.subr.bf16.mxu0 %v25528_v6  ;;  %v15998_v40 = vpack.c.bf16 %v10167_v50, %v10163_v21  ;;  %v10166_v6 = vld [vmem:[%s24216_s9 + $0x1a0] sm:$0xff]  ;;  %v16062_v21 = vpack.c.bf16 %v10375_v63, %v10374_v10  ;;  %v10377_v10 = vld [vmem:[%s24218_s11 + $0xf8] sm:$0xff] }
 0x9d7   : > { %v12484_v24 = vpop.f32.mrb[70].mxu0  ;;  %v10370_v48 = vld [vmem:[%s24218_s11 + $0xc0] sm:$0xff] }
 0x9d8   : > { %v12485_v18 = vpop.f32.mrb[71].mxu0 }
 0x9d9   : > { %v12486_v52 = vadd.f32 %v12485_v18, %v12484_v24  ;;  %15953 = vmatpush3.bf16.msra.mxu0 %v25529_v31  ;;  %v16000_v24 = vpack.c.bf16 %v10166_v6, %v10162_v9  ;;  %v10171_v18 = vld [vmem:[%s24216_s9 + $0x1c8] sm:$0xff] }
 0x9da   : > { %15955 = vmatprep.subr.bf16.mxu0 %v25530_v13  ;;  %v10170_v13 = vld [vmem:[%s24216_s9 + $0x1c0] sm:$0xff] }
 0x9dd   : > { %15957 = vmatpush3.bf16.msra.mxu0 %v25531_v62  ;;  %v10174_v62 = vld [vmem:[%s24216_s9 + $0x1e0] sm:$0xff] }
 0x9de   : > { %15959 = vmatprep.subr.bf16.mxu0 %v25532_v3  ;;  %v16004_v3 = vpack.c.bf16 %v10174_v62, %v10170_v13  ;;  %v10116_v62 = vld [vmem:[%s24216_s9 + $0x10] sm:$0xff] }
 0x9e1   : > { %15961 = vmatpush3.bf16.msra.mxu0 %v25533_v20  ;;  %v10117_v20 = vld [vmem:[%s24216_s9 + $0x18] sm:$0xff] }
 0x9e2   : > { %15962 = vmatprep.subr.bf16.mxu0 %v24699_v29 }
 0x9e4   : > { %10034 = vmatmul.mubr.f32.vlgmr.msra.gmra.mrb[82].mxu0 %v25534_v15  ;;  %v10121_v15 = vld [vmem:[%s24216_s9 + $0x38] sm:$0xff] }
 0x9e5   : > { %15964 = vmatpush3.bf16.msra.mxu0 %v23589_v5  ;;  %13163 = vmatprep.mubr.msk.f32.mxu0 %vm16376_vm9, %v25396_v51  ;;  %v10115_v5 = vld [vmem:[%s24216_s9 + $0x8] sm:$0xff] }
 0x9e6   : > { %15965 = vmatprep.subr.bf16.mxu0 %v24699_v29  ;;  %v15974_v34 = vpack.c.bf16 %v10119_v61, %v10115_v5  ;;  %v16006_v5 = vpack.c.bf16 %v10121_v15, %v10117_v20  ;;  %v10129_v20 = vld [vmem:[%s24216_s9 + $0x78] sm:$0xff] }
 0x9e8   : > { %15975 = vmatprep.subr.bf16.mxu1 %v15974_v34 }
 0x9e9   : > { %15967 = vmatpush3.bf16.msra.mxu0 %v23601_v45  ;;  %v10114_v45 = vld [vmem:[%s24216_s9] sm:$0xff] }
 0x9ea   : > { %15968 = vmatprep.subr.bf16.mxu0 %v24699_v29 }
 0x9ed   : > { %15970 = vmatpush3.bf16.msra.mxu0 %v23613_v32 }
 0x9ee   : > { %15971 = vmatprep.subr.bf16.mxu0 %v24699_v29  ;;  %v10118_v29 = vld [vmem:[%s24216_s9 + $0x20] sm:$0xff] }
 0x9ef   : > { %v15976_v32 = vpack.c.bf16 %v10118_v29, %v10114_v45 }
 0x9f1   : > { %15973 = vmatpush3.bf16.msra.mxu0 %v23623_v1  ;;  %v10126_v1 = vld [vmem:[%s24216_s9 + $0x60] sm:$0xff]  ;;  %15977 = vmatpush1.bf16.msra.mxu1 %v15976_v32  ;;  %v10363_v32 = vld [vmem:[%s24218_s11 + $0x88] sm:$0xff] }
 0x9f2   : > { %v15980_v44 = vpack.c.bf16 %v10126_v1, %v10122_v42  ;;  %15979 = vmatprep.subr.bf16.mxu1 %v15978_v2  ;;  %v10346_v2 = vld [vmem:[%s24218_s11] sm:$0xff]  ;;  %v16038_v42 = vpack.c.bf16 %v10363_v32, %v10362_v35  ;;  %v10347_v1 = vld [vmem:[%s24218_s11 + $0x8] sm:$0xff]  ;;  %v10137_v35 = vld [vmem:[%s24216_s9 + $0xb8] sm:$0xff] }
 0x9f4   : > { %13164 = vmatmul.mubr.msk.f32.vlgmr.msra.gmra.mrb[80].mxu0 %vm8247_vm10, %v25516_v57  ;;  %v10134_v57 = vld [vmem:[%s24216_s9 + $0xa0] sm:$0xff]  ;;  %16039 = vmatprep.subr.bf16.mxu0 %v16038_v42  ;;  %v10132_v42 = vld [vmem:[%s24216_s9 + $0x90] sm:$0xff] }
 0x9f5   : > { %15981 = vmatpush1.bf16.msra.mxu1 %v15980_v44  ;;  %v16040_v44 = vpack.c.bf16 %v10347_v1, %v10346_v2  ;;  %v10136_v1 = vld [vmem:[%s24216_s9 + $0xb0] sm:$0xff] }
 0x9f6   : > { %15983 = vmatprep.subr.bf16.mxu1 %v15982_v33  ;;  %v10368_v33 = vld [vmem:[%s24218_s11 + $0xb0] sm:$0xff] }
 0x9f7   : > { %16041 = vmatpush3.bf16.msra.mxu0 %v16040_v44 }
 0xa07   : > { %v12528_v56 = vpop.f32.mrb[74].mxu0 }
 0xa08   : > { %v12529_v58 = vpop.f32.mrb[75].mxu0 }
 0xa09   : > { %v12530_v26 = vadd.f32 %v12529_v58, %v12528_v56  ;;  %v10348_v58 = vld [vmem:[%s24218_s11 + $0x10] sm:$0xff] }
 0xa0b   : > { %v16121_v46 = vadd.f32 %v12530_v26, %v12486_v52  ;;  %v10175_v52 = vld [vmem:[%s24216_s9 + $0x1e8] sm:$0xff]  ;;  %v10349_v26 = vld [vmem:[%s24218_s11 + $0x18] sm:$0xff] }
 0xa0c   : > { %v16002_v31 = vpack.c.bf16 %v10175_v52, %v10171_v18 }
 0xa0d   : > { %v16122_v23 = vadd.f32 %v16121_v46, %v23627_v14  ;;  %v10130_v14 = vld [vmem:[%s24216_s9 + $0x80] sm:$0xff] }
 0xa0e   : > { %v15984_v11 = vpack.c.bf16 %v10134_v57, %v10130_v14  ;;  %v10366_v46 = vld [vmem:[%s24218_s11 + $0xa0] sm:$0xff]  ;;  %v10369_v14 = vld [vmem:[%s24218_s11 + $0xb8] sm:$0xff] }
 0xa0f   : > { %v16050_v41 = vpack.c.bf16 %v10369_v14, %v10368_v33  ;;  %v10161_v33 = vld [vmem:[%s24216_s9 + $0x178] sm:$0xff] }
 0xa10   : > { %15985 = vmatpush1.bf16.msra.mxu1 %v15984_v11 }
 0xa11   : > { %15987 = vmatprep.subr.bf16.mxu1 %v15986_v17  ;;  %v10352_v17 = vld [vmem:[%s24218_s11 + $0x30] sm:$0xff] }
 0xa14   : > { %15989 = vmatpush1.bf16.msra.mxu1 %v15988_v38  ;;  %v10371_v38 = vld [vmem:[%s24218_s11 + $0xc8] sm:$0xff] }
 0xa15   : > { %15991 = vmatprep.subr.bf16.mxu1 %v15990_v27  ;;  %v16052_v27 = vpack.c.bf16 %v10353_v12, %v10352_v17  ;;  %v16054_v60 = vpack.c.bf16 %v10371_v38, %v10370_v48  ;;  %v10168_v48 = vld [vmem:[%s24216_s9 + $0x1b0] sm:$0xff]  ;;  %v10173_v38 = vld [vmem:[%s24216_s9 + $0x1d8] sm:$0xff] }
 0xa18   : > { %15993 = vmatpush1.bf16.msra.mxu1 %v15992_v37  ;;  %v10356_v37 = vld [vmem:[%s24218_s11 + $0x50] sm:$0xff] }
 0xa19   : > { %15995 = vmatprep.subr.bf16.mxu1 %v15994_v59  ;;  %v10357_v59 = vld [vmem:[%s24218_s11 + $0x58] sm:$0xff] }
 0xa1c   : > { %15997 = vmatpush1.bf16.msra.mxu1 %v15996_v25  ;;  %v16060_v25 = vpack.c.bf16 %v10357_v59, %v10356_v37  ;;  %v10376_v59 = vld [vmem:[%s24218_s11 + $0xf0] sm:$0xff] }
 0xa1d   : > { %15999 = vmatprep.subr.bf16.mxu1 %v15998_v40  ;;  %v16066_v63 = vpack.c.bf16 %v10377_v10, %v10376_v59  ;;  %v25537_v10 = vld [vmem:[#allocation9_spill] sm:$0xff] }
 0xa20   : > { %16001 = vmatpush1.bf16.msra.mxu1 %v16000_v24 }
 0xa21   : > { %16003 = vmatprep.subr.bf16.mxu1 %v16002_v31  ;;  %v10111_v31 = vld [vmem:[%s24215_s8] sm:$0x1] }
 0xa24   : > { %16005 = vmatpush1.bf16.msra.mxu1 %v16004_v3  ;;  %v10120_v3 = vld [vmem:[%s24216_s9 + $0x30] sm:$0xff] }
 0xa25   : > { %16007 = vmatprep.subr.bf16.mxu1 %v16006_v5  ;;  %v16008_v5 = vpack.c.bf16 %v10120_v3, %v10116_v62  ;;  %v10380_v62 = vld [vmem:[%s24218_s11 + $0x110] sm:$0xff] }
 0xa27   : > { %v9258_v54 = vpop.f32.mrb[72].mxu0 }
 0xa28   : > { %v23772_v55 = vadd.f32 %v16122_v23, %v9258_v54  ;;  %v13051_v19 = vpop.f32.mrb[73].mxu0  ;;  %v10367_v23 = vld [vmem:[%s24218_s11 + $0xa8] sm:$0xff]  ;;  %v16044_v54 = vpack.c.bf16 %v10349_v26, %v10348_v58  ;;  %v10144_v58 = vld [vmem:[%s24216_s9 + $0xf0] sm:$0xff]  ;;  %v10149_v26 = vld [vmem:[%s24216_s9 + $0x118] sm:$0xff] }
 0xa29   : > { %v16046_v19 = vpack.c.bf16 %v10367_v23, %v10366_v46  ;;  %v10153_v46 = vld [vmem:[%s24216_s9 + $0x138] sm:$0xff] }
 0xa2a   : > { %v9263_v36 = vmax.f32 %v23706_v49, %v23772_v55  ;;  %v10355_v49 = vld [vmem:[%s24218_s11 + $0x48] sm:$0xff]  ;;  %v10372_v55 = vld [vmem:[%s24218_s11 + $0xd0] sm:$0xff] }
 0xa2b   : > { %v16056_v22 = vpack.c.bf16 %v10355_v49, %v10354_v43  ;;  %v10172_v49 = vld [vmem:[%s24216_s9 + $0x1d0] sm:$0xff] }
 0xa57   : > { %v12660_v61 = vpop.f32.mrb[78].mxu0 }
 0xa58   : > { %v12661_v45 = vpop.f32.mrb[79].mxu0 }
 0xa59   : > { %v12662_v34 = vadd.f32 %v12661_v45, %v12660_v61 }
 0xa5b   : > { %v16124_v29 = vadd.f32 %v12662_v34, %v23653_v28  ;;  %v10364_v28 = vld [vmem:[%s24218_s11 + $0x90] sm:$0xff] }
 0xa5c   : > { %v10124_v34 = vld [vmem:[%s24216_s9 + $0x50] sm:$0xff] }
 0xa5d   : > { %v16125_v39 = vadd.f32 %v16124_v29, %v23674_v47  ;;  %v10365_v47 = vld [vmem:[%s24218_s11 + $0x98] sm:$0xff]  ;;  %v10128_v29 = vld [vmem:[%s24216_s9 + $0x70] sm:$0xff] }
 0xa5e   : > { %v16042_v56 = vpack.c.bf16 %v10365_v47, %v10364_v28  ;;  %v16012_v32 = vpack.c.bf16 %v10128_v29, %v10124_v34  ;;  %v10141_v28 = vld [vmem:[%s24216_s9 + $0xd8] sm:$0xff]  ;;  %v10383_v34 = vld [vmem:[%s24218_s11 + $0x128] sm:$0xff]  ;;  %v10400_v29 = vld [vmem:[%s24218_s11 + $0x1b0] sm:$0xff] }
 0xa5f   : > { %v10145_v47 = vld [vmem:[%s24216_s9 + $0xf8] sm:$0xff] }
 0xa60   : > { %16043 = vmatprep.subr.bf16.mxu0 %v16042_v56  ;;  %v16018_v44 = vpack.c.bf16 %v10145_v47, %v10141_v28  ;;  %v10140_v56 = vld [vmem:[%s24216_s9 + $0xd0] sm:$0xff]  ;;  %v10403_v28 = vld [vmem:[%s24218_s11 + $0x1c8] sm:$0xff] }
 0xa61   : > { %16045 = vmatpush3.bf16.msra.mxu0 %v16044_v54  ;;  %v16020_v23 = vpack.c.bf16 %v10144_v58, %v10140_v56  ;;  %v16022_v54 = vpack.c.bf16 %v10153_v46, %v10149_v26  ;;  %v10387_v56 = vld [vmem:[%s24218_s11 + $0x148] sm:$0xff]  ;;  %v10404_v58 = vld [vmem:[%s24218_s11 + $0x1d0] sm:$0xff]  ;;  %v10405_v26 = vld [vmem:[%s24218_s11 + $0x1d8] sm:$0xff] }
 0xa62   : > { %16047 = vmatprep.subr.bf16.mxu0 %v16046_v19  ;;  %v10148_v19 = vld [vmem:[%s24216_s9 + $0x110] sm:$0xff] }
 0xa63   : > { %v16024_v14 = vpack.c.bf16 %v10152_v7, %v10148_v19  ;;  %v10389_v19 = vld [vmem:[%s24218_s11 + $0x158] sm:$0xff]  ;;  %v10406_v7 = vld [vmem:[%s24218_s11 + $0x1e0] sm:$0xff] }
 0xa65   : > { %16049 = vmatpush3.bf16.msra.mxu0 %v16048_v4  ;;  %v10165_v4 = vld [vmem:[%s24216_s9 + $0x198] sm:$0xff] }
 0xa66   : > { %16051 = vmatprep.subr.bf16.mxu0 %v16050_v41  ;;  %v10169_v41 = vld [vmem:[%s24216_s9 + $0x1b8] sm:$0xff] }
 0xa67   : > { %v16030_v12 = vpack.c.bf16 %v10169_v41, %v10165_v4  ;;  %v10408_v4 = vld [vmem:[%s24218_s11 + $0x1f0] sm:$0xff]  ;;  %v10409_v41 = vld [vmem:[%s24218_s11 + $0x1f8] sm:$0xff] }
 0xa69   : > { %16053 = vmatpush3.bf16.msra.mxu0 %v16052_v27  ;;  %v10177_v27 = vld [vmem:[%s24216_s9 + $0x1f8] sm:$0xff] }
 0xa6a   : > { %16055 = vmatprep.subr.bf16.mxu0 %v16054_v60  ;;  %v16034_v43 = vpack.c.bf16 %v10177_v27, %v10173_v38  ;;  %v10178_v38 = vld [vmem:[%s24217_s10] sm:$0xf]  ;;  %v25535_v27 = vld [vmem:[#allocation10_spill] sm:$0xff] }
 0xa6d   : > { %16057 = vmatpush3.bf16.msra.mxu0 %v16056_v22  ;;  %v10358_v22 = vld [vmem:[%s24218_s11 + $0x60] sm:$0xff] }
 0xa77   : > { %v9683_v57 = vpop.f32.mrb[76].mxu0 }
 0xa78   : > { %v16126_v11 = vadd.f32 %v16125_v39, %v9683_v57  ;;  %v13108_v53 = vpop.f32.mrb[77].mxu0  ;;  %v10133_v39 = vld [vmem:[%s24216_s9 + $0x98] sm:$0xff]  ;;  %v16026_v57 = vpack.c.bf16 %v10161_v33, %v10157_v8  ;;  %v10407_v8 = vld [vmem:[%s24218_s11 + $0x1e8] sm:$0xff] }
 0xa79   : > { %v16014_v2 = vpack.c.bf16 %v10137_v35, %v10133_v39  ;;  %v10160_v53 = vld [vmem:[%s24216_s9 + $0x170] sm:$0xff]  ;;  %v10401_v39 = vld [vmem:[%s24218_s11 + $0x1b8] sm:$0xff] }
 0xa7a   : > { %v9688_v0 = vmax.f32 %v9263_v36, %v16126_v11  ;;  %v10373_v36 = vld [vmem:[%s24218_s11 + $0xd8] sm:$0xff]  ;;  %v10156_v11 = vld [vmem:[%s24216_s9 + $0x150] sm:$0xff] }
 0xa7b   : > { %v16058_v30 = vpack.c.bf16 %v10373_v36, %v10372_v55  ;;  %v16028_v17 = vpack.c.bf16 %v10160_v53, %v10156_v11  ;;  %v10176_v55 = vld [vmem:[%s24216_s9 + $0x1f0] sm:$0xff]  ;;  %v10391_v11 = vld [vmem:[%s24218_s11 + $0x168] sm:$0xff] }
 0xa7c   : > { %v16036_v36 = vpack.c.bf16 %v10176_v55, %v10172_v49 }
 0xa7d   : > { %16059 = vmatprep.subr.bf16.mxu0 %v16058_v30  ;;  %v10359_v30 = vld [vmem:[%s24218_s11 + $0x68] sm:$0xff] }
 0xa7e   : > { %16061 = vmatpush3.bf16.msra.mxu0 %v16060_v25  ;;  %v16064_v37 = vpack.c.bf16 %v10359_v30, %v10358_v22  ;;  %v10360_v25 = vld [vmem:[%s24218_s11 + $0x70] sm:$0xff] }
 0xa7f   : > { %16063 = vmatprep.subr.bf16.mxu0 %v16062_v21  ;;  %v10361_v21 = vld [vmem:[%s24218_s11 + $0x78] sm:$0xff] }
 0xa82   : > { %16065 = vmatpush3.bf16.msra.mxu0 %v16064_v37 }
 0xa83   : > { %16067 = vmatprep.subr.bf16.mxu0 %v16066_v63  ;;  %v10191_v63 = vrot.slane %v10178_v38, %v25537_v10 }
 0xab7   : > { %v12836_v50 = vpop.f32.mrb[82].mxu0 }
 0xab8   : > { %v12837_v40 = vpop.f32.mrb[83].mxu0 }
 0xab9   : > { %v12838_v9 = vadd.f32 %v12837_v40, %v12836_v50  ;;  %v16068_v50 = vpack.c.bf16 %v10361_v21, %v10360_v25  ;;  %v10394_v40 = vld [vmem:[%s24218_s11 + $0x180] sm:$0xff] }
 0xaba   : > { %v25538_v25 = vld [vmem:[#allocation8_spill] sm:$0xff] }
 0xabb   : > { %v16128_v6 = vadd.f32 %v23725_v16, %v12838_v9  ;;  %v10125_v16 = vld [vmem:[%s24216_s9 + $0x58] sm:$0xff]  ;;  %v10395_v9 = vld [vmem:[%s24218_s11 + $0x188] sm:$0xff]  ;;  %16069 = vmatpush3.bf16.msra.mxu0 %v16068_v50  ;;  %v25539_v21 = vsub.s32 3, %v25538_v25 }
 0xabc   : > { %v16010_v45 = vpack.c.bf16 %v10129_v20, %v10125_v16  ;;  %v10381_v16 = vld [vmem:[%s24218_s11 + $0x118] sm:$0xff]  ;;  %v10398_v20 = vld [vmem:[%s24218_s11 + $0x1a0] sm:$0xff] }
 0xabd   : > { %v10195_v50 = vrot.slane %v10178_v38, %v25539_v21 }
 0xac7   : > { %v10105_v24 = vpop.f32.mrb[80].mxu0 }
 0xac8   : > { %v16129_v18 = vadd.f32 %v16128_v6, %v10105_v24  ;;  %v13165_v52 = vpop.f32.mrb[81].mxu0  ;;  %v16070_v6 = vpack.c.bf16 %v10395_v9, %v10394_v40  ;;  %v10378_v24 = vld [vmem:[%s24218_s11 + $0x100] sm:$0xff] }
 0xaca   : > { %v10110_v13 = vmax.f32 %v9688_v0, %v16129_v18  ;;  %v10164_v0 = vld [vmem:[%s24216_s9 + $0x190] sm:$0xff]  ;;  %v10379_v18 = vld [vmem:[%s24218_s11 + $0x108] sm:$0xff] }
 0xacb   : > { %v16032_v60 = vpack.c.bf16 %v10168_v48, %v10164_v0  ;;  %v16072_v52 = vpack.c.bf16 %v10379_v18, %v10378_v24  ;;  %v10393_v0 = vld [vmem:[%s24218_s11 + $0x178] sm:$0xff] }
 0xacc   : > { %v10112_v15 = vadd.f32 %v10111_v31, %v10110_v13  ;;  %v10396_v31 = vld [vmem:[%s24218_s11 + $0x190] sm:$0xff]  ;;  %v10397_v13 = vld [vmem:[%s24218_s11 + $0x198] sm:$0xff] }
 0xacd   : > { %v16074_v3 = vpack.c.bf16 %v10397_v13, %v10396_v31 }
 0xace   : > { %v10113_v61 = vmax.f32 %v10112_v15, 0.0  ;;  %v10399_v15 = vld [vmem:[%s24218_s11 + $0x1a8] sm:$0xff] }
 0xad0   : > { %10265 = vmatmul.mubr.f32.vlgmr.msra.gmra.mrb[56].mxu1 %v10113_v61 }
 0xad1   : > { %16009 = vmatpush1.bf16.msra.mxu1 %v16008_v5  ;;  %10335 = vmatprep.mubr.f32.mxu1 %v25396_v51  ;;  %v16016_v51 = vpack.c.bf16 %v10136_v1, %v10132_v42  ;;  %v16076_v5 = vpack.c.bf16 %v10381_v16, %v10380_v62  ;;  %v10385_v42 = vld [vmem:[%s24218_s11 + $0x138] sm:$0xff]  ;;  %v10402_v1 = vld [vmem:[%s24218_s11 + $0x1c0] sm:$0xff] }
 0xad2   : > { %16011 = vmatprep.subr.bf16.mxu1 %v16010_v45  ;;  %v10382_v45 = vld [vmem:[%s24218_s11 + $0x120] sm:$0xff] }
 0xad3   : > { %v16080_v35 = vpack.c.bf16 %v10383_v34, %v10382_v45 }
 0xad5   : > { %16013 = vmatpush1.bf16.msra.mxu1 %v16012_v32  ;;  %v16082_v32 = vpack.c.bf16 %v10401_v39, %v10400_v29 }
 0xad6   : > { %16015 = vmatprep.subr.bf16.mxu1 %v16014_v2  ;;  %v10384_v2 = vld [vmem:[%s24218_s11 + $0x130] sm:$0xff] }
 0xad7   : > { %v16084_v47 = vpack.c.bf16 %v10385_v42, %v10384_v2 }
 0xad9   : > { %16017 = vmatpush1.bf16.msra.mxu1 %v16016_v51  ;;  %v16086_v51 = vpack.c.bf16 %v10403_v28, %v10402_v1 }
 0xada   : > { %16019 = vmatprep.subr.bf16.mxu1 %v16018_v44  ;;  %v10386_v44 = vld [vmem:[%s24218_s11 + $0x140] sm:$0xff] }
 0xadb   : > { %v16088_v46 = vpack.c.bf16 %v10387_v56, %v10386_v44 }
 0xadd   : > { %16021 = vmatpush1.bf16.msra.mxu1 %v16020_v23  ;;  %v16090_v23 = vpack.c.bf16 %v10405_v26, %v10404_v58 }
 0xade   : > { %16023 = vmatprep.subr.bf16.mxu1 %v16022_v54  ;;  %v10388_v54 = vld [vmem:[%s24218_s11 + $0x150] sm:$0xff] }
 0xadf   : > { %v16092_v33 = vpack.c.bf16 %v10389_v19, %v10388_v54 }
 0xae1   : > { %16025 = vmatpush1.bf16.msra.mxu1 %v16024_v14  ;;  %v16094_v14 = vpack.c.bf16 %v10407_v8, %v10406_v7 }
 0xae2   : > { %16027 = vmatprep.subr.bf16.mxu1 %v16026_v57  ;;  %v10390_v57 = vld [vmem:[%s24218_s11 + $0x160] sm:$0xff] }
 0xae3   : > { %v16096_v53 = vpack.c.bf16 %v10391_v11, %v10390_v57 }
 0xae5   : > { %16029 = vmatpush1.bf16.msra.mxu1 %v16028_v17  ;;  %v16098_v17 = vpack.c.bf16 %v10409_v41, %v10408_v4 }
 0xae6   : > { %16031 = vmatprep.subr.bf16.mxu1 %v16030_v12  ;;  %v10392_v12 = vld [vmem:[%s24218_s11 + $0x170] sm:$0xff] }
 0xae7   : > { %v16100_v48 = vpack.c.bf16 %v10393_v0, %v10392_v12 }
 0xae9   : > { %16033 = vmatpush1.bf16.msra.mxu1 %v16032_v60  ;;  %v10183_v60 = vrot.slane %v10178_v38, %v25535_v27 }
 0xaea   : > { %16035 = vmatprep.subr.bf16.mxu1 %v16034_v43  ;;  %v25536_v43 = vld [vmem:[#allocation11_spill] sm:$0xff] }
 0xaeb   : > { %v10187_v49 = vrot.slane %v10178_v38, %v25536_v43 }
 0xaed   : > { %16037 = vmatpush1.bf16.msra.mxu1 %v16036_v36 }
 0xaee   : > { %16071 = vmatprep.subr.bf16.mxu1 %v16070_v6 }
 0xaf0   : > { %10336 = vmatmul.mubr.f32.vlgmr.msra.gmra.mrb[58].mxu1 %v10113_v61  ;;  %v16078_v61 = vpack.c.bf16 %v10399_v15, %v10398_v20 }
 0xaf1   : > { %16073 = vmatpush3.bf16.msra.mxu1 %v16072_v52 }
 0xaf2   : > { %16075 = vmatprep.subr.bf16.mxu1 %v16074_v3  ;;  %v10410_v3 = vld [vmem:[%s24219_s12] sm:$0x1] }
 0xaf5   : > { %16077 = vmatpush3.bf16.msra.mxu1 %v16076_v5 }
 0xaf6   : > { %16079 = vmatprep.subr.bf16.mxu1 %v16078_v61 }
 0xaf9   : > { %16081 = vmatpush3.bf16.msra.mxu1 %v16080_v35 }
 0xafa   : > { %16083 = vmatprep.subr.bf16.mxu1 %v16082_v32 }
 0xafd   : > { %16085 = vmatpush3.bf16.msra.mxu1 %v16084_v47 }
 0xafe   : > { %16087 = vmatprep.subr.bf16.mxu1 %v16086_v51 }
 0xb01   : > { %16089 = vmatpush3.bf16.msra.mxu1 %v16088_v46 }
 0xb02   : > { %16091 = vmatprep.subr.bf16.mxu1 %v16090_v23 }
 0xb05   : > { %16093 = vmatpush3.bf16.msra.mxu1 %v16092_v33 }
 0xb06   : > { %16095 = vmatprep.subr.bf16.mxu1 %v16094_v14 }
 0xb09   : > { %16097 = vmatpush3.bf16.msra.mxu1 %v16096_v53 }
 0xb0a   : > { %16099 = vmatprep.subr.bf16.mxu1 %v16098_v17 }
 0xb0d   : > { %16101 = vmatpush3.bf16.msra.mxu1 %v16100_v48 }
 0xba3   : > { %v10266_v55 = vpop.f32.mrb[56].mxu1 }
 0xba4   : > { %v10267_v36 = vadd.f32 %v10266_v55, %v10183_v60  ;;  %v10268_v22 = vpop.f32.mrb[57].mxu1 }
 0xba5   : > { %v10269_v30 = vadd.f32 %v10268_v22, %v10187_v49 }
 0xba6   : > { %v10342_v59 = vmax.f32 %v10267_v36, 0.0 }
 0xba7   : > { %v10343_v37 = vmax.f32 %v10269_v30, 0.0 }
 0xba9   : > { %10475 = vmatprep.mubr.f32.mxu0 %v10343_v37 }
 0xbaa   : > { %10476 = vmatmul.mubr.f32.vlgmr.msra.gmra.mrb[84].mxu0 %v10342_v59 }
 0xbc3   : > { %v10337_v40 = vpop.f32.mrb[58].mxu1 }
 0xbc4   : > { %v10338_v9 = vadd.f32 %v10337_v40, %v10191_v63  ;;  %v10339_v6 = vpop.f32.mrb[59].mxu1 }
 0xbc5   : > { %v10340_v24 = vadd.f32 %v10339_v6, %v10195_v50 }
 0xbc6   : > { %v10344_v52 = vmax.f32 %v10338_v9, 0.0 }
 0xbc7   : > { %v10345_v18 = vmax.f32 %v10340_v24, 0.0 }
 0xbc9   : > { %10545 = vmatprep.mubr.f32.mxu1 %v10345_v18 }
 0xbca   : > { %10546 = vmatmul.mubr.f32.vlgmr.msra.gmra.mrb[60].mxu1 %v10344_v52 }
 0xc7d   : > { %v12880_v31 = vpop.f32.mrb[84].mxu0 }
 0xc7e   : > { %v12881_v13 = vpop.f32.mrb[85].mxu0 }
 0xc7f   : > { %v12882_v62 = vadd.f32 %v12881_v13, %v12880_v31 }
 0xc81   : > { %v10478_v15 = vadd.f32 %v12882_v62, %v10410_v3 }
 0xc9d   : > { %v12915_v16 = vpop.f32.mrb[60].mxu1 }
 0xc9e   : > { %v12916_v20 = vpop.f32.mrb[61].mxu1 }
 0xc9f   : > { %v12917_v5 = vadd.f32 %v12916_v20, %v12915_v16 }
 0xca1   : > { %v10548_v61 = vadd.f32 %v12917_v5, %v10478_v15 }
 0xca3   : > { %v10552_v45 = vsel %vm10551_vm11, %v10548_v61, -inf }
 0xca4   : > { %10553 = vmax.xlane.f32.xlu0 %v10552_v45 }
 0xd31   : > { %v10554_v34 = vpop.xlane.xlu0 %10553 }
 0xd32   : > { %v10555_v29 = vsub.f32 %v10548_v61, %v10554_v34 }
 0xd34   : > { %v10556_v39 = vmul.f32 1.442695, %v10555_v29 }
 0xd36   : > { %16305 = vpow2.f32 %v10556_v39 }
 0xd40   : > { %v16306_v35 = vpop.eup %16305 }
 0xd41   : > { %v10558_v32 = vsel %vm10551_vm11, %v16306_v35, 0.0 }
 0xd42   : > { %10559 = vadd.xlane.f32.xlu0 %v10558_v32 }
 0xdcf   : > { %v10560_v2 = vpop.xlane.xlu0 %10559 }
 0xdd0   : > { %16307 = vlog2.f32 %v10560_v2 }
 0xdda   : > { %v16308_v42 = vpop.eup %16307 }
 0xddb   : > { %v10562_v1 = vmul.f32 0.6931472, %v16308_v42 }
 0xddd   : > { %v10563_v28 = vadd.f32 %v10562_v1, %v10554_v34 }
 0xddf   : > { %v10564_v47 = vsub.f32 %v10548_v61, %v10563_v28 }
 0xde1   : > { %10565 = vst.msk [vmem:[%s432_s0] sm:$0x1] %vm10551_vm11, %v10564_v47 }
 0xde2   : > { %16322 = shalt.err (!%p16319_p3)
}
 0xde3   : > { %s16323_s14 = scalar_lea.hbm %s24164_s20, 16  ;;  %s16327_s0 = scalar_lea.hbm %s24220_s13, 32 }
 0xde4   : > { %p16324_p4 = scmp.ne.s32.totalorder %s24164_s20, %s16323_s14  ;;  %p16328_p9 = scmp.lt.u32.totalorder %s24164_s20, %s24220_s13 }
 0xde5   : > { %p16329_p10 = scmp.lt.u32.totalorder %s16327_s0, %s16323_s14  ;;  %p16331_p12 = scmp.lt.u32.totalorder %s16323_s14, %s24164_s20 }
 0xde6   : > { %p16325_p7 = pnand %p16324_p4, %p16486_p5 }
 0xde7   : > { %p16330_p11 = por %p16329_p10, %p16328_p9 }
 0xde8   : > { %p16326_p8 = pneg %p16325_p7 }
 0xde9   : > { %p16332_p13 = por %p16331_p12, %p16330_p11 }
 0xdeb   : > { %p16333_p0 = pnand %p16332_p13, %p16326_p8 }
 0xded   : > { %16336 = shalt.err (!%p16333_p0)
}
 0xdee   : > { %16262 = dma.vmem_to_hbm [thread:$0]  (%p16486_p5), %s24166_s24, 16, %s24164_s20, %s10567_s22  }
 0xdef PF: > { %p16268_p1 = scmp.ge.s32.totalorder %s16371_s28, 2  ;;  %s10591_s21 = sand.u32 1, %s16359_s25  }
 0xdf0   : > { %s10592_s29 = scalar_lea.sflag [#allocation3], %s10591_s21 }
 0xdf1   : > { %p16265_p2 = pnand %p16268_p1, %p16490_p6 }
 0xdf3   : > { %16354 = dma.done.wait (!%p16265_p2), %s10592_s29, 16  }
 0xdf4   : > { %16356 = vsyncadd (!%p16265_p2), %s10592_s29, 4294967280  ;;  %s25540_s28 = sld [smem:[#allocation6_spill]]  ;;  %s25541_s23 = sld [smem:[#allocation5_spill]] }
 0xdf5   : > { %s25542_s27 = sld [smem:[#allocation7_spill]]  ;;  %s25543_s25 = smov %s16363_s26 }
 0xdfa   : > { %p23_p3 = scmp.ge.s32.totalorder %s25540_s28, 4   ;;  %s25544_s26 = smov %s25541_s23 }
 0xdfc   :  { %25 = sbr.rel (!%p23_p3) target bundleno = 5 (0x5), region = 131 }
 0xe03   :  { %10596 = vsyncpa [#allocation3], 1 }
 0xe04   :  { %10598 = vsyncpa [#allocation3 + $0x1], 1 }

</bundles_post_ra>
